<compile_context>
chip_gen: v7x
topology: tpu7x:2x2x1
jax: 0.10.0
libtpu: 0.0.40
codegen_flags: <defaults>
</compile_context>

<pallas_src>
import functools

import numpy as np
import jax
import jax.numpy as jnp
from jax import lax
from jax.experimental import pallas as pl
from jax.experimental.pallas import tpu as pltpu


# ---------------------------------------------------------------------------
# Blur filter (Pascal's triangle), identical to make_blur_kernel in PyTorch.
# ---------------------------------------------------------------------------
def _binom(n, k):
    if k <= 0 or n <= k:
        return 1
    return _binom(n - 1, k - 1) + _binom(n - 1, k)


def make_blur_kernel_np(filter_size=4):
    filt = np.array([_binom(filter_size - 1, j) for j in range(filter_size)],
                    dtype=np.float32)
    k = np.outer(filt, filt)
    return k / k.sum()


def _blur_taps_1d(filter_size=4):
    filt = np.array([_binom(filter_size - 1, j) for j in range(filter_size)],
                    dtype=np.float32)
    filt = filt / filt.sum()
    return tuple(float(v) for v in filt)


def _round_up(v, m):
    return (v + m - 1) // m * m


def _vmem_limit_bytes():
    # Generation-aware scoped-VMEM limit: leave headroom on v7x (64 MiB
    # physical), use most of v5e/v6e's 128 MiB.  Fallback keeps things safe.
    try:
        cap = pltpu.get_tpu_info().vmem_capacity_bytes
        return int(min(0.75 * cap, 100 * 1024 * 1024))
    except Exception:
        return 32 * 1024 * 1024


# ---------------------------------------------------------------------------
# The parity-plane layout.
#
# For a spatially padded tensor T of shape (2R, 2C, ch), the split tensor has
# rows laid out as  split[p*R + r, c, :] == T[2r + py, 2c + px, :]  with
# p = 2*py + px.  Every stage of the ResBlock (3x3 conv, separable 4-tap
# blur, stride-2 conv) can then be evaluated with unit-stride slices only,
# using:   T[2m + out_par + k]  ==  plane[(out_par+k) & 1][m + ((out_par+k)>>1)]
# ---------------------------------------------------------------------------
def _parity_split(t):
    n, hh, ww, ch = t.shape
    r, c = hh // 2, ww // 2
    t = jnp.transpose(t.reshape(n, r, 2, c, 2, ch), (0, 2, 4, 1, 3, 5))
    return t.reshape(n, 4 * r, c, ch)


# ---------------------------------------------------------------------------
# Fully fused ResBlock kernel (one batch element per grid step).
# ---------------------------------------------------------------------------
def _resblock_kernel(x_ref, w1_ref, b1_ref, w2_ref, b2_ref, ws_ref, o_ref,
                     h1p_scr, *, Ho, Wo, Cip, Cop, slope, gain1, fh):
    f32 = jnp.float32
    bf16 = jnp.bfloat16
    R1 = Ho + 1          # rows per input parity plane

    # -- zero only the 1-px halo of each h1p parity plane (interior is fully
    #    rewritten below).  Done every step so correctness does not depend on
    #    which TensorCore sees program_id==0 under megacore partitioning.
    zrow = jnp.zeros((1, Wo + 2, Cop), f32)
    zcol = jnp.zeros((Ho + 2, 1, Cop), f32)
    for p in range(4):
        h1p_scr[p, 0:1, :, :] = zrow
        h1p_scr[p, Ho + 1:Ho + 2, :, :] = zrow
        h1p_scr[p, :, 0:1, :] = zcol
        h1p_scr[p, :, Wo + 1:Wo + 2, :] = zcol

    # -- conv1 (fused im2col over parity planes) + bias + lrelu * sqrt(2) ----
    #    bf16 operands, f32 accumulation.
    for ry in range(2):
        for cx in range(2):
            acc = jnp.zeros((Ho * Wo, Cop), f32)
            for ky in range(3):
                for kx in range(3):
                    sp = 2 * ((ry + ky) & 1) + ((cx + kx) & 1)
                    dr, dc = (ry + ky) >> 1, (cx + kx) >> 1
                    patch = x_ref[0, sp * R1 + dr:sp * R1 + dr + Ho,
                                  dc:dc + Wo, :]
                    acc = acc + jnp.dot(patch.reshape(Ho * Wo, Cip),
                                        w1_ref[3 * ky + kx],
                                        preferred_element_type=f32)
            h1 = acc + b1_ref[...]
            h1 = jnp.where(h1 >= 0.0, h1, h1 * slope) * gain1
            # h1p plane (ry, cx) = h1 plane padded by 1 on each spatial side.
            h1p_scr[2 * ry + cx, 1:1 + Ho, 1:1 + Wo, :] = h1.reshape(Ho, Wo, Cop)

    # -- separable 4-tap binomial blur, evaluated per parity plane -----------
    # horizontal pass: hbt[(row_par, col_par)]
    hbt = {}
    for rp in range(2):
        pe = h1p_scr[2 * rp + 0]                       # (Ho+2, Wo+2, Cop)
        po = h1p_scr[2 * rp + 1]
        hbt[(rp, 0)] = (fh[0] * pe[:, 0:Wo + 1] + fh[1] * po[:, 0:Wo + 1]
                        + fh[2] * pe[:, 1:Wo + 2] + fh[3] * po[:, 1:Wo + 2])
        hbt[(rp, 1)] = (fh[0] * po[:, 0:Wo] + fh[1] * pe[:, 1:Wo + 1]
                        + fh[2] * po[:, 1:Wo + 1] + fh[3] * pe[:, 2:Wo + 2])
    # vertical pass: hb[(row_par, col_par)]
    hb = {}
    for cp in range(2):
        te = hbt[(0, cp)]                              # (Ho+2, *, Cop)
        to = hbt[(1, cp)]
        hb[(0, cp)] = (fh[0] * te[0:Ho + 1] + fh[1] * to[0:Ho + 1]
                       + fh[2] * te[1:Ho + 2] + fh[3] * to[1:Ho + 2])
        hb[(1, cp)] = (fh[0] * to[0:Ho] + fh[1] * te[1:Ho + 1]
                       + fh[2] * to[1:Ho + 1] + fh[3] * te[2:Ho + 2])

    # -- conv2 (stride 2, fused im2col over the blurred parity planes) -------
    acc2 = jnp.zeros((Ho * Wo, Cop), f32)
    for ky in range(3):
        for kx in range(3):
            patch = hb[(ky & 1, kx & 1)][(ky >> 1):(ky >> 1) + Ho,
                                         (kx >> 1):(kx >> 1) + Wo, :]
            acc2 = acc2 + jnp.dot(patch.reshape(Ho * Wo, Cop).astype(bf16),
                                  w2_ref[3 * ky + kx],
                                  preferred_element_type=f32)
    h2 = acc2 + b2_ref[...]
    h2 = jnp.where(h2 >= 0.0, h2, h2 * slope)          # act_gain = 1.0

    # -- skip branch: 4x4 blur of x evaluated at even (y, x) + 1x1 GEMM ------
    sh = []
    for rp in range(2):
        ae = x_ref[0, (2 * rp + 0) * R1:(2 * rp + 0) * R1 + R1, :, :].astype(f32)
        ao = x_ref[0, (2 * rp + 1) * R1:(2 * rp + 1) * R1 + R1, :, :].astype(f32)
        sh.append(fh[0] * ae[:, 0:Wo] + fh[1] * ao[:, 0:Wo]
                  + fh[2] * ae[:, 1:Wo + 1] + fh[3] * ao[:, 1:Wo + 1])
    sblur = (fh[0] * sh[0][0:Ho] + fh[1] * sh[1][0:Ho]
             + fh[2] * sh[0][1:Ho + 1] + fh[3] * sh[1][1:Ho + 1])
    s = jnp.dot(sblur.reshape(Ho * Wo, Cip).astype(bf16), ws_ref[...],
                preferred_element_type=f32)

    o_ref[0] = (h2 + s).reshape(Ho, Wo, Cop)


# ---------------------------------------------------------------------------
# ResBlock forward (Pallas path)
# ---------------------------------------------------------------------------
def resblock_forward(x_nchw, params, filter_size=4):
    assert filter_size == 4, "fused blur path is specialized to filter_size=4"
    fh = _blur_taps_1d(filter_size)

    x = jnp.transpose(x_nchw, (0, 2, 3, 1)).astype(jnp.float32)   # NHWC
    N, H, W, Cin = x.shape
    Cout = params["w1"].shape[0]
    assert H % 2 == 0 and W % 2 == 0
    Ho, Wo = H // 2, W // 2
    Cip, Cop = _round_up(Cin, 128), _round_up(Cout, 128)          # lane-dense

    # --- parameters: scale, tap-major, channel-pad, cast to bf16 ------------
    w1 = params["w1"] * params["s1"]
    w2 = params["w2"] * params["s2"]
    ws = params["wskip"] * params["sskip"]
    w1m = jnp.pad(jnp.transpose(w1, (2, 3, 1, 0)),
                  ((0, 0), (0, 0), (0, Cip - Cin), (0, Cop - Cout))
                  ).reshape(9, Cip, Cop).astype(jnp.bfloat16)
    w2m = jnp.pad(jnp.transpose(w2, (2, 3, 1, 0)),
                  ((0, 0), (0, 0), (0, Cop - Cout), (0, Cop - Cout))
                  ).reshape(9, Cop, Cop).astype(jnp.bfloat16)
    wsm = jnp.pad(jnp.transpose(ws, (2, 3, 1, 0)).reshape(Cin, Cout),
                  ((0, Cip - Cin), (0, Cop - Cout))).astype(jnp.bfloat16)
    b1p = jnp.pad(params["b1"], (0, Cop - Cout)).reshape(1, Cop).astype(jnp.float32)
    b2p = jnp.pad(params["b2"], (0, Cop - Cout)).reshape(1, Cop).astype(jnp.float32)

    # --- input: pad-1 spatially, 4-way parity split on the (cheap, unpadded)
    #     channel dim, then channel-pad to lane width and cast to bf16 --------
    xpad = jnp.pad(x, ((0, 0), (1, 1), (1, 1), (0, 0)))           # (N,H+2,W+2,Cin)
    xq = _parity_split(xpad)                                      # (N,4*(Ho+1),Wo+1,Cin)
    xq = jnp.pad(xq, ((0, 0), (0, 0), (0, 0), (0, Cip - Cin))).astype(jnp.bfloat16)

    kern = functools.partial(_resblock_kernel, Ho=Ho, Wo=Wo, Cip=Cip, Cop=Cop,
                             slope=0.2, gain1=float(np.sqrt(2.0)), fh=fh)
    out = pl.pallas_call(
        kern,
        out_shape=jax.ShapeDtypeStruct((N, Ho, Wo, Cop), jnp.float32),
        grid=(N,),
        in_specs=[pl.BlockSpec((1, 4 * (Ho + 1), Wo + 1, Cip),
                               lambda i: (i, 0, 0, 0)),
                  pl.BlockSpec((9, Cip, Cop), lambda i: (0, 0, 0)),
                  pl.BlockSpec((1, Cop), lambda i: (0, 0)),
                  pl.BlockSpec((9, Cop, Cop), lambda i: (0, 0, 0)),
                  pl.BlockSpec((1, Cop), lambda i: (0, 0)),
                  pl.BlockSpec((Cip, Cop), lambda i: (0, 0))],
        out_specs=pl.BlockSpec((1, Ho, Wo, Cop), lambda i: (i, 0, 0, 0)),
        scratch_shapes=[pltpu.VMEM((4, Ho + 2, Wo + 2, Cop), jnp.float32)],
        compiler_params=pltpu.CompilerParams(
            dimension_semantics=("parallel",),
            vmem_limit_bytes=_vmem_limit_bytes()),
    )(xq, w1m, b1p, w2m, b2p, wsm)

    out = out[:, :, :, :Cout]                    # drop channel padding
    return jnp.transpose(out, (0, 3, 1, 2))      # NCHW only at the API edge


# ---------------------------------------------------------------------------
# Pure lax reference (mirrors torch conv2d_resample / bias_act semantics)
# ---------------------------------------------------------------------------
def resblock_reference(x, params, filter_size=4):
    f = jnp.asarray(make_blur_kernel_np(filter_size))

    def conv(z, w, stride, pad):
        return lax.conv_general_dilated(
            z, w, (stride, stride), ((pad, pad), (pad, pad)),
            dimension_numbers=("NCHW", "OIHW", "NCHW"))

    def blur(z, pad):
        c = z.shape[1]
        k = jnp.tile(f[None, None], (c, 1, 1, 1))
        return lax.conv_general_dilated(
            z, k, (1, 1), ((pad, pad), (pad, pad)),
            dimension_numbers=("NCHW", "OIHW", "NCHW"),
            feature_group_count=c)

    lrelu = lambda v: jnp.where(v >= 0, v, 0.2 * v)

    w1 = params["w1"] * params["s1"]
    w2 = params["w2"] * params["s2"]
    ws = params["wskip"] * params["sskip"]

    h = lrelu(conv(x, w1, 1, 1) + params["b1"][None, :, None, None]) * np.sqrt(2.0)
    h = blur(h, 2)
    h = lrelu(conv(h, w2, 2, 0) + params["b2"][None, :, None, None])
    s = blur(x, 1)[:, :, ::2, ::2]
    s = conv(s, ws, 1, 0)
    return h + s


# ---------------------------------------------------------------------------
if __name__ == "__main__":
    key = jax.random.PRNGKey(0)
    N, Cin, Cout, H, W = 2, 4, 8, 16, 16
    k1, k2, k3, kx = jax.random.split(key, 4)

    params = {
        "w1": jax.random.normal(k1, (Cout, Cin, 3, 3), jnp.float32),
        "b1": jnp.zeros((Cout,), jnp.float32),
        "s1": 1.0 / float(np.sqrt(Cin * 3 * 3)),
        "w2": jax.random.normal(k2, (Cout, Cout, 3, 3), jnp.float32),
        "b2": jnp.zeros((Cout,), jnp.float32),
        "s2": 1.0 / float(np.sqrt(Cout * 3 * 3)),
        "wskip": jax.random.normal(k3, (Cout, Cin, 1, 1), jnp.float32),
        "sskip": 1.0 / float(np.sqrt(Cin * 1 * 1)),
    }
    x = jax.random.normal(kx, (N, Cin, H, W), jnp.float32)

    fwd = jax.jit(resblock_forward)
    out = jax.block_until_ready(fwd(x, params))

    # Reference with bf16-rounded inputs/weights (the kernel feeds the MXU in
    # bf16 with f32 accumulation); tolerance covers the remaining in-kernel
    # bf16 re-rounding of the conv2 / skip GEMM operands.
    def _bf16(v):
        return jnp.asarray(v, jnp.float32).astype(jnp.bfloat16).astype(jnp.float32)

    params_ref = dict(params)
    params_ref["w1"], params_ref["s1"] = _bf16(params["w1"] * params["s1"]), 1.0
    params_ref["w2"], params_ref["s2"] = _bf16(params["w2"] * params["s2"]), 1.0
    params_ref["wskip"], params_ref["sskip"] = (
        _bf16(params["wskip"] * params["sskip"]), 1.0)
    ref = jax.block_until_ready(resblock_reference(_bf16(x), params_ref))

    assert out.shape == (N, Cout, H // 2, W // 2), out.shape
    np.testing.assert_allclose(np.asarray(out), np.asarray(ref),
                               rtol=3e-2, atol=3e-2)
    print("KERNEL_OK")
</pallas_src>

<mosaic_0001>
module attributes {stable_mosaic.version = 11 : i64} {
  func.func @_resblock_kernel(%arg0: i32, %arg1: memref<1x36x9x128xbf16, #tpu.memory_space<vmem>>, %arg2: memref<9x128x128xbf16, #tpu.memory_space<vmem>>, %arg3: memref<1x128xf32, #tpu.memory_space<vmem>>, %arg4: memref<9x128x128xbf16, #tpu.memory_space<vmem>>, %arg5: memref<1x128xf32, #tpu.memory_space<vmem>>, %arg6: memref<128x128xbf16, #tpu.memory_space<vmem>>, %arg7: memref<1x8x8x128xf32, #tpu.memory_space<vmem>>, %arg8: memref<4x10x10x128xf32, #tpu.memory_space<vmem>>) attributes {dimension_semantics = [#tpu.dimension_semantics<parallel>], iteration_bounds = array<i64: 2>, scalar_prefetch = 0 : i64, scratch_operands = 1 : i64, tpu.core_type = #tpu.core_type<tc>, window_params = [{transform_indices = @transform_0, window_bounds = array<i64: 1, 36, 9, 128>}, {pipeline_mode = #tpu.pipeline_mode<synchronous>, transform_indices = @transform_1, window_bounds = array<i64: 9, 128, 128>}, {pipeline_mode = #tpu.pipeline_mode<synchronous>, transform_indices = @transform_2, window_bounds = array<i64: 1, 128>}, {pipeline_mode = #tpu.pipeline_mode<synchronous>, transform_indices = @transform_3, window_bounds = array<i64: 9, 128, 128>}, {pipeline_mode = #tpu.pipeline_mode<synchronous>, transform_indices = @transform_4, window_bounds = array<i64: 1, 128>}, {pipeline_mode = #tpu.pipeline_mode<synchronous>, transform_indices = @transform_5, window_bounds = array<i64: 128, 128>}, {transform_indices = @transform_6, window_bounds = array<i64: 1, 8, 8, 128>}]} {
    %cst = arith.constant 0.000000e+00 : f32
    %0 = vector.broadcast %cst : f32 to vector<1x10x128xf32>
    %cst_0 = arith.constant 0.000000e+00 : f32
    %1 = vector.broadcast %cst_0 : f32 to vector<10x1x128xf32>
    %c0 = arith.constant 0 : index
    %c0_1 = arith.constant 0 : index
    %c0_2 = arith.constant 0 : index
    %c0_3 = arith.constant 0 : index
    %2 = vector.load %arg8[%c0, %c0_1, %c0_2, %c0_3] : memref<4x10x10x128xf32, #tpu.memory_space<vmem>>, vector<1x1x10x128xf32>
    %3 = vector.shape_cast %2 : vector<1x1x10x128xf32> to vector<1x10x128xf32>
    %4 = vector.shape_cast %0 : vector<1x10x128xf32> to vector<1x1x10x128xf32>
    tpu.vector_store %arg8[%c0, %c0_1, %c0_2, %c0_3], %4 {strides = array<i32>} : memref<4x10x10x128xf32, #tpu.memory_space<vmem>>, vector<1x1x10x128xf32>,
    %c0_4 = arith.constant 0 : index
    %c9 = arith.constant 9 : index
    %c0_5 = arith.constant 0 : index
    %c0_6 = arith.constant 0 : index
    %5 = vector.load %arg8[%c0_4, %c9, %c0_5, %c0_6] : memref<4x10x10x128xf32, #tpu.memory_space<vmem>>, vector<1x1x10x128xf32>
    %6 = vector.shape_cast %5 : vector<1x1x10x128xf32> to vector<1x10x128xf32>
    %7 = vector.shape_cast %0 : vector<1x10x128xf32> to vector<1x1x10x128xf32>
    tpu.vector_store %arg8[%c0_4, %c9, %c0_5, %c0_6], %7 {strides = array<i32>} : memref<4x10x10x128xf32, #tpu.memory_space<vmem>>, vector<1x1x10x128xf32>,
    %c0_7 = arith.constant 0 : index
    %c0_8 = arith.constant 0 : index
    %c0_9 = arith.constant 0 : index
    %c0_10 = arith.constant 0 : index
    %8 = vector.load %arg8[%c0_7, %c0_8, %c0_9, %c0_10] : memref<4x10x10x128xf32, #tpu.memory_space<vmem>>, vector<1x10x1x128xf32>
    %9 = vector.shape_cast %8 : vector<1x10x1x128xf32> to vector<10x1x128xf32>
    %10 = vector.shape_cast %1 : vector<10x1x128xf32> to vector<1x10x1x128xf32>
    tpu.vector_store %arg8[%c0_7, %c0_8, %c0_9, %c0_10], %10 {strides = array<i32>} : memref<4x10x10x128xf32, #tpu.memory_space<vmem>>, vector<1x10x1x128xf32>,
    %c0_11 = arith.constant 0 : index
    %c0_12 = arith.constant 0 : index
    %c9_13 = arith.constant 9 : index
    %c0_14 = arith.constant 0 : index
    %11 = vector.load %arg8[%c0_11, %c0_12, %c9_13, %c0_14] : memref<4x10x10x128xf32, #tpu.memory_space<vmem>>, vector<1x10x1x128xf32>
    %12 = vector.shape_cast %11 : vector<1x10x1x128xf32> to vector<10x1x128xf32>
    %13 = vector.shape_cast %1 : vector<10x1x128xf32> to vector<1x10x1x128xf32>
    tpu.vector_store %arg8[%c0_11, %c0_12, %c9_13, %c0_14], %13 {strides = array<i32>} : memref<4x10x10x128xf32, #tpu.memory_space<vmem>>, vector<1x10x1x128xf32>,
    %c1 = arith.constant 1 : index
    %c0_15 = arith.constant 0 : index
    %c0_16 = arith.constant 0 : index
    %c0_17 = arith.constant 0 : index
    %14 = vector.load %arg8[%c1, %c0_15, %c0_16, %c0_17] : memref<4x10x10x128xf32, #tpu.memory_space<vmem>>, vector<1x1x10x128xf32>
    %15 = vector.shape_cast %14 : vector<1x1x10x128xf32> to vector<1x10x128xf32>
    %16 = vector.shape_cast %0 : vector<1x10x128xf32> to vector<1x1x10x128xf32>
    tpu.vector_store %arg8[%c1, %c0_15, %c0_16, %c0_17], %16 {strides = array<i32>} : memref<4x10x10x128xf32, #tpu.memory_space<vmem>>, vector<1x1x10x128xf32>,
    %c1_18 = arith.constant 1 : index
    %c9_19 = arith.constant 9 : index
    %c0_20 = arith.constant 0 : index
    %c0_21 = arith.constant 0 : index
    %17 = vector.load %arg8[%c1_18, %c9_19, %c0_20, %c0_21] : memref<4x10x10x128xf32, #tpu.memory_space<vmem>>, vector<1x1x10x128xf32>
    %18 = vector.shape_cast %17 : vector<1x1x10x128xf32> to vector<1x10x128xf32>
    %19 = vector.shape_cast %0 : vector<1x10x128xf32> to vector<1x1x10x128xf32>
    tpu.vector_store %arg8[%c1_18, %c9_19, %c0_20, %c0_21], %19 {strides = array<i32>} : memref<4x10x10x128xf32, #tpu.memory_space<vmem>>, vector<1x1x10x128xf32>,
    %c1_22 = arith.constant 1 : index
    %c0_23 = arith.constant 0 : index
    %c0_24 = arith.constant 0 : index
    %c0_25 = arith.constant 0 : index
    %20 = vector.load %arg8[%c1_22, %c0_23, %c0_24, %c0_25] : memref<4x10x10x128xf32, #tpu.memory_space<vmem>>, vector<1x10x1x128xf32>
    %21 = vector.shape_cast %20 : vector<1x10x1x128xf32> to vector<10x1x128xf32>
    %22 = vector.shape_cast %1 : vector<10x1x128xf32> to vector<1x10x1x128xf32>
    tpu.vector_store %arg8[%c1_22, %c0_23, %c0_24, %c0_25], %22 {strides = array<i32>} : memref<4x10x10x128xf32, #tpu.memory_space<vmem>>, vector<1x10x1x128xf32>,
    %c1_26 = arith.constant 1 : index
    %c0_27 = arith.constant 0 : index
    %c9_28 = arith.constant 9 : index
    %c0_29 = arith.constant 0 : index
    %23 = vector.load %arg8[%c1_26, %c0_27, %c9_28, %c0_29] : memref<4x10x10x128xf32, #tpu.memory_space<vmem>>, vector<1x10x1x128xf32>
    %24 = vector.shape_cast %23 : vector<1x10x1x128xf32> to vector<10x1x128xf32>
    %25 = vector.shape_cast %1 : vector<10x1x128xf32> to vector<1x10x1x128xf32>
    tpu.vector_store %arg8[%c1_26, %c0_27, %c9_28, %c0_29], %25 {strides = array<i32>} : memref<4x10x10x128xf32, #tpu.memory_space<vmem>>, vector<1x10x1x128xf32>,
    %c2 = arith.constant 2 : index
    %c0_30 = arith.constant 0 : index
    %c0_31 = arith.constant 0 : index
    %c0_32 = arith.constant 0 : index
    %26 = vector.load %arg8[%c2, %c0_30, %c0_31, %c0_32] : memref<4x10x10x128xf32, #tpu.memory_space<vmem>>, vector<1x1x10x128xf32>
    %27 = vector.shape_cast %26 : vector<1x1x10x128xf32> to vector<1x10x128xf32>
    %28 = vector.shape_cast %0 : vector<1x10x128xf32> to vector<1x1x10x128xf32>
    tpu.vector_store %arg8[%c2, %c0_30, %c0_31, %c0_32], %28 {strides = array<i32>} : memref<4x10x10x128xf32, #tpu.memory_space<vmem>>, vector<1x1x10x128xf32>,
    %c2_33 = arith.constant 2 : index
    %c9_34 = arith.constant 9 : index
    %c0_35 = arith.constant 0 : index
    %c0_36 = arith.constant 0 : index
    %29 = vector.load %arg8[%c2_33, %c9_34, %c0_35, %c0_36] : memref<4x10x10x128xf32, #tpu.memory_space<vmem>>, vector<1x1x10x128xf32>
    %30 = vector.shape_cast %29 : vector<1x1x10x128xf32> to vector<1x10x128xf32>
    %31 = vector.shape_cast %0 : vector<1x10x128xf32> to vector<1x1x10x128xf32>
    tpu.vector_store %arg8[%c2_33, %c9_34, %c0_35, %c0_36], %31 {strides = array<i32>} : memref<4x10x10x128xf32, #tpu.memory_space<vmem>>, vector<1x1x10x128xf32>,
    %c2_37 = arith.constant 2 : index
    %c0_38 = arith.constant 0 : index
    %c0_39 = arith.constant 0 : index
    %c0_40 = arith.constant 0 : index
    %32 = vector.load %arg8[%c2_37, %c0_38, %c0_39, %c0_40] : memref<4x10x10x128xf32, #tpu.memory_space<vmem>>, vector<1x10x1x128xf32>
    %33 = vector.shape_cast %32 : vector<1x10x1x128xf32> to vector<10x1x128xf32>
    %34 = vector.shape_cast %1 : vector<10x1x128xf32> to vector<1x10x1x128xf32>
    tpu.vector_store %arg8[%c2_37, %c0_38, %c0_39, %c0_40], %34 {strides = array<i32>} : memref<4x10x10x128xf32, #tpu.memory_space<vmem>>, vector<1x10x1x128xf32>,
    %c2_41 = arith.constant 2 : index
    %c0_42 = arith.constant 0 : index
    %c9_43 = arith.constant 9 : index
    %c0_44 = arith.constant 0 : index
    %35 = vector.load %arg8[%c2_41, %c0_42, %c9_43, %c0_44] : memref<4x10x10x128xf32, #tpu.memory_space<vmem>>, vector<1x10x1x128xf32>
    %36 = vector.shape_cast %35 : vector<1x10x1x128xf32> to vector<10x1x128xf32>
    %37 = vector.shape_cast %1 : vector<10x1x128xf32> to vector<1x10x1x128xf32>
    tpu.vector_store %arg8[%c2_41, %c0_42, %c9_43, %c0_44], %37 {strides = array<i32>} : memref<4x10x10x128xf32, #tpu.memory_space<vmem>>, vector<1x10x1x128xf32>,
    %c3 = arith.constant 3 : index
    %c0_45 = arith.constant 0 : index
    %c0_46 = arith.constant 0 : index
    %c0_47 = arith.constant 0 : index
    %38 = vector.load %arg8[%c3, %c0_45, %c0_46, %c0_47] : memref<4x10x10x128xf32, #tpu.memory_space<vmem>>, vector<1x1x10x128xf32>
    %39 = vector.shape_cast %38 : vector<1x1x10x128xf32> to vector<1x10x128xf32>
    %40 = vector.shape_cast %0 : vector<1x10x128xf32> to vector<1x1x10x128xf32>
    tpu.vector_store %arg8[%c3, %c0_45, %c0_46, %c0_47], %40 {strides = array<i32>} : memref<4x10x10x128xf32, #tpu.memory_space<vmem>>, vector<1x1x10x128xf32>,
    %c3_48 = arith.constant 3 : index
    %c9_49 = arith.constant 9 : index
    %c0_50 = arith.constant 0 : index
    %c0_51 = arith.constant 0 : index
    %41 = vector.load %arg8[%c3_48, %c9_49, %c0_50, %c0_51] : memref<4x10x10x128xf32, #tpu.memory_space<vmem>>, vector<1x1x10x128xf32>
    %42 = vector.shape_cast %41 : vector<1x1x10x128xf32> to vector<1x10x128xf32>
    %43 = vector.shape_cast %0 : vector<1x10x128xf32> to vector<1x1x10x128xf32>
    tpu.vector_store %arg8[%c3_48, %c9_49, %c0_50, %c0_51], %43 {strides = array<i32>} : memref<4x10x10x128xf32, #tpu.memory_space<vmem>>, vector<1x1x10x128xf32>,
    %c3_52 = arith.constant 3 : index
    %c0_53 = arith.constant 0 : index
    %c0_54 = arith.constant 0 : index
    %c0_55 = arith.constant 0 : index
    %44 = vector.load %arg8[%c3_52, %c0_53, %c0_54, %c0_55] : memref<4x10x10x128xf32, #tpu.memory_space<vmem>>, vector<1x10x1x128xf32>
    %45 = vector.shape_cast %44 : vector<1x10x1x128xf32> to vector<10x1x128xf32>
    %46 = vector.shape_cast %1 : vector<10x1x128xf32> to vector<1x10x1x128xf32>
    tpu.vector_store %arg8[%c3_52, %c0_53, %c0_54, %c0_55], %46 {strides = array<i32>} : memref<4x10x10x128xf32, #tpu.memory_space<vmem>>, vector<1x10x1x128xf32>,
    %c3_56 = arith.constant 3 : index
    %c0_57 = arith.constant 0 : index
    %c9_58 = arith.constant 9 : index
    %c0_59 = arith.constant 0 : index
    %47 = vector.load %arg8[%c3_56, %c0_57, %c9_58, %c0_59] : memref<4x10x10x128xf32, #tpu.memory_space<vmem>>, vector<1x10x1x128xf32>
    %48 = vector.shape_cast %47 : vector<1x10x1x128xf32> to vector<10x1x128xf32>
    %49 = vector.shape_cast %1 : vector<10x1x128xf32> to vector<1x10x1x128xf32>
    tpu.vector_store %arg8[%c3_56, %c0_57, %c9_58, %c0_59], %49 {strides = array<i32>} : memref<4x10x10x128xf32, #tpu.memory_space<vmem>>, vector<1x10x1x128xf32>,
    %cst_60 = arith.constant 0.000000e+00 : f32
    %50 = vector.broadcast %cst_60 : f32 to vector<64x128xf32>
    %c0_61 = arith.constant 0 : index
    %c0_62 = arith.constant 0 : index
    %c0_63 = arith.constant 0 : index
    %c0_64 = arith.constant 0 : index
    %51 = vector.load %arg1[%c0_61, %c0_62, %c0_63, %c0_64] : memref<1x36x9x128xbf16, #tpu.memory_space<vmem>>, vector<1x8x8x128xbf16>
    %52 = vector.shape_cast %51 : vector<1x8x8x128xbf16> to vector<8x8x128xbf16>
    %53 = vector.shape_cast %52 : vector<8x8x128xbf16> to vector<64x128xbf16>
    %c0_65 = arith.constant 0 : index
    %c0_66 = arith.constant 0 : index
    %c0_67 = arith.constant 0 : index
    %54 = vector.load %arg2[%c0_65, %c0_66, %c0_67] : memref<9x128x128xbf16, #tpu.memory_space<vmem>>, vector<1x128x128xbf16>
    %55 = vector.shape_cast %54 : vector<1x128x128xbf16> to vector<128x128xbf16>
    %cst_68 = arith.constant dense<0.000000e+00> : vector<64x128xf32>
    %56 = tpu.matmul %53, %55, %cst_68 {dimension_numbers = #tpu.dot_dimension_numbers<[1], [0], [0], [1], [0, 0, 1, 1], [], []>} : vector<64x128xbf16>, vector<128x128xbf16>, vector<64x128xf32> -> vector<64x128xf32>
    %57 = arith.addf %50, %56 : vector<64x128xf32>
    %c0_69 = arith.constant 0 : index
    %c9_70 = arith.constant 9 : index
    %c0_71 = arith.constant 0 : index
    %c0_72 = arith.constant 0 : index
    %58 = vector.load %arg1[%c0_69, %c9_70, %c0_71, %c0_72] : memref<1x36x9x128xbf16, #tpu.memory_space<vmem>>, vector<1x8x8x128xbf16>
    %59 = vector.shape_cast %58 : vector<1x8x8x128xbf16> to vector<8x8x128xbf16>
    %60 = vector.shape_cast %59 : vector<8x8x128xbf16> to vector<64x128xbf16>
    %c1_73 = arith.constant 1 : index
    %c0_74 = arith.constant 0 : index
    %c0_75 = arith.constant 0 : index
    %61 = vector.load %arg2[%c1_73, %c0_74, %c0_75] : memref<9x128x128xbf16, #tpu.memory_space<vmem>>, vector<1x128x128xbf16>
    %62 = vector.shape_cast %61 : vector<1x128x128xbf16> to vector<128x128xbf16>
    %cst_76 = arith.constant dense<0.000000e+00> : vector<64x128xf32>
    %63 = tpu.matmul %60, %62, %cst_76 {dimension_numbers = #tpu.dot_dimension_numbers<[1], [0], [0], [1], [0, 0, 1, 1], [], []>} : vector<64x128xbf16>, vector<128x128xbf16>, vector<64x128xf32> -> vector<64x128xf32>
    %64 = arith.addf %57, %63 : vector<64x128xf32>
    %c0_77 = arith.constant 0 : index
    %c0_78 = arith.constant 0 : index
    %c1_79 = arith.constant 1 : index
    %c0_80 = arith.constant 0 : index
    %65 = vector.load %arg1[%c0_77, %c0_78, %c1_79, %c0_80] : memref<1x36x9x128xbf16, #tpu.memory_space<vmem>>, vector<1x8x8x128xbf16>
    %66 = vector.shape_cast %65 : vector<1x8x8x128xbf16> to vector<8x8x128xbf16>
    %67 = vector.shape_cast %66 : vector<8x8x128xbf16> to vector<64x128xbf16>
    %c2_81 = arith.constant 2 : index
    %c0_82 = arith.constant 0 : index
    %c0_83 = arith.constant 0 : index
    %68 = vector.load %arg2[%c2_81, %c0_82, %c0_83] : memref<9x128x128xbf16, #tpu.memory_space<vmem>>, vector<1x128x128xbf16>
    %69 = vector.shape_cast %68 : vector<1x128x128xbf16> to vector<128x128xbf16>
    %cst_84 = arith.constant dense<0.000000e+00> : vector<64x128xf32>
    %70 = tpu.matmul %67, %69, %cst_84 {dimension_numbers = #tpu.dot_dimension_numbers<[1], [0], [0], [1], [0, 0, 1, 1], [], []>} : vector<64x128xbf16>, vector<128x128xbf16>, vector<64x128xf32> -> vector<64x128xf32>
    %71 = arith.addf %64, %70 : vector<64x128xf32>
    %c0_85 = arith.constant 0 : index
    %c18 = arith.constant 18 : index
    %c0_86 = arith.constant 0 : index
    %c0_87 = arith.constant 0 : index
    %72 = vector.load %arg1[%c0_85, %c18, %c0_86, %c0_87] : memref<1x36x9x128xbf16, #tpu.memory_space<vmem>>, vector<1x8x8x128xbf16>
    %73 = vector.shape_cast %72 : vector<1x8x8x128xbf16> to vector<8x8x128xbf16>
    %74 = vector.shape_cast %73 : vector<8x8x128xbf16> to vector<64x128xbf16>
    %c3_88 = arith.constant 3 : index
    %c0_89 = arith.constant 0 : index
    %c0_90 = arith.constant 0 : index
    %75 = vector.load %arg2[%c3_88, %c0_89, %c0_90] : memref<9x128x128xbf16, #tpu.memory_space<vmem>>, vector<1x128x128xbf16>
    %76 = vector.shape_cast %75 : vector<1x128x128xbf16> to vector<128x128xbf16>
    %cst_91 = arith.constant dense<0.000000e+00> : vector<64x128xf32>
    %77 = tpu.matmul %74, %76, %cst_91 {dimension_numbers = #tpu.dot_dimension_numbers<[1], [0], [0], [1], [0, 0, 1, 1], [], []>} : vector<64x128xbf16>, vector<128x128xbf16>, vector<64x128xf32> -> vector<64x128xf32>
    %78 = arith.addf %71, %77 : vector<64x128xf32>
    %c0_92 = arith.constant 0 : index
    %c27 = arith.constant 27 : index
    %c0_93 = arith.constant 0 : index
    %c0_94 = arith.constant 0 : index
    %79 = vector.load %arg1[%c0_92, %c27, %c0_93, %c0_94] : memref<1x36x9x128xbf16, #tpu.memory_space<vmem>>, vector<1x8x8x128xbf16>
    %80 = vector.shape_cast %79 : vector<1x8x8x128xbf16> to vector<8x8x128xbf16>
    %81 = vector.shape_cast %80 : vector<8x8x128xbf16> to vector<64x128xbf16>
    %c4 = arith.constant 4 : index
    %c0_95 = arith.constant 0 : index
    %c0_96 = arith.constant 0 : index
    %82 = vector.load %arg2[%c4, %c0_95, %c0_96] : memref<9x128x128xbf16, #tpu.memory_space<vmem>>, vector<1x128x128xbf16>
    %83 = vector.shape_cast %82 : vector<1x128x128xbf16> to vector<128x128xbf16>
    %cst_97 = arith.constant dense<0.000000e+00> : vector<64x128xf32>
    %84 = tpu.matmul %81, %83, %cst_97 {dimension_numbers = #tpu.dot_dimension_numbers<[1], [0], [0], [1], [0, 0, 1, 1], [], []>} : vector<64x128xbf16>, vector<128x128xbf16>, vector<64x128xf32> -> vector<64x128xf32>
    %85 = arith.addf %78, %84 : vector<64x128xf32>
    %c0_98 = arith.constant 0 : index
    %c18_99 = arith.constant 18 : index
    %c1_100 = arith.constant 1 : index
    %c0_101 = arith.constant 0 : index
    %86 = vector.load %arg1[%c0_98, %c18_99, %c1_100, %c0_101] : memref<1x36x9x128xbf16, #tpu.memory_space<vmem>>, vector<1x8x8x128xbf16>
    %87 = vector.shape_cast %86 : vector<1x8x8x128xbf16> to vector<8x8x128xbf16>
    %88 = vector.shape_cast %87 : vector<8x8x128xbf16> to vector<64x128xbf16>
    %c5 = arith.constant 5 : index
    %c0_102 = arith.constant 0 : index
    %c0_103 = arith.constant 0 : index
    %89 = vector.load %arg2[%c5, %c0_102, %c0_103] : memref<9x128x128xbf16, #tpu.memory_space<vmem>>, vector<1x128x128xbf16>
    %90 = vector.shape_cast %89 : vector<1x128x128xbf16> to vector<128x128xbf16>
    %cst_104 = arith.constant dense<0.000000e+00> : vector<64x128xf32>
    %91 = tpu.matmul %88, %90, %cst_104 {dimension_numbers = #tpu.dot_dimension_numbers<[1], [0], [0], [1], [0, 0, 1, 1], [], []>} : vector<64x128xbf16>, vector<128x128xbf16>, vector<64x128xf32> -> vector<64x128xf32>
    %92 = arith.addf %85, %91 : vector<64x128xf32>
    %c0_105 = arith.constant 0 : index
    %c1_106 = arith.constant 1 : index
    %c0_107 = arith.constant 0 : index
    %c0_108 = arith.constant 0 : index
    %93 = vector.load %arg1[%c0_105, %c1_106, %c0_107, %c0_108] : memref<1x36x9x128xbf16, #tpu.memory_space<vmem>>, vector<1x8x8x128xbf16>
    %94 = vector.shape_cast %93 : vector<1x8x8x128xbf16> to vector<8x8x128xbf16>
    %95 = vector.shape_cast %94 : vector<8x8x128xbf16> to vector<64x128xbf16>
    %c6 = arith.constant 6 : index
    %c0_109 = arith.constant 0 : index
    %c0_110 = arith.constant 0 : index
    %96 = vector.load %arg2[%c6, %c0_109, %c0_110] : memref<9x128x128xbf16, #tpu.memory_space<vmem>>, vector<1x128x128xbf16>
    %97 = vector.shape_cast %96 : vector<1x128x128xbf16> to vector<128x128xbf16>
    %cst_111 = arith.constant dense<0.000000e+00> : vector<64x128xf32>
    %98 = tpu.matmul %95, %97, %cst_111 {dimension_numbers = #tpu.dot_dimension_numbers<[1], [0], [0], [1], [0, 0, 1, 1], [], []>} : vector<64x128xbf16>, vector<128x128xbf16>, vector<64x128xf32> -> vector<64x128xf32>
    %99 = arith.addf %92, %98 : vector<64x128xf32>
    %c0_112 = arith.constant 0 : index
    %c10 = arith.constant 10 : index
    %c0_113 = arith.constant 0 : index
    %c0_114 = arith.constant 0 : index
    %100 = vector.load %arg1[%c0_112, %c10, %c0_113, %c0_114] : memref<1x36x9x128xbf16, #tpu.memory_space<vmem>>, vector<1x8x8x128xbf16>
    %101 = vector.shape_cast %100 : vector<1x8x8x128xbf16> to vector<8x8x128xbf16>
    %102 = vector.shape_cast %101 : vector<8x8x128xbf16> to vector<64x128xbf16>
    %c7 = arith.constant 7 : index
    %c0_115 = arith.constant 0 : index
    %c0_116 = arith.constant 0 : index
    %103 = vector.load %arg2[%c7, %c0_115, %c0_116] : memref<9x128x128xbf16, #tpu.memory_space<vmem>>, vector<1x128x128xbf16>
    %104 = vector.shape_cast %103 : vector<1x128x128xbf16> to vector<128x128xbf16>
    %cst_117 = arith.constant dense<0.000000e+00> : vector<64x128xf32>
    %105 = tpu.matmul %102, %104, %cst_117 {dimension_numbers = #tpu.dot_dimension_numbers<[1], [0], [0], [1], [0, 0, 1, 1], [], []>} : vector<64x128xbf16>, vector<128x128xbf16>, vector<64x128xf32> -> vector<64x128xf32>
    %106 = arith.addf %99, %105 : vector<64x128xf32>
    %c0_118 = arith.constant 0 : index
    %c1_119 = arith.constant 1 : index
    %c1_120 = arith.constant 1 : index
    %c0_121 = arith.constant 0 : index
    %107 = vector.load %arg1[%c0_118, %c1_119, %c1_120, %c0_121] : memref<1x36x9x128xbf16, #tpu.memory_space<vmem>>, vector<1x8x8x128xbf16>
    %108 = vector.shape_cast %107 : vector<1x8x8x128xbf16> to vector<8x8x128xbf16>
    %109 = vector.shape_cast %108 : vector<8x8x128xbf16> to vector<64x128xbf16>
    %c8 = arith.constant 8 : index
    %c0_122 = arith.constant 0 : index
    %c0_123 = arith.constant 0 : index
    %110 = vector.load %arg2[%c8, %c0_122, %c0_123] : memref<9x128x128xbf16, #tpu.memory_space<vmem>>, vector<1x128x128xbf16>
    %111 = vector.shape_cast %110 : vector<1x128x128xbf16> to vector<128x128xbf16>
    %cst_124 = arith.constant dense<0.000000e+00> : vector<64x128xf32>
    %112 = tpu.matmul %109, %111, %cst_124 {dimension_numbers = #tpu.dot_dimension_numbers<[1], [0], [0], [1], [0, 0, 1, 1], [], []>} : vector<64x128xbf16>, vector<128x128xbf16>, vector<64x128xf32> -> vector<64x128xf32>
    %113 = arith.addf %106, %112 : vector<64x128xf32>
    %c0_125 = arith.constant 0 : index
    %c0_126 = arith.constant 0 : index
    %114 = vector.load %arg3[%c0_125, %c0_126] : memref<1x128xf32, #tpu.memory_space<vmem>>, vector<1x128xf32>
    %115 = vector.broadcast %114 : vector<1x128xf32> to vector<64x128xf32>
    %116 = arith.addf %113, %115 : vector<64x128xf32>
    %cst_127 = arith.constant 0.000000e+00 : f32
    %117 = vector.broadcast %cst_127 : f32 to vector<64x128xf32>
    %118 = arith.cmpf oge, %116, %117 : vector<64x128xf32>
    %cst_128 = arith.constant 2.000000e-01 : f32
    %119 = vector.broadcast %cst_128 : f32 to vector<64x128xf32>
    %120 = arith.mulf %116, %119 : vector<64x128xf32>
    %121 = arith.select %118, %116, %120 : vector<64x128xi1>, vector<64x128xf32>
    %cst_129 = arith.constant 1.41421354 : f32
    %122 = vector.broadcast %cst_129 : f32 to vector<64x128xf32>
    %123 = arith.mulf %121, %122 : vector<64x128xf32>
    %124 = vector.shape_cast %123 : vector<64x128xf32> to vector<8x8x128xf32>
    %c0_130 = arith.constant 0 : index
    %c1_131 = arith.constant 1 : index
    %c1_132 = arith.constant 1 : index
    %c0_133 = arith.constant 0 : index
    %125 = vector.load %arg8[%c0_130, %c1_131, %c1_132, %c0_133] : memref<4x10x10x128xf32, #tpu.memory_space<vmem>>, vector<1x8x8x128xf32>
    %126 = vector.shape_cast %125 : vector<1x8x8x128xf32> to vector<8x8x128xf32>
    %127 = vector.shape_cast %124 : vector<8x8x128xf32> to vector<1x8x8x128xf32>
    tpu.vector_store %arg8[%c0_130, %c1_131, %c1_132, %c0_133], %127 {strides = array<i32>} : memref<4x10x10x128xf32, #tpu.memory_space<vmem>>, vector<1x8x8x128xf32>,
    %cst_134 = arith.constant 0.000000e+00 : f32
    %128 = vector.broadcast %cst_134 : f32 to vector<64x128xf32>
    %c0_135 = arith.constant 0 : index
    %c9_136 = arith.constant 9 : index
    %c0_137 = arith.constant 0 : index
    %c0_138 = arith.constant 0 : index
    %129 = vector.load %arg1[%c0_135, %c9_136, %c0_137, %c0_138] : memref<1x36x9x128xbf16, #tpu.memory_space<vmem>>, vector<1x8x8x128xbf16>
    %130 = vector.shape_cast %129 : vector<1x8x8x128xbf16> to vector<8x8x128xbf16>
    %131 = vector.shape_cast %130 : vector<8x8x128xbf16> to vector<64x128xbf16>
    %c0_139 = arith.constant 0 : index
    %c0_140 = arith.constant 0 : index
    %c0_141 = arith.constant 0 : index
    %132 = vector.load %arg2[%c0_139, %c0_140, %c0_141] : memref<9x128x128xbf16, #tpu.memory_space<vmem>>, vector<1x128x128xbf16>
    %133 = vector.shape_cast %132 : vector<1x128x128xbf16> to vector<128x128xbf16>
    %cst_142 = arith.constant dense<0.000000e+00> : vector<64x128xf32>
    %134 = tpu.matmul %131, %133, %cst_142 {dimension_numbers = #tpu.dot_dimension_numbers<[1], [0], [0], [1], [0, 0, 1, 1], [], []>} : vector<64x128xbf16>, vector<128x128xbf16>, vector<64x128xf32> -> vector<64x128xf32>
    %135 = arith.addf %128, %134 : vector<64x128xf32>
    %c0_143 = arith.constant 0 : index
    %c0_144 = arith.constant 0 : index
    %c1_145 = arith.constant 1 : index
    %c0_146 = arith.constant 0 : index
    %136 = vector.load %arg1[%c0_143, %c0_144, %c1_145, %c0_146] : memref<1x36x9x128xbf16, #tpu.memory_space<vmem>>, vector<1x8x8x128xbf16>
    %137 = vector.shape_cast %136 : vector<1x8x8x128xbf16> to vector<8x8x128xbf16>
    %138 = vector.shape_cast %137 : vector<8x8x128xbf16> to vector<64x128xbf16>
    %c1_147 = arith.constant 1 : index
    %c0_148 = arith.constant 0 : index
    %c0_149 = arith.constant 0 : index
    %139 = vector.load %arg2[%c1_147, %c0_148, %c0_149] : memref<9x128x128xbf16, #tpu.memory_space<vmem>>, vector<1x128x128xbf16>
    %140 = vector.shape_cast %139 : vector<1x128x128xbf16> to vector<128x128xbf16>
    %cst_150 = arith.constant dense<0.000000e+00> : vector<64x128xf32>
    %141 = tpu.matmul %138, %140, %cst_150 {dimension_numbers = #tpu.dot_dimension_numbers<[1], [0], [0], [1], [0, 0, 1, 1], [], []>} : vector<64x128xbf16>, vector<128x128xbf16>, vector<64x128xf32> -> vector<64x128xf32>
    %142 = arith.addf %135, %141 : vector<64x128xf32>
    %c0_151 = arith.constant 0 : index
    %c9_152 = arith.constant 9 : index
    %c1_153 = arith.constant 1 : index
    %c0_154 = arith.constant 0 : index
    %143 = vector.load %arg1[%c0_151, %c9_152, %c1_153, %c0_154] : memref<1x36x9x128xbf16, #tpu.memory_space<vmem>>, vector<1x8x8x128xbf16>
    %144 = vector.shape_cast %143 : vector<1x8x8x128xbf16> to vector<8x8x128xbf16>
    %145 = vector.shape_cast %144 : vector<8x8x128xbf16> to vector<64x128xbf16>
    %c2_155 = arith.constant 2 : index
    %c0_156 = arith.constant 0 : index
    %c0_157 = arith.constant 0 : index
    %146 = vector.load %arg2[%c2_155, %c0_156, %c0_157] : memref<9x128x128xbf16, #tpu.memory_space<vmem>>, vector<1x128x128xbf16>
    %147 = vector.shape_cast %146 : vector<1x128x128xbf16> to vector<128x128xbf16>
    %cst_158 = arith.constant dense<0.000000e+00> : vector<64x128xf32>
    %148 = tpu.matmul %145, %147, %cst_158 {dimension_numbers = #tpu.dot_dimension_numbers<[1], [0], [0], [1], [0, 0, 1, 1], [], []>} : vector<64x128xbf16>, vector<128x128xbf16>, vector<64x128xf32> -> vector<64x128xf32>
    %149 = arith.addf %142, %148 : vector<64x128xf32>
    %c0_159 = arith.constant 0 : index
    %c27_160 = arith.constant 27 : index
    %c0_161 = arith.constant 0 : index
    %c0_162 = arith.constant 0 : index
    %150 = vector.load %arg1[%c0_159, %c27_160, %c0_161, %c0_162] : memref<1x36x9x128xbf16, #tpu.memory_space<vmem>>, vector<1x8x8x128xbf16>
    %151 = vector.shape_cast %150 : vector<1x8x8x128xbf16> to vector<8x8x128xbf16>
    %152 = vector.shape_cast %151 : vector<8x8x128xbf16> to vector<64x128xbf16>
    %c3_163 = arith.constant 3 : index
    %c0_164 = arith.constant 0 : index
    %c0_165 = arith.constant 0 : index
    %153 = vector.load %arg2[%c3_163, %c0_164, %c0_165] : memref<9x128x128xbf16, #tpu.memory_space<vmem>>, vector<1x128x128xbf16>
    %154 = vector.shape_cast %153 : vector<1x128x128xbf16> to vector<128x128xbf16>
    %cst_166 = arith.constant dense<0.000000e+00> : vector<64x128xf32>
    %155 = tpu.matmul %152, %154, %cst_166 {dimension_numbers = #tpu.dot_dimension_numbers<[1], [0], [0], [1], [0, 0, 1, 1], [], []>} : vector<64x128xbf16>, vector<128x128xbf16>, vector<64x128xf32> -> vector<64x128xf32>
    %156 = arith.addf %149, %155 : vector<64x128xf32>
    %c0_167 = arith.constant 0 : index
    %c18_168 = arith.constant 18 : index
    %c1_169 = arith.constant 1 : index
    %c0_170 = arith.constant 0 : index
    %157 = vector.load %arg1[%c0_167, %c18_168, %c1_169, %c0_170] : memref<1x36x9x128xbf16, #tpu.memory_space<vmem>>, vector<1x8x8x128xbf16>
    %158 = vector.shape_cast %157 : vector<1x8x8x128xbf16> to vector<8x8x128xbf16>
    %159 = vector.shape_cast %158 : vector<8x8x128xbf16> to vector<64x128xbf16>
    %c4_171 = arith.constant 4 : index
    %c0_172 = arith.constant 0 : index
    %c0_173 = arith.constant 0 : index
    %160 = vector.load %arg2[%c4_171, %c0_172, %c0_173] : memref<9x128x128xbf16, #tpu.memory_space<vmem>>, vector<1x128x128xbf16>
    %161 = vector.shape_cast %160 : vector<1x128x128xbf16> to vector<128x128xbf16>
    %cst_174 = arith.constant dense<0.000000e+00> : vector<64x128xf32>
    %162 = tpu.matmul %159, %161, %cst_174 {dimension_numbers = #tpu.dot_dimension_numbers<[1], [0], [0], [1], [0, 0, 1, 1], [], []>} : vector<64x128xbf16>, vector<128x128xbf16>, vector<64x128xf32> -> vector<64x128xf32>
    %163 = arith.addf %156, %162 : vector<64x128xf32>
    %c0_175 = arith.constant 0 : index
    %c27_176 = arith.constant 27 : index
    %c1_177 = arith.constant 1 : index
    %c0_178 = arith.constant 0 : index
    %164 = vector.load %arg1[%c0_175, %c27_176, %c1_177, %c0_178] : memref<1x36x9x128xbf16, #tpu.memory_space<vmem>>, vector<1x8x8x128xbf16>
    %165 = vector.shape_cast %164 : vector<1x8x8x128xbf16> to vector<8x8x128xbf16>
    %166 = vector.shape_cast %165 : vector<8x8x128xbf16> to vector<64x128xbf16>
    %c5_179 = arith.constant 5 : index
    %c0_180 = arith.constant 0 : index
    %c0_181 = arith.constant 0 : index
    %167 = vector.load %arg2[%c5_179, %c0_180, %c0_181] : memref<9x128x128xbf16, #tpu.memory_space<vmem>>, vector<1x128x128xbf16>
    %168 = vector.shape_cast %167 : vector<1x128x128xbf16> to vector<128x128xbf16>
    %cst_182 = arith.constant dense<0.000000e+00> : vector<64x128xf32>
    %169 = tpu.matmul %166, %168, %cst_182 {dimension_numbers = #tpu.dot_dimension_numbers<[1], [0], [0], [1], [0, 0, 1, 1], [], []>} : vector<64x128xbf16>, vector<128x128xbf16>, vector<64x128xf32> -> vector<64x128xf32>
    %170 = arith.addf %163, %169 : vector<64x128xf32>
    %c0_183 = arith.constant 0 : index
    %c10_184 = arith.constant 10 : index
    %c0_185 = arith.constant 0 : index
    %c0_186 = arith.constant 0 : index
    %171 = vector.load %arg1[%c0_183, %c10_184, %c0_185, %c0_186] : memref<1x36x9x128xbf16, #tpu.memory_space<vmem>>, vector<1x8x8x128xbf16>
    %172 = vector.shape_cast %171 : vector<1x8x8x128xbf16> to vector<8x8x128xbf16>
    %173 = vector.shape_cast %172 : vector<8x8x128xbf16> to vector<64x128xbf16>
    %c6_187 = arith.constant 6 : index
    %c0_188 = arith.constant 0 : index
    %c0_189 = arith.constant 0 : index
    %174 = vector.load %arg2[%c6_187, %c0_188, %c0_189] : memref<9x128x128xbf16, #tpu.memory_space<vmem>>, vector<1x128x128xbf16>
    %175 = vector.shape_cast %174 : vector<1x128x128xbf16> to vector<128x128xbf16>
    %cst_190 = arith.constant dense<0.000000e+00> : vector<64x128xf32>
    %176 = tpu.matmul %173, %175, %cst_190 {dimension_numbers = #tpu.dot_dimension_numbers<[1], [0], [0], [1], [0, 0, 1, 1], [], []>} : vector<64x128xbf16>, vector<128x128xbf16>, vector<64x128xf32> -> vector<64x128xf32>
    %177 = arith.addf %170, %176 : vector<64x128xf32>
    %c0_191 = arith.constant 0 : index
    %c1_192 = arith.constant 1 : index
    %c1_193 = arith.constant 1 : index
    %c0_194 = arith.constant 0 : index
    %178 = vector.load %arg1[%c0_191, %c1_192, %c1_193, %c0_194] : memref<1x36x9x128xbf16, #tpu.memory_space<vmem>>, vector<1x8x8x128xbf16>
    %179 = vector.shape_cast %178 : vector<1x8x8x128xbf16> to vector<8x8x128xbf16>
    %180 = vector.shape_cast %179 : vector<8x8x128xbf16> to vector<64x128xbf16>
    %c7_195 = arith.constant 7 : index
    %c0_196 = arith.constant 0 : index
    %c0_197 = arith.constant 0 : index
    %181 = vector.load %arg2[%c7_195, %c0_196, %c0_197] : memref<9x128x128xbf16, #tpu.memory_space<vmem>>, vector<1x128x128xbf16>
    %182 = vector.shape_cast %181 : vector<1x128x128xbf16> to vector<128x128xbf16>
    %cst_198 = arith.constant dense<0.000000e+00> : vector<64x128xf32>
    %183 = tpu.matmul %180, %182, %cst_198 {dimension_numbers = #tpu.dot_dimension_numbers<[1], [0], [0], [1], [0, 0, 1, 1], [], []>} : vector<64x128xbf16>, vector<128x128xbf16>, vector<64x128xf32> -> vector<64x128xf32>
    %184 = arith.addf %177, %183 : vector<64x128xf32>
    %c0_199 = arith.constant 0 : index
    %c10_200 = arith.constant 10 : index
    %c1_201 = arith.constant 1 : index
    %c0_202 = arith.constant 0 : index
    %185 = vector.load %arg1[%c0_199, %c10_200, %c1_201, %c0_202] : memref<1x36x9x128xbf16, #tpu.memory_space<vmem>>, vector<1x8x8x128xbf16>
    %186 = vector.shape_cast %185 : vector<1x8x8x128xbf16> to vector<8x8x128xbf16>
    %187 = vector.shape_cast %186 : vector<8x8x128xbf16> to vector<64x128xbf16>
    %c8_203 = arith.constant 8 : index
    %c0_204 = arith.constant 0 : index
    %c0_205 = arith.constant 0 : index
    %188 = vector.load %arg2[%c8_203, %c0_204, %c0_205] : memref<9x128x128xbf16, #tpu.memory_space<vmem>>, vector<1x128x128xbf16>
    %189 = vector.shape_cast %188 : vector<1x128x128xbf16> to vector<128x128xbf16>
    %cst_206 = arith.constant dense<0.000000e+00> : vector<64x128xf32>
    %190 = tpu.matmul %187, %189, %cst_206 {dimension_numbers = #tpu.dot_dimension_numbers<[1], [0], [0], [1], [0, 0, 1, 1], [], []>} : vector<64x128xbf16>, vector<128x128xbf16>, vector<64x128xf32> -> vector<64x128xf32>
    %191 = arith.addf %184, %190 : vector<64x128xf32>
    %c0_207 = arith.constant 0 : index
    %c0_208 = arith.constant 0 : index
    %192 = vector.load %arg3[%c0_207, %c0_208] : memref<1x128xf32, #tpu.memory_space<vmem>>, vector<1x128xf32>
    %193 = vector.broadcast %192 : vector<1x128xf32> to vector<64x128xf32>
    %194 = arith.addf %191, %193 : vector<64x128xf32>
    %cst_209 = arith.constant 0.000000e+00 : f32
    %195 = vector.broadcast %cst_209 : f32 to vector<64x128xf32>
    %196 = arith.cmpf oge, %194, %195 : vector<64x128xf32>
    %cst_210 = arith.constant 2.000000e-01 : f32
    %197 = vector.broadcast %cst_210 : f32 to vector<64x128xf32>
    %198 = arith.mulf %194, %197 : vector<64x128xf32>
    %199 = arith.select %196, %194, %198 : vector<64x128xi1>, vector<64x128xf32>
    %cst_211 = arith.constant 1.41421354 : f32
    %200 = vector.broadcast %cst_211 : f32 to vector<64x128xf32>
    %201 = arith.mulf %199, %200 : vector<64x128xf32>
    %202 = vector.shape_cast %201 : vector<64x128xf32> to vector<8x8x128xf32>
    %c1_212 = arith.constant 1 : index
    %c1_213 = arith.constant 1 : index
    %c1_214 = arith.constant 1 : index
    %c0_215 = arith.constant 0 : index
    %203 = vector.load %arg8[%c1_212, %c1_213, %c1_214, %c0_215] : memref<4x10x10x128xf32, #tpu.memory_space<vmem>>, vector<1x8x8x128xf32>
    %204 = vector.shape_cast %203 : vector<1x8x8x128xf32> to vector<8x8x128xf32>
    %205 = vector.shape_cast %202 : vector<8x8x128xf32> to vector<1x8x8x128xf32>
    tpu.vector_store %arg8[%c1_212, %c1_213, %c1_214, %c0_215], %205 {strides = array<i32>} : memref<4x10x10x128xf32, #tpu.memory_space<vmem>>, vector<1x8x8x128xf32>,
    %cst_216 = arith.constant 0.000000e+00 : f32
    %206 = vector.broadcast %cst_216 : f32 to vector<64x128xf32>
    %c0_217 = arith.constant 0 : index
    %c18_218 = arith.constant 18 : index
    %c0_219 = arith.constant 0 : index
    %c0_220 = arith.constant 0 : index
    %207 = vector.load %arg1[%c0_217, %c18_218, %c0_219, %c0_220] : memref<1x36x9x128xbf16, #tpu.memory_space<vmem>>, vector<1x8x8x128xbf16>
    %208 = vector.shape_cast %207 : vector<1x8x8x128xbf16> to vector<8x8x128xbf16>
    %209 = vector.shape_cast %208 : vector<8x8x128xbf16> to vector<64x128xbf16>
    %c0_221 = arith.constant 0 : index
    %c0_222 = arith.constant 0 : index
    %c0_223 = arith.constant 0 : index
    %210 = vector.load %arg2[%c0_221, %c0_222, %c0_223] : memref<9x128x128xbf16, #tpu.memory_space<vmem>>, vector<1x128x128xbf16>
    %211 = vector.shape_cast %210 : vector<1x128x128xbf16> to vector<128x128xbf16>
    %cst_224 = arith.constant dense<0.000000e+00> : vector<64x128xf32>
    %212 = tpu.matmul %209, %211, %cst_224 {dimension_numbers = #tpu.dot_dimension_numbers<[1], [0], [0], [1], [0, 0, 1, 1], [], []>} : vector<64x128xbf16>, vector<128x128xbf16>, vector<64x128xf32> -> vector<64x128xf32>
    %213 = arith.addf %206, %212 : vector<64x128xf32>
    %c0_225 = arith.constant 0 : index
    %c27_226 = arith.constant 27 : index
    %c0_227 = arith.constant 0 : index
    %c0_228 = arith.constant 0 : index
    %214 = vector.load %arg1[%c0_225, %c27_226, %c0_227, %c0_228] : memref<1x36x9x128xbf16, #tpu.memory_space<vmem>>, vector<1x8x8x128xbf16>
    %215 = vector.shape_cast %214 : vector<1x8x8x128xbf16> to vector<8x8x128xbf16>
    %216 = vector.shape_cast %215 : vector<8x8x128xbf16> to vector<64x128xbf16>
    %c1_229 = arith.constant 1 : index
    %c0_230 = arith.constant 0 : index
    %c0_231 = arith.constant 0 : index
    %217 = vector.load %arg2[%c1_229, %c0_230, %c0_231] : memref<9x128x128xbf16, #tpu.memory_space<vmem>>, vector<1x128x128xbf16>
    %218 = vector.shape_cast %217 : vector<1x128x128xbf16> to vector<128x128xbf16>
    %cst_232 = arith.constant dense<0.000000e+00> : vector<64x128xf32>
    %219 = tpu.matmul %216, %218, %cst_232 {dimension_numbers = #tpu.dot_dimension_numbers<[1], [0], [0], [1], [0, 0, 1, 1], [], []>} : vector<64x128xbf16>, vector<128x128xbf16>, vector<64x128xf32> -> vector<64x128xf32>
    %220 = arith.addf %213, %219 : vector<64x128xf32>
    %c0_233 = arith.constant 0 : index
    %c18_234 = arith.constant 18 : index
    %c1_235 = arith.constant 1 : index
    %c0_236 = arith.constant 0 : index
    %221 = vector.load %arg1[%c0_233, %c18_234, %c1_235, %c0_236] : memref<1x36x9x128xbf16, #tpu.memory_space<vmem>>, vector<1x8x8x128xbf16>
    %222 = vector.shape_cast %221 : vector<1x8x8x128xbf16> to vector<8x8x128xbf16>
    %223 = vector.shape_cast %222 : vector<8x8x128xbf16> to vector<64x128xbf16>
    %c2_237 = arith.constant 2 : index
    %c0_238 = arith.constant 0 : index
    %c0_239 = arith.constant 0 : index
    %224 = vector.load %arg2[%c2_237, %c0_238, %c0_239] : memref<9x128x128xbf16, #tpu.memory_space<vmem>>, vector<1x128x128xbf16>
    %225 = vector.shape_cast %224 : vector<1x128x128xbf16> to vector<128x128xbf16>
    %cst_240 = arith.constant dense<0.000000e+00> : vector<64x128xf32>
    %226 = tpu.matmul %223, %225, %cst_240 {dimension_numbers = #tpu.dot_dimension_numbers<[1], [0], [0], [1], [0, 0, 1, 1], [], []>} : vector<64x128xbf16>, vector<128x128xbf16>, vector<64x128xf32> -> vector<64x128xf32>
    %227 = arith.addf %220, %226 : vector<64x128xf32>
    %c0_241 = arith.constant 0 : index
    %c1_242 = arith.constant 1 : index
    %c0_243 = arith.constant 0 : index
    %c0_244 = arith.constant 0 : index
    %228 = vector.load %arg1[%c0_241, %c1_242, %c0_243, %c0_244] : memref<1x36x9x128xbf16, #tpu.memory_space<vmem>>, vector<1x8x8x128xbf16>
    %229 = vector.shape_cast %228 : vector<1x8x8x128xbf16> to vector<8x8x128xbf16>
    %230 = vector.shape_cast %229 : vector<8x8x128xbf16> to vector<64x128xbf16>
    %c3_245 = arith.constant 3 : index
    %c0_246 = arith.constant 0 : index
    %c0_247 = arith.constant 0 : index
    %231 = vector.load %arg2[%c3_245, %c0_246, %c0_247] : memref<9x128x128xbf16, #tpu.memory_space<vmem>>, vector<1x128x128xbf16>
    %232 = vector.shape_cast %231 : vector<1x128x128xbf16> to vector<128x128xbf16>
    %cst_248 = arith.constant dense<0.000000e+00> : vector<64x128xf32>
    %233 = tpu.matmul %230, %232, %cst_248 {dimension_numbers = #tpu.dot_dimension_numbers<[1], [0], [0], [1], [0, 0, 1, 1], [], []>} : vector<64x128xbf16>, vector<128x128xbf16>, vector<64x128xf32> -> vector<64x128xf32>
    %234 = arith.addf %227, %233 : vector<64x128xf32>
    %c0_249 = arith.constant 0 : index
    %c10_250 = arith.constant 10 : index
    %c0_251 = arith.constant 0 : index
    %c0_252 = arith.constant 0 : index
    %235 = vector.load %arg1[%c0_249, %c10_250, %c0_251, %c0_252] : memref<1x36x9x128xbf16, #tpu.memory_space<vmem>>, vector<1x8x8x128xbf16>
    %236 = vector.shape_cast %235 : vector<1x8x8x128xbf16> to vector<8x8x128xbf16>
    %237 = vector.shape_cast %236 : vector<8x8x128xbf16> to vector<64x128xbf16>
    %c4_253 = arith.constant 4 : index
    %c0_254 = arith.constant 0 : index
    %c0_255 = arith.constant 0 : index
    %238 = vector.load %arg2[%c4_253, %c0_254, %c0_255] : memref<9x128x128xbf16, #tpu.memory_space<vmem>>, vector<1x128x128xbf16>
    %239 = vector.shape_cast %238 : vector<1x128x128xbf16> to vector<128x128xbf16>
    %cst_256 = arith.constant dense<0.000000e+00> : vector<64x128xf32>
    %240 = tpu.matmul %237, %239, %cst_256 {dimension_numbers = #tpu.dot_dimension_numbers<[1], [0], [0], [1], [0, 0, 1, 1], [], []>} : vector<64x128xbf16>, vector<128x128xbf16>, vector<64x128xf32> -> vector<64x128xf32>
    %241 = arith.addf %234, %240 : vector<64x128xf32>
    %c0_257 = arith.constant 0 : index
    %c1_258 = arith.constant 1 : index
    %c1_259 = arith.constant 1 : index
    %c0_260 = arith.constant 0 : index
    %242 = vector.load %arg1[%c0_257, %c1_258, %c1_259, %c0_260] : memref<1x36x9x128xbf16, #tpu.memory_space<vmem>>, vector<1x8x8x128xbf16>
    %243 = vector.shape_cast %242 : vector<1x8x8x128xbf16> to vector<8x8x128xbf16>
    %244 = vector.shape_cast %243 : vector<8x8x128xbf16> to vector<64x128xbf16>
    %c5_261 = arith.constant 5 : index
    %c0_262 = arith.constant 0 : index
    %c0_263 = arith.constant 0 : index
    %245 = vector.load %arg2[%c5_261, %c0_262, %c0_263] : memref<9x128x128xbf16, #tpu.memory_space<vmem>>, vector<1x128x128xbf16>
    %246 = vector.shape_cast %245 : vector<1x128x128xbf16> to vector<128x128xbf16>
    %cst_264 = arith.constant dense<0.000000e+00> : vector<64x128xf32>
    %247 = tpu.matmul %244, %246, %cst_264 {dimension_numbers = #tpu.dot_dimension_numbers<[1], [0], [0], [1], [0, 0, 1, 1], [], []>} : vector<64x128xbf16>, vector<128x128xbf16>, vector<64x128xf32> -> vector<64x128xf32>
    %248 = arith.addf %241, %247 : vector<64x128xf32>
    %c0_265 = arith.constant 0 : index
    %c19 = arith.constant 19 : index
    %c0_266 = arith.constant 0 : index
    %c0_267 = arith.constant 0 : index
    %249 = vector.load %arg1[%c0_265, %c19, %c0_266, %c0_267] : memref<1x36x9x128xbf16, #tpu.memory_space<vmem>>, vector<1x8x8x128xbf16>
    %250 = vector.shape_cast %249 : vector<1x8x8x128xbf16> to vector<8x8x128xbf16>
    %251 = vector.shape_cast %250 : vector<8x8x128xbf16> to vector<64x128xbf16>
    %c6_268 = arith.constant 6 : index
    %c0_269 = arith.constant 0 : index
    %c0_270 = arith.constant 0 : index
    %252 = vector.load %arg2[%c6_268, %c0_269, %c0_270] : memref<9x128x128xbf16, #tpu.memory_space<vmem>>, vector<1x128x128xbf16>
    %253 = vector.shape_cast %252 : vector<1x128x128xbf16> to vector<128x128xbf16>
    %cst_271 = arith.constant dense<0.000000e+00> : vector<64x128xf32>
    %254 = tpu.matmul %251, %253, %cst_271 {dimension_numbers = #tpu.dot_dimension_numbers<[1], [0], [0], [1], [0, 0, 1, 1], [], []>} : vector<64x128xbf16>, vector<128x128xbf16>, vector<64x128xf32> -> vector<64x128xf32>
    %255 = arith.addf %248, %254 : vector<64x128xf32>
    %c0_272 = arith.constant 0 : index
    %c28 = arith.constant 28 : index
    %c0_273 = arith.constant 0 : index
    %c0_274 = arith.constant 0 : index
    %256 = vector.load %arg1[%c0_272, %c28, %c0_273, %c0_274] : memref<1x36x9x128xbf16, #tpu.memory_space<vmem>>, vector<1x8x8x128xbf16>
    %257 = vector.shape_cast %256 : vector<1x8x8x128xbf16> to vector<8x8x128xbf16>
    %258 = vector.shape_cast %257 : vector<8x8x128xbf16> to vector<64x128xbf16>
    %c7_275 = arith.constant 7 : index
    %c0_276 = arith.constant 0 : index
    %c0_277 = arith.constant 0 : index
    %259 = vector.load %arg2[%c7_275, %c0_276, %c0_277] : memref<9x128x128xbf16, #tpu.memory_space<vmem>>, vector<1x128x128xbf16>
    %260 = vector.shape_cast %259 : vector<1x128x128xbf16> to vector<128x128xbf16>
    %cst_278 = arith.constant dense<0.000000e+00> : vector<64x128xf32>
    %261 = tpu.matmul %258, %260, %cst_278 {dimension_numbers = #tpu.dot_dimension_numbers<[1], [0], [0], [1], [0, 0, 1, 1], [], []>} : vector<64x128xbf16>, vector<128x128xbf16>, vector<64x128xf32> -> vector<64x128xf32>
    %262 = arith.addf %255, %261 : vector<64x128xf32>
    %c0_279 = arith.constant 0 : index
    %c19_280 = arith.constant 19 : index
    %c1_281 = arith.constant 1 : index
    %c0_282 = arith.constant 0 : index
    %263 = vector.load %arg1[%c0_279, %c19_280, %c1_281, %c0_282] : memref<1x36x9x128xbf16, #tpu.memory_space<vmem>>, vector<1x8x8x128xbf16>
    %264 = vector.shape_cast %263 : vector<1x8x8x128xbf16> to vector<8x8x128xbf16>
    %265 = vector.shape_cast %264 : vector<8x8x128xbf16> to vector<64x128xbf16>
    %c8_283 = arith.constant 8 : index
    %c0_284 = arith.constant 0 : index
    %c0_285 = arith.constant 0 : index
    %266 = vector.load %arg2[%c8_283, %c0_284, %c0_285] : memref<9x128x128xbf16, #tpu.memory_space<vmem>>, vector<1x128x128xbf16>
    %267 = vector.shape_cast %266 : vector<1x128x128xbf16> to vector<128x128xbf16>
    %cst_286 = arith.constant dense<0.000000e+00> : vector<64x128xf32>
    %268 = tpu.matmul %265, %267, %cst_286 {dimension_numbers = #tpu.dot_dimension_numbers<[1], [0], [0], [1], [0, 0, 1, 1], [], []>} : vector<64x128xbf16>, vector<128x128xbf16>, vector<64x128xf32> -> vector<64x128xf32>
    %269 = arith.addf %262, %268 : vector<64x128xf32>
    %c0_287 = arith.constant 0 : index
    %c0_288 = arith.constant 0 : index
    %270 = vector.load %arg3[%c0_287, %c0_288] : memref<1x128xf32, #tpu.memory_space<vmem>>, vector<1x128xf32>
    %271 = vector.broadcast %270 : vector<1x128xf32> to vector<64x128xf32>
    %272 = arith.addf %269, %271 : vector<64x128xf32>
    %cst_289 = arith.constant 0.000000e+00 : f32
    %273 = vector.broadcast %cst_289 : f32 to vector<64x128xf32>
    %274 = arith.cmpf oge, %272, %273 : vector<64x128xf32>
    %cst_290 = arith.constant 2.000000e-01 : f32
    %275 = vector.broadcast %cst_290 : f32 to vector<64x128xf32>
    %276 = arith.mulf %272, %275 : vector<64x128xf32>
    %277 = arith.select %274, %272, %276 : vector<64x128xi1>, vector<64x128xf32>
    %cst_291 = arith.constant 1.41421354 : f32
    %278 = vector.broadcast %cst_291 : f32 to vector<64x128xf32>
    %279 = arith.mulf %277, %278 : vector<64x128xf32>
    %280 = vector.shape_cast %279 : vector<64x128xf32> to vector<8x8x128xf32>
    %c2_292 = arith.constant 2 : index
    %c1_293 = arith.constant 1 : index
    %c1_294 = arith.constant 1 : index
    %c0_295 = arith.constant 0 : index
    %281 = vector.load %arg8[%c2_292, %c1_293, %c1_294, %c0_295] : memref<4x10x10x128xf32, #tpu.memory_space<vmem>>, vector<1x8x8x128xf32>
    %282 = vector.shape_cast %281 : vector<1x8x8x128xf32> to vector<8x8x128xf32>
    %283 = vector.shape_cast %280 : vector<8x8x128xf32> to vector<1x8x8x128xf32>
    tpu.vector_store %arg8[%c2_292, %c1_293, %c1_294, %c0_295], %283 {strides = array<i32>} : memref<4x10x10x128xf32, #tpu.memory_space<vmem>>, vector<1x8x8x128xf32>,
    %cst_296 = arith.constant 0.000000e+00 : f32
    %284 = vector.broadcast %cst_296 : f32 to vector<64x128xf32>
    %c0_297 = arith.constant 0 : index
    %c27_298 = arith.constant 27 : index
    %c0_299 = arith.constant 0 : index
    %c0_300 = arith.constant 0 : index
    %285 = vector.load %arg1[%c0_297, %c27_298, %c0_299, %c0_300] : memref<1x36x9x128xbf16, #tpu.memory_space<vmem>>, vector<1x8x8x128xbf16>
    %286 = vector.shape_cast %285 : vector<1x8x8x128xbf16> to vector<8x8x128xbf16>
    %287 = vector.shape_cast %286 : vector<8x8x128xbf16> to vector<64x128xbf16>
    %c0_301 = arith.constant 0 : index
    %c0_302 = arith.constant 0 : index
    %c0_303 = arith.constant 0 : index
    %288 = vector.load %arg2[%c0_301, %c0_302, %c0_303] : memref<9x128x128xbf16, #tpu.memory_space<vmem>>, vector<1x128x128xbf16>
    %289 = vector.shape_cast %288 : vector<1x128x128xbf16> to vector<128x128xbf16>
    %cst_304 = arith.constant dense<0.000000e+00> : vector<64x128xf32>
    %290 = tpu.matmul %287, %289, %cst_304 {dimension_numbers = #tpu.dot_dimension_numbers<[1], [0], [0], [1], [0, 0, 1, 1], [], []>} : vector<64x128xbf16>, vector<128x128xbf16>, vector<64x128xf32> -> vector<64x128xf32>
    %291 = arith.addf %284, %290 : vector<64x128xf32>
    %c0_305 = arith.constant 0 : index
    %c18_306 = arith.constant 18 : index
    %c1_307 = arith.constant 1 : index
    %c0_308 = arith.constant 0 : index
    %292 = vector.load %arg1[%c0_305, %c18_306, %c1_307, %c0_308] : memref<1x36x9x128xbf16, #tpu.memory_space<vmem>>, vector<1x8x8x128xbf16>
    %293 = vector.shape_cast %292 : vector<1x8x8x128xbf16> to vector<8x8x128xbf16>
    %294 = vector.shape_cast %293 : vector<8x8x128xbf16> to vector<64x128xbf16>
    %c1_309 = arith.constant 1 : index
    %c0_310 = arith.constant 0 : index
    %c0_311 = arith.constant 0 : index
    %295 = vector.load %arg2[%c1_309, %c0_310, %c0_311] : memref<9x128x128xbf16, #tpu.memory_space<vmem>>, vector<1x128x128xbf16>
    %296 = vector.shape_cast %295 : vector<1x128x128xbf16> to vector<128x128xbf16>
    %cst_312 = arith.constant dense<0.000000e+00> : vector<64x128xf32>
    %297 = tpu.matmul %294, %296, %cst_312 {dimension_numbers = #tpu.dot_dimension_numbers<[1], [0], [0], [1], [0, 0, 1, 1], [], []>} : vector<64x128xbf16>, vector<128x128xbf16>, vector<64x128xf32> -> vector<64x128xf32>
    %298 = arith.addf %291, %297 : vector<64x128xf32>
    %c0_313 = arith.constant 0 : index
    %c27_314 = arith.constant 27 : index
    %c1_315 = arith.constant 1 : index
    %c0_316 = arith.constant 0 : index
    %299 = vector.load %arg1[%c0_313, %c27_314, %c1_315, %c0_316] : memref<1x36x9x128xbf16, #tpu.memory_space<vmem>>, vector<1x8x8x128xbf16>
    %300 = vector.shape_cast %299 : vector<1x8x8x128xbf16> to vector<8x8x128xbf16>
    %301 = vector.shape_cast %300 : vector<8x8x128xbf16> to vector<64x128xbf16>
    %c2_317 = arith.constant 2 : index
    %c0_318 = arith.constant 0 : index
    %c0_319 = arith.constant 0 : index
    %302 = vector.load %arg2[%c2_317, %c0_318, %c0_319] : memref<9x128x128xbf16, #tpu.memory_space<vmem>>, vector<1x128x128xbf16>
    %303 = vector.shape_cast %302 : vector<1x128x128xbf16> to vector<128x128xbf16>
    %cst_320 = arith.constant dense<0.000000e+00> : vector<64x128xf32>
    %304 = tpu.matmul %301, %303, %cst_320 {dimension_numbers = #tpu.dot_dimension_numbers<[1], [0], [0], [1], [0, 0, 1, 1], [], []>} : vector<64x128xbf16>, vector<128x128xbf16>, vector<64x128xf32> -> vector<64x128xf32>
    %305 = arith.addf %298, %304 : vector<64x128xf32>
    %c0_321 = arith.constant 0 : index
    %c10_322 = arith.constant 10 : index
    %c0_323 = arith.constant 0 : index
    %c0_324 = arith.constant 0 : index
    %306 = vector.load %arg1[%c0_321, %c10_322, %c0_323, %c0_324] : memref<1x36x9x128xbf16, #tpu.memory_space<vmem>>, vector<1x8x8x128xbf16>
    %307 = vector.shape_cast %306 : vector<1x8x8x128xbf16> to vector<8x8x128xbf16>
    %308 = vector.shape_cast %307 : vector<8x8x128xbf16> to vector<64x128xbf16>
    %c3_325 = arith.constant 3 : index
    %c0_326 = arith.constant 0 : index
    %c0_327 = arith.constant 0 : index
    %309 = vector.load %arg2[%c3_325, %c0_326, %c0_327] : memref<9x128x128xbf16, #tpu.memory_space<vmem>>, vector<1x128x128xbf16>
    %310 = vector.shape_cast %309 : vector<1x128x128xbf16> to vector<128x128xbf16>
    %cst_328 = arith.constant dense<0.000000e+00> : vector<64x128xf32>
    %311 = tpu.matmul %308, %310, %cst_328 {dimension_numbers = #tpu.dot_dimension_numbers<[1], [0], [0], [1], [0, 0, 1, 1], [], []>} : vector<64x128xbf16>, vector<128x128xbf16>, vector<64x128xf32> -> vector<64x128xf32>
    %312 = arith.addf %305, %311 : vector<64x128xf32>
    %c0_329 = arith.constant 0 : index
    %c1_330 = arith.constant 1 : index
    %c1_331 = arith.constant 1 : index
    %c0_332 = arith.constant 0 : index
    %313 = vector.load %arg1[%c0_329, %c1_330, %c1_331, %c0_332] : memref<1x36x9x128xbf16, #tpu.memory_space<vmem>>, vector<1x8x8x128xbf16>
    %314 = vector.shape_cast %313 : vector<1x8x8x128xbf16> to vector<8x8x128xbf16>
    %315 = vector.shape_cast %314 : vector<8x8x128xbf16> to vector<64x128xbf16>
    %c4_333 = arith.constant 4 : index
    %c0_334 = arith.constant 0 : index
    %c0_335 = arith.constant 0 : index
    %316 = vector.load %arg2[%c4_333, %c0_334, %c0_335] : memref<9x128x128xbf16, #tpu.memory_space<vmem>>, vector<1x128x128xbf16>
    %317 = vector.shape_cast %316 : vector<1x128x128xbf16> to vector<128x128xbf16>
    %cst_336 = arith.constant dense<0.000000e+00> : vector<64x128xf32>
    %318 = tpu.matmul %315, %317, %cst_336 {dimension_numbers = #tpu.dot_dimension_numbers<[1], [0], [0], [1], [0, 0, 1, 1], [], []>} : vector<64x128xbf16>, vector<128x128xbf16>, vector<64x128xf32> -> vector<64x128xf32>
    %319 = arith.addf %312, %318 : vector<64x128xf32>
    %c0_337 = arith.constant 0 : index
    %c10_338 = arith.constant 10 : index
    %c1_339 = arith.constant 1 : index
    %c0_340 = arith.constant 0 : index
    %320 = vector.load %arg1[%c0_337, %c10_338, %c1_339, %c0_340] : memref<1x36x9x128xbf16, #tpu.memory_space<vmem>>, vector<1x8x8x128xbf16>
    %321 = vector.shape_cast %320 : vector<1x8x8x128xbf16> to vector<8x8x128xbf16>
    %322 = vector.shape_cast %321 : vector<8x8x128xbf16> to vector<64x128xbf16>
    %c5_341 = arith.constant 5 : index
    %c0_342 = arith.constant 0 : index
    %c0_343 = arith.constant 0 : index
    %323 = vector.load %arg2[%c5_341, %c0_342, %c0_343] : memref<9x128x128xbf16, #tpu.memory_space<vmem>>, vector<1x128x128xbf16>
    %324 = vector.shape_cast %323 : vector<1x128x128xbf16> to vector<128x128xbf16>
    %cst_344 = arith.constant dense<0.000000e+00> : vector<64x128xf32>
    %325 = tpu.matmul %322, %324, %cst_344 {dimension_numbers = #tpu.dot_dimension_numbers<[1], [0], [0], [1], [0, 0, 1, 1], [], []>} : vector<64x128xbf16>, vector<128x128xbf16>, vector<64x128xf32> -> vector<64x128xf32>
    %326 = arith.addf %319, %325 : vector<64x128xf32>
    %c0_345 = arith.constant 0 : index
    %c28_346 = arith.constant 28 : index
    %c0_347 = arith.constant 0 : index
    %c0_348 = arith.constant 0 : index
    %327 = vector.load %arg1[%c0_345, %c28_346, %c0_347, %c0_348] : memref<1x36x9x128xbf16, #tpu.memory_space<vmem>>, vector<1x8x8x128xbf16>
    %328 = vector.shape_cast %327 : vector<1x8x8x128xbf16> to vector<8x8x128xbf16>
    %329 = vector.shape_cast %328 : vector<8x8x128xbf16> to vector<64x128xbf16>
    %c6_349 = arith.constant 6 : index
    %c0_350 = arith.constant 0 : index
    %c0_351 = arith.constant 0 : index
    %330 = vector.load %arg2[%c6_349, %c0_350, %c0_351] : memref<9x128x128xbf16, #tpu.memory_space<vmem>>, vector<1x128x128xbf16>
    %331 = vector.shape_cast %330 : vector<1x128x128xbf16> to vector<128x128xbf16>
    %cst_352 = arith.constant dense<0.000000e+00> : vector<64x128xf32>
    %332 = tpu.matmul %329, %331, %cst_352 {dimension_numbers = #tpu.dot_dimension_numbers<[1], [0], [0], [1], [0, 0, 1, 1], [], []>} : vector<64x128xbf16>, vector<128x128xbf16>, vector<64x128xf32> -> vector<64x128xf32>
    %333 = arith.addf %326, %332 : vector<64x128xf32>
    %c0_353 = arith.constant 0 : index
    %c19_354 = arith.constant 19 : index
    %c1_355 = arith.constant 1 : index
    %c0_356 = arith.constant 0 : index
    %334 = vector.load %arg1[%c0_353, %c19_354, %c1_355, %c0_356] : memref<1x36x9x128xbf16, #tpu.memory_space<vmem>>, vector<1x8x8x128xbf16>
    %335 = vector.shape_cast %334 : vector<1x8x8x128xbf16> to vector<8x8x128xbf16>
    %336 = vector.shape_cast %335 : vector<8x8x128xbf16> to vector<64x128xbf16>
    %c7_357 = arith.constant 7 : index
    %c0_358 = arith.constant 0 : index
    %c0_359 = arith.constant 0 : index
    %337 = vector.load %arg2[%c7_357, %c0_358, %c0_359] : memref<9x128x128xbf16, #tpu.memory_space<vmem>>, vector<1x128x128xbf16>
    %338 = vector.shape_cast %337 : vector<1x128x128xbf16> to vector<128x128xbf16>
    %cst_360 = arith.constant dense<0.000000e+00> : vector<64x128xf32>
    %339 = tpu.matmul %336, %338, %cst_360 {dimension_numbers = #tpu.dot_dimension_numbers<[1], [0], [0], [1], [0, 0, 1, 1], [], []>} : vector<64x128xbf16>, vector<128x128xbf16>, vector<64x128xf32> -> vector<64x128xf32>
    %340 = arith.addf %333, %339 : vector<64x128xf32>
    %c0_361 = arith.constant 0 : index
    %c28_362 = arith.constant 28 : index
    %c1_363 = arith.constant 1 : index
    %c0_364 = arith.constant 0 : index
    %341 = vector.load %arg1[%c0_361, %c28_362, %c1_363, %c0_364] : memref<1x36x9x128xbf16, #tpu.memory_space<vmem>>, vector<1x8x8x128xbf16>
    %342 = vector.shape_cast %341 : vector<1x8x8x128xbf16> to vector<8x8x128xbf16>
    %343 = vector.shape_cast %342 : vector<8x8x128xbf16> to vector<64x128xbf16>
    %c8_365 = arith.constant 8 : index
    %c0_366 = arith.constant 0 : index
    %c0_367 = arith.constant 0 : index
    %344 = vector.load %arg2[%c8_365, %c0_366, %c0_367] : memref<9x128x128xbf16, #tpu.memory_space<vmem>>, vector<1x128x128xbf16>
    %345 = vector.shape_cast %344 : vector<1x128x128xbf16> to vector<128x128xbf16>
    %cst_368 = arith.constant dense<0.000000e+00> : vector<64x128xf32>
    %346 = tpu.matmul %343, %345, %cst_368 {dimension_numbers = #tpu.dot_dimension_numbers<[1], [0], [0], [1], [0, 0, 1, 1], [], []>} : vector<64x128xbf16>, vector<128x128xbf16>, vector<64x128xf32> -> vector<64x128xf32>
    %347 = arith.addf %340, %346 : vector<64x128xf32>
    %c0_369 = arith.constant 0 : index
    %c0_370 = arith.constant 0 : index
    %348 = vector.load %arg3[%c0_369, %c0_370] : memref<1x128xf32, #tpu.memory_space<vmem>>, vector<1x128xf32>
    %349 = vector.broadcast %348 : vector<1x128xf32> to vector<64x128xf32>
    %350 = arith.addf %347, %349 : vector<64x128xf32>
    %cst_371 = arith.constant 0.000000e+00 : f32
    %351 = vector.broadcast %cst_371 : f32 to vector<64x128xf32>
    %352 = arith.cmpf oge, %350, %351 : vector<64x128xf32>
    %cst_372 = arith.constant 2.000000e-01 : f32
    %353 = vector.broadcast %cst_372 : f32 to vector<64x128xf32>
    %354 = arith.mulf %350, %353 : vector<64x128xf32>
    %355 = arith.select %352, %350, %354 : vector<64x128xi1>, vector<64x128xf32>
    %cst_373 = arith.constant 1.41421354 : f32
    %356 = vector.broadcast %cst_373 : f32 to vector<64x128xf32>
    %357 = arith.mulf %355, %356 : vector<64x128xf32>
    %358 = vector.shape_cast %357 : vector<64x128xf32> to vector<8x8x128xf32>
    %c3_374 = arith.constant 3 : index
    %c1_375 = arith.constant 1 : index
    %c1_376 = arith.constant 1 : index
    %c0_377 = arith.constant 0 : index
    %359 = vector.load %arg8[%c3_374, %c1_375, %c1_376, %c0_377] : memref<4x10x10x128xf32, #tpu.memory_space<vmem>>, vector<1x8x8x128xf32>
    %360 = vector.shape_cast %359 : vector<1x8x8x128xf32> to vector<8x8x128xf32>
    %361 = vector.shape_cast %358 : vector<8x8x128xf32> to vector<1x8x8x128xf32>
    tpu.vector_store %arg8[%c3_374, %c1_375, %c1_376, %c0_377], %361 {strides = array<i32>} : memref<4x10x10x128xf32, #tpu.memory_space<vmem>>, vector<1x8x8x128xf32>,
    %c0_378 = arith.constant 0 : index
    %c0_379 = arith.constant 0 : index
    %c0_380 = arith.constant 0 : index
    %c0_381 = arith.constant 0 : index
    %362 = vector.load %arg8[%c0_378, %c0_379, %c0_380, %c0_381] : memref<4x10x10x128xf32, #tpu.memory_space<vmem>>, vector<1x10x10x128xf32>
    %363 = vector.shape_cast %362 : vector<1x10x10x128xf32> to vector<10x10x128xf32>
    %c1_382 = arith.constant 1 : index
    %c0_383 = arith.constant 0 : index
    %c0_384 = arith.constant 0 : index
    %c0_385 = arith.constant 0 : index
    %364 = vector.load %arg8[%c1_382, %c0_383, %c0_384, %c0_385] : memref<4x10x10x128xf32, #tpu.memory_space<vmem>>, vector<1x10x10x128xf32>
    %365 = vector.shape_cast %364 : vector<1x10x10x128xf32> to vector<10x10x128xf32>
    %366 = vector.extract_strided_slice %363 {offsets = [0, 0, 0], sizes = [10, 9, 128], strides = [1, 1, 1]} : vector<10x10x128xf32> to vector<10x9x128xf32>
    %cst_386 = arith.constant 1.250000e-01 : f32
    %367 = vector.broadcast %cst_386 : f32 to vector<10x9x128xf32>
    %368 = arith.mulf %367, %366 : vector<10x9x128xf32>
    %369 = vector.extract_strided_slice %365 {offsets = [0, 0, 0], sizes = [10, 9, 128], strides = [1, 1, 1]} : vector<10x10x128xf32> to vector<10x9x128xf32>
    %cst_387 = arith.constant 3.750000e-01 : f32
    %370 = vector.broadcast %cst_387 : f32 to vector<10x9x128xf32>
    %371 = arith.mulf %370, %369 : vector<10x9x128xf32>
    %372 = arith.addf %368, %371 : vector<10x9x128xf32>
    %373 = vector.extract_strided_slice %363 {offsets = [0, 1, 0], sizes = [10, 9, 128], strides = [1, 1, 1]} : vector<10x10x128xf32> to vector<10x9x128xf32>
    %cst_388 = arith.constant 3.750000e-01 : f32
    %374 = vector.broadcast %cst_388 : f32 to vector<10x9x128xf32>
    %375 = arith.mulf %374, %373 : vector<10x9x128xf32>
    %376 = arith.addf %372, %375 : vector<10x9x128xf32>
    %377 = vector.extract_strided_slice %365 {offsets = [0, 1, 0], sizes = [10, 9, 128], strides = [1, 1, 1]} : vector<10x10x128xf32> to vector<10x9x128xf32>
    %cst_389 = arith.constant 1.250000e-01 : f32
    %378 = vector.broadcast %cst_389 : f32 to vector<10x9x128xf32>
    %379 = arith.mulf %378, %377 : vector<10x9x128xf32>
    %380 = arith.addf %376, %379 : vector<10x9x128xf32>
    %381 = vector.extract_strided_slice %365 {offsets = [0, 0, 0], sizes = [10, 8, 128], strides = [1, 1, 1]} : vector<10x10x128xf32> to vector<10x8x128xf32>
    %cst_390 = arith.constant 1.250000e-01 : f32
    %382 = vector.broadcast %cst_390 : f32 to vector<10x8x128xf32>
    %383 = arith.mulf %382, %381 : vector<10x8x128xf32>
    %384 = vector.extract_strided_slice %363 {offsets = [0, 1, 0], sizes = [10, 8, 128], strides = [1, 1, 1]} : vector<10x10x128xf32> to vector<10x8x128xf32>
    %cst_391 = arith.constant 3.750000e-01 : f32
    %385 = vector.broadcast %cst_391 : f32 to vector<10x8x128xf32>
    %386 = arith.mulf %385, %384 : vector<10x8x128xf32>
    %387 = arith.addf %383, %386 : vector<10x8x128xf32>
    %388 = vector.extract_strided_slice %365 {offsets = [0, 1, 0], sizes = [10, 8, 128], strides = [1, 1, 1]} : vector<10x10x128xf32> to vector<10x8x128xf32>
    %cst_392 = arith.constant 3.750000e-01 : f32
    %389 = vector.broadcast %cst_392 : f32 to vector<10x8x128xf32>
    %390 = arith.mulf %389, %388 : vector<10x8x128xf32>
    %391 = arith.addf %387, %390 : vector<10x8x128xf32>
    %392 = vector.extract_strided_slice %363 {offsets = [0, 2, 0], sizes = [10, 8, 128], strides = [1, 1, 1]} : vector<10x10x128xf32> to vector<10x8x128xf32>
    %cst_393 = arith.constant 1.250000e-01 : f32
    %393 = vector.broadcast %cst_393 : f32 to vector<10x8x128xf32>
    %394 = arith.mulf %393, %392 : vector<10x8x128xf32>
    %395 = arith.addf %391, %394 : vector<10x8x128xf32>
    %c2_394 = arith.constant 2 : index
    %c0_395 = arith.constant 0 : index
    %c0_396 = arith.constant 0 : index
    %c0_397 = arith.constant 0 : index
    %396 = vector.load %arg8[%c2_394, %c0_395, %c0_396, %c0_397] : memref<4x10x10x128xf32, #tpu.memory_space<vmem>>, vector<1x10x10x128xf32>
    %397 = vector.shape_cast %396 : vector<1x10x10x128xf32> to vector<10x10x128xf32>
    %c3_398 = arith.constant 3 : index
    %c0_399 = arith.constant 0 : index
    %c0_400 = arith.constant 0 : index
    %c0_401 = arith.constant 0 : index
    %398 = vector.load %arg8[%c3_398, %c0_399, %c0_400, %c0_401] : memref<4x10x10x128xf32, #tpu.memory_space<vmem>>, vector<1x10x10x128xf32>
    %399 = vector.shape_cast %398 : vector<1x10x10x128xf32> to vector<10x10x128xf32>
    %400 = vector.extract_strided_slice %397 {offsets = [0, 0, 0], sizes = [10, 9, 128], strides = [1, 1, 1]} : vector<10x10x128xf32> to vector<10x9x128xf32>
    %cst_402 = arith.constant 1.250000e-01 : f32
    %401 = vector.broadcast %cst_402 : f32 to vector<10x9x128xf32>
    %402 = arith.mulf %401, %400 : vector<10x9x128xf32>
    %403 = vector.extract_strided_slice %399 {offsets = [0, 0, 0], sizes = [10, 9, 128], strides = [1, 1, 1]} : vector<10x10x128xf32> to vector<10x9x128xf32>
    %cst_403 = arith.constant 3.750000e-01 : f32
    %404 = vector.broadcast %cst_403 : f32 to vector<10x9x128xf32>
    %405 = arith.mulf %404, %403 : vector<10x9x128xf32>
    %406 = arith.addf %402, %405 : vector<10x9x128xf32>
    %407 = vector.extract_strided_slice %397 {offsets = [0, 1, 0], sizes = [10, 9, 128], strides = [1, 1, 1]} : vector<10x10x128xf32> to vector<10x9x128xf32>
    %cst_404 = arith.constant 3.750000e-01 : f32
    %408 = vector.broadcast %cst_404 : f32 to vector<10x9x128xf32>
    %409 = arith.mulf %408, %407 : vector<10x9x128xf32>
    %410 = arith.addf %406, %409 : vector<10x9x128xf32>
    %411 = vector.extract_strided_slice %399 {offsets = [0, 1, 0], sizes = [10, 9, 128], strides = [1, 1, 1]} : vector<10x10x128xf32> to vector<10x9x128xf32>
    %cst_405 = arith.constant 1.250000e-01 : f32
    %412 = vector.broadcast %cst_405 : f32 to vector<10x9x128xf32>
    %413 = arith.mulf %412, %411 : vector<10x9x128xf32>
    %414 = arith.addf %410, %413 : vector<10x9x128xf32>
    %415 = vector.extract_strided_slice %399 {offsets = [0, 0, 0], sizes = [10, 8, 128], strides = [1, 1, 1]} : vector<10x10x128xf32> to vector<10x8x128xf32>
    %cst_406 = arith.constant 1.250000e-01 : f32
    %416 = vector.broadcast %cst_406 : f32 to vector<10x8x128xf32>
    %417 = arith.mulf %416, %415 : vector<10x8x128xf32>
    %418 = vector.extract_strided_slice %397 {offsets = [0, 1, 0], sizes = [10, 8, 128], strides = [1, 1, 1]} : vector<10x10x128xf32> to vector<10x8x128xf32>
    %cst_407 = arith.constant 3.750000e-01 : f32
    %419 = vector.broadcast %cst_407 : f32 to vector<10x8x128xf32>
    %420 = arith.mulf %419, %418 : vector<10x8x128xf32>
    %421 = arith.addf %417, %420 : vector<10x8x128xf32>
    %422 = vector.extract_strided_slice %399 {offsets = [0, 1, 0], sizes = [10, 8, 128], strides = [1, 1, 1]} : vector<10x10x128xf32> to vector<10x8x128xf32>
    %cst_408 = arith.constant 3.750000e-01 : f32
    %423 = vector.broadcast %cst_408 : f32 to vector<10x8x128xf32>
    %424 = arith.mulf %423, %422 : vector<10x8x128xf32>
    %425 = arith.addf %421, %424 : vector<10x8x128xf32>
    %426 = vector.extract_strided_slice %397 {offsets = [0, 2, 0], sizes = [10, 8, 128], strides = [1, 1, 1]} : vector<10x10x128xf32> to vector<10x8x128xf32>
    %cst_409 = arith.constant 1.250000e-01 : f32
    %427 = vector.broadcast %cst_409 : f32 to vector<10x8x128xf32>
    %428 = arith.mulf %427, %426 : vector<10x8x128xf32>
    %429 = arith.addf %425, %428 : vector<10x8x128xf32>
    %430 = vector.extract_strided_slice %380 {offsets = [0, 0, 0], sizes = [9, 9, 128], strides = [1, 1, 1]} : vector<10x9x128xf32> to vector<9x9x128xf32>
    %cst_410 = arith.constant 1.250000e-01 : f32
    %431 = vector.broadcast %cst_410 : f32 to vector<9x9x128xf32>
    %432 = arith.mulf %431, %430 : vector<9x9x128xf32>
    %433 = vector.extract_strided_slice %414 {offsets = [0, 0, 0], sizes = [9, 9, 128], strides = [1, 1, 1]} : vector<10x9x128xf32> to vector<9x9x128xf32>
    %cst_411 = arith.constant 3.750000e-01 : f32
    %434 = vector.broadcast %cst_411 : f32 to vector<9x9x128xf32>
    %435 = arith.mulf %434, %433 : vector<9x9x128xf32>
    %436 = arith.addf %432, %435 : vector<9x9x128xf32>
    %437 = vector.extract_strided_slice %380 {offsets = [1, 0, 0], sizes = [9, 9, 128], strides = [1, 1, 1]} : vector<10x9x128xf32> to vector<9x9x128xf32>
    %cst_412 = arith.constant 3.750000e-01 : f32
    %438 = vector.broadcast %cst_412 : f32 to vector<9x9x128xf32>
    %439 = arith.mulf %438, %437 : vector<9x9x128xf32>
    %440 = arith.addf %436, %439 : vector<9x9x128xf32>
    %441 = vector.extract_strided_slice %414 {offsets = [1, 0, 0], sizes = [9, 9, 128], strides = [1, 1, 1]} : vector<10x9x128xf32> to vector<9x9x128xf32>
    %cst_413 = arith.constant 1.250000e-01 : f32
    %442 = vector.broadcast %cst_413 : f32 to vector<9x9x128xf32>
    %443 = arith.mulf %442, %441 : vector<9x9x128xf32>
    %444 = arith.addf %440, %443 : vector<9x9x128xf32>
    %445 = vector.extract_strided_slice %414 {offsets = [0, 0, 0], sizes = [8, 9, 128], strides = [1, 1, 1]} : vector<10x9x128xf32> to vector<8x9x128xf32>
    %cst_414 = arith.constant 1.250000e-01 : f32
    %446 = vector.broadcast %cst_414 : f32 to vector<8x9x128xf32>
    %447 = arith.mulf %446, %445 : vector<8x9x128xf32>
    %448 = vector.extract_strided_slice %380 {offsets = [1, 0, 0], sizes = [8, 9, 128], strides = [1, 1, 1]} : vector<10x9x128xf32> to vector<8x9x128xf32>
    %cst_415 = arith.constant 3.750000e-01 : f32
    %449 = vector.broadcast %cst_415 : f32 to vector<8x9x128xf32>
    %450 = arith.mulf %449, %448 : vector<8x9x128xf32>
    %451 = arith.addf %447, %450 : vector<8x9x128xf32>
    %452 = vector.extract_strided_slice %414 {offsets = [1, 0, 0], sizes = [8, 9, 128], strides = [1, 1, 1]} : vector<10x9x128xf32> to vector<8x9x128xf32>
    %cst_416 = arith.constant 3.750000e-01 : f32
    %453 = vector.broadcast %cst_416 : f32 to vector<8x9x128xf32>
    %454 = arith.mulf %453, %452 : vector<8x9x128xf32>
    %455 = arith.addf %451, %454 : vector<8x9x128xf32>
    %456 = vector.extract_strided_slice %380 {offsets = [2, 0, 0], sizes = [8, 9, 128], strides = [1, 1, 1]} : vector<10x9x128xf32> to vector<8x9x128xf32>
    %cst_417 = arith.constant 1.250000e-01 : f32
    %457 = vector.broadcast %cst_417 : f32 to vector<8x9x128xf32>
    %458 = arith.mulf %457, %456 : vector<8x9x128xf32>
    %459 = arith.addf %455, %458 : vector<8x9x128xf32>
    %460 = vector.extract_strided_slice %395 {offsets = [0, 0, 0], sizes = [9, 8, 128], strides = [1, 1, 1]} : vector<10x8x128xf32> to vector<9x8x128xf32>
    %cst_418 = arith.constant 1.250000e-01 : f32
    %461 = vector.broadcast %cst_418 : f32 to vector<9x8x128xf32>
    %462 = arith.mulf %461, %460 : vector<9x8x128xf32>
    %463 = vector.extract_strided_slice %429 {offsets = [0, 0, 0], sizes = [9, 8, 128], strides = [1, 1, 1]} : vector<10x8x128xf32> to vector<9x8x128xf32>
    %cst_419 = arith.constant 3.750000e-01 : f32
    %464 = vector.broadcast %cst_419 : f32 to vector<9x8x128xf32>
    %465 = arith.mulf %464, %463 : vector<9x8x128xf32>
    %466 = arith.addf %462, %465 : vector<9x8x128xf32>
    %467 = vector.extract_strided_slice %395 {offsets = [1, 0, 0], sizes = [9, 8, 128], strides = [1, 1, 1]} : vector<10x8x128xf32> to vector<9x8x128xf32>
    %cst_420 = arith.constant 3.750000e-01 : f32
    %468 = vector.broadcast %cst_420 : f32 to vector<9x8x128xf32>
    %469 = arith.mulf %468, %467 : vector<9x8x128xf32>
    %470 = arith.addf %466, %469 : vector<9x8x128xf32>
    %471 = vector.extract_strided_slice %429 {offsets = [1, 0, 0], sizes = [9, 8, 128], strides = [1, 1, 1]} : vector<10x8x128xf32> to vector<9x8x128xf32>
    %cst_421 = arith.constant 1.250000e-01 : f32
    %472 = vector.broadcast %cst_421 : f32 to vector<9x8x128xf32>
    %473 = arith.mulf %472, %471 : vector<9x8x128xf32>
    %474 = arith.addf %470, %473 : vector<9x8x128xf32>
    %475 = vector.extract_strided_slice %429 {offsets = [0, 0, 0], sizes = [8, 8, 128], strides = [1, 1, 1]} : vector<10x8x128xf32> to vector<8x8x128xf32>
    %cst_422 = arith.constant 1.250000e-01 : f32
    %476 = vector.broadcast %cst_422 : f32 to vector<8x8x128xf32>
    %477 = arith.mulf %476, %475 : vector<8x8x128xf32>
    %478 = vector.extract_strided_slice %395 {offsets = [1, 0, 0], sizes = [8, 8, 128], strides = [1, 1, 1]} : vector<10x8x128xf32> to vector<8x8x128xf32>
    %cst_423 = arith.constant 3.750000e-01 : f32
    %479 = vector.broadcast %cst_423 : f32 to vector<8x8x128xf32>
    %480 = arith.mulf %479, %478 : vector<8x8x128xf32>
    %481 = arith.addf %477, %480 : vector<8x8x128xf32>
    %482 = vector.extract_strided_slice %429 {offsets = [1, 0, 0], sizes = [8, 8, 128], strides = [1, 1, 1]} : vector<10x8x128xf32> to vector<8x8x128xf32>
    %cst_424 = arith.constant 3.750000e-01 : f32
    %483 = vector.broadcast %cst_424 : f32 to vector<8x8x128xf32>
    %484 = arith.mulf %483, %482 : vector<8x8x128xf32>
    %485 = arith.addf %481, %484 : vector<8x8x128xf32>
    %486 = vector.extract_strided_slice %395 {offsets = [2, 0, 0], sizes = [8, 8, 128], strides = [1, 1, 1]} : vector<10x8x128xf32> to vector<8x8x128xf32>
    %cst_425 = arith.constant 1.250000e-01 : f32
    %487 = vector.broadcast %cst_425 : f32 to vector<8x8x128xf32>
    %488 = arith.mulf %487, %486 : vector<8x8x128xf32>
    %489 = arith.addf %485, %488 : vector<8x8x128xf32>
    %cst_426 = arith.constant 0.000000e+00 : f32
    %490 = vector.broadcast %cst_426 : f32 to vector<64x128xf32>
    %491 = vector.extract_strided_slice %444 {offsets = [0, 0, 0], sizes = [8, 8, 128], strides = [1, 1, 1]} : vector<9x9x128xf32> to vector<8x8x128xf32>
    %492 = vector.shape_cast %491 : vector<8x8x128xf32> to vector<64x128xf32>
    %493 = arith.truncf %492 : vector<64x128xf32> to vector<64x128xbf16>
    %c0_427 = arith.constant 0 : index
    %c0_428 = arith.constant 0 : index
    %c0_429 = arith.constant 0 : index
    %494 = vector.load %arg4[%c0_427, %c0_428, %c0_429] : memref<9x128x128xbf16, #tpu.memory_space<vmem>>, vector<1x128x128xbf16>
    %495 = vector.shape_cast %494 : vector<1x128x128xbf16> to vector<128x128xbf16>
    %cst_430 = arith.constant dense<0.000000e+00> : vector<64x128xf32>
    %496 = tpu.matmul %493, %495, %cst_430 {dimension_numbers = #tpu.dot_dimension_numbers<[1], [0], [0], [1], [0, 0, 1, 1], [], []>} : vector<64x128xbf16>, vector<128x128xbf16>, vector<64x128xf32> -> vector<64x128xf32>
    %497 = arith.addf %490, %496 : vector<64x128xf32>
    %498 = vector.extract_strided_slice %474 {offsets = [0, 0, 0], sizes = [8, 8, 128], strides = [1, 1, 1]} : vector<9x8x128xf32> to vector<8x8x128xf32>
    %499 = vector.shape_cast %498 : vector<8x8x128xf32> to vector<64x128xf32>
    %500 = arith.truncf %499 : vector<64x128xf32> to vector<64x128xbf16>
    %c1_431 = arith.constant 1 : index
    %c0_432 = arith.constant 0 : index
    %c0_433 = arith.constant 0 : index
    %501 = vector.load %arg4[%c1_431, %c0_432, %c0_433] : memref<9x128x128xbf16, #tpu.memory_space<vmem>>, vector<1x128x128xbf16>
    %502 = vector.shape_cast %501 : vector<1x128x128xbf16> to vector<128x128xbf16>
    %cst_434 = arith.constant dense<0.000000e+00> : vector<64x128xf32>
    %503 = tpu.matmul %500, %502, %cst_434 {dimension_numbers = #tpu.dot_dimension_numbers<[1], [0], [0], [1], [0, 0, 1, 1], [], []>} : vector<64x128xbf16>, vector<128x128xbf16>, vector<64x128xf32> -> vector<64x128xf32>
    %504 = arith.addf %497, %503 : vector<64x128xf32>
    %505 = vector.extract_strided_slice %444 {offsets = [0, 1, 0], sizes = [8, 8, 128], strides = [1, 1, 1]} : vector<9x9x128xf32> to vector<8x8x128xf32>
    %506 = vector.shape_cast %505 : vector<8x8x128xf32> to vector<64x128xf32>
    %507 = arith.truncf %506 : vector<64x128xf32> to vector<64x128xbf16>
    %c2_435 = arith.constant 2 : index
    %c0_436 = arith.constant 0 : index
    %c0_437 = arith.constant 0 : index
    %508 = vector.load %arg4[%c2_435, %c0_436, %c0_437] : memref<9x128x128xbf16, #tpu.memory_space<vmem>>, vector<1x128x128xbf16>
    %509 = vector.shape_cast %508 : vector<1x128x128xbf16> to vector<128x128xbf16>
    %cst_438 = arith.constant dense<0.000000e+00> : vector<64x128xf32>
    %510 = tpu.matmul %507, %509, %cst_438 {dimension_numbers = #tpu.dot_dimension_numbers<[1], [0], [0], [1], [0, 0, 1, 1], [], []>} : vector<64x128xbf16>, vector<128x128xbf16>, vector<64x128xf32> -> vector<64x128xf32>
    %511 = arith.addf %504, %510 : vector<64x128xf32>
    %512 = vector.extract_strided_slice %459 {offsets = [0, 0, 0], sizes = [8, 8, 128], strides = [1, 1, 1]} : vector<8x9x128xf32> to vector<8x8x128xf32>
    %513 = vector.shape_cast %512 : vector<8x8x128xf32> to vector<64x128xf32>
    %514 = arith.truncf %513 : vector<64x128xf32> to vector<64x128xbf16>
    %c3_439 = arith.constant 3 : index
    %c0_440 = arith.constant 0 : index
    %c0_441 = arith.constant 0 : index
    %515 = vector.load %arg4[%c3_439, %c0_440, %c0_441] : memref<9x128x128xbf16, #tpu.memory_space<vmem>>, vector<1x128x128xbf16>
    %516 = vector.shape_cast %515 : vector<1x128x128xbf16> to vector<128x128xbf16>
    %cst_442 = arith.constant dense<0.000000e+00> : vector<64x128xf32>
    %517 = tpu.matmul %514, %516, %cst_442 {dimension_numbers = #tpu.dot_dimension_numbers<[1], [0], [0], [1], [0, 0, 1, 1], [], []>} : vector<64x128xbf16>, vector<128x128xbf16>, vector<64x128xf32> -> vector<64x128xf32>
    %518 = arith.addf %511, %517 : vector<64x128xf32>
    %519 = vector.shape_cast %489 : vector<8x8x128xf32> to vector<64x128xf32>
    %520 = arith.truncf %519 : vector<64x128xf32> to vector<64x128xbf16>
    %c4_443 = arith.constant 4 : index
    %c0_444 = arith.constant 0 : index
    %c0_445 = arith.constant 0 : index
    %521 = vector.load %arg4[%c4_443, %c0_444, %c0_445] : memref<9x128x128xbf16, #tpu.memory_space<vmem>>, vector<1x128x128xbf16>
    %522 = vector.shape_cast %521 : vector<1x128x128xbf16> to vector<128x128xbf16>
    %cst_446 = arith.constant dense<0.000000e+00> : vector<64x128xf32>
    %523 = tpu.matmul %520, %522, %cst_446 {dimension_numbers = #tpu.dot_dimension_numbers<[1], [0], [0], [1], [0, 0, 1, 1], [], []>} : vector<64x128xbf16>, vector<128x128xbf16>, vector<64x128xf32> -> vector<64x128xf32>
    %524 = arith.addf %518, %523 : vector<64x128xf32>
    %525 = vector.extract_strided_slice %459 {offsets = [0, 1, 0], sizes = [8, 8, 128], strides = [1, 1, 1]} : vector<8x9x128xf32> to vector<8x8x128xf32>
    %526 = vector.shape_cast %525 : vector<8x8x128xf32> to vector<64x128xf32>
    %527 = arith.truncf %526 : vector<64x128xf32> to vector<64x128xbf16>
    %c5_447 = arith.constant 5 : index
    %c0_448 = arith.constant 0 : index
    %c0_449 = arith.constant 0 : index
    %528 = vector.load %arg4[%c5_447, %c0_448, %c0_449] : memref<9x128x128xbf16, #tpu.memory_space<vmem>>, vector<1x128x128xbf16>
    %529 = vector.shape_cast %528 : vector<1x128x128xbf16> to vector<128x128xbf16>
    %cst_450 = arith.constant dense<0.000000e+00> : vector<64x128xf32>
    %530 = tpu.matmul %527, %529, %cst_450 {dimension_numbers = #tpu.dot_dimension_numbers<[1], [0], [0], [1], [0, 0, 1, 1], [], []>} : vector<64x128xbf16>, vector<128x128xbf16>, vector<64x128xf32> -> vector<64x128xf32>
    %531 = arith.addf %524, %530 : vector<64x128xf32>
    %532 = vector.extract_strided_slice %444 {offsets = [1, 0, 0], sizes = [8, 8, 128], strides = [1, 1, 1]} : vector<9x9x128xf32> to vector<8x8x128xf32>
    %533 = vector.shape_cast %532 : vector<8x8x128xf32> to vector<64x128xf32>
    %534 = arith.truncf %533 : vector<64x128xf32> to vector<64x128xbf16>
    %c6_451 = arith.constant 6 : index
    %c0_452 = arith.constant 0 : index
    %c0_453 = arith.constant 0 : index
    %535 = vector.load %arg4[%c6_451, %c0_452, %c0_453] : memref<9x128x128xbf16, #tpu.memory_space<vmem>>, vector<1x128x128xbf16>
    %536 = vector.shape_cast %535 : vector<1x128x128xbf16> to vector<128x128xbf16>
    %cst_454 = arith.constant dense<0.000000e+00> : vector<64x128xf32>
    %537 = tpu.matmul %534, %536, %cst_454 {dimension_numbers = #tpu.dot_dimension_numbers<[1], [0], [0], [1], [0, 0, 1, 1], [], []>} : vector<64x128xbf16>, vector<128x128xbf16>, vector<64x128xf32> -> vector<64x128xf32>
    %538 = arith.addf %531, %537 : vector<64x128xf32>
    %539 = vector.extract_strided_slice %474 {offsets = [1, 0, 0], sizes = [8, 8, 128], strides = [1, 1, 1]} : vector<9x8x128xf32> to vector<8x8x128xf32>
    %540 = vector.shape_cast %539 : vector<8x8x128xf32> to vector<64x128xf32>
    %541 = arith.truncf %540 : vector<64x128xf32> to vector<64x128xbf16>
    %c7_455 = arith.constant 7 : index
    %c0_456 = arith.constant 0 : index
    %c0_457 = arith.constant 0 : index
    %542 = vector.load %arg4[%c7_455, %c0_456, %c0_457] : memref<9x128x128xbf16, #tpu.memory_space<vmem>>, vector<1x128x128xbf16>
    %543 = vector.shape_cast %542 : vector<1x128x128xbf16> to vector<128x128xbf16>
    %cst_458 = arith.constant dense<0.000000e+00> : vector<64x128xf32>
    %544 = tpu.matmul %541, %543, %cst_458 {dimension_numbers = #tpu.dot_dimension_numbers<[1], [0], [0], [1], [0, 0, 1, 1], [], []>} : vector<64x128xbf16>, vector<128x128xbf16>, vector<64x128xf32> -> vector<64x128xf32>
    %545 = arith.addf %538, %544 : vector<64x128xf32>
    %546 = vector.extract_strided_slice %444 {offsets = [1, 1, 0], sizes = [8, 8, 128], strides = [1, 1, 1]} : vector<9x9x128xf32> to vector<8x8x128xf32>
    %547 = vector.shape_cast %546 : vector<8x8x128xf32> to vector<64x128xf32>
    %548 = arith.truncf %547 : vector<64x128xf32> to vector<64x128xbf16>
    %c8_459 = arith.constant 8 : index
    %c0_460 = arith.constant 0 : index
    %c0_461 = arith.constant 0 : index
    %549 = vector.load %arg4[%c8_459, %c0_460, %c0_461] : memref<9x128x128xbf16, #tpu.memory_space<vmem>>, vector<1x128x128xbf16>
    %550 = vector.shape_cast %549 : vector<1x128x128xbf16> to vector<128x128xbf16>
    %cst_462 = arith.constant dense<0.000000e+00> : vector<64x128xf32>
    %551 = tpu.matmul %548, %550, %cst_462 {dimension_numbers = #tpu.dot_dimension_numbers<[1], [0], [0], [1], [0, 0, 1, 1], [], []>} : vector<64x128xbf16>, vector<128x128xbf16>, vector<64x128xf32> -> vector<64x128xf32>
    %552 = arith.addf %545, %551 : vector<64x128xf32>
    %c0_463 = arith.constant 0 : index
    %c0_464 = arith.constant 0 : index
    %553 = vector.load %arg5[%c0_463, %c0_464] : memref<1x128xf32, #tpu.memory_space<vmem>>, vector<1x128xf32>
    %554 = vector.broadcast %553 : vector<1x128xf32> to vector<64x128xf32>
    %555 = arith.addf %552, %554 : vector<64x128xf32>
    %cst_465 = arith.constant 0.000000e+00 : f32
    %556 = vector.broadcast %cst_465 : f32 to vector<64x128xf32>
    %557 = arith.cmpf oge, %555, %556 : vector<64x128xf32>
    %cst_466 = arith.constant 2.000000e-01 : f32
    %558 = vector.broadcast %cst_466 : f32 to vector<64x128xf32>
    %559 = arith.mulf %555, %558 : vector<64x128xf32>
    %560 = arith.select %557, %555, %559 : vector<64x128xi1>, vector<64x128xf32>
    %c0_467 = arith.constant 0 : index
    %c0_468 = arith.constant 0 : index
    %c0_469 = arith.constant 0 : index
    %c0_470 = arith.constant 0 : index
    %561 = vector.load %arg1[%c0_467, %c0_468, %c0_469, %c0_470] : memref<1x36x9x128xbf16, #tpu.memory_space<vmem>>, vector<1x9x9x128xbf16>
    %562 = vector.shape_cast %561 : vector<1x9x9x128xbf16> to vector<9x9x128xbf16>
    %563 = arith.extf %562 : vector<9x9x128xbf16> to vector<9x9x128xf32>
    %c0_471 = arith.constant 0 : index
    %c9_472 = arith.constant 9 : index
    %c0_473 = arith.constant 0 : index
    %c0_474 = arith.constant 0 : index
    %564 = vector.load %arg1[%c0_471, %c9_472, %c0_473, %c0_474] : memref<1x36x9x128xbf16, #tpu.memory_space<vmem>>, vector<1x9x9x128xbf16>
    %565 = vector.shape_cast %564 : vector<1x9x9x128xbf16> to vector<9x9x128xbf16>
    %566 = arith.extf %565 : vector<9x9x128xbf16> to vector<9x9x128xf32>
    %567 = vector.extract_strided_slice %563 {offsets = [0, 0, 0], sizes = [9, 8, 128], strides = [1, 1, 1]} : vector<9x9x128xf32> to vector<9x8x128xf32>
    %cst_475 = arith.constant 1.250000e-01 : f32
    %568 = vector.broadcast %cst_475 : f32 to vector<9x8x128xf32>
    %569 = arith.mulf %568, %567 : vector<9x8x128xf32>
    %570 = vector.extract_strided_slice %566 {offsets = [0, 0, 0], sizes = [9, 8, 128], strides = [1, 1, 1]} : vector<9x9x128xf32> to vector<9x8x128xf32>
    %cst_476 = arith.constant 3.750000e-01 : f32
    %571 = vector.broadcast %cst_476 : f32 to vector<9x8x128xf32>
    %572 = arith.mulf %571, %570 : vector<9x8x128xf32>
    %573 = arith.addf %569, %572 : vector<9x8x128xf32>
    %574 = vector.extract_strided_slice %563 {offsets = [0, 1, 0], sizes = [9, 8, 128], strides = [1, 1, 1]} : vector<9x9x128xf32> to vector<9x8x128xf32>
    %cst_477 = arith.constant 3.750000e-01 : f32
    %575 = vector.broadcast %cst_477 : f32 to vector<9x8x128xf32>
    %576 = arith.mulf %575, %574 : vector<9x8x128xf32>
    %577 = arith.addf %573, %576 : vector<9x8x128xf32>
    %578 = vector.extract_strided_slice %566 {offsets = [0, 1, 0], sizes = [9, 8, 128], strides = [1, 1, 1]} : vector<9x9x128xf32> to vector<9x8x128xf32>
    %cst_478 = arith.constant 1.250000e-01 : f32
    %579 = vector.broadcast %cst_478 : f32 to vector<9x8x128xf32>
    %580 = arith.mulf %579, %578 : vector<9x8x128xf32>
    %581 = arith.addf %577, %580 : vector<9x8x128xf32>
    %c0_479 = arith.constant 0 : index
    %c18_480 = arith.constant 18 : index
    %c0_481 = arith.constant 0 : index
    %c0_482 = arith.constant 0 : index
    %582 = vector.load %arg1[%c0_479, %c18_480, %c0_481, %c0_482] : memref<1x36x9x128xbf16, #tpu.memory_space<vmem>>, vector<1x9x9x128xbf16>
    %583 = vector.shape_cast %582 : vector<1x9x9x128xbf16> to vector<9x9x128xbf16>
    %584 = arith.extf %583 : vector<9x9x128xbf16> to vector<9x9x128xf32>
    %c0_483 = arith.constant 0 : index
    %c27_484 = arith.constant 27 : index
    %c0_485 = arith.constant 0 : index
    %c0_486 = arith.constant 0 : index
    %585 = vector.load %arg1[%c0_483, %c27_484, %c0_485, %c0_486] : memref<1x36x9x128xbf16, #tpu.memory_space<vmem>>, vector<1x9x9x128xbf16>
    %586 = vector.shape_cast %585 : vector<1x9x9x128xbf16> to vector<9x9x128xbf16>
    %587 = arith.extf %586 : vector<9x9x128xbf16> to vector<9x9x128xf32>
    %588 = vector.extract_strided_slice %584 {offsets = [0, 0, 0], sizes = [9, 8, 128], strides = [1, 1, 1]} : vector<9x9x128xf32> to vector<9x8x128xf32>
    %cst_487 = arith.constant 1.250000e-01 : f32
    %589 = vector.broadcast %cst_487 : f32 to vector<9x8x128xf32>
    %590 = arith.mulf %589, %588 : vector<9x8x128xf32>
    %591 = vector.extract_strided_slice %587 {offsets = [0, 0, 0], sizes = [9, 8, 128], strides = [1, 1, 1]} : vector<9x9x128xf32> to vector<9x8x128xf32>
    %cst_488 = arith.constant 3.750000e-01 : f32
    %592 = vector.broadcast %cst_488 : f32 to vector<9x8x128xf32>
    %593 = arith.mulf %592, %591 : vector<9x8x128xf32>
    %594 = arith.addf %590, %593 : vector<9x8x128xf32>
    %595 = vector.extract_strided_slice %584 {offsets = [0, 1, 0], sizes = [9, 8, 128], strides = [1, 1, 1]} : vector<9x9x128xf32> to vector<9x8x128xf32>
    %cst_489 = arith.constant 3.750000e-01 : f32
    %596 = vector.broadcast %cst_489 : f32 to vector<9x8x128xf32>
    %597 = arith.mulf %596, %595 : vector<9x8x128xf32>
    %598 = arith.addf %594, %597 : vector<9x8x128xf32>
    %599 = vector.extract_strided_slice %587 {offsets = [0, 1, 0], sizes = [9, 8, 128], strides = [1, 1, 1]} : vector<9x9x128xf32> to vector<9x8x128xf32>
    %cst_490 = arith.constant 1.250000e-01 : f32
    %600 = vector.broadcast %cst_490 : f32 to vector<9x8x128xf32>
    %601 = arith.mulf %600, %599 : vector<9x8x128xf32>
    %602 = arith.addf %598, %601 : vector<9x8x128xf32>
    %603 = vector.extract_strided_slice %581 {offsets = [0, 0, 0], sizes = [8, 8, 128], strides = [1, 1, 1]} : vector<9x8x128xf32> to vector<8x8x128xf32>
    %cst_491 = arith.constant 1.250000e-01 : f32
    %604 = vector.broadcast %cst_491 : f32 to vector<8x8x128xf32>
    %605 = arith.mulf %604, %603 : vector<8x8x128xf32>
    %606 = vector.extract_strided_slice %602 {offsets = [0, 0, 0], sizes = [8, 8, 128], strides = [1, 1, 1]} : vector<9x8x128xf32> to vector<8x8x128xf32>
    %cst_492 = arith.constant 3.750000e-01 : f32
    %607 = vector.broadcast %cst_492 : f32 to vector<8x8x128xf32>
    %608 = arith.mulf %607, %606 : vector<8x8x128xf32>
    %609 = arith.addf %605, %608 : vector<8x8x128xf32>
    %610 = vector.extract_strided_slice %581 {offsets = [1, 0, 0], sizes = [8, 8, 128], strides = [1, 1, 1]} : vector<9x8x128xf32> to vector<8x8x128xf32>
    %cst_493 = arith.constant 3.750000e-01 : f32
    %611 = vector.broadcast %cst_493 : f32 to vector<8x8x128xf32>
    %612 = arith.mulf %611, %610 : vector<8x8x128xf32>
    %613 = arith.addf %609, %612 : vector<8x8x128xf32>
    %614 = vector.extract_strided_slice %602 {offsets = [1, 0, 0], sizes = [8, 8, 128], strides = [1, 1, 1]} : vector<9x8x128xf32> to vector<8x8x128xf32>
    %cst_494 = arith.constant 1.250000e-01 : f32
    %615 = vector.broadcast %cst_494 : f32 to vector<8x8x128xf32>
    %616 = arith.mulf %615, %614 : vector<8x8x128xf32>
    %617 = arith.addf %613, %616 : vector<8x8x128xf32>
    %618 = vector.shape_cast %617 : vector<8x8x128xf32> to vector<64x128xf32>
    %619 = arith.truncf %618 : vector<64x128xf32> to vector<64x128xbf16>
    %c0_495 = arith.constant 0 : index
    %c0_496 = arith.constant 0 : index
    %620 = vector.load %arg6[%c0_495, %c0_496] : memref<128x128xbf16, #tpu.memory_space<vmem>>, vector<128x128xbf16>
    %cst_497 = arith.constant dense<0.000000e+00> : vector<64x128xf32>
    %621 = tpu.matmul %619, %620, %cst_497 {dimension_numbers = #tpu.dot_dimension_numbers<[1], [0], [0], [1], [0, 0, 1, 1], [], []>} : vector<64x128xbf16>, vector<128x128xbf16>, vector<64x128xf32> -> vector<64x128xf32>
    %622 = arith.addf %560, %621 : vector<64x128xf32>
    %623 = vector.shape_cast %622 : vector<64x128xf32> to vector<8x8x128xf32>
    %c0_498 = arith.constant 0 : index
    %c0_499 = arith.constant 0 : index
    %c0_500 = arith.constant 0 : index
    %c0_501 = arith.constant 0 : index
    %624 = vector.load %arg7[%c0_498, %c0_499, %c0_500, %c0_501] : memref<1x8x8x128xf32, #tpu.memory_space<vmem>>, vector<1x8x8x128xf32>
    %625 = vector.shape_cast %624 : vector<1x8x8x128xf32> to vector<8x8x128xf32>
    %626 = vector.shape_cast %623 : vector<8x8x128xf32> to vector<1x8x8x128xf32>
    tpu.vector_store %arg7[%c0_498, %c0_499, %c0_500, %c0_501], %626 {strides = array<i32>} : memref<1x8x8x128xf32, #tpu.memory_space<vmem>>, vector<1x8x8x128xf32>,
    return
  }
  func.func @transform_0(%arg0: i32) -> (i32, i32, i32, i32) {
    %c0_i32 = arith.constant 0 : i32
    %c0_i32_0 = arith.constant 0 : i32
    %c0_i32_1 = arith.constant 0 : i32
    %c0_i32_2 = arith.constant 0 : i32
    return %arg0, %c0_i32, %c0_i32_0, %c0_i32_1 : i32, i32, i32, i32
  }
  func.func @transform_1(%arg0: i32) -> (i32, i32, i32) {
    %c0_i32 = arith.constant 0 : i32
    %c0_i32_0 = arith.constant 0 : i32
    %c0_i32_1 = arith.constant 0 : i32
    %c0_i32_2 = arith.constant 0 : i32
    return %c0_i32, %c0_i32_0, %c0_i32_1 : i32, i32, i32
  }
  func.func @transform_2(%arg0: i32) -> (i32, i32) {
    %c0_i32 = arith.constant 0 : i32
    %c0_i32_0 = arith.constant 0 : i32
    %c0_i32_1 = arith.constant 0 : i32
    return %c0_i32, %c0_i32_0 : i32, i32
  }
  func.func @transform_3(%arg0: i32) -> (i32, i32, i32) {
    %c0_i32 = arith.constant 0 : i32
    %c0_i32_0 = arith.constant 0 : i32
    %c0_i32_1 = arith.constant 0 : i32
    %c0_i32_2 = arith.constant 0 : i32
    return %c0_i32, %c0_i32_0, %c0_i32_1 : i32, i32, i32
  }
  func.func @transform_4(%arg0: i32) -> (i32, i32) {
    %c0_i32 = arith.constant 0 : i32
    %c0_i32_0 = arith.constant 0 : i32
    %c0_i32_1 = arith.constant 0 : i32
    return %c0_i32, %c0_i32_0 : i32, i32
  }
  func.func @transform_5(%arg0: i32) -> (i32, i32) {
    %c0_i32 = arith.constant 0 : i32
    %c0_i32_0 = arith.constant 0 : i32
    %c0_i32_1 = arith.constant 0 : i32
    return %c0_i32, %c0_i32_0 : i32, i32
  }
  func.func @transform_6(%arg0: i32) -> (i32, i32, i32, i32) {
    %c0_i32 = arith.constant 0 : i32
    %c0_i32_0 = arith.constant 0 : i32
    %c0_i32_1 = arith.constant 0 : i32
    %c0_i32_2 = arith.constant 0 : i32
    return %arg0, %c0_i32, %c0_i32_0, %c0_i32_1 : i32, i32, i32, i32
  }
}

</mosaic_0001>

<bundles_post_ra>
// kernel: resblock_forward.1
= control target key start
LH: loop header
LB: loop body
LE: loop exit
PB: predicated region body
PF: predicated region fallthrough
CT: control target
= control target key end

     0   :  { %s16113_s21 = smov 0   ;;  %s19943_s0 = inlined_call_operand.vmem [shape: bf16[2,36,9,128], index: 0, kind: input, shape index: {}]   ;;  %s19944_s1 = inlined_call_operand.vmem [shape: bf16[9,128,128], index: 1, kind: input, shape index: {}]   ;;  %s19945_s2 = inlined_call_operand.vmem [shape: f32[1,128], index: 2, kind: input, shape index: {}]   ;;  %s19946_s3 = inlined_call_operand.vmem [shape: bf16[9,128,128], index: 3, kind: input, shape index: {}]   ;;  %s19947_s4 = inlined_call_operand.vmem [shape: f32[1,128], index: 4, kind: input, shape index: {}]   ;;  %s19948_s5 = inlined_call_operand.vmem [shape: bf16[128,128], index: 5, kind: input, shape index: {}]   ;;  %s19949_s6 = inlined_call_operand.vmem [shape: f32[2,8,8,128], index: 6, kind: output, shape index: {}]  }
   0x1 LB: > { %s12027_s22 = sadd.s32 4294967295, %s16075_s21   ;;  %p12031_p0 = scmp.ge.s32.totalorder %s16075_s21, 1  ;;  %s16075_s21 = sphi %s16113_s21, %s16_s21  }
   0x2   : > { %p212_p1 = scmp.lt.s32.totalorder %s16075_s21, 3 }
   0x4   : > { %p213_p2 = pnand %p12031_p0, %p212_p1 }
   0x6   : > { %216 = sbr.rel (%p213_p2) target bundleno = 1468 (0x5bc), region = 44 }
   0xd   : > { %v15627_v0 = vld [vmem:[%s19944_s1 + $0x40] sm:$0xff]   ;;  %p242_p3 = scmp.lt.s32.totalorder %s12027_s22, 1  ;;  %v15629_v2 = vld [vmem:[%s19944_s1 + $0x48] sm:$0xff]   ;;  %v15631_v4 = vld [vmem:[%s19944_s1 + $0x50] sm:$0xff]   ;;  %vm696_vm0 = vsmask.f32 3328 }
   0xe   : > { %v15628_v1 = vld [vmem:[%s19944_s1 + $0x100] sm:$0xff]   ;;  %14193 = vmatprep.subr.bf16.mxu1 %v15627_v0  ;;  %v15630_v3 = vld [vmem:[%s19944_s1 + $0x108] sm:$0xff]   ;;  %v15632_v5 = vld [vmem:[%s19944_s1 + $0x110] sm:$0xff]   ;;  %vm697_vm1 = vsmask.f32 7440 }
   0xf   : > { %14289 = vmatprep.subr.bf16.mxu0 %v15628_v1  ;;  %14194 = vmatpush3.bf16.msra.mxu1 %v15627_v0  ;;  %s20550_s22 = smov (!%p242_p3, %s12027_s22), 1  ;;  %v15633_v6 = vld [vmem:[%s19944_s1 + $0x58] sm:$0xff]   ;;  %v15635_v8 = vld [vmem:[%s19944_s1 + $0x60] sm:$0xff]   ;;  %v15637_v10 = vld [vmem:[%s19944_s1 + $0x68] sm:$0xff]  }
  0x10   : > { %14290 = vmatpush3.bf16.msra.mxu0 %v15628_v1  ;;  %14195 = vmatprep.subr.bf16.mxu1 %v15629_v2  ;;  %v15634_v7 = vld [vmem:[%s19944_s1 + $0x118] sm:$0xff]   ;;  %s15617_s15 = smul.u32 288, %s20550_s22  ;;  %v15636_v9 = vld [vmem:[%s19944_s1 + $0x120] sm:$0xff]   ;;  %v15638_v12 = vld [vmem:[%s19944_s1 + $0x128] sm:$0xff]   ;;  %s13640_s12 = sshll.u32 %s20550_s22, 6 }
  0x11   : > { %14291 = vmatprep.subr.bf16.mxu0 %v15630_v3  ;;  %v15639_v14 = vld [vmem:[%s19944_s1 + $0x70] sm:$0xff]   ;;  %v15641_v16 = vld [vmem:[%s19944_s1 + $0x78] sm:$0xff]   ;;  %v15644_v18 = vld [vmem:[%s19944_s1] sm:$0xff]  }
  0x12   : > { %s16157_s24 = scalar_lea.vmem %s19943_s0, %s15617_s15  ;;  %v15640_v15 = vld [vmem:[%s19944_s1 + $0x130] sm:$0xff]   ;;  %v15642_v17 = vld [vmem:[%s19944_s1 + $0x138] sm:$0xff]   ;;  %v15646_v19 = vld [vmem:[%s19944_s1 + $0x140] sm:$0xff]   ;;  %s19930_s15 = scalar_lea.vmem %s19949_s6, %s13640_s12 }
  0x13   : > { %14196 = vmatpush3.bf16.msra.mxu1 %v15629_v2  ;;  %v15643_v11 = vld [vmem:[%s16157_s24 + $0x48] ss:$8 sps:$4 sm:$0xff]   ;;  %v15645_v13 = vld [vmem:[%s16157_s24 + $0xd8] ss:$8 sps:$4 sm:$0xff]   ;;  %v12184_v34 = vld [vmem:[%s16157_s24 + $0x94] sm:$0x1] }
  0x14   : > { %14292 = vmatpush3.bf16.msra.mxu0 %v15630_v3  ;;  %14197 = vmatprep.subr.bf16.mxu1 %v15631_v4  ;;  %v15647_v20 = vld [vmem:[%s16157_s24 + $0x58] ss:$8 sps:$4 sm:$0xff]   ;;  %v15648_v21 = vld [vmem:[%s16157_s24 + $0xe8] ss:$8 sps:$4 sm:$0xff]   ;;  %v12186_v39 = vld [vmem:[%s16157_s24 + $0x9c] sm:$0x1] }
  0x15   : > { %14293 = vmatprep.subr.bf16.mxu0 %v15632_v5  ;;  %14209 = vmatprep.mubr.bf16.mxu1 %v15643_v11  ;;  %v15649_v22 = vld [vmem:[%s19944_s1 + $0x8] sm:$0xff]   ;;  %v15661_v25 = vld [vmem:[%s16157_s24 + $0xf8] ss:$8 sps:$4 sm:$0xff]   ;;  %v15651_v26 = vld [vmem:[%s19944_s1 + $0x10] sm:$0xff]   ;;  %v1333_v40 = vshll.u32 %v12184_v34, 16  ;;  %v1347_v46 = vshll.u32 %v12186_v39, 16 }
  0x16   : > { %14305 = vmatprep.mubr.bf16.mxu0 %v15645_v13  ;;  %v15650_v23 = vld [vmem:[%s19944_s1 + $0x148] sm:$0xff]   ;;  %v15652_v27 = vld [vmem:[%s19944_s1 + $0x150] sm:$0xff]   ;;  %v15653_v28 = vld [vmem:[%s19944_s1 + $0x18] sm:$0xff]  }
  0x17   : > { %14198 = vmatpush3.bf16.msra.mxu1 %v15631_v4  ;;  %v15659_v24 = vld [vmem:[%s16157_s24 + $0x68] ss:$8 sps:$4 sm:$0xff]   ;;  %v15663_v29 = vld [vmem:[%s16157_s24 + $0x78] ss:$8 sps:$4 sm:$0xff]   ;;  %v1335_v52 = vrot.slane %v1333_v40, 5  ;;  %vm16228_vm2 = vmor %vm696_vm0, %vm697_vm1  ;;  %v1349_v55 = vrot.slane %v1347_v46, 5 }
  0x18   : > { %14294 = vmatpush3.bf16.msra.mxu0 %v15632_v5  ;;  %14199 = vmatprep.subr.bf16.mxu1 %v15633_v6  ;;  %v15664_v30 = vld [vmem:[%s16157_s24 + $0x108] ss:$8 sps:$4 sm:$0xff]   ;;  %v15654_v31 = vld [vmem:[%s19944_s1 + $0x158] sm:$0xff]   ;;  %v15655_v38 = vld [vmem:[%s19944_s1 + $0x20] sm:$0xff]  }
  0x19   : > { %14295 = vmatprep.subr.bf16.mxu0 %v15634_v7  ;;  %v15667_v32 = vld [vmem:[%s16157_s24] ss:$8 sps:$4 sm:$0xff]   ;;  %v12183_v33 = vld [vmem:[%s16157_s24 + $0x90] sm:$0xf]  ;;  %v12185_v35 = vld [vmem:[%s16157_s24 + $0x98] sm:$0xf] }
  0x1a   : > { %v1324_v36 = vshrl.u32 %v12183_v33, 16  ;;  %v1327_v37 = vshll.u32 %v12183_v33, 16  ;;  %v1338_v41 = vshrl.u32 %v12185_v35, 16  ;;  %v1341_v42 = vshll.u32 %v12185_v35, 16  ;;  %v15656_v43 = vld [vmem:[%s19944_s1 + $0x160] sm:$0xff]   ;;  %v15657_v47 = vld [vmem:[%s19944_s1 + $0x28] sm:$0xff]  }
  0x1b   : > { %14200 = vmatpush3.bf16.msra.mxu1 %v15633_v6  ;;  %v15658_v50 = vld [vmem:[%s19944_s1 + $0x168] sm:$0xff]   ;;  %v12187_v56 = vld [vmem:[%s16157_s24 + $0xa0] sm:$0xf]  ;;  %v12188_v57 = vld [vmem:[%s16157_s24 + $0xa4] sm:$0x1] }
  0x1c   : > { %14296 = vmatpush3.bf16.msra.mxu0 %v15634_v7  ;;  %14201 = vmatprep.subr.bf16.mxu1 %v15635_v8  ;;  %v1326_v44 = vrot.slane %v1324_v36, 4  ;;  %v1329_v45 = vrot.slane %v1327_v37, 5  ;;  %v1340_v48 = vrot.slane %v1338_v41, 4  ;;  %v1343_v49 = vrot.slane %v1341_v42, 5  ;;  %v12189_v59 = vld [vmem:[%s16157_s24 + $0xa8] sm:$0xf] }
  0x1d   : > { %14297 = vmatprep.subr.bf16.mxu0 %v15636_v9  ;;  %v12190_v60 = vld [vmem:[%s16157_s24 + $0xac] sm:$0x1]  ;;  %v1352_v61 = vshrl.u32 %v12187_v56, 16  ;;  %v1355_v63 = vshll.u32 %v12187_v56, 16  ;;  %v1361_v0 = vshll.u32 %v12188_v57, 16  ;;  %v1366_v1 = vshrl.u32 %v12189_v59, 16 }
  0x1e   : > { %v1330_v51 = vor.u32 %v1329_v45, %v1326_v44  ;;  %v1344_v54 = vor.u32 %v1343_v49, %v1340_v48  ;;  %v15660_v2 = vld [vmem:[%s19944_s1 + $0x30] sm:$0xff]   ;;  %v1369_v5 = vshll.u32 %v12189_v59, 16  ;;  %v15681_v37 = vld [vmem:[%s16157_s24 + $0x20] ss:$8 sps:$4 sm:$0xff]   ;;  %v15675_v59 = vld [vmem:[%s19944_s1 + $0x98] sm:$0xff]  }
  0x1f   : > { %14202 = vmatpush3.bf16.msra.mxu1 %v15635_v8  ;;  %v1354_v4 = vrot.slane %v1352_v61, 4  ;;  %v15662_v6 = vld [vmem:[%s19944_s1 + $0x170] sm:$0xff]   ;;  %v1357_v8 = vrot.slane %v1355_v63, 5  ;;  %v12195_v49 = vld [vmem:[%s16157_s24 + $0xc0] sm:$0xf] }
  0x20   : > { %14298 = vmatpush3.bf16.msra.mxu0 %v15636_v9  ;;  %14203 = vmatprep.subr.bf16.mxu1 %v15637_v10  ;;  %v1331_v58 = vrot.slane %v1330_v51, 4  ;;  %v1345_v62 = vrot.slane %v1344_v54, 4  ;;  %v1368_v9 = vrot.slane %v1366_v1, 4  ;;  %v1371_v13 = vrot.slane %v1369_v5, 5  ;;  %v15684_v48 = vld [vmem:[%s16157_s24 + $0x30] ss:$8 sps:$4 sm:$0xff]  }
  0x21   : > { %14299 = vmatprep.subr.bf16.mxu0 %v15638_v12  ;;  %v12197_v51 = vld [vmem:[%s16157_s24 + $0xc8] sm:$0xf]  ;;  %v1408_v56 = vshrl.u32 %v12195_v49, 16  ;;  %v1411_v57 = vshll.u32 %v12195_v49, 16 }
  0x22   : > { %v1336_v3 = vsel %vm16228_vm2, %v1331_v58, %v1335_v52  ;;  %v1350_v7 = vsel %vm16228_vm2, %v1345_v62, %v1349_v55  ;;  %v15674_v52 = vld [vmem:[%s19944_s1 + $0x190] sm:$0xff]   ;;  %v12198_v55 = vld [vmem:[%s16157_s24 + $0xcc] sm:$0x1]  ;;  %v1422_v61 = vshrl.u32 %v12197_v51, 16  ;;  %v1425_v62 = vshll.u32 %v12197_v51, 16 }
  0x23   : > { %14204 = vmatpush3.bf16.msra.mxu1 %v15637_v10  ;;  %v1375_v10 = vshll.u32 %v12190_v60, 16  ;;  %v12215_v11 = vcombine.low %v1336_v3, %v1350_v7  ;;  %v1431_v63 = vshll.u32 %v12198_v55, 16  ;;  %v1410_v1 = vrot.slane %v1408_v56, 4 }
  0x24   : > { %14300 = vmatpush3.bf16.msra.mxu0 %v15638_v12  ;;  %14205 = vmatprep.subr.bf16.mxu1 %v15639_v14  ;;  %v1363_v12 = vrot.slane %v1361_v0, 5  ;;  %v1427_v7 = vrot.slane %v1425_v62, 5 }
  0x25   : > { %14301 = vmatprep.subr.bf16.mxu0 %v15640_v15 }
  0x27   : > { %14206 = vmatpush3.bf16.msra.mxu1 %v15639_v14  ;;  %v15665_v14 = vld [vmem:[%s19944_s1 + $0x38] sm:$0xff]  }
  0x28   : > { %14302 = vmatpush3.bf16.msra.mxu0 %v15640_v15  ;;  %14207 = vmatprep.subr.bf16.mxu1 %v15641_v16  ;;  %v1358_v15 = vor.u32 %v1357_v8, %v1354_v4  ;;  %v15676_v4 = vld [vmem:[%s19944_s1 + $0x198] sm:$0xff]   ;;  %v1433_v8 = vrot.slane %v1431_v63, 5 }
  0x29   : > { %14303 = vmatprep.subr.bf16.mxu0 %v15642_v17 }
  0x2b   : > { %14208 = vmatpush3.bf16.msra.mxu1 %v15641_v16  ;;  %v1372_v16 = vor.u32 %v1371_v13, %v1368_v9  ;;  %v15677_v13 = vld [vmem:[%s19944_s1 + $0xa0] sm:$0xff]  }
  0x2c   : > { %14304 = vmatpush3.bf16.msra.mxu0 %v15642_v17  ;;  %14217 = vmatprep.subr.bf16.mxu1 %v15644_v18  ;;  %v1359_v17 = vrot.slane %v1358_v15, 4 }
  0x2d   : > { %14313 = vmatprep.subr.bf16.mxu0 %v15646_v19 }
  0x2e   : > { %14210 = vmatmul.mubr.bf16.vlgmr.msra.gmra.mrb[0].mxu1 %v15647_v20  ;;  %v1373_v20 = vrot.slane %v1372_v16, 4  ;;  %v682_v16 = vld [vmem:[%s16157_s24 + $0x8] sm:$0xf] }
  0x2f   : > { %14218 = vmatpush3.bf16.msra.mxu1 %v15644_v18  ;;  %14306 = vmatmul.mubr.bf16.vlgmr.msra.gmra.mrb[0].mxu0 %v15648_v21  ;;  %v1377_v18 = vrot.slane %v1375_v10, 5  ;;  %v15668_v21 = vld [vmem:[%s19944_s1 + $0x80] sm:$0xff]  }
  0x30   : > { %14314 = vmatpush3.bf16.msra.mxu0 %v15646_v19  ;;  %14219 = vmatprep.subr.bf16.mxu1 %v15649_v22  ;;  %v15666_v19 = vld [vmem:[%s19944_s1 + $0x178] sm:$0xff]  }
  0x31   : > { %14315 = vmatprep.subr.bf16.mxu0 %v15650_v23  ;;  %14213 = vmatprep.mubr.bf16.mxu1 %v15659_v24  ;;  %v15669_v24 = vld [vmem:[%s19944_s1 + $0x180] sm:$0xff]  }
  0x32   : > { %14309 = vmatprep.mubr.bf16.mxu0 %v15661_v25  ;;  %v15670_v25 = vld [vmem:[%s16157_s24 + $0x10] ss:$8 sps:$4 sm:$0xff]  }
  0x33   : > { %14220 = vmatpush3.bf16.msra.mxu1 %v15649_v22  ;;  %v1364_v22 = vsel %vm16228_vm2, %v1359_v17, %v1363_v12  ;;  %v681_v12 = vld [vmem:[%s16157_s24 + $0x4] sm:$0x1]  ;;  %v683_v17 = vld [vmem:[%s16157_s24 + $0xc] sm:$0x1] }
  0x34   : > { %14316 = vmatpush3.bf16.msra.mxu0 %v15650_v23  ;;  %14221 = vmatprep.subr.bf16.mxu1 %v15651_v26  ;;  %v1378_v23 = vsel %vm16228_vm2, %v1373_v20, %v1377_v18 }
  0x35   : > { %14317 = vmatprep.subr.bf16.mxu0 %v15652_v27 }
  0x36   : > { %14214 = vmatmul.mubr.bf16.gmra.mrb[4].mxu1 %v15663_v29  ;;  %v15672_v29 = vld [vmem:[%s19944_s1 + $0x188] sm:$0xff]  }
  0x37   : > { %14222 = vmatpush3.bf16.msra.mxu1 %v15651_v26  ;;  %14310 = vmatmul.mubr.bf16.gmra.mrb[4].mxu0 %v15664_v30  ;;  %v15671_v26 = vld [vmem:[%s19944_s1 + $0x88] sm:$0xff]   ;;  %v12192_v30 = vld [vmem:[%s16157_s24 + $0xb4] sm:$0x1] }
  0x38   : > { %14318 = vmatpush3.bf16.msra.mxu0 %v15652_v27  ;;  %14223 = vmatprep.subr.bf16.mxu1 %v15653_v28  ;;  %v12191_v27 = vld [vmem:[%s16157_s24 + $0xb0] sm:$0xf]  ;;  %v1389_v35 = vshll.u32 %v12192_v30, 16 }
  0x39   : > { %14319 = vmatprep.subr.bf16.mxu0 %v15654_v31  ;;  %14233 = vmatprep.mubr.bf16.mxu1 %v15667_v32  ;;  %v12194_v32 = vld [vmem:[%s16157_s24 + $0xbc] sm:$0x1]  ;;  %v1380_v33 = vshrl.u32 %v12191_v27, 16  ;;  %v1383_v34 = vshll.u32 %v12191_v27, 16  ;;  %v723_v27 = vshll.u32 %v683_v17, 16 }
  0x3a   : > { %14329 = vmatprep.mubr.bf16.mxu0 %v12215_v11  ;;  %v1403_v39 = vshll.u32 %v12194_v32, 16  ;;  %v1391_v44 = vrot.slane %v1389_v35, 5  ;;  %v680_v11 = vld [vmem:[%s16157_s24] sm:$0xf]  ;;  %v15679_v32 = vld [vmem:[%s19944_s1 + $0xa8] sm:$0xff]  }
  0x3b   : > { %14224 = vmatpush3.bf16.msra.mxu1 %v15653_v28  ;;  %v12216_v28 = vcombine.low %v1364_v22, %v1378_v23  ;;  %v1382_v40 = vrot.slane %v1380_v33, 4  ;;  %v1385_v41 = vrot.slane %v1383_v34, 5  ;;  %v700_v18 = vshrl.u32 %v680_v11, 16  ;;  %v691_v17 = vld [vmem:[%s16157_s24 + $0x2c] sm:$0x1] }
  0x3c   : > { %14320 = vmatpush3.bf16.msra.mxu0 %v15654_v31  ;;  %14225 = vmatprep.subr.bf16.mxu1 %v15655_v38  ;;  %v12193_v31 = vld [vmem:[%s16157_s24 + $0xb8] sm:$0xf]  ;;  %v1405_v46 = vrot.slane %v1403_v39, 5  ;;  %v714_v22 = vshrl.u32 %v682_v16, 16  ;;  %v717_v23 = vshll.u32 %v682_v16, 16 }
  0x3d   : > { %14321 = vmatprep.subr.bf16.mxu0 %v15656_v43  ;;  %v1394_v36 = vshrl.u32 %v12193_v31, 16  ;;  %v690_v16 = vld [vmem:[%s16157_s24 + $0x28] sm:$0xf] }
  0x3e   : > { %v716_v30 = vrot.slane %v714_v22, 4  ;;  %v770_v22 = vshrl.u32 %v690_v16, 16 }
  0x3f   : > { %14226 = vmatpush3.bf16.msra.mxu1 %v15655_v38  ;;  %v1397_v38 = vshll.u32 %v12193_v31, 16  ;;  %v1396_v42 = vrot.slane %v1394_v36, 4  ;;  %v719_v31 = vrot.slane %v717_v23, 5  ;;  %v725_v36 = vrot.slane %v723_v27, 5  ;;  %v692_v23 = vld [vmem:[%s16157_s24 + $0x30] sm:$0xf] }
  0x40   : > { %14322 = vmatpush3.bf16.msra.mxu0 %v15656_v43  ;;  %14227 = vmatprep.subr.bf16.mxu1 %v15657_v47  ;;  %v15673_v43 = vld [vmem:[%s19944_s1 + $0x90] sm:$0xff]   ;;  %v694_v27 = vld [vmem:[%s16157_s24 + $0x38] sm:$0xf] }
  0x41   : > { %14323 = vmatprep.subr.bf16.mxu0 %v15658_v50  ;;  %v1399_v45 = vrot.slane %v1397_v38, 5  ;;  %v15680_v38 = vld [vmem:[%s19944_s1 + $0x1a8] sm:$0xff]  }
  0x43   : > { %14228 = vmatpush3.bf16.msra.mxu1 %v15657_v47  ;;  %v1386_v47 = vor.u32 %v1385_v41, %v1382_v40  ;;  %v1400_v54 = vor.u32 %v1399_v45, %v1396_v42  ;;  %v720_v40 = vor.u32 %v719_v31, %v716_v30  ;;  %v684_v41 = vld [vmem:[%s16157_s24 + $0x10] sm:$0xf]  ;;  %v772_v31 = vrot.slane %v770_v22, 4 }
  0x44   : > { %14324 = vmatpush3.bf16.msra.mxu0 %v15658_v50  ;;  %14229 = vmatprep.subr.bf16.mxu1 %v15660_v2  ;;  %v12196_v50 = vld [vmem:[%s16157_s24 + $0xc4] sm:$0x1]  ;;  %v728_v45 = vshrl.u32 %v684_v41, 16  ;;  %v15725_v22 = vld [vmem:[%s16157_s24 + $0x70] ss:$8 sps:$4 sm:$0xff]  }
  0x45   : > { %14325 = vmatprep.subr.bf16.mxu0 %v15662_v6  ;;  %v1417_v58 = vshll.u32 %v12196_v50, 16  ;;  %v1387_v60 = vrot.slane %v1386_v47, 4  ;;  %v1401_v0 = vrot.slane %v1400_v54, 4  ;;  %v687_v47 = vld [vmem:[%s16157_s24 + $0x1c] sm:$0x1] }
  0x47   : > { %14230 = vmatpush3.bf16.msra.mxu1 %v15660_v2  ;;  %v1413_v2 = vrot.slane %v1411_v57, 5  ;;  %v1419_v3 = vrot.slane %v1417_v58, 5  ;;  %v1392_v5 = vsel %vm16228_vm2, %v1387_v60, %v1391_v44  ;;  %v1406_v9 = vsel %vm16228_vm2, %v1401_v0, %v1405_v46  ;;  %v686_v44 = vld [vmem:[%s16157_s24 + $0x18] sm:$0xf]  ;;  %v15683_v60 = vld [vmem:[%s19944_s1 + $0x1b0] sm:$0xff]  }
  0x48   : > { %14326 = vmatpush3.bf16.msra.mxu0 %v15662_v6  ;;  %14231 = vmatprep.subr.bf16.mxu1 %v15665_v14  ;;  %v1424_v6 = vrot.slane %v1422_v61, 4  ;;  %v721_v46 = vrot.slane %v720_v40, 4  ;;  %v742_v50 = vshrl.u32 %v686_v44, 16  ;;  %v745_v54 = vshll.u32 %v686_v44, 16 }
  0x49   : > { %14327 = vmatprep.subr.bf16.mxu0 %v15666_v19  ;;  %v1414_v10 = vor.u32 %v1413_v2, %v1410_v1  ;;  %v751_v58 = vshll.u32 %v687_v47, 16  ;;  %v798_v40 = vshrl.u32 %v694_v27, 16 }
  0x4a   : > { %v1428_v15 = vor.u32 %v1427_v7, %v1424_v6  ;;  %v726_v55 = vsel %vm16228_vm2, %v721_v46, %v725_v36  ;;  %v744_v57 = vrot.slane %v742_v50, 4  ;;  %v747_v63 = vrot.slane %v745_v54, 5  ;;  %v15686_v6 = vld [vmem:[%s19944_s1 + $0x1b8] sm:$0xff]   ;;  %v15687_v7 = vld [vmem:[%s19944_s1 + $0xc0] sm:$0xff]  }
  0x4b   : > { %14232 = vmatpush3.bf16.msra.mxu1 %v15665_v14  ;;  %v12217_v14 = vcombine.low %v1392_v5, %v1406_v9  ;;  %v1415_v20 = vrot.slane %v1414_v10, 4  ;;  %v15689_v10 = vld [vmem:[%s19944_s1 + $0x1c0] sm:$0xff]   ;;  %v787_v36 = vshll.u32 %v692_v23, 16 }
  0x4c   : > { %14328 = vmatpush3.bf16.msra.mxu0 %v15666_v19  ;;  %14241 = vmatprep.subr.bf16.mxu1 %v15668_v21  ;;  %v703_v19 = vshll.u32 %v680_v11, 16  ;;  %v748_v1 = vor.u32 %v747_v63, %v744_v57  ;;  %v15690_v11 = vld [vmem:[%s16157_s24 + $0x18] ss:$8 sps:$4 sm:$0xff]  }
  0x4d   : > { %14337 = vmatprep.subr.bf16.mxu0 %v15669_v24 }
  0x4e   : > { %14234 = vmatmul.mubr.bf16.vlgmr.msra.gmra.mrb[0].mxu1 %v15670_v25  ;;  %v702_v25 = vrot.slane %v700_v18, 4  ;;  %v749_v5 = vrot.slane %v748_v1, 4  ;;  %v15692_v18 = vld [vmem:[%s19944_s1 + $0x1c8] sm:$0xff]   ;;  %v15697_v1 = vld [vmem:[%s19944_s1 + $0xe0] sm:$0xff]  }
  0x4f   : > { %14242 = vmatpush3.bf16.msra.mxu1 %v15668_v21  ;;  %14330 = vmatmul.mubr.bf16.vlgmr.msra.gmra.mrb[0].mxu0 %v12216_v28  ;;  %v709_v21 = vshll.u32 %v681_v12, 16  ;;  %v15678_v28 = vld [vmem:[%s19944_s1 + $0x1a0] sm:$0xff]  }
  0x50   : > { %14338 = vmatpush3.bf16.msra.mxu0 %v15669_v24  ;;  %14243 = vmatprep.subr.bf16.mxu1 %v15671_v26  ;;  %v1429_v24 = vrot.slane %v1428_v15, 4  ;;  %v688_v12 = vld [vmem:[%s16157_s24 + $0x20] sm:$0xf]  ;;  %v689_v15 = vld [vmem:[%s16157_s24 + $0x24] sm:$0x1] }
  0x51   : > { %14339 = vmatprep.subr.bf16.mxu0 %v15672_v29  ;;  %14237 = vmatprep.mubr.bf16.mxu1 %v15681_v37  ;;  %v711_v35 = vrot.slane %v709_v21, 5  ;;  %v15688_v37 = vld [vmem:[%s16157_s24 + $0x8] ss:$8 sps:$4 sm:$0xff]   ;;  %v765_v21 = vshll.u32 %v689_v15, 16  ;;  %v15711_v15 = vld [vmem:[%s19944_s1 + $0x40] sm:$0xff]  }
  0x52   : > { %14333 = vmatprep.mubr.bf16.mxu0 %v12217_v14  ;;  %v1434_v33 = vsel %vm16228_vm2, %v1429_v24, %v1433_v8  ;;  %v15691_v14 = vld [vmem:[%s19944_s1 + $0xc8] sm:$0xff]   ;;  %v773_v24 = vshll.u32 %v690_v16, 16  ;;  %v15710_v16 = vld [vmem:[%s19944_s1 + $0x200] sm:$0xff]  }
  0x53   : > { %14244 = vmatpush3.bf16.msra.mxu1 %v15671_v26  ;;  %v705_v26 = vrot.slane %v703_v19, 5  ;;  %v756_v19 = vshrl.u32 %v688_v12, 16  ;;  %v767_v30 = vrot.slane %v765_v21, 5  ;;  %v15718_v21 = vld [vmem:[%s19944_s1 + $0x50] sm:$0xff]  }
  0x54   : > { %14340 = vmatpush3.bf16.msra.mxu0 %v15672_v29  ;;  %14245 = vmatprep.subr.bf16.mxu1 %v15673_v43  ;;  %v1420_v29 = vsel %vm16228_vm2, %v1415_v20, %v1419_v3  ;;  %v753_v3 = vrot.slane %v751_v58, 5  ;;  %v759_v20 = vshll.u32 %v688_v12, 16  ;;  %v15695_v58 = vld [vmem:[%s19944_s1 + $0xd8] sm:$0xff]  }
  0x55   : > { %14341 = vmatprep.subr.bf16.mxu0 %v15674_v52  ;;  %v706_v34 = vor.u32 %v705_v26, %v702_v25  ;;  %v12218_v39 = vcombine.low %v1420_v29, %v1434_v33  ;;  %v779_v25 = vshll.u32 %v691_v17, 16  ;;  %v693_v26 = vld [vmem:[%s16157_s24 + $0x34] sm:$0x1]  ;;  %v775_v33 = vrot.slane %v773_v24, 5  ;;  %v15705_v12 = vld [vmem:[%s19944_s1 + $0xf8] sm:$0xff]  }
  0x56   : > { %14238 = vmatmul.mubr.bf16.gmra.mrb[4].mxu1 %v15684_v48  ;;  %v731_v48 = vshll.u32 %v684_v41, 16  ;;  %v754_v9 = vsel %vm16228_vm2, %v749_v5, %v753_v3  ;;  %v761_v29 = vrot.slane %v759_v20, 5  ;;  %v801_v41 = vshll.u32 %v694_v27, 16  ;;  %v15698_v5 = vld [vmem:[%s19944_s1 + $0x1e0] sm:$0xff]   ;;  %v15715_v20 = vld [vmem:[%s16157_s24 + $0xb0] ss:$8 sps:$4 sm:$0xff]  }
  0x57   : > { %14246 = vmatpush3.bf16.msra.mxu1 %v15673_v43  ;;  %v707_v42 = vrot.slane %v706_v34, 4  ;;  %v685_v43 = vld [vmem:[%s16157_s24 + $0x14] sm:$0x1]  ;;  %14334 = vmatmul.mubr.bf16.gmra.mrb[4].mxu0 %v12218_v39  ;;  %v781_v34 = vrot.slane %v779_v25, 5  ;;  %v793_v39 = vshll.u32 %v693_v26, 16 }
  0x58   : > { %14342 = vmatpush3.bf16.msra.mxu0 %v15674_v52  ;;  %14247 = vmatprep.subr.bf16.mxu1 %v15675_v59  ;;  %v737_v49 = vshll.u32 %v685_v43, 16  ;;  %v730_v52 = vrot.slane %v728_v45, 4  ;;  %v733_v56 = vrot.slane %v731_v48, 5  ;;  %v776_v43 = vor.u32 %v775_v33, %v772_v31  ;;  %v15712_v17 = vld [vmem:[%s16157_s24 + $0x60] ss:$8 sps:$4 sm:$0xff]   ;;  %v15717_v25 = vld [vmem:[%s19944_s1 + $0x210] sm:$0xff]  }
  0x59   : > { %14343 = vmatprep.subr.bf16.mxu0 %v15676_v4  ;;  %v712_v51 = vsel %vm16228_vm2, %v707_v42, %v711_v35  ;;  %14353 = vmatprep.mubr.bf16.mxu0 %v15688_v37  ;;  %v784_v35 = vshrl.u32 %v692_v23, 16  ;;  %v15693_v37 = vld [vmem:[%s19944_s1 + $0xd0] sm:$0xff]   ;;  %v789_v45 = vrot.slane %v787_v36, 5  ;;  %v795_v48 = vrot.slane %v793_v39, 5  ;;  %v12299_v23 = vld [vmem:[%s16157_s24 + $0x8] sm:$0xf] }
  0x5a   : > { %v12099_v61 = vcombine.low %v712_v51, %v726_v55  ;;  %v739_v62 = vrot.slane %v737_v49, 5  ;;  %v734_v0 = vor.u32 %v733_v56, %v730_v52  ;;  %v15694_v42 = vld [vmem:[%s19944_s1 + $0x1d0] sm:$0xff]   ;;  %v800_v49 = vrot.slane %v798_v40, 4  ;;  %v12300_v24 = vld [vmem:[%s16157_s24 + $0xc] sm:$0x1] }
  0x5b   : > { %14248 = vmatpush3.bf16.msra.mxu1 %v15675_v59  ;;  %v15682_v59 = vld [vmem:[%s19944_s1 + $0xb0] sm:$0xff]   ;;  %v786_v44 = vrot.slane %v784_v35, 4  ;;  %v803_v50 = vrot.slane %v801_v41, 5  ;;  %v777_v51 = vrot.slane %v776_v43, 4  ;;  %v1957_v31 = vshll.u32 %v12300_v24, 16  ;;  %v15723_v24 = vld [vmem:[%s19944_s1 + $0x228] sm:$0xff]  }
  0x5c   : > { %14344 = vmatpush3.bf16.msra.mxu0 %v15676_v4  ;;  %14249 = vmatprep.subr.bf16.mxu1 %v15677_v13  ;;  %v735_v2 = vrot.slane %v734_v0, 4  ;;  %v15685_v4 = vld [vmem:[%s19944_s1 + $0xb8] sm:$0xff]   ;;  %v15702_v55 = vld [vmem:[%s16157_s24 + $0x28] ss:$8 sps:$4 sm:$0xff]   ;;  %v12302_v27 = vld [vmem:[%s16157_s24 + $0x14] sm:$0x1] }
  0x5d   : > { %14345 = vmatprep.subr.bf16.mxu0 %v15678_v28  ;;  %14257 = vmatprep.mubr.bf16.mxu1 %v12099_v61  ;;  %v790_v52 = vor.u32 %v789_v45, %v786_v44  ;;  %v804_v57 = vor.u32 %v803_v50, %v800_v49  ;;  %v15704_v61 = vld [vmem:[%s16157_s24 + $0x38] ss:$8 sps:$4 sm:$0xff]   ;;  %v12301_v26 = vld [vmem:[%s16157_s24 + $0x10] sm:$0xf]  ;;  %v1959_v40 = vrot.slane %v1957_v31, 5 }
  0x5e   : > { %v740_v8 = vsel %vm16228_vm2, %v735_v2, %v739_v62  ;;  %v15696_v62 = vld [vmem:[%s19944_s1 + $0x1d8] sm:$0xff]   ;;  %v1965_v33 = vshll.u32 %v12301_v26, 16  ;;  %v12305_v39 = vld [vmem:[%s16157_s24 + $0x20] sm:$0xf]  ;;  %v12306_v44 = vld [vmem:[%s16157_s24 + $0x24] sm:$0x1] }
  0x5f   : > { %14250 = vmatpush3.bf16.msra.mxu1 %v15677_v13  ;;  %v12100_v13 = vcombine.low %v740_v8, %v754_v9  ;;  %v805_v0 = vrot.slane %v804_v57, 4  ;;  %v15699_v8 = vld [vmem:[%s19944_s1 + $0xe8] sm:$0xff]   ;;  %v12303_v35 = vld [vmem:[%s16157_s24 + $0x18] sm:$0xf]  ;;  %v2294_v57 = vld [vmem:[%s16157_s24 + $0x4] sm:$0x1] }
  0x60   : > { %14346 = vmatpush3.bf16.msra.mxu0 %v15678_v28  ;;  %14251 = vmatprep.subr.bf16.mxu1 %v15679_v32  ;;  %v758_v28 = vrot.slane %v756_v19, 4  ;;  %v15700_v9 = vld [vmem:[%s19944_s1 + $0x1e8] sm:$0xff]   ;;  %v15719_v45 = vld [vmem:[%s19944_s1 + $0x218] sm:$0xff]   ;;  %v1976_v49 = vshrl.u32 %v12303_v35, 16  ;;  %v1979_v50 = vshll.u32 %v12303_v35, 16 }
  0x61   : > { %14347 = vmatprep.subr.bf16.mxu0 %v15680_v38  ;;  %v15714_v19 = vld [vmem:[%s19944_s1 + $0x48] sm:$0xff]  }
  0x63   : > { %14252 = vmatpush3.bf16.msra.mxu1 %v15679_v32  ;;  %v695_v32 = vld [vmem:[%s16157_s24 + $0x3c] sm:$0x1] }
  0x64   : > { %14348 = vmatpush3.bf16.msra.mxu0 %v15680_v38  ;;  %14253 = vmatprep.subr.bf16.mxu1 %v15682_v59  ;;  %v762_v38 = vor.u32 %v761_v29, %v758_v28  ;;  %v807_v46 = vshll.u32 %v695_v32, 16  ;;  %v1948_v28 = vshrl.u32 %v12299_v23, 16  ;;  %v1951_v29 = vshll.u32 %v12299_v23, 16  ;;  %v2298_v23 = vld [vmem:[%s16157_s24 + $0x14] sm:$0x1] }
  0x65   : > { %14349 = vmatprep.subr.bf16.mxu0 %v15683_v60  ;;  %v1962_v32 = vshrl.u32 %v12301_v26, 16 }
  0x66   : > { %v763_v47 = vrot.slane %v762_v38, 4  ;;  %v809_v54 = vrot.slane %v807_v46, 5  ;;  %v1950_v36 = vrot.slane %v1948_v28, 4  ;;  %v12304_v38 = vld [vmem:[%s16157_s24 + $0x1c] sm:$0x1] }
  0x67   : > { %14254 = vmatpush3.bf16.msra.mxu1 %v15682_v59  ;;  %v782_v59 = vsel %vm16228_vm2, %v777_v51, %v781_v34  ;;  %v1971_v34 = vshll.u32 %v12302_v27, 16  ;;  %v1964_v41 = vrot.slane %v1962_v32, 4  ;;  %v15720_v46 = vld [vmem:[%s19944_s1 + $0x58] sm:$0xff]   ;;  %v1985_v51 = vshll.u32 %v12304_v38, 16  ;;  %v15728_v38 = vld [vmem:[%s19944_s1 + $0x70] sm:$0xff]  }
  0x68   : > { %14350 = vmatpush3.bf16.msra.mxu0 %v15683_v60  ;;  %14255 = vmatprep.subr.bf16.mxu1 %v15685_v4  ;;  %v768_v56 = vsel %vm16228_vm2, %v763_v47, %v767_v30  ;;  %v791_v60 = vrot.slane %v790_v52, 4  ;;  %v810_v3 = vsel %vm16228_vm2, %v805_v0, %v809_v54  ;;  %v15716_v30 = vld [vmem:[%s16157_s24 + $0xc0] ss:$8 sps:$4 sm:$0xff]   ;;  %v1990_v54 = vshrl.u32 %v12305_v39, 16  ;;  %v2299_v27 = vld [vmem:[%s16157_s24 + $0x18] sm:$0xf] }
  0x69   : > { %14351 = vmatprep.subr.bf16.mxu0 %v15686_v6  ;;  %v12101_v63 = vcombine.low %v768_v56, %v782_v59  ;;  %v1973_v43 = vrot.slane %v1971_v34, 5  ;;  %v15726_v47 = vld [vmem:[%s16157_s24 + $0x80] ss:$8 sps:$4 sm:$0xff]   ;;  %v1978_v59 = vrot.slane %v1976_v49, 4  ;;  %v2300_v28 = vld [vmem:[%s16157_s24 + $0x1c] sm:$0x1] }
  0x6a   : > { %v796_v2 = vsel %vm16228_vm2, %v791_v60, %v795_v48  ;;  %v2293_v56 = vld [vmem:[%s16157_s24] sm:$0xf]  ;;  %v1981_v60 = vrot.slane %v1979_v50, 5 }
  0x6b   : > { %14256 = vmatpush3.bf16.msra.mxu1 %v15685_v4  ;;  %v15707_v4 = vld [vmem:[%s16157_s24 + $0x90] ss:$8 sps:$4 sm:$0xff]  }
  0x6c   : > { %14352 = vmatpush3.bf16.msra.mxu0 %v15686_v6  ;;  %14265 = vmatprep.subr.bf16.mxu1 %v15687_v7  ;;  %v12102_v6 = vcombine.low %v796_v2, %v810_v3  ;;  %v1992_v2 = vrot.slane %v1990_v54, 4 }
  0x6d   : > { %14361 = vmatprep.subr.bf16.mxu0 %v15689_v10 }
  0x6e   : > { %14258 = vmatmul.mubr.bf16.vlgmr.msra.gmra.mrb[0].mxu1 %v12100_v13  ;;  %v15706_v13 = vld [vmem:[%s19944_s1 + $0x1f8] sm:$0xff]  }
  0x6f   : > { %14266 = vmatpush3.bf16.msra.mxu1 %v15687_v7  ;;  %14354 = vmatmul.mubr.bf16.vlgmr.msra.gmra.mrb[0].mxu0 %v15690_v11  ;;  %v15709_v7 = vld [vmem:[%s16157_s24 + $0x50] ss:$8 sps:$4 sm:$0xff]  }
  0x70   : > { %14362 = vmatpush3.bf16.msra.mxu0 %v15689_v10  ;;  %14267 = vmatprep.subr.bf16.mxu1 %v15691_v14  ;;  %v15701_v10 = vld [vmem:[%s19944_s1 + $0xf0] sm:$0xff]  }
  0x71   : > { %14363 = vmatprep.subr.bf16.mxu0 %v15692_v18  ;;  %14357 = vmatprep.mubr.bf16.mxu0 %v15702_v55  ;;  %v15703_v11 = vld [vmem:[%s19944_s1 + $0x1f0] sm:$0xff]   ;;  %v1993_v55 = vshll.u32 %v12305_v39, 16 }
  0x72   : > { %14261 = vmatprep.mubr.bf16.mxu1 %v12101_v63  ;;  %v15722_v63 = vld [vmem:[%s19944_s1 + $0x60] sm:$0xff]  }
  0x73   : > { %14268 = vmatpush3.bf16.msra.mxu1 %v15691_v14  ;;  %v15708_v14 = vld [vmem:[%s16157_s24 + $0xa0] ss:$8 sps:$4 sm:$0xff]   ;;  %v1995_v3 = vrot.slane %v1993_v55, 5 }
  0x74   : > { %14364 = vmatpush3.bf16.msra.mxu0 %v15692_v18  ;;  %14269 = vmatprep.subr.bf16.mxu1 %v15693_v37  ;;  %v15713_v18 = vld [vmem:[%s19944_s1 + $0x208] sm:$0xff]  }
  0x75   : > { %14365 = vmatprep.subr.bf16.mxu0 %v15694_v42 }
  0x76   : > { %14262 = vmatmul.mubr.bf16.gmra.mrb[4].mxu1 %v12102_v6  ;;  %v1982_v6 = vor.u32 %v1981_v60, %v1978_v59 }
  0x77   : > { %14270 = vmatpush3.bf16.msra.mxu1 %v15693_v37  ;;  %14358 = vmatmul.mubr.bf16.gmra.mrb[4].mxu0 %v15704_v61  ;;  %v1953_v37 = vrot.slane %v1951_v29, 5  ;;  %v1999_v61 = vshll.u32 %v12306_v44, 16  ;;  %v2355_v44 = vshll.u32 %v2299_v27, 16 }
  0x78   : > { %14366 = vmatpush3.bf16.msra.mxu0 %v15694_v42  ;;  %14271 = vmatprep.subr.bf16.mxu1 %v15695_v58  ;;  %v1967_v42 = vrot.slane %v1965_v33, 5  ;;  %v2347_v33 = vshll.u32 %v2298_v23, 16 }
  0x79   : > { %14367 = vmatprep.subr.bf16.mxu0 %v15696_v62  ;;  %14281 = vmatprep.mubr.bf16.mxu1 %v15707_v4  ;;  %v1954_v48 = vor.u32 %v1953_v37, %v1950_v36  ;;  %v2296_v4 = vld [vmem:[%s16157_s24 + $0xc] sm:$0x1]  ;;  %v2357_v54 = vrot.slane %v2355_v44, 5 }
  0x7a   : > { %14377 = vmatprep.mubr.bf16.mxu0 %v15709_v7  ;;  %v1968_v52 = vor.u32 %v1967_v42, %v1964_v41  ;;  %v2310_v7 = vshrl.u32 %v2293_v56, 16  ;;  %v2333_v26 = vshll.u32 %v2296_v4, 16  ;;  %v16482_v41 = vrot.slane %v2347_v33, 5 }
  0x7b   : > { %14272 = vmatpush3.bf16.msra.mxu1 %v15695_v58  ;;  %v1955_v58 = vrot.slane %v1954_v48, 4  ;;  %v2352_v42 = vshrl.u32 %v2299_v27, 16 }
  0x7c   : > { %14368 = vmatpush3.bf16.msra.mxu0 %v15696_v62  ;;  %14273 = vmatprep.subr.bf16.mxu1 %v15697_v1  ;;  %v2295_v62 = vld [vmem:[%s16157_s24 + $0x8] sm:$0xf]  ;;  %v1969_v0 = vrot.slane %v1968_v52, 4  ;;  %v2335_v36 = vrot.slane %v2333_v26, 5  ;;  %v12309_v52 = vld [vmem:[%s16157_s24 + $0x30] sm:$0xf] }
  0x7d   : > { %14369 = vmatprep.subr.bf16.mxu0 %v15698_v5  ;;  %v2354_v50 = vrot.slane %v2352_v42, 4 }
  0x7f   : > { %14274 = vmatpush3.bf16.msra.mxu1 %v15697_v1  ;;  %v16453_v1 = vrot.slane %v1985_v51, 5  ;;  %v12308_v51 = vld [vmem:[%s16157_s24 + $0x2c] sm:$0x1] }
  0x80   : > { %14370 = vmatpush3.bf16.msra.mxu0 %v15698_v5  ;;  %14275 = vmatprep.subr.bf16.mxu1 %v15699_v8  ;;  %v1960_v5 = vsel %vm16228_vm2, %v1955_v58, %v1959_v40 }
  0x81   : > { %14371 = vmatprep.subr.bf16.mxu0 %v15700_v9 }
  0x83   : > { %14276 = vmatpush3.bf16.msra.mxu1 %v15699_v8  ;;  %v2313_v8 = vshll.u32 %v2293_v56, 16  ;;  %v12310_v56 = vld [vmem:[%s16157_s24 + $0x34] sm:$0x1] }
  0x84   : > { %14372 = vmatpush3.bf16.msra.mxu0 %v15700_v9  ;;  %14277 = vmatprep.subr.bf16.mxu1 %v15701_v10  ;;  %v1974_v9 = vsel %vm16228_vm2, %v1969_v0, %v1973_v43  ;;  %v15727_v43 = vld [vmem:[%s19944_s1 + $0x230] sm:$0xff]   ;;  %v15730_v0 = vld [vmem:[%s19944_s1 + $0x78] sm:$0xff]  }
  0x85   : > { %14373 = vmatprep.subr.bf16.mxu0 %v15703_v11 }
  0x87   : > { %14278 = vmatpush3.bf16.msra.mxu1 %v15701_v10  ;;  %v2319_v10 = vshll.u32 %v2294_v57, 16 }
  0x88   : > { %14374 = vmatpush3.bf16.msra.mxu0 %v15703_v11  ;;  %14279 = vmatprep.subr.bf16.mxu1 %v15705_v12  ;;  %v2324_v11 = vshrl.u32 %v2295_v62, 16 }
  0x89   : > { %14375 = vmatprep.subr.bf16.mxu0 %v15706_v13 }
  0x8b   : > { %14280 = vmatpush3.bf16.msra.mxu1 %v15705_v12  ;;  %v15721_v12 = vld [vmem:[%s19944_s1 + $0x220] sm:$0xff]  }
  0x8c   : > { %14376 = vmatpush3.bf16.msra.mxu0 %v15706_v13  ;;  %14409 = vmatprep.subr.bf16.mxu1 %v15711_v15  ;;  %v12331_v13 = vcombine.low %v1960_v5, %v1974_v9 }
  0x8d   : > { %14385 = vmatprep.subr.bf16.mxu0 %v15710_v16 }
  0x8e   : > { %14282 = vmatmul.mubr.bf16.vlgmr.msra.gmra.mrb[0].mxu1 %v15708_v14  ;;  %v1996_v14 = vor.u32 %v1995_v3, %v1992_v2  ;;  %v2358_v3 = vor.u32 %v2357_v54, %v2354_v50  ;;  %v2302_v50 = vld [vmem:[%s16157_s24 + $0x24] sm:$0x1]  ;;  %v15736_v54 = vld [vmem:[%s19944_s1 + $0x50] sm:$0xff]  }
  0x8f   : > { %14378 = vmatmul.mubr.bf16.vlgmr.msra.gmra.mrb[0].mxu0 %v15712_v17  ;;  %14410 = vmatpush3.bf16.msra.mxu1 %v15711_v15  ;;  %v2312_v15 = vrot.slane %v2310_v7, 4  ;;  %v2297_v17 = vld [vmem:[%s16157_s24 + $0x10] sm:$0xf] }
  0x90   : > { %14386 = vmatpush3.bf16.msra.mxu0 %v15710_v16  ;;  %14411 = vmatprep.subr.bf16.mxu1 %v15714_v19  ;;  %v2315_v16 = vrot.slane %v2313_v8, 5  ;;  %v2338_v29 = vshrl.u32 %v2297_v17, 16  ;;  %v2341_v32 = vshll.u32 %v2297_v17, 16  ;;  %v16477_v34 = vrot.slane %v1996_v14, 4 }
  0x91   : > { %14387 = vmatprep.subr.bf16.mxu0 %v15713_v18  ;;  %14285 = vmatprep.mubr.bf16.mxu1 %v15715_v20  ;;  %v16469_v20 = vrot.slane %v1999_v61, 5  ;;  %v2013_v61 = vshll.u32 %v12308_v51, 16  ;;  %v2359_v14 = vrot.slane %v2358_v3, 4 }
  0x92   : > { %14381 = vmatprep.mubr.bf16.mxu0 %v15725_v22  ;;  %v2327_v22 = vshll.u32 %v2295_v62, 16  ;;  %v2340_v37 = vrot.slane %v2338_v29, 4  ;;  %v2343_v40 = vrot.slane %v2341_v32, 5  ;;  %v2018_v62 = vshrl.u32 %v12309_v52, 16 }
  0x93   : > { %14412 = vmatpush3.bf16.msra.mxu1 %v15714_v19  ;;  %v16467_v19 = vrot.slane %v1982_v6, 4  ;;  %v12313_v6 = vld [vmem:[%s16157_s24 + $0x40] sm:$0xf]  ;;  %v2002_v27 = vsel %vm16228_vm2, %v16477_v34, %v16469_v20 }
  0x94   : > { %14388 = vmatpush3.bf16.msra.mxu0 %v15713_v18  ;;  %14413 = vmatprep.subr.bf16.mxu1 %v15718_v21  ;;  %v15724_v18 = vld [vmem:[%s19944_s1 + $0x68] sm:$0xff]   ;;  %v2329_v31 = vrot.slane %v2327_v22, 5  ;;  %v2344_v49 = vor.u32 %v2343_v40, %v2340_v37  ;;  %v2020_v9 = vrot.slane %v2018_v62, 4  ;;  %v15731_v22 = vld [vmem:[%s19944_s1] sm:$0xff]   ;;  %v2049_v33 = vshll.u32 %v12313_v6, 16 }
  0x95   : > { %14389 = vmatprep.subr.bf16.mxu0 %v15717_v25  ;;  %v1988_v7 = vsel %vm16228_vm2, %v16467_v19, %v16453_v1  ;;  %v15733_v37 = vld [vmem:[%s19944_s1 + $0x8] sm:$0xff]  }
  0x96   : > { %14286 = vmatmul.mubr.bf16.gmra.mrb[4].mxu1 %v15716_v30  ;;  %v2321_v30 = vrot.slane %v2319_v10, 5  ;;  %v2345_v60 = vrot.slane %v2344_v49, 4  ;;  %v2021_v10 = vshll.u32 %v12309_v52, 16  ;;  %v15734_v40 = vld [vmem:[%s19944_s1 + $0x48] sm:$0xff]   ;;  %v2051_v42 = vrot.slane %v2049_v33, 5 }
  0x97   : > { %14414 = vmatpush3.bf16.msra.mxu1 %v15718_v21  ;;  %14382 = vmatmul.mubr.bf16.gmra.mrb[4].mxu0 %v15726_v47  ;;  %v2326_v21 = vrot.slane %v2324_v11, 4  ;;  %v12312_v11 = vld [vmem:[%s16157_s24 + $0x3c] sm:$0x1]  ;;  %v2301_v49 = vld [vmem:[%s16157_s24 + $0x20] sm:$0xf] }
  0x98   : > { %14390 = vmatpush3.bf16.msra.mxu0 %v15717_v25  ;;  %14415 = vmatprep.subr.bf16.mxu1 %v15720_v46  ;;  %v2316_v25 = vor.u32 %v2315_v16, %v2312_v15  ;;  %v2350_v8 = vsel %vm16228_vm2, %v2345_v60, %v16482_v41  ;;  %v2027_v16 = vshll.u32 %v12310_v56, 16  ;;  %v2023_v1 = vrot.slane %v2021_v10, 5  ;;  %v2304_v56 = vld [vmem:[%s16157_s24 + $0x2c] sm:$0x1]  ;;  %v2306_v10 = vld [vmem:[%s16157_s24 + $0x34] sm:$0x1] }
  0x99   : > { %14391 = vmatprep.subr.bf16.mxu0 %v15719_v45  ;;  %14401 = vmatprep.mubr.bf16.mxu0 %v12331_v13  ;;  %v2330_v39 = vor.u32 %v2329_v31, %v2326_v21  ;;  %v15729_v13 = vld [vmem:[%s19944_s1 + $0x238] sm:$0xff]   ;;  %v2046_v21 = vshrl.u32 %v12313_v6, 16  ;;  %v2041_v26 = vshll.u32 %v12312_v11, 16  ;;  %v15732_v31 = vld [vmem:[%s19944_s1 + $0x40] sm:$0xff]  }
  0x9a   : > { %v2317_v35 = vrot.slane %v2316_v25, 4  ;;  %v2029_v29 = vrot.slane %v2027_v16, 5  ;;  %v15738_v16 = vld [vmem:[%s19944_s1 + $0x58] sm:$0xff]  }
  0x9b   : > { %14416 = vmatpush3.bf16.msra.mxu1 %v15720_v46  ;;  %v12307_v46 = vld [vmem:[%s16157_s24 + $0x28] sm:$0xf]  ;;  %v2331_v48 = vrot.slane %v2330_v39, 4  ;;  %v2048_v32 = vrot.slane %v2046_v21, 4  ;;  %v12332_v39 = vcombine.low %v1988_v7, %v2002_v27  ;;  %v2043_v41 = vrot.slane %v2041_v26, 5 }
  0x9c   : > { %14392 = vmatpush3.bf16.msra.mxu0 %v15719_v45  ;;  %14417 = vmatprep.subr.bf16.mxu1 %v15722_v63  ;;  %v2361_v45 = vshll.u32 %v2300_v28, 16  ;;  %v2322_v47 = vsel %vm16228_vm2, %v2317_v35, %v2321_v30  ;;  %v2004_v57 = vshrl.u32 %v12307_v46, 16  ;;  %v2007_v58 = vshll.u32 %v12307_v46, 16 }
  0x9d   : > { %14393 = vmatprep.subr.bf16.mxu0 %v15721_v12  ;;  %v2336_v59 = vsel %vm16228_vm2, %v2331_v48, %v2335_v36  ;;  %v2024_v28 = vor.u32 %v2023_v1, %v2020_v9  ;;  %v15735_v48 = vld [vmem:[%s19944_s1 + $0x10] sm:$0xff]  }
  0x9e   : > { %v2363_v55 = vrot.slane %v2361_v45, 5  ;;  %v12368_v2 = vcombine.low %v2322_v47, %v2336_v59  ;;  %v2006_v4 = vrot.slane %v2004_v57, 4  ;;  %v2009_v5 = vrot.slane %v2007_v58, 5  ;;  %v2305_v9 = vld [vmem:[%s16157_s24 + $0x30] sm:$0xf] }
  0x9f   : > { %14418 = vmatpush3.bf16.msra.mxu1 %v15722_v63  ;;  %v12311_v63 = vld [vmem:[%s16157_s24 + $0x38] sm:$0xf]  ;;  %v2025_v20 = vrot.slane %v2024_v28, 4  ;;  %v2052_v47 = vor.u32 %v2051_v42, %v2048_v32  ;;  %v2366_v57 = vshrl.u32 %v2301_v49, 16  ;;  %v2369_v58 = vshll.u32 %v2301_v49, 16  ;;  %v15739_v28 = vld [vmem:[%s19944_s1 + $0x20] sm:$0xff]  }
  0xa0   : > { %14394 = vmatpush3.bf16.msra.mxu0 %v15721_v12  ;;  %14419 = vmatprep.subr.bf16.mxu1 %v15724_v18  ;;  %v12314_v12 = vld [vmem:[%s16157_s24 + $0x44] sm:$0x1]  ;;  %v2010_v15 = vor.u32 %v2009_v5, %v2006_v4  ;;  %v2032_v17 = vshrl.u32 %v12311_v63, 16  ;;  %v2035_v19 = vshll.u32 %v12311_v63, 16  ;;  %v2364_v23 = vsel %vm16228_vm2, %v2359_v14, %v2363_v55  ;;  %v2303_v55 = vld [vmem:[%s16157_s24 + $0x28] sm:$0xf] }
  0xa1   : > { %14395 = vmatprep.subr.bf16.mxu0 %v15723_v24  ;;  %14425 = vmatprep.mubr.bf16.mxu1 %v12368_v2  ;;  %v2055_v35 = vshll.u32 %v12314_v12, 16  ;;  %v12369_v36 = vcombine.low %v2350_v8, %v2364_v23  ;;  %v2053_v52 = vrot.slane %v2052_v47, 4  ;;  %v2375_v59 = vshll.u32 %v2302_v50, 16  ;;  %v15737_v2 = vld [vmem:[%s19944_s1 + $0x18] sm:$0xff]   ;;  %v15740_v32 = vld [vmem:[%s19944_s1 + $0x60] sm:$0xff]  }
  0xa2   : > { %v2034_v25 = vrot.slane %v2032_v17, 4  ;;  %v2037_v30 = vrot.slane %v2035_v19, 5  ;;  %v2380_v60 = vshrl.u32 %v2303_v55, 16  ;;  %v2368_v63 = vrot.slane %v2366_v57, 4  ;;  %v2307_v12 = vld [vmem:[%s16157_s24 + $0x38] sm:$0xf] }
  0xa3   : > { %14420 = vmatpush3.bf16.msra.mxu1 %v15724_v18  ;;  %v2015_v18 = vrot.slane %v2013_v61, 5  ;;  %v2057_v45 = vrot.slane %v2055_v35, 5  ;;  %v2383_v61 = vshll.u32 %v2303_v55, 16  ;;  %v2371_v3 = vrot.slane %v2369_v58, 5  ;;  %v15745_v47 = vld [vmem:[%s19944_s1 + $0x38] sm:$0xff]   ;;  %v15748_v49 = vld [vmem:[%s19944_s1 + $0x80] sm:$0xff]  }
  0xa4   : > { %14396 = vmatpush3.bf16.msra.mxu0 %v15723_v24  ;;  %14421 = vmatprep.subr.bf16.mxu1 %v15728_v38  ;;  %v2011_v24 = vrot.slane %v2010_v15, 4  ;;  %v2038_v34 = vor.u32 %v2037_v30, %v2034_v25  ;;  %v2377_v4 = vrot.slane %v2375_v59, 5  ;;  %v2382_v5 = vrot.slane %v2380_v60, 4  ;;  %v15750_v50 = vld [vmem:[%s19944_s1] sm:$0xff]   ;;  %v15754_v55 = vld [vmem:[%s19944_s1 + $0x8] sm:$0xff]   ;;  %v15755_v57 = vld [vmem:[%s19944_s1 + $0x90] sm:$0xff]  }
  0xa5   : > { %14397 = vmatprep.subr.bf16.mxu0 %v15727_v43  ;;  %v2058_v62 = vsel %vm16228_vm2, %v2053_v52, %v2057_v45  ;;  %v2385_v7 = vrot.slane %v2383_v61, 5  ;;  %v2372_v11 = vor.u32 %v2371_v3, %v2368_v63  ;;  %v2394_v14 = vshrl.u32 %v2305_v9, 16  ;;  %v15743_v45 = vld [vmem:[%s19944_s1 + $0x30] sm:$0xff]   ;;  %v15765_v58 = vld [vmem:[%s16157_s24 + $0xf8] ss:$8 sps:$4 sm:$0xff]  }
  0xa6   : > { %v2039_v44 = vrot.slane %v2038_v34, 4  ;;  %v2397_v15 = vshll.u32 %v2305_v9, 16  ;;  %v2408_v1 = vshrl.u32 %v2307_v12, 16  ;;  %v2411_v19 = vshll.u32 %v2307_v12, 16  ;;  %v15752_v52 = vld [vmem:[%s16157_s24 + $0xe8] ss:$8 sps:$4 sm:$0xff]  }
  0xa7   : > { %14422 = vmatpush3.bf16.msra.mxu1 %v15728_v38  ;;  %v2016_v38 = vsel %vm16228_vm2, %v2011_v24, %v2015_v18  ;;  %v2386_v17 = vor.u32 %v2385_v7, %v2382_v5  ;;  %v2403_v18 = vshll.u32 %v2306_v10, 16  ;;  %v2373_v21 = vrot.slane %v2372_v11, 4  ;;  %v15756_v59 = vld [vmem:[%s19944_s1 + $0x10] sm:$0xff]   ;;  %v15767_v60 = vld [vmem:[%s16157_s24 + $0x78] ss:$8 sps:$4 sm:$0xff]  }
  0xa8   : > { %14398 = vmatpush3.bf16.msra.mxu0 %v15727_v43  ;;  %14423 = vmatprep.subr.bf16.mxu1 %v15730_v0  ;;  %v2030_v43 = vsel %vm16228_vm2, %v2025_v20, %v2029_v29  ;;  %v2044_v51 = vsel %vm16228_vm2, %v2039_v44, %v2043_v41  ;;  %v2399_v23 = vrot.slane %v2397_v15, 5  ;;  %v2410_v26 = vrot.slane %v2408_v1, 4  ;;  %v15741_v20 = vld [vmem:[%s19944_s1 + $0x28] sm:$0xff]   ;;  %v12394_v63 = vld [vmem:[%s16157_s24 + $0x50] sm:$0xf]  ;;  %v15758_v10 = vld [vmem:[%s19944_s1 + $0x18] sm:$0xff]  }
  0xa9   : > { %14399 = vmatprep.subr.bf16.mxu0 %v15729_v13  ;;  %v12333_v46 = vcombine.low %v2016_v38, %v2030_v43  ;;  %v12334_v6 = vcombine.low %v2044_v51, %v2058_v62  ;;  %v2387_v25 = vrot.slane %v2386_v17, 4  ;;  %v2413_v27 = vrot.slane %v2411_v19, 5  ;;  %v15742_v41 = vld [vmem:[%s19944_s1 + $0x68] sm:$0xff]   ;;  %v15751_v51 = vld [vmem:[%s16157_s24 + $0x58] ss:$8 sps:$4 sm:$0xff]  }
  0xaa   : > { %v2378_v29 = vsel %vm16228_vm2, %v2373_v21, %v2377_v4  ;;  %v15747_v44 = vld [vmem:[%s16157_s24 + $0x48] ss:$8 sps:$4 sm:$0xff]   ;;  %v12393_v62 = vld [vmem:[%s16157_s24 + $0x4c] sm:$0x1]  ;;  %v12398_v21 = vld [vmem:[%s16157_s24 + $0x60] sm:$0xf] }
  0xab   : > { %14424 = vmatpush3.bf16.msra.mxu1 %v15730_v0  ;;  %v2389_v0 = vshll.u32 %v2304_v56, 16  ;;  %v2414_v35 = vor.u32 %v2413_v27, %v2410_v26  ;;  %v15763_v56 = vld [vmem:[%s16157_s24 + $0x68] ss:$8 sps:$4 sm:$0xff]   ;;  %v2729_v5 = vshll.u32 %v12393_v62, 16  ;;  %v15760_v26 = vld [vmem:[%s19944_s1 + $0x20] sm:$0xff]  }
  0xac   : > { %14400 = vmatpush3.bf16.msra.mxu0 %v15729_v13  ;;  %14433 = vmatprep.subr.bf16.mxu1 %v15731_v22  ;;  %v2308_v13 = vld [vmem:[%s16157_s24 + $0x3c] sm:$0x1]  ;;  %v12392_v61 = vld [vmem:[%s16157_s24 + $0x48] sm:$0xf] }
  0xad   : > { %14625 = vmatprep.subr.bf16.mxu0 %v15732_v31  ;;  %v2391_v8 = vrot.slane %v2389_v0, 5  ;;  %v2417_v24 = vshll.u32 %v2308_v13, 16  ;;  %v2415_v34 = vrot.slane %v2414_v35, 4  ;;  %v12395_v0 = vld [vmem:[%s16157_s24 + $0x54] sm:$0x1]  ;;  %v2720_v3 = vshrl.u32 %v12392_v61, 16 }
  0xae   : > { %14426 = vmatmul.mubr.bf16.vlgmr.msra.gmra.mrb[8].mxu1 %v12369_v36  ;;  %v2723_v4 = vshll.u32 %v12392_v61, 16  ;;  %v15768_v7 = vld [vmem:[%s16157_s24 + $0x108] ss:$8 sps:$4 sm:$0xff]   ;;  %v2743_v9 = vshll.u32 %v12395_v0, 16 }
  0xaf   : > { %14402 = vmatmul.mubr.bf16.vlgmr.msra.gmra.mrb[0].mxu0 %v12332_v39  ;;  %14434 = vmatpush3.bf16.msra.mxu1 %v15731_v22  ;;  %v2396_v22 = vrot.slane %v2394_v14, 4  ;;  %v2392_v33 = vsel %vm16228_vm2, %v2387_v25, %v2391_v8  ;;  %v2419_v36 = vrot.slane %v2417_v24, 5  ;;  %v15749_v39 = vld [vmem:[%s16157_s24 + $0xd8] ss:$8 sps:$4 sm:$0xff]   ;;  %v2737_v8 = vshll.u32 %v12394_v63, 16  ;;  %v15761_v35 = vld [vmem:[%s19944_s1 + $0xa8] sm:$0xff]  }
  0xb0   : > { %14626 = vmatpush3.bf16.msra.mxu0 %v15732_v31  ;;  %14435 = vmatprep.subr.bf16.mxu1 %v15733_v37  ;;  %v2405_v31 = vrot.slane %v2403_v18, 5  ;;  %v2722_v11 = vrot.slane %v2720_v3, 4  ;;  %v2725_v12 = vrot.slane %v2723_v4, 5  ;;  %v2731_v14 = vrot.slane %v2729_v5, 5  ;;  %v12396_v18 = vld [vmem:[%s16157_s24 + $0x58] sm:$0xf] }
  0xb1   : > { %14627 = vmatprep.subr.bf16.mxu0 %v15734_v40  ;;  %14405 = vmatprep.mubr.bf16.mxu0 %v12333_v46  ;;  %v2400_v30 = vor.u32 %v2399_v23, %v2396_v22  ;;  %v2420_v42 = vsel %vm16228_vm2, %v2415_v34, %v2419_v36  ;;  %v15744_v46 = vld [vmem:[%s19944_s1 + $0x70] sm:$0xff]   ;;  %v2739_v15 = vrot.slane %v2737_v8, 5  ;;  %v2745_v19 = vrot.slane %v2743_v9, 5  ;;  %v15759_v22 = vld [vmem:[%s19944_s1 + $0xa0] sm:$0xff]  }
  0xb2   : > { %v2726_v17 = vor.u32 %v2725_v12, %v2722_v11  ;;  %v2748_v24 = vshrl.u32 %v12396_v18, 16  ;;  %v2751_v25 = vshll.u32 %v12396_v18, 16  ;;  %v12405_v18 = vld [vmem:[%s16157_s24 + $0x7c] sm:$0x1] }
  0xb3   : > { %14436 = vmatpush3.bf16.msra.mxu1 %v15733_v37  ;;  %v12370_v37 = vcombine.low %v2378_v29, %v2392_v33  ;;  %v2401_v38 = vrot.slane %v2400_v30, 4  ;;  %v2765_v29 = vshll.u32 %v12398_v21, 16 }
  0xb4   : > { %14628 = vmatpush3.bf16.msra.mxu0 %v15734_v40  ;;  %14437 = vmatprep.subr.bf16.mxu1 %v15735_v48  ;;  %v2727_v23 = vrot.slane %v2726_v17, 4  ;;  %v2750_v33 = vrot.slane %v2748_v24, 4  ;;  %v12404_v17 = vld [vmem:[%s16157_s24 + $0x78] sm:$0xf]  ;;  %v2813_v24 = vshll.u32 %v12405_v18, 16 }
  0xb5   : > { %14629 = vmatprep.subr.bf16.mxu0 %v15736_v54  ;;  %v2406_v40 = vsel %vm16228_vm2, %v2401_v38, %v2405_v31  ;;  %14429 = vmatprep.mubr.bf16.mxu1 %v12370_v37  ;;  %v12397_v31 = vld [vmem:[%s16157_s24 + $0x5c] sm:$0x1]  ;;  %v2753_v37 = vrot.slane %v2751_v25, 5 }
  0xb6   : > { %v12371_v43 = vcombine.low %v2406_v40, %v2420_v42  ;;  %v2732_v30 = vsel %vm16228_vm2, %v2727_v23, %v2731_v14  ;;  %v2757_v40 = vshll.u32 %v12397_v31, 16  ;;  %v15776_v14 = vld [vmem:[%s19944_s1 + $0x88] sm:$0xff]   ;;  %v2807_v23 = vshll.u32 %v12404_v17, 16 }
  0xb7   : > { %14406 = vmatmul.mubr.bf16.gmra.mrb[4].mxu0 %v12334_v6  ;;  %14438 = vmatpush3.bf16.msra.mxu1 %v15735_v48  ;;  %v15746_v48 = vld [vmem:[%s19944_s1 + $0x78] sm:$0xff]   ;;  %v2734_v6 = vshrl.u32 %v12394_v63, 16  ;;  %v2754_v42 = vor.u32 %v2753_v37, %v2750_v33  ;;  %v15777_v33 = vld [vmem:[%s19944_s1 + $0xd0] sm:$0xff]  }
  0xb8   : > { %14630 = vmatpush3.bf16.msra.mxu0 %v15736_v54  ;;  %14439 = vmatprep.subr.bf16.mxu1 %v15737_v2  ;;  %v15753_v54 = vld [vmem:[%s19944_s1 + $0x88] sm:$0xff]   ;;  %v2809_v31 = vrot.slane %v2807_v23, 5 }
  0xb9   : > { %14631 = vmatprep.subr.bf16.mxu0 %v15738_v16  ;;  %14641 = vmatprep.mubr.bf16.mxu0 %v15749_v39  ;;  %v2736_v13 = vrot.slane %v2734_v6, 4  ;;  %v15762_v39 = vld [vmem:[%s19944_s1 + $0x28] sm:$0xff]   ;;  %v15773_v6 = vld [vmem:[%s19944_s1 + $0x80] sm:$0xff]  }
  0xba   : > { %14430 = vmatmul.mubr.bf16.gmra.mrb[12].mxu1 %v12371_v43 }
  0xbb   : > { %14440 = vmatpush3.bf16.msra.mxu1 %v15737_v2  ;;  %14449 = vmatprep.mubr.bf16.mxu1 %v15747_v44  ;;  %v15757_v2 = vld [vmem:[%s19944_s1 + $0x98] sm:$0xff]   ;;  %v2740_v1 = vor.u32 %v2739_v15, %v2736_v13  ;;  %v15764_v44 = vld [vmem:[%s19944_s1 + $0xb0] sm:$0xff]  }
  0xbc   : > { %14632 = vmatpush3.bf16.msra.mxu0 %v15738_v16  ;;  %14441 = vmatprep.subr.bf16.mxu1 %v15739_v28  ;;  %v15772_v16 = vld [vmem:[%s16157_s24 + $0x90] ss:$8 sps:$4 sm:$0xff]  }
  0xbd   : > { %14633 = vmatprep.subr.bf16.mxu0 %v15740_v32  ;;  %v2741_v27 = vrot.slane %v2740_v1, 4  ;;  %v12406_v1 = vld [vmem:[%s16157_s24 + $0x80] sm:$0xf] }
  0xbf   : > { %14442 = vmatpush3.bf16.msra.mxu1 %v15739_v28  ;;  %v2762_v28 = vshrl.u32 %v12398_v21, 16  ;;  %v2746_v36 = vsel %vm16228_vm2, %v2741_v27, %v2745_v19  ;;  %v12407_v21 = vld [vmem:[%s16157_s24 + $0x84] sm:$0x1]  ;;  %v2821_v27 = vshll.u32 %v12406_v1, 16 }
  0xc0   : > { %14634 = vmatpush3.bf16.msra.mxu0 %v15740_v32  ;;  %14443 = vmatprep.subr.bf16.mxu1 %v15741_v20  ;;  %v12399_v32 = vld [vmem:[%s16157_s24 + $0x64] sm:$0x1]  ;;  %v12424_v34 = vcombine.low %v2732_v30, %v2746_v36 }
  0xc1   : > { %14635 = vmatprep.subr.bf16.mxu0 %v15742_v41  ;;  %v2764_v38 = vrot.slane %v2762_v28, 4  ;;  %v2827_v28 = vshll.u32 %v12407_v21, 16 }
  0xc3   : > { %14444 = vmatpush3.bf16.msra.mxu1 %v15741_v20  ;;  %v2767_v20 = vrot.slane %v2765_v29, 5 }
  0xc4   : > { %14636 = vmatpush3.bf16.msra.mxu0 %v15742_v41  ;;  %14445 = vmatprep.subr.bf16.mxu1 %v15743_v45  ;;  %v2771_v41 = vshll.u32 %v12399_v32, 16  ;;  %v2815_v32 = vrot.slane %v2813_v24, 5 }
  0xc5   : > { %14637 = vmatprep.subr.bf16.mxu0 %v15744_v46  ;;  %v2768_v43 = vor.u32 %v2767_v20, %v2764_v38  ;;  %v2823_v38 = vrot.slane %v2821_v27, 5  ;;  %v2829_v20 = vrot.slane %v2827_v28, 5  ;;  %v15785_v27 = vld [vmem:[%s19944_s1 + $0xf0] sm:$0xff]  }
  0xc7   : > { %14446 = vmatpush3.bf16.msra.mxu1 %v15743_v45  ;;  %v15766_v45 = vld [vmem:[%s19944_s1 + $0x30] sm:$0xff]  }
  0xc8   : > { %14638 = vmatpush3.bf16.msra.mxu0 %v15744_v46  ;;  %14447 = vmatprep.subr.bf16.mxu1 %v15745_v47  ;;  %v15769_v46 = vld [vmem:[%s19944_s1 + $0xb8] sm:$0xff]  }
  0xc9   : > { %14639 = vmatprep.subr.bf16.mxu0 %v15746_v48 }
  0xcb   : > { %14448 = vmatpush3.bf16.msra.mxu1 %v15745_v47  ;;  %v2759_v47 = vrot.slane %v2757_v40, 5 }
  0xcc   : > { %14640 = vmatpush3.bf16.msra.mxu0 %v15746_v48  ;;  %14457 = vmatprep.subr.bf16.mxu1 %v15748_v49  ;;  %v2773_v48 = vrot.slane %v2771_v41, 5 }
  0xcd   : > { %14649 = vmatprep.subr.bf16.mxu0 %v15750_v50 }
  0xce   : > { %14450 = vmatmul.mubr.bf16.vlgmr.msra.gmra.mrb[8].mxu1 %v15751_v51  ;;  %v15770_v51 = vld [vmem:[%s19944_s1 + $0x38] sm:$0xff]  }
  0xcf   : > { %14458 = vmatpush3.bf16.msra.mxu1 %v15748_v49  ;;  %14642 = vmatmul.mubr.bf16.vlgmr.msra.gmra.mrb[8].mxu0 %v15752_v52  ;;  %v2755_v49 = vrot.slane %v2754_v42, 4  ;;  %v12400_v52 = vld [vmem:[%s16157_s24 + $0x68] sm:$0xf] }
  0xd0   : > { %14650 = vmatpush3.bf16.msra.mxu0 %v15750_v50  ;;  %14459 = vmatprep.subr.bf16.mxu1 %v15753_v54  ;;  %v2769_v50 = vrot.slane %v2768_v43, 4  ;;  %v15788_v42 = vld [vmem:[%s16157_s24 + $0xc0] ss:$8 sps:$4 sm:$0xff]   ;;  %v15779_v43 = vld [vmem:[%s19944_s1 + $0xd8] sm:$0xff]  }
  0xd1   : > { %14651 = vmatprep.subr.bf16.mxu0 %v15754_v55  ;;  %14453 = vmatprep.mubr.bf16.mxu1 %v15763_v56  ;;  %v12403_v56 = vld [vmem:[%s16157_s24 + $0x74] sm:$0x1]  ;;  %v2760_v61 = vsel %vm16228_vm2, %v2755_v49, %v2759_v47  ;;  %v15791_v47 = vld [vmem:[%s16157_s24 + $0xd8] ss:$8 sps:$4 sm:$0xff]  }
  0xd2   : > { %14645 = vmatprep.mubr.bf16.mxu0 %v15765_v58  ;;  %v2779_v58 = vshll.u32 %v12400_v52, 16  ;;  %v2774_v62 = vsel %vm16228_vm2, %v2769_v50, %v2773_v48  ;;  %v2799_v0 = vshll.u32 %v12403_v56, 16  ;;  %v12742_v48 = vld [vmem:[%s16157_s24 + $0x94] sm:$0x1]  ;;  %v12743_v49 = vld [vmem:[%s16157_s24 + $0x98] sm:$0xf] }
  0xd3   : > { %14460 = vmatpush3.bf16.msra.mxu1 %v15753_v54  ;;  %v12401_v54 = vld [vmem:[%s16157_s24 + $0x6c] sm:$0x1]  ;;  %v12425_v9 = vcombine.low %v2760_v61, %v2774_v62  ;;  %v12744_v50 = vld [vmem:[%s16157_s24 + $0x9c] sm:$0x1]  ;;  %v4850_v56 = vshll.u32 %v12742_v48, 16 }
  0xd4   : > { %14652 = vmatpush3.bf16.msra.mxu0 %v15754_v55  ;;  %14461 = vmatprep.subr.bf16.mxu1 %v15755_v57  ;;  %v12402_v55 = vld [vmem:[%s16157_s24 + $0x70] sm:$0xf]  ;;  %v2781_v4 = vrot.slane %v2779_v58, 5  ;;  %v2801_v13 = vrot.slane %v2799_v0, 5  ;;  %v4855_v58 = vshrl.u32 %v12743_v49, 16  ;;  %v15782_v0 = vld [vmem:[%s19944_s1 + $0xa0] sm:$0xff]  }
  0xd5   : > { %14653 = vmatprep.subr.bf16.mxu0 %v15756_v59  ;;  %v2793_v63 = vshll.u32 %v12402_v55, 16 }
  0xd6   : > { %14454 = vmatmul.mubr.bf16.gmra.mrb[12].mxu1 %v15767_v60  ;;  %v2790_v60 = vshrl.u32 %v12402_v55, 16 }
  0xd7   : > { %14462 = vmatpush3.bf16.msra.mxu1 %v15755_v57  ;;  %14646 = vmatmul.mubr.bf16.gmra.mrb[12].mxu0 %v15768_v7  ;;  %v2776_v57 = vshrl.u32 %v12400_v52, 16  ;;  %v15774_v7 = vld [vmem:[%s16157_s24 + $0xa0] ss:$8 sps:$4 sm:$0xff]   ;;  %v2795_v8 = vrot.slane %v2793_v63, 5 }
  0xd8   : > { %14654 = vmatpush3.bf16.msra.mxu0 %v15756_v59  ;;  %14463 = vmatprep.subr.bf16.mxu1 %v15757_v2  ;;  %v2785_v59 = vshll.u32 %v12401_v54, 16  ;;  %v2792_v5 = vrot.slane %v2790_v60, 4  ;;  %v4864_v60 = vshll.u32 %v12744_v50, 16  ;;  %v15781_v63 = vld [vmem:[%s19944_s1 + $0xe0] sm:$0xff]  }
  0xd9   : > { %14655 = vmatprep.subr.bf16.mxu0 %v15758_v10  ;;  %14665 = vmatprep.mubr.bf16.mxu0 %v15772_v16  ;;  %v2778_v3 = vrot.slane %v2776_v57, 4  ;;  %v15786_v16 = vld [vmem:[%s16157_s24 + $0xb0] ss:$8 sps:$4 sm:$0xff]  }
  0xda   : > { %14473 = vmatprep.mubr.bf16.mxu1 %v12424_v34  ;;  %v2787_v12 = vrot.slane %v2785_v59, 5  ;;  %v2796_v15 = vor.u32 %v2795_v8, %v2792_v5  ;;  %v4858_v59 = vshll.u32 %v12743_v49, 16  ;;  %v4852_v5 = vrot.slane %v4850_v56, 5  ;;  %v12746_v8 = vld [vmem:[%s16157_s24 + $0xa4] sm:$0x1] }
  0xdb   : > { %14464 = vmatpush3.bf16.msra.mxu1 %v15757_v2  ;;  %v15771_v2 = vld [vmem:[%s19944_s1 + $0xc0] sm:$0xff]   ;;  %v2782_v11 = vor.u32 %v2781_v4, %v2778_v3  ;;  %v4878_v21 = vshll.u32 %v12746_v8, 16 }
  0xdc   : > { %14656 = vmatpush3.bf16.msra.mxu0 %v15758_v10  ;;  %14465 = vmatprep.subr.bf16.mxu1 %v15759_v22  ;;  %v15775_v10 = vld [vmem:[%s19944_s1 + $0xc8] sm:$0xff]   ;;  %v2797_v25 = vrot.slane %v2796_v15, 4  ;;  %v4860_v3 = vrot.slane %v4858_v59, 5  ;;  %v15805_v59 = vld [vmem:[%s16157_s24 + $0xf8] ss:$8 sps:$4 sm:$0xff]  }
  0xdd   : > { %14657 = vmatprep.subr.bf16.mxu0 %v15760_v26  ;;  %v2783_v19 = vrot.slane %v2782_v11, 4  ;;  %v12748_v11 = vld [vmem:[%s16157_s24 + $0xac] sm:$0x1] }
  0xde   : > { %v2802_v36 = vsel %vm16228_vm2, %v2797_v25, %v2801_v13 }
  0xdf   : > { %14466 = vmatpush3.bf16.msra.mxu1 %v15759_v22  ;;  %v2804_v22 = vshrl.u32 %v12404_v17, 16  ;;  %v2788_v29 = vsel %vm16228_vm2, %v2783_v19, %v2787_v12 }
  0xe0   : > { %14658 = vmatpush3.bf16.msra.mxu0 %v15760_v26  ;;  %14467 = vmatprep.subr.bf16.mxu1 %v15761_v35  ;;  %v2818_v26 = vshrl.u32 %v12406_v1, 16  ;;  %v12426_v34 = vcombine.low %v2788_v29, %v2802_v36  ;;  %v15789_v36 = vld [vmem:[%s19944_s1 + $0xf8] sm:$0xff]  }
  0xe1   : > { %14659 = vmatprep.subr.bf16.mxu0 %v15762_v39  ;;  %v2806_v30 = vrot.slane %v2804_v22, 4  ;;  %v15784_v22 = vld [vmem:[%s19944_s1 + $0xa8] sm:$0xff]  }
  0xe2   : > { %v2820_v37 = vrot.slane %v2818_v26, 4  ;;  %v4892_v26 = vshll.u32 %v12748_v11, 16 }
  0xe3   : > { %14468 = vmatpush3.bf16.msra.mxu1 %v15761_v35  ;;  %v15778_v35 = vld [vmem:[%s19944_s1 + $0x90] sm:$0xff]  }
  0xe4   : > { %14660 = vmatpush3.bf16.msra.mxu0 %v15762_v39  ;;  %14469 = vmatprep.subr.bf16.mxu1 %v15764_v44  ;;  %v2810_v39 = vor.u32 %v2809_v31, %v2806_v30  ;;  %v2824_v40 = vor.u32 %v2823_v38, %v2820_v37  ;;  %v15787_v30 = vld [vmem:[%s19944_s1 + $0xb0] sm:$0xff]  }
  0xe5   : > { %14661 = vmatprep.subr.bf16.mxu0 %v15766_v45 }
  0xe6   : > { %v2811_v41 = vrot.slane %v2810_v39, 4  ;;  %v15793_v39 = vld [vmem:[%s19944_s1 + $0xc0] sm:$0xff]  }
  0xe7   : > { %14470 = vmatpush3.bf16.msra.mxu1 %v15764_v44  ;;  %v2825_v44 = vrot.slane %v2824_v40, 4  ;;  %v12749_v40 = vld [vmem:[%s16157_s24 + $0xb0] sm:$0xf] }
  0xe8   : > { %14662 = vmatpush3.bf16.msra.mxu0 %v15766_v45  ;;  %14471 = vmatprep.subr.bf16.mxu1 %v15769_v46  ;;  %v12741_v45 = vld [vmem:[%s16157_s24 + $0x90] sm:$0xf] }
  0xe9   : > { %14663 = vmatprep.subr.bf16.mxu0 %v15770_v51  ;;  %v2830_v52 = vsel %vm16228_vm2, %v2825_v44, %v2829_v20  ;;  %v4841_v54 = vshrl.u32 %v12741_v45, 16  ;;  %v4844_v55 = vshll.u32 %v12741_v45, 16  ;;  %v15790_v20 = vld [vmem:[%s19944_s1 + $0xb8] sm:$0xff]  }
  0xea   : > { %v12751_v44 = vld [vmem:[%s16157_s24 + $0xb8] sm:$0xf]  ;;  %v12752_v45 = vld [vmem:[%s16157_s24 + $0xbc] sm:$0x1] }
  0xeb   : > { %14472 = vmatpush3.bf16.msra.mxu1 %v15769_v46  ;;  %v2816_v46 = vsel %vm16228_vm2, %v2811_v41, %v2815_v32  ;;  %v4843_v61 = vrot.slane %v4841_v54, 4  ;;  %v4846_v62 = vrot.slane %v4844_v55, 5  ;;  %v12750_v41 = vld [vmem:[%s16157_s24 + $0xb4] sm:$0x1]  ;;  %v4911_v49 = vshrl.u32 %v12751_v44, 16  ;;  %v15795_v54 = vld [vmem:[%s19944_s1 + $0x108] sm:$0xff]  }
  0xec   : > { %14664 = vmatpush3.bf16.msra.mxu0 %v15770_v51  ;;  %14481 = vmatprep.subr.bf16.mxu1 %v15771_v2  ;;  %v15780_v51 = vld [vmem:[%s19944_s1 + $0x98] sm:$0xff]   ;;  %v12427_v57 = vcombine.low %v2816_v46, %v2830_v52  ;;  %v4897_v46 = vshrl.u32 %v12749_v40, 16  ;;  %v4906_v48 = vshll.u32 %v12750_v41, 16  ;;  %v4914_v50 = vshll.u32 %v12751_v44, 16  ;;  %v15794_v52 = vld [vmem:[%s16157_s24 + $0xe8] ss:$8 sps:$4 sm:$0xff]  }
  0xed   : > { %14673 = vmatprep.subr.bf16.mxu0 %v15773_v6  ;;  %v4847_v4 = vor.u32 %v4846_v62, %v4843_v61 }
  0xee   : > { %14474 = vmatmul.mubr.bf16.vlgmr.msra.gmra.mrb[8].mxu1 %v12425_v9  ;;  %v4899_v55 = vrot.slane %v4897_v46, 4  ;;  %v4916_v61 = vrot.slane %v4914_v50, 5  ;;  %v15802_v50 = vld [vmem:[%s19944_s1 + $0xe0] sm:$0xff]  }
  0xef   : > { %14482 = vmatpush3.bf16.msra.mxu1 %v15771_v2  ;;  %14666 = vmatmul.mubr.bf16.vlgmr.msra.gmra.mrb[8].mxu0 %v15774_v7  ;;  %v4857_v2 = vrot.slane %v4855_v58, 4  ;;  %v12745_v7 = vld [vmem:[%s16157_s24 + $0xa0] sm:$0xf]  ;;  %v4848_v15 = vrot.slane %v4847_v4, 4  ;;  %v15796_v58 = vld [vmem:[%s19944_s1 + $0xc8] sm:$0xff]  }
  0xf0   : > { %14674 = vmatpush3.bf16.msra.mxu0 %v15773_v6  ;;  %14483 = vmatprep.subr.bf16.mxu1 %v15775_v10  ;;  %v4866_v6 = vrot.slane %v4864_v60, 5  ;;  %v4869_v12 = vshrl.u32 %v12745_v7, 16  ;;  %v4872_v13 = vshll.u32 %v12745_v7, 16  ;;  %v4913_v60 = vrot.slane %v4911_v49, 4  ;;  %v12754_v4 = vld [vmem:[%s16157_s24 + $0xc4] sm:$0x1] }
  0xf1   : > { %14675 = vmatprep.subr.bf16.mxu0 %v15776_v14  ;;  %14669 = vmatprep.mubr.bf16.mxu0 %v15786_v16  ;;  %v4861_v9 = vor.u32 %v4860_v3, %v4857_v2  ;;  %v4853_v23 = vsel %vm16228_vm2, %v4848_v15, %v4852_v5  ;;  %v12753_v2 = vld [vmem:[%s16157_s24 + $0xc0] sm:$0xf]  ;;  %v12755_v5 = vld [vmem:[%s16157_s24 + $0xc8] sm:$0xf]  ;;  %v15797_v15 = vld [vmem:[%s19944_s1 + $0x110] sm:$0xff]  }
  0xf2   : > { %14477 = vmatprep.mubr.bf16.mxu1 %v12426_v34  ;;  %v4871_v1 = vrot.slane %v4869_v12, 4  ;;  %v4874_v19 = vrot.slane %v4872_v13, 5  ;;  %v15792_v34 = vld [vmem:[%s19944_s1 + $0x100] sm:$0xff]   ;;  %v4917_v3 = vor.u32 %v4916_v61, %v4913_v60  ;;  %v4925_v8 = vshrl.u32 %v12753_v2, 16  ;;  %v12478_v60 = vld [vmem:[%s16157_s24 + $0xa8] sm:$0xf] }
  0xf3   : > { %14484 = vmatpush3.bf16.msra.mxu1 %v15775_v10  ;;  %v12747_v10 = vld [vmem:[%s16157_s24 + $0xa8] sm:$0xf]  ;;  %v4862_v18 = vrot.slane %v4861_v9, 4  ;;  %v4928_v9 = vshll.u32 %v12753_v2, 16  ;;  %v4939_v12 = vshrl.u32 %v12755_v5, 16  ;;  %v4942_v13 = vshll.u32 %v12755_v5, 16 }
  0xf4   : > { %14676 = vmatpush3.bf16.msra.mxu0 %v15776_v14  ;;  %14485 = vmatprep.subr.bf16.mxu1 %v15777_v33  ;;  %v15783_v14 = vld [vmem:[%s19944_s1 + $0xe8] sm:$0xff]   ;;  %v4883_v16 = vshrl.u32 %v12747_v10, 16  ;;  %v4886_v17 = vshll.u32 %v12747_v10, 16  ;;  %v4875_v31 = vor.u32 %v4874_v19, %v4871_v1  ;;  %v4934_v10 = vshll.u32 %v12754_v4, 16 }
  0xf5   : > { %14677 = vmatprep.subr.bf16.mxu0 %v15778_v35  ;;  %v4867_v28 = vsel %vm16228_vm2, %v4862_v18, %v4866_v6  ;;  %v12756_v6 = vld [vmem:[%s16157_s24 + $0xcc] sm:$0x1]  ;;  %v4918_v11 = vrot.slane %v4917_v3, 4  ;;  %v4927_v18 = vrot.slane %v4925_v8, 4  ;;  %v4930_v1 = vrot.slane %v4928_v9, 5 }
  0xf6   : > { %14478 = vmatmul.mubr.bf16.gmra.mrb[12].mxu1 %v12427_v57  ;;  %v4885_v24 = vrot.slane %v4883_v16, 4  ;;  %v4888_v25 = vrot.slane %v4886_v17, 5  ;;  %v12773_v29 = vcombine.low %v4853_v23, %v4867_v28  ;;  %v4876_v37 = vrot.slane %v4875_v31, 4  ;;  %v15808_v17 = vld [vmem:[%s16157_s24 + $0x108] ss:$8 sps:$4 sm:$0xff]  }
  0xf7   : > { %14486 = vmatpush3.bf16.msra.mxu1 %v15777_v33  ;;  %14670 = vmatmul.mubr.bf16.gmra.mrb[12].mxu0 %v15788_v42  ;;  %v4880_v33 = vrot.slane %v4878_v21, 5  ;;  %v4936_v19 = vrot.slane %v4934_v10, 5  ;;  %v15798_v21 = vld [vmem:[%s19944_s1 + $0xd0] sm:$0xff]   ;;  %v4941_v23 = vrot.slane %v4939_v12, 4  ;;  %v4931_v28 = vor.u32 %v4930_v1, %v4927_v18  ;;  %v12474_v31 = vld [vmem:[%s16157_s24 + $0x98] sm:$0xf] }
  0xf8   : > { %14678 = vmatpush3.bf16.msra.mxu0 %v15778_v35  ;;  %14487 = vmatprep.subr.bf16.mxu1 %v15779_v43  ;;  %v4889_v32 = vor.u32 %v4888_v25, %v4885_v24  ;;  %v4894_v35 = vrot.slane %v4892_v26, 5  ;;  %v4944_v24 = vrot.slane %v4942_v13, 5  ;;  %v15799_v26 = vld [vmem:[%s19944_s1 + $0x118] sm:$0xff]   ;;  %v12479_v61 = vld [vmem:[%s16157_s24 + $0xac] sm:$0x1]  ;;  %v3212_v2 = vshrl.u32 %v12478_v60, 16 }
  0xf9   : > { %14679 = vmatprep.subr.bf16.mxu0 %v15780_v51  ;;  %14497 = vmatprep.mubr.bf16.mxu1 %v15791_v47  ;;  %v4881_v42 = vsel %vm16228_vm2, %v4876_v37, %v4880_v33  ;;  %v4900_v47 = vshll.u32 %v12749_v40, 16  ;;  %v3215_v5 = vshll.u32 %v12478_v60, 16  ;;  %v16825_v18 = vld [vmem:[%s19944_s1 + $0xf0] sm:$0xff]  }
  0xfa   : > { %14689 = vmatprep.mubr.bf16.mxu0 %v12773_v29  ;;  %v4890_v38 = vrot.slane %v4889_v32, 4  ;;  %v12472_v29 = vld [vmem:[%s16157_s24 + $0x90] sm:$0xf]  ;;  %v15800_v32 = vld [vmem:[%s19944_s1 + $0xd8] sm:$0xff]   ;;  %v4945_v33 = vor.u32 %v4944_v24, %v4941_v23  ;;  %v16077_v23 = vmov 0.0  }
  0xfb   : > { %14488 = vmatpush3.bf16.msra.mxu1 %v15779_v43  ;;  %v4902_v56 = vrot.slane %v4900_v47, 5  ;;  %v3173_v37 = vshll.u32 %v12472_v29, 16  ;;  %v3217_v13 = vrot.slane %v3215_v5, 5  ;;  %253 = vst [vmem:[#allocation2] sm:$0xff] %v16077_v23  ;;  %254 = vst [vmem:[#allocation2 + $0x8] sm:$0x3] %v16077_v23 }
  0xfc   : > { %14680 = vmatpush3.bf16.msra.mxu0 %v15780_v51  ;;  %14489 = vmatprep.subr.bf16.mxu1 %v15781_v63  ;;  %v4895_v43 = vsel %vm16228_vm2, %v4890_v38, %v4894_v35  ;;  %v4920_v51 = vshll.u32 %v12752_v45, 16  ;;  %v12475_v35 = vld [vmem:[%s16157_s24 + $0x9c] sm:$0x1]  ;;  %v4946_v41 = vrot.slane %v4945_v33, 4  ;;  %v15801_v45 = vld [vmem:[%s19944_s1 + $0x120] sm:$0xff]   ;;  %279 = vst [vmem:[#allocation2 + $0xa0] sm:$0xff] %v16077_v23 }
  0xfd   : > { %14681 = vmatprep.subr.bf16.mxu0 %v15782_v0  ;;  %v12774_v57 = vcombine.low %v4881_v42, %v4895_v43  ;;  %v4903_v62 = vor.u32 %v4902_v56, %v4899_v55  ;;  %v3193_v40 = vshll.u32 %v12475_v35, 16  ;;  %v3175_v43 = vrot.slane %v3173_v37, 5  ;;  %259 = vst [vmem:[#allocation2 + $0x10] sm:$0x1] %v16077_v23  ;;  %260 = vst [vmem:[#allocation2 + $0x20] sm:$0x1] %v16077_v23 }
  0xfe   : > { %261 = vst [vmem:[#allocation2 + $0x30] sm:$0x1] %v16077_v23  ;;  %269 = vst [vmem:[#allocation2 + $0x19] sm:$0x1] %v16077_v23  ;;  %v15809_v24 = vld [vmem:[%s19944_s1 + $0x138] sm:$0xff]   ;;  %v15818_v5 = vld [vmem:[%s19944_s1 + $0x110] sm:$0xff]  }
  0xff   : > { %14490 = vmatpush3.bf16.msra.mxu1 %v15781_v63  ;;  %v4908_v63 = vrot.slane %v4906_v48, 5  ;;  %v4904_v7 = vrot.slane %v4903_v62, 4  ;;  %v3195_v49 = vrot.slane %v3193_v40, 5  ;;  %270 = vst [vmem:[#allocation2 + $0x29] sm:$0x1] %v16077_v23  ;;  %305 = vst [vmem:[#allocation2 + $0x140] sm:$0xff] %v16077_v23 }
 0x100   : > { %14682 = vmatpush3.bf16.msra.mxu0 %v15782_v0  ;;  %14491 = vmatprep.subr.bf16.mxu1 %v15783_v14  ;;  %v4922_v0 = vrot.slane %v4920_v51, 5  ;;  %271 = vst [vmem:[#allocation2 + $0x39] sm:$0x1] %v16077_v23  ;;  %280 = vst [vmem:[#allocation2 + $0xa8] sm:$0x3] %v16077_v23 }
 0x101   : > { %14683 = vmatprep.subr.bf16.mxu0 %v15784_v22  ;;  %v4909_v16 = vsel %vm16228_vm2, %v4904_v7, %v4908_v63  ;;  %v16813_v7 = vld [vmem:[%s19944_s1 + $0xe8] sm:$0xff]   ;;  %285 = vst [vmem:[#allocation2 + $0xb0] sm:$0x1] %v16077_v23  ;;  %286 = vst [vmem:[#allocation2 + $0xc0] sm:$0x1] %v16077_v23 }
 0x102   : > { %287 = vst [vmem:[#allocation2 + $0xd0] sm:$0x1] %v16077_v23  ;;  %295 = vst [vmem:[#allocation2 + $0xb9] sm:$0x1] %v16077_v23  ;;  %v12483_v33 = vld [vmem:[%s16157_s24 + $0xbc] sm:$0x1] }
 0x103   : > { %14492 = vmatpush3.bf16.msra.mxu1 %v15783_v14  ;;  %v4948_v14 = vshll.u32 %v12756_v6, 16  ;;  %v15803_v6 = vld [vmem:[%s19944_s1 + $0x128] sm:$0xff]   ;;  %296 = vst [vmem:[#allocation2 + $0xc9] sm:$0x1] %v16077_v23  ;;  %297 = vst [vmem:[#allocation2 + $0xd9] sm:$0x1] %v16077_v23 }
 0x104   : > { %14684 = vmatpush3.bf16.msra.mxu0 %v15784_v22  ;;  %14493 = vmatprep.subr.bf16.mxu1 %v15785_v27  ;;  %v4923_v22 = vsel %vm16228_vm2, %v4918_v11, %v4922_v0  ;;  %v3214_v11 = vrot.slane %v3212_v2, 4  ;;  %306 = vst [vmem:[#allocation2 + $0x148] sm:$0x3] %v16077_v23  ;;  %311 = vst [vmem:[#allocation2 + $0x150] sm:$0x1] %v16077_v23 }
 0x105   : > { %14685 = vmatprep.subr.bf16.mxu0 %v15787_v30  ;;  %v4950_v25 = vrot.slane %v4948_v14, 5  ;;  %v3221_v14 = vshll.u32 %v12479_v61, 16  ;;  %312 = vst [vmem:[#allocation2 + $0x160] sm:$0x1] %v16077_v23  ;;  %313 = vst [vmem:[#allocation2 + $0x170] sm:$0x1] %v16077_v23 }
 0x106   : > { %321 = vst [vmem:[#allocation2 + $0x159] sm:$0x1] %v16077_v23  ;;  %322 = vst [vmem:[#allocation2 + $0x169] sm:$0x1] %v16077_v23  ;;  %v15814_v40 = vld [vmem:[%s16157_s24 + $0x18] ss:$8 sps:$4 sm:$0xff]  }
 0x107   : > { %14494 = vmatpush3.bf16.msra.mxu1 %v15785_v27  ;;  %v12775_v27 = vcombine.low %v4909_v16, %v4923_v22  ;;  %v4951_v51 = vsel %vm16228_vm2, %v4946_v41, %v4950_v25  ;;  %323 = vst [vmem:[#allocation2 + $0x179] sm:$0x1] %v16077_v23  ;;  %331 = vst [vmem:[#allocation2 + $0x1e0] sm:$0xff] %v16077_v23  ;;  %v15810_v25 = vld [vmem:[%s19944_s1 + $0xf8] sm:$0xff]  }
 0x108   : > { %14686 = vmatpush3.bf16.msra.mxu0 %v15787_v30  ;;  %14495 = vmatprep.subr.bf16.mxu1 %v15789_v36  ;;  %v12473_v30 = vld [vmem:[%s16157_s24 + $0x94] sm:$0x1]  ;;  %332 = vst [vmem:[#allocation2 + $0x1e8] sm:$0x3] %v16077_v23  ;;  %337 = vst [vmem:[#allocation2 + $0x1f0] sm:$0x1] %v16077_v23 }
 0x109   : > { %14687 = vmatprep.subr.bf16.mxu0 %v15790_v20  ;;  %v3179_v38 = vshll.u32 %v12473_v30, 16  ;;  %338 = vst [vmem:[#allocation2 + $0x200] sm:$0x1] %v16077_v23  ;;  %339 = vst [vmem:[#allocation2 + $0x210] sm:$0x1] %v16077_v23 }
 0x10a   : > { %347 = vst [vmem:[#allocation2 + $0x1f9] sm:$0x1] %v16077_v23  ;;  %348 = vst [vmem:[#allocation2 + $0x209] sm:$0x1] %v16077_v23  ;;  %v12481_v30 = vld [vmem:[%s16157_s24 + $0xb4] sm:$0x1] }
 0x10b   : > { %14496 = vmatpush3.bf16.msra.mxu1 %v15789_v36  ;;  %v3170_v36 = vshrl.u32 %v12472_v29, 16  ;;  %v3181_v44 = vrot.slane %v3179_v38, 5  ;;  %349 = vst [vmem:[#allocation2 + $0x219] sm:$0x1] %v16077_v23  ;;  %256 = vst [vmem:[#allocation2 + $0x90] sm:$0xff] %v16077_v23  ;;  %v3235_v37 = vshll.u32 %v12481_v30, 16 }
 0x10c   : > { %14688 = vmatpush3.bf16.msra.mxu0 %v15790_v20  ;;  %14505 = vmatprep.subr.bf16.mxu1 %v15792_v34  ;;  %v4932_v20 = vrot.slane %v4931_v28, 4  ;;  %257 = vst [vmem:[#allocation2 + $0x98] sm:$0x3] %v16077_v23  ;;  %262 = vst [vmem:[#allocation2 + $0x40] sm:$0x1] %v16077_v23  ;;  %v15821_v30 = vld [vmem:[%s19944_s1 + $0x160] sm:$0xff]  }
 0x10d   : > { %14697 = vmatprep.subr.bf16.mxu0 %v15793_v39  ;;  %v3172_v42 = vrot.slane %v3170_v36, 4  ;;  %263 = vst [vmem:[#allocation2 + $0x50] sm:$0x1] %v16077_v23  ;;  %264 = vst [vmem:[#allocation2 + $0x60] sm:$0x1] %v16077_v23 }
 0x10e   : > { %14498 = vmatmul.mubr.bf16.vlgmr.msra.gmra.mrb[8].mxu1 %v15794_v52  ;;  %v4937_v46 = vsel %vm16228_vm2, %v4932_v20, %v4936_v19  ;;  %265 = vst [vmem:[#allocation2 + $0x70] sm:$0x1] %v16077_v23  ;;  %266 = vst [vmem:[#allocation2 + $0x80] sm:$0x1] %v16077_v23  ;;  %v12480_v29 = vld [vmem:[%s16157_s24 + $0xb0] sm:$0xf] }
 0x10f   : > { %14506 = vmatpush3.bf16.msra.mxu1 %v15792_v34  ;;  %14690 = vmatmul.mubr.bf16.vlgmr.msra.gmra.mrb[8].mxu0 %v12774_v57  ;;  %v3184_v34 = vshrl.u32 %v12474_v31, 16  ;;  %v3176_v52 = vor.u32 %v3175_v43, %v3172_v42  ;;  %v12776_v55 = vcombine.low %v4937_v46, %v4951_v51  ;;  %v12476_v57 = vld [vmem:[%s16157_s24 + $0xa0] sm:$0xf]  ;;  %272 = vst [vmem:[#allocation2 + $0x49] sm:$0x1] %v16077_v23  ;;  %282 = vst [vmem:[#allocation2 + $0x130] sm:$0xff] %v16077_v23 }
 0x110   : > { %14698 = vmatpush3.bf16.msra.mxu0 %v15793_v39  ;;  %14507 = vmatprep.subr.bf16.mxu1 %v15795_v54  ;;  %v3187_v39 = vshll.u32 %v12474_v31, 16  ;;  %v3198_v62 = vshrl.u32 %v12476_v57, 16  ;;  %v3201_v0 = vshll.u32 %v12476_v57, 16  ;;  %273 = vst [vmem:[#allocation2 + $0x59] sm:$0x1] %v16077_v23  ;;  %308 = vst [vmem:[#allocation2 + $0x1d0] sm:$0xff] %v16077_v23 }
 0x111   : > { %14699 = vmatprep.subr.bf16.mxu0 %v15796_v58  ;;  %14501 = vmatprep.mubr.bf16.mxu1 %v15805_v59  ;;  %v3186_v47 = vrot.slane %v3184_v34, 4  ;;  %v3177_v59 = vrot.slane %v3176_v52, 4  ;;  %274 = vst [vmem:[#allocation2 + $0x69] sm:$0x1] %v16077_v23  ;;  %275 = vst [vmem:[#allocation2 + $0x79] sm:$0x1] %v16077_v23 }
 0x112   : > { %14693 = vmatprep.mubr.bf16.mxu0 %v12775_v27  ;;  %v3189_v48 = vrot.slane %v3187_v39, 5  ;;  %v3200_v4 = vrot.slane %v3198_v62, 4  ;;  %v3203_v9 = vrot.slane %v3201_v0, 5  ;;  %276 = vst [vmem:[#allocation2 + $0x89] sm:$0x1] %v16077_v23  ;;  %334 = vst [vmem:[#allocation2 + $0x270] sm:$0xff] %v16077_v23 }
 0x113   : > { %14508 = vmatpush3.bf16.msra.mxu1 %v15795_v54  ;;  %v15812_v54 = vld [vmem:[%s16157_s24 + $0x8] ss:$8 sps:$4 sm:$0xff]   ;;  %v3182_v3 = vsel %vm16228_vm2, %v3177_v59, %v3181_v44  ;;  %283 = vst [vmem:[#allocation2 + $0x138] sm:$0x3] %v16077_v23  ;;  %288 = vst [vmem:[#allocation2 + $0xe0] sm:$0x1] %v16077_v23 }
 0x114   : > { %14700 = vmatpush3.bf16.msra.mxu0 %v15796_v58  ;;  %14509 = vmatprep.subr.bf16.mxu1 %v15797_v15  ;;  %v3190_v56 = vor.u32 %v3189_v48, %v3186_v47  ;;  %v12477_v58 = vld [vmem:[%s16157_s24 + $0xa4] sm:$0x1]  ;;  %v3204_v16 = vor.u32 %v3203_v9, %v3200_v4  ;;  %289 = vst [vmem:[#allocation2 + $0xf0] sm:$0x1] %v16077_v23  ;;  %290 = vst [vmem:[#allocation2 + $0x100] sm:$0x1] %v16077_v23 }
 0x115   : > { %14701 = vmatprep.subr.bf16.mxu0 %v15798_v21  ;;  %v3207_v10 = vshll.u32 %v12477_v58, 16  ;;  %291 = vst [vmem:[#allocation2 + $0x110] sm:$0x1] %v16077_v23  ;;  %292 = vst [vmem:[#allocation2 + $0x120] sm:$0x1] %v16077_v23  ;;  %v15813_v31 = vld [vmem:[%s19944_s1 + $0x100] sm:$0xff]  }
 0x116   : > { %14502 = vmatmul.mubr.bf16.gmra.mrb[12].mxu1 %v15808_v17  ;;  %v3191_v63 = vrot.slane %v3190_v56, 4  ;;  %v3218_v17 = vor.u32 %v3217_v13, %v3214_v11  ;;  %v16830_v19 = vrot.slane %v3204_v16, 4  ;;  %298 = vst [vmem:[#allocation2 + $0xe9] sm:$0x1] %v16077_v23  ;;  %299 = vst [vmem:[#allocation2 + $0xf9] sm:$0x1] %v16077_v23 }
 0x117   : > { %14510 = vmatpush3.bf16.msra.mxu1 %v15797_v15  ;;  %14694 = vmatmul.mubr.bf16.gmra.mrb[12].mxu0 %v12776_v55  ;;  %v16820_v15 = vld [vmem:[%s19944_s1 + $0x130] sm:$0xff]   ;;  %v16827_v1 = vrot.slane %v3207_v10, 5  ;;  %300 = vst [vmem:[#allocation2 + $0x109] sm:$0x1] %v16077_v23  ;;  %301 = vst [vmem:[#allocation2 + $0x119] sm:$0x1] %v16077_v23 }
 0x118   : > { %14702 = vmatpush3.bf16.msra.mxu0 %v15798_v21  ;;  %14511 = vmatprep.subr.bf16.mxu1 %v15799_v26  ;;  %v3196_v8 = vsel %vm16228_vm2, %v3191_v63, %v3195_v49  ;;  %v16832_v21 = vrot.slane %v3221_v14, 5  ;;  %v16834_v22 = vrot.slane %v3218_v17, 4  ;;  %302 = vst [vmem:[#allocation2 + $0x129] sm:$0x1] %v16077_v23  ;;  %309 = vst [vmem:[#allocation2 + $0x1d8] sm:$0x3] %v16077_v23 }
 0x119   : > { %14703 = vmatprep.subr.bf16.mxu0 %v15800_v32  ;;  %14713 = vmatprep.mubr.bf16.mxu0 %v15812_v54  ;;  %v12504_v12 = vcombine.low %v3182_v3, %v3196_v8  ;;  %314 = vst [vmem:[#allocation2 + $0x180] sm:$0x1] %v16077_v23  ;;  %315 = vst [vmem:[#allocation2 + $0x190] sm:$0x1] %v16077_v23  ;;  %v3210_v27 = vsel %vm16228_vm2, %v16830_v19, %v16827_v1  ;;  %v3226_v35 = vshrl.u32 %v12480_v29, 16  ;;  %v15815_v43 = vld [vmem:[%s19944_s1 + $0x148] sm:$0xff]  }
 0x11a   : > { %316 = vst [vmem:[#allocation2 + $0x1a0] sm:$0x1] %v16077_v23  ;;  %317 = vst [vmem:[#allocation2 + $0x1b0] sm:$0x1] %v16077_v23  ;;  %v3224_v28 = vsel %vm16228_vm2, %v16834_v22, %v16832_v21  ;;  %v3229_v36 = vshll.u32 %v12480_v29, 16  ;;  %v3249_v34 = vshll.u32 %v12483_v33, 16 }
 0x11b   : > { %14512 = vmatpush3.bf16.msra.mxu1 %v15799_v26  ;;  %14521 = vmatprep.mubr.bf16.mxu1 %v12504_v12  ;;  %318 = vst [vmem:[#allocation2 + $0x1c0] sm:$0x1] %v16077_v23  ;;  %324 = vst [vmem:[#allocation2 + $0x189] sm:$0x1] %v16077_v23  ;;  %v15811_v26 = vld [vmem:[%s19944_s1 + $0x140] sm:$0xff]   ;;  %v12505_v39 = vcombine.low %v3210_v27, %v3224_v28  ;;  %v3228_v41 = vrot.slane %v3226_v35, 4 }
 0x11c   : > { %14704 = vmatpush3.bf16.msra.mxu0 %v15800_v32  ;;  %14513 = vmatprep.subr.bf16.mxu1 %v15801_v45  ;;  %325 = vst [vmem:[#allocation2 + $0x199] sm:$0x1] %v16077_v23  ;;  %326 = vst [vmem:[#allocation2 + $0x1a9] sm:$0x1] %v16077_v23  ;;  %v12482_v32 = vld [vmem:[%s16157_s24 + $0xb8] sm:$0xf] }
 0x11d   : > { %14705 = vmatprep.subr.bf16.mxu0 %v15802_v50  ;;  %327 = vst [vmem:[#allocation2 + $0x1b9] sm:$0x1] %v16077_v23  ;;  %328 = vst [vmem:[#allocation2 + $0x1c9] sm:$0x1] %v16077_v23  ;;  %v3240_v38 = vshrl.u32 %v12482_v32, 16  ;;  %v3243_v20 = vshll.u32 %v12482_v32, 16 }
 0x11e   : > { %335 = vst [vmem:[#allocation2 + $0x278] sm:$0x3] %v16077_v23  ;;  %340 = vst [vmem:[#allocation2 + $0x220] sm:$0x1] %v16077_v23  ;;  %v3231_v42 = vrot.slane %v3229_v36, 5  ;;  %v3237_v44 = vrot.slane %v3235_v37, 5 }
 0x11f   : > { %14514 = vmatpush3.bf16.msra.mxu1 %v15801_v45  ;;  %341 = vst [vmem:[#allocation2 + $0x230] sm:$0x1] %v16077_v23  ;;  %342 = vst [vmem:[#allocation2 + $0x240] sm:$0x1] %v16077_v23  ;;  %v3242_v45 = vrot.slane %v3240_v38, 4  ;;  %v3245_v46 = vrot.slane %v3243_v20, 5 }
 0x120   : > { %14706 = vmatpush3.bf16.msra.mxu0 %v15802_v50  ;;  %14515 = vmatprep.subr.bf16.mxu1 %v15803_v6  ;;  %343 = vst [vmem:[#allocation2 + $0x250] sm:$0x1] %v16077_v23  ;;  %344 = vst [vmem:[#allocation2 + $0x260] sm:$0x1] %v16077_v23  ;;  %v3251_v47 = vrot.slane %v3249_v34, 5  ;;  %v15816_v48 = vld [vmem:[%s19944_s1 + $0x108] sm:$0xff]   ;;  %v3232_v49 = vor.u32 %v3231_v42, %v3228_v41 }
 0x121   : > { %14707 = vmatprep.subr.bf16.mxu0 %v16813_v7  ;;  %350 = vst [vmem:[#allocation2 + $0x229] sm:$0x1] %v16077_v23  ;;  %351 = vst [vmem:[#allocation2 + $0x239] sm:$0x1] %v16077_v23  ;;  %v15826_v50 = vld [vmem:[%s16157_s24 + $0x28] ss:$8 sps:$4 sm:$0xff]   ;;  %v3246_v51 = vor.u32 %v3245_v46, %v3242_v45 }
 0x122   : > { %352 = vst [vmem:[#allocation2 + $0x249] sm:$0x1] %v16077_v23  ;;  %353 = vst [vmem:[#allocation2 + $0x259] sm:$0x1] %v16077_v23  ;;  %v12484_v52 = vld [vmem:[%s16157_s24 + $0xc0] sm:$0xf] }
 0x123   : > { %14516 = vmatpush3.bf16.msra.mxu1 %v15803_v6  ;;  %354 = vst [vmem:[#allocation2 + $0x269] sm:$0x1] %v16077_v23  ;;  %258 = vst [vmem:[#allocation2] sm:$0x1] %v16077_v23  ;;  %v12485_v54 = vld [vmem:[%s16157_s24 + $0xc4] sm:$0x1] }
 0x124   : > { %14708 = vmatpush3.bf16.msra.mxu0 %v16813_v7  ;;  %14517 = vmatprep.subr.bf16.mxu1 %v16820_v15  ;;  %268 = vst [vmem:[#allocation2 + $0x9] sm:$0x1] %v16077_v23  ;;  %284 = vst [vmem:[#allocation2 + $0xa0] sm:$0x1] %v16077_v23  ;;  %v3233_v55 = vrot.slane %v3232_v49, 4  ;;  %v3254_v58 = vshrl.u32 %v12484_v52, 16 }
 0x125   : > { %294 = vst [vmem:[#allocation2 + $0xa9] sm:$0x1] %v16077_v23  ;;  %310 = vst [vmem:[#allocation2 + $0x140] sm:$0x1] %v16077_v23  ;;  %14709 = vmatprep.subr.bf16.mxu0 %v16825_v18  ;;  %v12486_v56 = vld [vmem:[%s16157_s24 + $0xc8] sm:$0xf] }
 0x126   : > { %320 = vst [vmem:[#allocation2 + $0x149] sm:$0x1] %v16077_v23  ;;  %336 = vst [vmem:[#allocation2 + $0x1e0] sm:$0x1] %v16077_v23  ;;  %v12487_v57 = vld [vmem:[%s16157_s24 + $0xcc] sm:$0x1]  ;;  %v3238_v63 = vsel %vm16228_vm2, %v3233_v55, %v3237_v44 }
 0x127   : > { %346 = vst [vmem:[#allocation2 + $0x1e9] sm:$0x1] %v16077_v23  ;;  %267 = vst [vmem:[#allocation2 + $0x90] sm:$0x1] %v16077_v23  ;;  %14518 = vmatpush3.bf16.msra.mxu1 %v16820_v15  ;;  %v3247_v59 = vrot.slane %v3246_v51, 4  ;;  %v3257_v60 = vshll.u32 %v12484_v52, 16 }
 0x128   : > { %277 = vst [vmem:[#allocation2 + $0x99] sm:$0x1] %v16077_v23  ;;  %293 = vst [vmem:[#allocation2 + $0x130] sm:$0x1] %v16077_v23  ;;  %14710 = vmatpush3.bf16.msra.mxu0 %v16825_v18  ;;  %14519 = vmatprep.subr.bf16.mxu1 %v15809_v24  ;;  %v3263_v61 = vshll.u32 %v12485_v54, 16  ;;  %v3268_v62 = vshrl.u32 %v12486_v56, 16 }
 0x129   : > { %303 = vst [vmem:[#allocation2 + $0x139] sm:$0x1] %v16077_v23  ;;  %319 = vst [vmem:[#allocation2 + $0x1d0] sm:$0x1] %v16077_v23  ;;  %14711 = vmatprep.subr.bf16.mxu0 %v15810_v25  ;;  %v3256_v0 = vrot.slane %v3254_v58, 4  ;;  %v3271_v2 = vshll.u32 %v12486_v56, 16  ;;  %v3252_v6 = vsel %vm16228_vm2, %v3247_v59, %v3251_v47 }
 0x12a   : > { %329 = vst [vmem:[#allocation2 + $0x1d9] sm:$0x1] %v16077_v23  ;;  %345 = vst [vmem:[#allocation2 + $0x270] sm:$0x1] %v16077_v23  ;;  %v3277_v3 = vshll.u32 %v12487_v57, 16  ;;  %v15817_v4 = vld [vmem:[%s19944_s1 + $0x150] sm:$0xff]   ;;  %v12506_v10 = vcombine.low %v3238_v63, %v3252_v6 }
 0x12b   : > { %355 = vst [vmem:[#allocation2 + $0x279] sm:$0x1] %v16077_v23  ;;  %14520 = vmatpush3.bf16.msra.mxu1 %v15809_v24  ;;  %v3259_v7 = vrot.slane %v3257_v60, 5  ;;  %v3265_v8 = vrot.slane %v3263_v61, 5  ;;  %v3270_v9 = vrot.slane %v3268_v62, 4  ;;  %v3273_v11 = vrot.slane %v3271_v2, 5 }
 0x12c   : > { %14712 = vmatpush3.bf16.msra.mxu0 %v15810_v25  ;;  %14529 = vmatprep.subr.bf16.mxu1 %v15811_v26  ;;  %v3279_v12 = vrot.slane %v3277_v3, 5  ;;  %v15828_v13 = vld [vmem:[%s16157_s24 + $0x38] ss:$8 sps:$4 sm:$0xff]   ;;  %v12517_v1 = vld [vmem:[%s16157_s24 + $0xdc] sm:$0x1]  ;;  %v15823_v54 = vld [vmem:[%s19944_s1 + $0x168] sm:$0xff]  }
 0x12d   : > { %14721 = vmatprep.subr.bf16.mxu0 %v15813_v31  ;;  %v15819_v14 = vld [vmem:[%s19944_s1 + $0x158] sm:$0xff]   ;;  %v3260_v15 = vor.u32 %v3259_v7, %v3256_v0  ;;  %v3274_v18 = vor.u32 %v3273_v11, %v3270_v9  ;;  %v12518_v19 = vld [vmem:[%s16157_s24 + $0xe0] sm:$0xf]  ;;  %v12519_v21 = vld [vmem:[%s16157_s24 + $0xe4] sm:$0x1]  ;;  %v3460_v25 = vshll.u32 %v12517_v1, 16 }
 0x12e   : > { %14522 = vmatmul.mubr.bf16.vlgmr.msra.gmra.mrb[8].mxu1 %v12505_v39  ;;  %v12516_v16 = vld [vmem:[%s16157_s24 + $0xd8] sm:$0xf]  ;;  %v3465_v27 = vshrl.u32 %v12518_v19, 16  ;;  %v3468_v28 = vshll.u32 %v12518_v19, 16  ;;  %v3474_v29 = vshll.u32 %v12519_v21, 16  ;;  %v15822_v36 = vld [vmem:[%s19944_s1 + $0x120] sm:$0xff]  }
 0x12f   : > { %14530 = vmatpush3.bf16.msra.mxu1 %v15811_v26  ;;  %14714 = vmatmul.mubr.bf16.vlgmr.msra.gmra.mrb[8].mxu0 %v15814_v40  ;;  %v15820_v17 = vld [vmem:[%s19944_s1 + $0x118] sm:$0xff]   ;;  %v3261_v22 = vrot.slane %v3260_v15, 4  ;;  %v3451_v23 = vshrl.u32 %v12516_v16, 16  ;;  %v3454_v24 = vshll.u32 %v12516_v16, 16  ;;  %v3275_v26 = vrot.slane %v3274_v18, 4  ;;  %v15824_v59 = vld [vmem:[%s19944_s1 + $0x128] sm:$0xff]  }
 0x130   : > { %14722 = vmatpush3.bf16.msra.mxu0 %v15813_v31  ;;  %14531 = vmatprep.subr.bf16.mxu1 %v15815_v43  ;;  %v3462_v35 = vrot.slane %v3460_v25, 5  ;;  %v3467_v38 = vrot.slane %v3465_v27, 4  ;;  %v3470_v20 = vrot.slane %v3468_v28, 5  ;;  %v3476_v34 = vrot.slane %v3474_v29, 5  ;;  %v15832_v41 = vld [vmem:[%s16157_s24 + $0x50] ss:$8 sps:$4 sm:$0xff]  }
 0x131   : > { %14723 = vmatprep.subr.bf16.mxu0 %v15816_v48  ;;  %14717 = vmatprep.mubr.bf16.mxu0 %v15826_v50  ;;  %v3266_v31 = vsel %vm16228_vm2, %v3261_v22, %v3265_v8  ;;  %v3453_v32 = vrot.slane %v3451_v23, 4  ;;  %v3456_v33 = vrot.slane %v3454_v24, 5  ;;  %v3280_v37 = vsel %vm16228_vm2, %v3275_v26, %v3279_v12  ;;  %v12521_v44 = vld [vmem:[%s16157_s24 + $0xec] sm:$0x1]  ;;  %v12522_v45 = vld [vmem:[%s16157_s24 + $0xf0] sm:$0xf] }
 0x132   : > { %14525 = vmatprep.mubr.bf16.mxu1 %v12506_v10  ;;  %v12507_v39 = vcombine.low %v3266_v31, %v3280_v37  ;;  %v3471_v42 = vor.u32 %v3470_v20, %v3467_v38  ;;  %v12523_v47 = vld [vmem:[%s16157_s24 + $0xf4] sm:$0x1]  ;;  %v3493_v51 = vshrl.u32 %v12522_v45, 16  ;;  %v3496_v52 = vshll.u32 %v12522_v45, 16  ;;  %v15829_v10 = vld [vmem:[%s19944_s1 + $0x178] sm:$0xff]   ;;  %v15831_v12 = vld [vmem:[%s19944_s1 + $0x180] sm:$0xff]  }
 0x133   : > { %14532 = vmatpush3.bf16.msra.mxu1 %v15815_v43  ;;  %v3457_v40 = vor.u32 %v3456_v33, %v3453_v32  ;;  %v12520_v43 = vld [vmem:[%s16157_s24 + $0xe8] sm:$0xf]  ;;  %v3488_v58 = vshll.u32 %v12521_v44, 16  ;;  %v3502_v63 = vshll.u32 %v12523_v47, 16  ;;  %v15830_v11 = vld [vmem:[%s19944_s1 + $0x138] sm:$0xff]  }
 0x134   : > { %14724 = vmatpush3.bf16.msra.mxu0 %v15816_v48  ;;  %14533 = vmatprep.subr.bf16.mxu1 %v15817_v4  ;;  %v3479_v48 = vshrl.u32 %v12520_v43, 16  ;;  %v3482_v49 = vshll.u32 %v12520_v43, 16  ;;  %v3472_v50 = vrot.slane %v3471_v42, 4  ;;  %v3495_v61 = vrot.slane %v3493_v51, 4  ;;  %v12524_v16 = vld [vmem:[%s16157_s24 + $0xf8] sm:$0xf] }
 0x135   : > { %14725 = vmatprep.subr.bf16.mxu0 %v15818_v5  ;;  %v3458_v46 = vrot.slane %v3457_v40, 4  ;;  %v3498_v62 = vrot.slane %v3496_v52, 5  ;;  %v3490_v6 = vrot.slane %v3488_v58, 5  ;;  %v3504_v7 = vrot.slane %v3502_v63, 5  ;;  %v12526_v18 = vld [vmem:[%s16157_s24 + $0x100] sm:$0xf] }
 0x136   : > { %14526 = vmatmul.mubr.bf16.gmra.mrb[12].mxu1 %v12507_v39  ;;  %v3481_v56 = vrot.slane %v3479_v48, 4  ;;  %v3484_v57 = vrot.slane %v3482_v49, 5  ;;  %v3477_v60 = vsel %vm16228_vm2, %v3472_v50, %v3476_v34  ;;  %v12527_v1 = vld [vmem:[%s16157_s24 + $0x104] sm:$0x1]  ;;  %v3507_v19 = vshrl.u32 %v12524_v16, 16  ;;  %v15835_v28 = vld [vmem:[%s19944_s1 + $0x188] sm:$0xff]  }
 0x137   : > { %14534 = vmatpush3.bf16.msra.mxu1 %v15817_v4  ;;  %14718 = vmatmul.mubr.bf16.gmra.mrb[12].mxu0 %v15828_v13  ;;  %v3463_v55 = vsel %vm16228_vm2, %v3458_v46, %v3462_v35  ;;  %v3499_v3 = vor.u32 %v3498_v62, %v3495_v61  ;;  %v15825_v4 = vld [vmem:[%s19944_s1 + $0x170] sm:$0xff]   ;;  %v15833_v13 = vld [vmem:[%s19944_s1 + $0x140] sm:$0xff]   ;;  %v3510_v21 = vshll.u32 %v12524_v16, 16  ;;  %v3521_v23 = vshrl.u32 %v12526_v18, 16  ;;  %v15836_v31 = vld [vmem:[%s19944_s1 + $0x148] sm:$0xff]  }
 0x138   : > { %14726 = vmatpush3.bf16.msra.mxu0 %v15818_v5  ;;  %14535 = vmatprep.subr.bf16.mxu1 %v15819_v14  ;;  %v12548_v0 = vcombine.low %v3463_v55, %v3477_v60  ;;  %v3485_v2 = vor.u32 %v3484_v57, %v3481_v56  ;;  %v15827_v5 = vld [vmem:[%s19944_s1 + $0x130] sm:$0xff]   ;;  %v3524_v24 = vshll.u32 %v12526_v18, 16  ;;  %v3530_v25 = vshll.u32 %v12527_v1, 16  ;;  %v15834_v27 = vld [vmem:[%s16157_s24 + $0x60] ss:$8 sps:$4 sm:$0xff]   ;;  %v15839_v63 = vld [vmem:[%s19944_s1 + $0x198] sm:$0xff]  }
 0x139   : > { %14727 = vmatprep.subr.bf16.mxu0 %v15820_v17  ;;  %14737 = vmatprep.mubr.bf16.mxu0 %v15832_v41  ;;  %v3500_v9 = vrot.slane %v3499_v3, 4  ;;  %v3509_v29 = vrot.slane %v3507_v19, 4  ;;  %v3523_v33 = vrot.slane %v3521_v23, 4  ;;  %v15846_v38 = vld [vmem:[%s16157_s24 + $0x70] ss:$8 sps:$4 sm:$0xff]   ;;  %v15842_v16 = vld [vmem:[%s19944_s1 + $0x160] sm:$0xff]  }
 0x13a   : > { %14545 = vmatprep.mubr.bf16.mxu1 %v12548_v0  ;;  %v3486_v8 = vrot.slane %v3485_v2, 4  ;;  %v3526_v35 = vrot.slane %v3524_v24, 5  ;;  %v12528_v34 = vld [vmem:[%s16157_s24 + $0x108] sm:$0xf]  ;;  %v12529_v39 = vld [vmem:[%s16157_s24 + $0x10c] sm:$0x1] }
 0x13b   : > { %14536 = vmatpush3.bf16.msra.mxu1 %v15819_v14  ;;  %v3505_v15 = vsel %vm16228_vm2, %v3500_v9, %v3504_v7  ;;  %v12530_v41 = vld [vmem:[%s16157_s24 + $0x110] sm:$0xf]  ;;  %v12531_v42 = vld [vmem:[%s16157_s24 + $0x114] sm:$0x1]  ;;  %v3535_v43 = vshrl.u32 %v12528_v34, 16  ;;  %v3538_v45 = vshll.u32 %v12528_v34, 16 }
 0x13c   : > { %14728 = vmatpush3.bf16.msra.mxu0 %v15820_v17  ;;  %14537 = vmatprep.subr.bf16.mxu1 %v15821_v30  ;;  %v3491_v14 = vsel %vm16228_vm2, %v3486_v8, %v3490_v6  ;;  %v12525_v17 = vld [vmem:[%s16157_s24 + $0xfc] sm:$0x1]  ;;  %v3527_v20 = vor.u32 %v3526_v35, %v3523_v33  ;;  %v3544_v46 = vshll.u32 %v12529_v39, 16  ;;  %v3549_v47 = vshrl.u32 %v12530_v41, 16  ;;  %v15837_v48 = vld [vmem:[%s19944_s1 + $0x190] sm:$0xff]  }
 0x13d   : > { %14729 = vmatprep.subr.bf16.mxu0 %v15822_v36  ;;  %v3516_v22 = vshll.u32 %v12525_v17, 16  ;;  %v12549_v26 = vcombine.low %v3491_v14, %v3505_v15  ;;  %v3537_v50 = vrot.slane %v3535_v43, 4  ;;  %v3552_v51 = vshll.u32 %v12530_v41, 16  ;;  %v15848_v58 = vld [vmem:[%s16157_s24 + $0x80] ss:$8 sps:$4 sm:$0xff]   ;;  %v15840_v3 = vld [vmem:[%s19944_s1 + $0x158] sm:$0xff]  }
 0x13e   : > { %v3528_v44 = vrot.slane %v3527_v20, 4  ;;  %v3558_v52 = vshll.u32 %v12531_v42, 16  ;;  %v3540_v56 = vrot.slane %v3538_v45, 5  ;;  %v3551_v57 = vrot.slane %v3549_v47, 4  ;;  %v12858_v7 = vld [vmem:[%s16157_s24 + $0xc] sm:$0x1] }
 0x13f   : > { %14538 = vmatpush3.bf16.msra.mxu1 %v15821_v30  ;;  %v3512_v30 = vrot.slane %v3510_v21, 5  ;;  %v3518_v32 = vrot.slane %v3516_v22, 5  ;;  %v3546_v60 = vrot.slane %v3544_v46, 5  ;;  %v3554_v61 = vrot.slane %v3552_v51, 5  ;;  %v12859_v8 = vld [vmem:[%s16157_s24 + $0x10] sm:$0xf] }
 0x140   : > { %14730 = vmatpush3.bf16.msra.mxu0 %v15822_v36  ;;  %14539 = vmatprep.subr.bf16.mxu1 %v15823_v54  ;;  %v3532_v36 = vrot.slane %v3530_v25, 5  ;;  %v3541_v62 = vor.u32 %v3540_v56, %v3537_v50  ;;  %v3560_v2 = vrot.slane %v3558_v52, 5  ;;  %v5469_v14 = vshll.u32 %v12858_v7, 16  ;;  %v15851_v22 = vld [vmem:[%s16157_s24 + $0x50] ss:$8 sps:$4 sm:$0xff]   ;;  %v15843_v25 = vld [vmem:[%s19944_s1 + $0x1a8] sm:$0xff]  }
 0x141   : > { %14731 = vmatprep.subr.bf16.mxu0 %v15824_v59  ;;  %v3513_v37 = vor.u32 %v3512_v30, %v3509_v29  ;;  %v3555_v0 = vor.u32 %v3554_v61, %v3551_v57  ;;  %v5474_v15 = vshrl.u32 %v12859_v8, 16  ;;  %v5477_v1 = vshll.u32 %v12859_v8, 16  ;;  %v12863_v35 = vld [vmem:[%s16157_s24 + $0x20] sm:$0xf]  ;;  %v15845_v45 = vld [vmem:[%s19944_s1 + $0x1b0] sm:$0xff]  }
 0x142   : > { %v3533_v55 = vsel %vm16228_vm2, %v3528_v44, %v3532_v36  ;;  %v5471_v29 = vrot.slane %v5469_v14, 5  ;;  %v12864_v36 = vld [vmem:[%s16157_s24 + $0x24] sm:$0x1]  ;;  %v5502_v39 = vshrl.u32 %v12863_v35, 16  ;;  %v15854_v8 = vld [vmem:[%s16157_s24 + $0x60] ss:$8 sps:$4 sm:$0xff]  }
 0x143   : > { %14540 = vmatpush3.bf16.msra.mxu1 %v15823_v54  ;;  %v3514_v40 = vrot.slane %v3513_v37, 4  ;;  %v15838_v54 = vld [vmem:[%s19944_s1 + $0x150] sm:$0xff]   ;;  %v3556_v6 = vrot.slane %v3555_v0, 4  ;;  %v5476_v24 = vrot.slane %v5474_v15, 4  ;;  %v5511_v44 = vshll.u32 %v12864_v36, 16  ;;  %v15850_v0 = vld [vmem:[%s19944_s1 + $0x178] sm:$0xff]  }
 0x144   : > { %14732 = vmatpush3.bf16.msra.mxu0 %v15824_v59  ;;  %14541 = vmatprep.subr.bf16.mxu1 %v15825_v4  ;;  %v5504_v47 = vrot.slane %v5502_v39, 4  ;;  %v12865_v14 = vld [vmem:[%s16157_s24 + $0x28] sm:$0xf]  ;;  %v12872_v39 = vld [vmem:[%s16157_s24 + $0x44] sm:$0x1] }
 0x145   : > { %14733 = vmatprep.subr.bf16.mxu0 %v15827_v5  ;;  %v3519_v49 = vsel %vm16228_vm2, %v3514_v40, %v3518_v32  ;;  %v3561_v17 = vsel %vm16228_vm2, %v3556_v6, %v3560_v2  ;;  %v12862_v32 = vld [vmem:[%s16157_s24 + $0x1c] sm:$0x1]  ;;  %v5505_v40 = vshll.u32 %v12863_v35, 16  ;;  %v15852_v2 = vld [vmem:[%s19944_s1 + $0x1c0] sm:$0xff]  }
 0x146   : > { %v12550_v59 = vcombine.low %v3519_v49, %v3533_v55  ;;  %v5497_v34 = vshll.u32 %v12862_v32, 16  ;;  %v15847_v49 = vld [vmem:[%s19944_s1 + $0x170] sm:$0xff]   ;;  %v15853_v6 = vld [vmem:[%s19944_s1 + $0x180] sm:$0xff]  }
 0x147   : > { %14542 = vmatpush3.bf16.msra.mxu1 %v15825_v4  ;;  %v3542_v4 = vrot.slane %v3541_v62, 4 }
 0x148   : > { %14734 = vmatpush3.bf16.msra.mxu0 %v15827_v5  ;;  %14543 = vmatprep.subr.bf16.mxu1 %v15829_v10  ;;  %v12857_v5 = vld [vmem:[%s16157_s24 + $0x8] sm:$0xf]  ;;  %v5499_v55 = vrot.slane %v5497_v34, 5  ;;  %v15859_v34 = vld [vmem:[%s19944_s1 + $0x1d8] sm:$0xff]  }
 0x149   : > { %14735 = vmatprep.subr.bf16.mxu0 %v15830_v11  ;;  %v5460_v9 = vshrl.u32 %v12857_v5, 16 }
 0x14b   : > { %14544 = vmatpush3.bf16.msra.mxu1 %v15829_v10  ;;  %v15841_v10 = vld [vmem:[%s19944_s1 + $0x1a0] sm:$0xff]   ;;  %v5462_v18 = vrot.slane %v5460_v9, 4  ;;  %v15855_v9 = vld [vmem:[%s19944_s1 + $0x1c8] sm:$0xff]  }
 0x14c   : > { %14736 = vmatpush3.bf16.msra.mxu0 %v15830_v11  ;;  %14553 = vmatprep.subr.bf16.mxu1 %v15831_v12  ;;  %v3547_v11 = vsel %vm16228_vm2, %v3542_v4, %v3546_v60 }
 0x14d   : > { %14745 = vmatprep.subr.bf16.mxu0 %v15833_v13  ;;  %v12551_v21 = vcombine.low %v3547_v11, %v3561_v17  ;;  %v12867_v17 = vld [vmem:[%s16157_s24 + $0x30] sm:$0xf] }
 0x14e   : > { %14546 = vmatmul.mubr.bf16.vlgmr.msra.gmra.mrb[8].mxu1 %v12549_v26  ;;  %v5479_v26 = vrot.slane %v5477_v1, 5  ;;  %v12868_v1 = vld [vmem:[%s16157_s24 + $0x34] sm:$0x1] }
 0x14f   : > { %14554 = vmatpush3.bf16.msra.mxu1 %v15831_v12  ;;  %14738 = vmatmul.mubr.bf16.vlgmr.msra.gmra.mrb[8].mxu0 %v15834_v27  ;;  %v12860_v12 = vld [vmem:[%s16157_s24 + $0x14] sm:$0x1]  ;;  %v15844_v27 = vld [vmem:[%s19944_s1 + $0x168] sm:$0xff]  }
 0x150   : > { %14746 = vmatpush3.bf16.msra.mxu0 %v15833_v13  ;;  %14555 = vmatprep.subr.bf16.mxu1 %v15835_v28  ;;  %v5463_v13 = vshll.u32 %v12857_v5, 16  ;;  %v5483_v19 = vshll.u32 %v12860_v12, 16  ;;  %v5480_v33 = vor.u32 %v5479_v26, %v5476_v24  ;;  %v15856_v12 = vld [vmem:[%s19944_s1 + $0x188] sm:$0xff]   ;;  %v15857_v24 = vld [vmem:[%s19944_s1 + $0x1d0] sm:$0xff]   ;;  %v5539_v26 = vshll.u32 %v12868_v1, 16 }
 0x151   : > { %14747 = vmatprep.subr.bf16.mxu0 %v15836_v31  ;;  %14741 = vmatprep.mubr.bf16.mxu0 %v15846_v38 }
 0x152   : > { %14549 = vmatprep.mubr.bf16.mxu1 %v12550_v59  ;;  %v5465_v23 = vrot.slane %v5463_v13, 5  ;;  %v5485_v30 = vrot.slane %v5483_v19, 5  ;;  %v5481_v41 = vrot.slane %v5480_v33, 4  ;;  %v5513_v59 = vrot.slane %v5511_v44, 5  ;;  %v15865_v13 = vld [vmem:[%s16157_s24 + $0x70] ss:$8 sps:$4 sm:$0xff]  }
 0x153   : > { %14556 = vmatpush3.bf16.msra.mxu1 %v15835_v28  ;;  %v5519_v19 = vshll.u32 %v12865_v14, 16  ;;  %v5541_v32 = vrot.slane %v5539_v26, 5  ;;  %v15868_v33 = vld [vmem:[%s16157_s24 + $0x80] ss:$8 sps:$4 sm:$0xff]   ;;  %v15860_v44 = vld [vmem:[%s19944_s1 + $0x198] sm:$0xff]  }
 0x154   : > { %14748 = vmatpush3.bf16.msra.mxu0 %v15836_v31  ;;  %14557 = vmatprep.subr.bf16.mxu1 %v15837_v48  ;;  %v5466_v28 = vor.u32 %v5465_v23, %v5462_v18  ;;  %v12861_v31 = vld [vmem:[%s16157_s24 + $0x18] sm:$0xf]  ;;  %v5486_v50 = vsel %vm16228_vm2, %v5481_v41, %v5485_v30  ;;  %v5516_v18 = vshrl.u32 %v12865_v14, 16  ;;  %v5533_v23 = vshll.u32 %v12867_v17, 16 }
 0x155   : > { %14749 = vmatprep.subr.bf16.mxu0 %v15838_v54  ;;  %v5488_v37 = vshrl.u32 %v12861_v31, 16  ;;  %v5491_v38 = vshll.u32 %v12861_v31, 16 }
 0x156   : > { %14550 = vmatmul.mubr.bf16.gmra.mrb[12].mxu1 %v12551_v21  ;;  %v5467_v20 = vrot.slane %v5466_v28, 4  ;;  %v5521_v28 = vrot.slane %v5519_v19, 5  ;;  %v5535_v30 = vrot.slane %v5533_v23, 5  ;;  %v15863_v23 = vld [vmem:[%s19944_s1 + $0x1e8] sm:$0xff]  }
 0x157   : > { %14558 = vmatpush3.bf16.msra.mxu1 %v15837_v48  ;;  %14742 = vmatmul.mubr.bf16.gmra.mrb[12].mxu0 %v15848_v58  ;;  %v5490_v42 = vrot.slane %v5488_v37, 4  ;;  %v5493_v43 = vrot.slane %v5491_v38, 5  ;;  %v5507_v48 = vrot.slane %v5505_v40, 5  ;;  %v15849_v58 = vld [vmem:[%s19944_s1 + $0x1b8] sm:$0xff]  }
 0x158   : > { %14750 = vmatpush3.bf16.msra.mxu0 %v15838_v54  ;;  %14559 = vmatprep.subr.bf16.mxu1 %v15839_v63  ;;  %v5472_v46 = vsel %vm16228_vm2, %v5467_v20, %v5471_v29  ;;  %v12869_v37 = vld [vmem:[%s16157_s24 + $0x38] sm:$0xf]  ;;  %v12870_v38 = vld [vmem:[%s16157_s24 + $0x3c] sm:$0x1]  ;;  %v12871_v20 = vld [vmem:[%s16157_s24 + $0x40] sm:$0xf] }
 0x159   : > { %14751 = vmatprep.subr.bf16.mxu0 %v15840_v3  ;;  %14569 = vmatprep.mubr.bf16.mxu1 %v15851_v22  ;;  %v5494_v51 = vor.u32 %v5493_v43, %v5490_v42  ;;  %v12889_v54 = vcombine.low %v5472_v46, %v5486_v50  ;;  %v5508_v56 = vor.u32 %v5507_v48, %v5504_v47  ;;  %v5530_v22 = vshrl.u32 %v12867_v17, 16 }
 0x15a   : > { %v5544_v40 = vshrl.u32 %v12869_v37, 16  ;;  %v5547_v41 = vshll.u32 %v12869_v37, 16  ;;  %v5553_v42 = vshll.u32 %v12870_v38, 16  ;;  %v5558_v43 = vshrl.u32 %v12871_v20, 16  ;;  %v12602_v38 = vld [vmem:[%s16157_s24 + $0x20] sm:$0xf] }
 0x15b   : > { %14560 = vmatpush3.bf16.msra.mxu1 %v15839_v63  ;;  %14761 = vmatprep.mubr.bf16.mxu0 %v12889_v54  ;;  %v5495_v61 = vrot.slane %v5494_v51, 4  ;;  %v5509_v63 = vrot.slane %v5508_v56, 4  ;;  %v5532_v29 = vrot.slane %v5530_v22, 4  ;;  %v5561_v47 = vshll.u32 %v12871_v20, 16  ;;  %v12603_v20 = vld [vmem:[%s16157_s24 + $0x24] sm:$0x1] }
 0x15c   : > { %14752 = vmatpush3.bf16.msra.mxu0 %v15840_v3  ;;  %14561 = vmatprep.subr.bf16.mxu1 %v15841_v10  ;;  %v5567_v48 = vshll.u32 %v12872_v39, 16  ;;  %v5549_v50 = vrot.slane %v5547_v41, 5  ;;  %v5555_v51 = vrot.slane %v5553_v42, 5  ;;  %v5560_v54 = vrot.slane %v5558_v43, 4 }
 0x15d   : > { %14753 = vmatprep.subr.bf16.mxu0 %v15842_v16  ;;  %v5500_v3 = vsel %vm16228_vm2, %v5495_v61, %v5499_v55  ;;  %v5514_v4 = vsel %vm16228_vm2, %v5509_v63, %v5513_v59  ;;  %v5536_v36 = vor.u32 %v5535_v30, %v5532_v29  ;;  %v15861_v61 = vld [vmem:[%s19944_s1 + $0x1e0] sm:$0xff]   ;;  %v3943_v42 = vshrl.u32 %v12602_v38, 16 }
 0x15e   : > { %v12890_v11 = vcombine.low %v5500_v3, %v5514_v4  ;;  %v5569_v59 = vrot.slane %v5567_v48, 5  ;;  %v12597_v3 = vld [vmem:[%s16157_s24 + $0xc] sm:$0x1]  ;;  %v12598_v4 = vld [vmem:[%s16157_s24 + $0x10] sm:$0xf] }
 0x15f   : > { %14562 = vmatpush3.bf16.msra.mxu1 %v15841_v10  ;;  %v5537_v46 = vrot.slane %v5536_v36, 4  ;;  %v3918_v17 = vshll.u32 %v12598_v4, 16  ;;  %v12601_v36 = vld [vmem:[%s16157_s24 + $0x1c] sm:$0x1]  ;;  %v15866_v48 = vld [vmem:[%s19944_s1 + $0x1f0] sm:$0xff]  }
 0x160   : > { %14754 = vmatpush3.bf16.msra.mxu0 %v15842_v16  ;;  %14563 = vmatprep.subr.bf16.mxu1 %v15843_v25  ;;  %v12866_v16 = vld [vmem:[%s16157_s24 + $0x2c] sm:$0x1]  ;;  %v3938_v41 = vshll.u32 %v12601_v36, 16 }
 0x161   : > { %v17109_v52 = vpop.f32.mrb[0].mxu1  ;;  %14755 = vmatprep.subr.bf16.mxu0 %v15844_v27  ;;  %v5525_v21 = vshll.u32 %v12866_v16, 16  ;;  %v5542_v56 = vsel %vm16228_vm2, %v5537_v46, %v5541_v32  ;;  %v3915_v16 = vshrl.u32 %v12598_v4, 16  ;;  %v3920_v26 = vrot.slane %v3918_v17, 5 }
 0x162   : > { %v17111_v57 = vpop.f32.mrb[1].mxu1  ;;  %v3952_v46 = vshll.u32 %v12603_v20, 16 }
 0x163   : > { %v17116_v60 = vpop.f32.mrb[2].mxu1  ;;  %14564 = vmatpush3.bf16.msra.mxu1 %v15843_v25  ;;  %v5518_v25 = vrot.slane %v5516_v18, 4  ;;  %v5527_v31 = vrot.slane %v5525_v21, 5 }
 0x164   : > { %14756 = vmatpush3.bf16.msra.mxu0 %v15844_v27  ;;  %v17118_v62 = vpop.f32.mrb[3].mxu1  ;;  %14565 = vmatprep.subr.bf16.mxu1 %v15845_v45  ;;  %v15858_v27 = vld [vmem:[%s19944_s1 + $0x190] sm:$0xff]  }
 0x165   : > { %14757 = vmatprep.subr.bf16.mxu0 %v15847_v49  ;;  %v5522_v35 = vor.u32 %v5521_v28, %v5518_v25  ;;  %v3917_v25 = vrot.slane %v3915_v16, 4  ;;  %v15864_v28 = vld [vmem:[%s19944_s1 + $0x1a8] sm:$0xff]  }
 0x167   : > { %14566 = vmatpush3.bf16.msra.mxu1 %v15845_v45  ;;  %v5523_v45 = vrot.slane %v5522_v35, 4  ;;  %v12600_v35 = vld [vmem:[%s16157_s24 + $0x18] sm:$0xf] }
 0x168   : > { %14758 = vmatpush3.bf16.msra.mxu0 %v15847_v49  ;;  %14567 = vmatprep.subr.bf16.mxu1 %v15849_v58  ;;  %v5546_v49 = vrot.slane %v5544_v40, 4  ;;  %v3932_v40 = vshll.u32 %v12600_v35, 16 }
 0x169   : > { %v17130_v5 = vpop.f32.mrb[4].mxu1  ;;  %14759 = vmatprep.subr.bf16.mxu0 %v15850_v0  ;;  %v5528_v55 = vsel %vm16228_vm2, %v5523_v45, %v5527_v31  ;;  %v15872_v31 = vld [vmem:[%s16157_s24 + $0x98] ss:$8 sps:$4 sm:$0xff]   ;;  %v3946_v45 = vshll.u32 %v12602_v38, 16 }
 0x16a   : > { %v17135_v7 = vpop.f32.mrb[5].mxu1  ;;  %v12891_v63 = vcombine.low %v5528_v55, %v5542_v56 }
 0x16b   : > { %v17141_v10 = vpop.f32.mrb[6].mxu1  ;;  %14568 = vmatpush3.bf16.msra.mxu1 %v15849_v58  ;;  %v5563_v58 = vrot.slane %v5561_v47, 5  ;;  %v17204_v47 = vld [vmem:[%s19945_s2] ss:$0 sm:$0xff]  ;;  %v3948_v56 = vrot.slane %v3946_v45, 5 }
 0x16c   : > { %14760 = vmatpush3.bf16.msra.mxu0 %v15850_v0  ;;  %v17148_v15 = vpop.f32.mrb[7].mxu1  ;;  %14577 = vmatprep.subr.bf16.mxu1 %v15852_v2  ;;  %v5550_v0 = vor.u32 %v5549_v50, %v5546_v49  ;;  %v3934_v50 = vrot.slane %v3932_v40, 5  ;;  %v12604_v45 = vld [vmem:[%s16157_s24 + $0x28] sm:$0xf] }
 0x16d   : > { %14769 = vmatprep.subr.bf16.mxu0 %v15853_v6 }
 0x16e   : > { %14570 = vmatmul.mubr.bf16.vlgmr.msra.gmra.mrb[8].mxu1 %v15854_v8  ;;  %v5564_v8 = vor.u32 %v5563_v58, %v5560_v54  ;;  %v5551_v14 = vrot.slane %v5550_v0, 4  ;;  %v15867_v54 = vld [vmem:[%s19944_s1 + $0x1b0] sm:$0xff]  }
 0x16f   : > { %14578 = vmatpush3.bf16.msra.mxu1 %v15852_v2  ;;  %14762 = vmatmul.mubr.bf16.vlgmr.msra.gmra.mrb[8].mxu0 %v12890_v11  ;;  %v12596_v2 = vld [vmem:[%s16157_s24 + $0x8] sm:$0xf] }
 0x170   : > { %14770 = vmatpush3.bf16.msra.mxu0 %v15853_v6  ;;  %14579 = vmatprep.subr.bf16.mxu1 %v15855_v9  ;;  %v15862_v6 = vld [vmem:[%s19944_s1 + $0x1a0] sm:$0xff]   ;;  %v3901_v11 = vshrl.u32 %v12596_v2, 16  ;;  %v5565_v1 = vrot.slane %v5564_v8, 4 }
 0x171   : > { %14771 = vmatprep.subr.bf16.mxu0 %v15856_v12  ;;  %14573 = vmatprep.mubr.bf16.mxu1 %v15865_v13  ;;  %v3910_v13 = vshll.u32 %v12597_v3, 16  ;;  %v15870_v3 = vld [vmem:[%s19944_s1 + $0x1b8] sm:$0xff]  }
 0x172   : > { %14765 = vmatprep.mubr.bf16.mxu0 %v12891_v63  ;;  %v3903_v19 = vrot.slane %v3901_v11, 4  ;;  %v5570_v29 = vsel %vm16228_vm2, %v5565_v1, %v5569_v59  ;;  %v15869_v59 = vld [vmem:[%s19944_s1 + $0x1f8] sm:$0xff]   ;;  %v3940_v63 = vrot.slane %v3938_v41, 5 }
 0x173   : > { %14580 = vmatpush3.bf16.msra.mxu1 %v15855_v9  ;;  %v12599_v9 = vld [vmem:[%s16157_s24 + $0x14] sm:$0x1]  ;;  %v3912_v22 = vrot.slane %v3910_v13, 5 }
 0x174   : > { %14772 = vmatpush3.bf16.msra.mxu0 %v15856_v12  ;;  %14581 = vmatprep.subr.bf16.mxu1 %v15857_v24  ;;  %v3904_v12 = vshll.u32 %v12596_v2, 16  ;;  %v3924_v18 = vshll.u32 %v12599_v9, 16 }
 0x175   : > { %14773 = vmatprep.subr.bf16.mxu0 %v15858_v27 }
 0x176   : > { %14574 = vmatmul.mubr.bf16.gmra.mrb[12].mxu1 %v15868_v33  ;;  %v3906_v21 = vrot.slane %v3904_v12, 5  ;;  %v3921_v33 = vor.u32 %v3920_v26, %v3917_v25  ;;  %v15874_v26 = vld [vmem:[%s16157_s24 + $0xa8] ss:$8 sps:$4 sm:$0xff]  }
 0x177   : > { %14582 = vmatpush3.bf16.msra.mxu1 %v15857_v24  ;;  %v5556_v24 = vsel %vm16228_vm2, %v5551_v14, %v5555_v51  ;;  %v3945_v51 = vrot.slane %v3943_v42, 4 }
 0x178   : > { %14774 = vmatpush3.bf16.msra.mxu0 %v15858_v27  ;;  %14583 = vmatprep.subr.bf16.mxu1 %v15859_v34  ;;  %v3926_v27 = vrot.slane %v3924_v18, 5  ;;  %v3907_v30 = vor.u32 %v3906_v21, %v3903_v19  ;;  %v12892_v32 = vcombine.low %v5556_v24, %v5570_v29  ;;  %v3922_v39 = vrot.slane %v3921_v33, 4  ;;  %v15873_v24 = vld [vmem:[%s19944_s1 + $0x1c0] sm:$0xff]  }
 0x179   : > { %14775 = vmatprep.subr.bf16.mxu0 %v15860_v44  ;;  %v3949_v4 = vor.u32 %v3948_v56, %v3945_v51 }
 0x17a   : > { %v3908_v37 = vrot.slane %v3907_v30, 4  ;;  %14766 = vmatmul.mubr.bf16.gmra.mrb[12].mxu0 %v12892_v32  ;;  %v3927_v49 = vsel %vm16228_vm2, %v3922_v39, %v3926_v27 }
 0x17b   : > { %14584 = vmatpush3.bf16.msra.mxu1 %v15859_v34  ;;  %v3929_v34 = vshrl.u32 %v12600_v35, 16  ;;  %14785 = vmatprep.mubr.bf16.mxu0 %v15872_v31  ;;  %v3950_v14 = vrot.slane %v3949_v4, 4 }
 0x17c   : > { %14776 = vmatpush3.bf16.msra.mxu0 %v15860_v44  ;;  %14585 = vmatprep.subr.bf16.mxu1 %v15861_v61  ;;  %v3913_v43 = vsel %vm16228_vm2, %v3908_v37, %v3912_v22 }
 0x17d   : > { %14777 = vmatprep.subr.bf16.mxu0 %v15862_v6  ;;  %v3931_v44 = vrot.slane %v3929_v34, 4  ;;  %v12628_v55 = vcombine.low %v3913_v43, %v3927_v49  ;;  %v15875_v34 = vld [vmem:[%s19944_s1 + $0x208] sm:$0xff]   ;;  %v3957_v49 = vshrl.u32 %v12604_v45, 16 }
 0x17f   : > { %14586 = vmatpush3.bf16.msra.mxu1 %v15861_v61  ;;  %v3935_v61 = vor.u32 %v3934_v50, %v3931_v44  ;;  %14593 = vmatprep.mubr.bf16.mxu1 %v12628_v55  ;;  %v15877_v44 = vld [vmem:[%s19944_s1 + $0x210] sm:$0xff]   ;;  %v3960_v55 = vshll.u32 %v12604_v45, 16 }
 0x180   : > { %14778 = vmatpush3.bf16.msra.mxu0 %v15862_v6  ;;  %14587 = vmatprep.subr.bf16.mxu1 %v15863_v23  ;;  %v3954_v6 = vrot.slane %v3952_v46, 5 }
 0x181   : > { %14779 = vmatprep.subr.bf16.mxu0 %v15864_v28  ;;  %v3936_v11 = vrot.slane %v3935_v61, 4  ;;  %v3959_v61 = vrot.slane %v3957_v49, 4  ;;  %v12641_v49 = vld [vmem:[%s16157_s24 + $0x54] sm:$0x1] }
 0x182   : > { %v14403_v58 = vpop.f32.mrb[0].mxu0  ;;  %v3955_v19 = vsel %vm16228_vm2, %v3950_v14, %v3954_v6  ;;  %v15880_v6 = vld [vmem:[%s19944_s1 + $0x1d8] sm:$0xff]  }
 0x183   : > { %v15297_v0 = vadd.f32 %v14403_v58, %v17109_v52  ;;  %v2174_v2 = vpop.f32.mrb[1].mxu0  ;;  %14588 = vmatpush3.bf16.msra.mxu1 %v15863_v23  ;;  %v3941_v18 = vsel %vm16228_vm2, %v3936_v11, %v3940_v63  ;;  %v12608_v11 = vld [vmem:[%s16157_s24 + $0x38] sm:$0xf] }
 0x184   : > { %v15298_v8 = vadd.f32 %v2174_v2, %v17111_v57  ;;  %v14404_v9 = vpop.f32.mrb[2].mxu0  ;;  %14780 = vmatpush3.bf16.msra.mxu0 %v15864_v28  ;;  %14589 = vmatprep.subr.bf16.mxu1 %v15866_v48  ;;  %v12629_v25 = vcombine.low %v3941_v18, %v3955_v19  ;;  %v12610_v19 = vld [vmem:[%s16157_s24 + $0x40] sm:$0xf] }
 0x185   : > { %v2222_v12 = vadd.f32 %v15297_v0, %v17204_v47  ;;  %v15299_v13 = vadd.f32 %v14404_v9, %v17116_v60  ;;  %v2177_v52 = vpop.f32.mrb[3].mxu0  ;;  %14781 = vmatprep.subr.bf16.mxu0 %v15867_v54 }
 0x186   : > { %v2220_v16 = vadd.f32 %v15298_v8, %v17204_v47  ;;  %v15300_v17 = vadd.f32 %v2177_v52, %v17118_v62  ;;  %v15871_v62 = vld [vmem:[%s19944_s1 + $0x200] sm:$0xff]   ;;  %v3962_v8 = vrot.slane %v3960_v55, 5  ;;  %v12643_v55 = vld [vmem:[%s16157_s24 + $0x5c] sm:$0x1] }
 0x187   : > { %vm2230_vm3 = vcmp.ge.f32.partialorder %v2222_v12, 0.0  ;;  %v2238_v57 = vmul.f32 0.2, %v2222_v12  ;;  %v2223_v1 = vadd.f32 %v15299_v13, %v17204_v47  ;;  %14590 = vmatpush3.bf16.msra.mxu1 %v15866_v48  ;;  %v15878_v48 = vld [vmem:[%s19944_s1 + $0x1d0] sm:$0xff]  }
 0x188   : > { %vm2228_vm4 = vcmp.ge.f32.partialorder %v2220_v16, 0.0  ;;  %v2236_v60 = vmul.f32 0.2, %v2220_v16  ;;  %v2221_v21 = vadd.f32 %v15300_v17, %v17204_v47  ;;  %14782 = vmatpush3.bf16.msra.mxu0 %v15867_v54  ;;  %14591 = vmatprep.subr.bf16.mxu1 %v15869_v59  ;;  %v12606_v54 = vld [vmem:[%s16157_s24 + $0x30] sm:$0xf]  ;;  %v3963_v18 = vor.u32 %v3962_v8, %v3959_v61 }
 0x189   : > { %v2246_v22 = vsel %vm2230_vm3, %v2222_v12, %v2238_v57  ;;  %vm2231_vm5 = vcmp.ge.f32.partialorder %v2223_v1, 0.0  ;;  %v2239_v23 = vmul.f32 0.2, %v2223_v1  ;;  %14783 = vmatprep.subr.bf16.mxu0 %v15870_v3  ;;  %v3971_v52 = vshrl.u32 %v12606_v54, 16 }
 0x18a   : > { %v2254_v27 = vmul.f32 1.4142135, %v2246_v22  ;;  %v2244_v28 = vsel %vm2228_vm4, %v2220_v16, %v2236_v60  ;;  %vm2229_vm6 = vcmp.ge.f32.partialorder %v2221_v21, 0.0  ;;  %v2237_v29 = vmul.f32 0.2, %v2221_v21  ;;  %v14407_v30 = vpop.f32.mrb[4].mxu0 }
 0x18b   : > { %v2252_v31 = vmul.f32 1.4142135, %v2244_v28  ;;  %v2247_v32 = vsel %vm2231_vm5, %v2223_v1, %v2239_v23  ;;  %v15301_v33 = vadd.f32 %v14407_v30, %v17130_v5  ;;  %v2190_v35 = vpop.f32.mrb[5].mxu0  ;;  %14592 = vmatpush3.bf16.msra.mxu1 %v15869_v59  ;;  %v12607_v59 = vld [vmem:[%s16157_s24 + $0x34] sm:$0x1]  ;;  %v3974_v14 = vshll.u32 %v12606_v54, 16 }
 0x18c   : > { %2263 = vst [vmem:[#allocation2 + $0x31] sm:$0xff] %v2254_v27  ;;  %v2255_v36 = vmul.f32 1.4142135, %v2247_v32  ;;  %v2245_v37 = vsel %vm2229_vm6, %v2221_v21, %v2237_v29  ;;  %v15302_v38 = vadd.f32 %v2190_v35, %v17135_v7  ;;  %v14408_v20 = vpop.f32.mrb[6].mxu0  ;;  %14784 = vmatpush3.bf16.msra.mxu0 %v15870_v3  ;;  %14601 = vmatprep.subr.bf16.mxu1 %v15871_v62  ;;  %v15876_v7 = vld [vmem:[%s19944_s1 + $0x1c8] sm:$0xff]   ;;  %v3980_v1 = vshll.u32 %v12607_v59, 16 }
 0x18d   : > { %2261 = vst [vmem:[#allocation2 + $0x11] sm:$0xff] %v2252_v31  ;;  %v2253_v39 = vmul.f32 1.4142135, %v2245_v37  ;;  %v2226_v40 = vadd.f32 %v15301_v33, %v17204_v47  ;;  %v15303_v5 = vadd.f32 %v14408_v20, %v17141_v10  ;;  %v2193_v41 = vpop.f32.mrb[7].mxu0  ;;  %14793 = vmatprep.subr.bf16.mxu0 %v15873_v24  ;;  %v12609_v16 = vld [vmem:[%s16157_s24 + $0x3c] sm:$0x1] }
 0x18e   : > { %2264 = vst [vmem:[#allocation2 + $0x41] sm:$0xff] %v2255_v36  ;;  %v2224_v42 = vadd.f32 %v15302_v38, %v17204_v47  ;;  %v15304_v43 = vadd.f32 %v2193_v41, %v17148_v15  ;;  %14594 = vmatmul.mubr.bf16.vlgmr.msra.gmra.mrb[8].mxu1 %v12629_v25  ;;  %v12605_v15 = vld [vmem:[%s16157_s24 + $0x2c] sm:$0x1]  ;;  %v3973_v60 = vrot.slane %v3971_v52, 4  ;;  %v3976_v21 = vrot.slane %v3974_v14, 5  ;;  %v15881_v28 = vld [vmem:[%s19944_s1 + $0x220] sm:$0xff]  }
 0x18f   : > { %2262 = vst [vmem:[#allocation2 + $0x21] sm:$0xff] %v2253_v39  ;;  %vm2234_vm7 = vcmp.ge.f32.partialorder %v2226_v40, 0.0  ;;  %v2242_v10 = vmul.f32 0.2, %v2226_v40  ;;  %v2227_v46 = vadd.f32 %v15303_v5, %v17204_v47  ;;  %14602 = vmatpush3.bf16.msra.mxu1 %v15871_v62  ;;  %14786 = vmatmul.mubr.bf16.vlgmr.msra.gmra.mrb[8].mxu0 %v15874_v26  ;;  %v3966_v9 = vshll.u32 %v12605_v15, 16  ;;  %v15882_v33 = vld [vmem:[%s19944_s1 + $0x1e0] sm:$0xff]  }
 0x190   : > { %vm2232_vm8 = vcmp.ge.f32.partialorder %v2224_v42, 0.0  ;;  %v2240_v50 = vmul.f32 0.2, %v2224_v42  ;;  %v2225_v51 = vadd.f32 %v15304_v43, %v17204_v47  ;;  %14794 = vmatpush3.bf16.msra.mxu0 %v15873_v24  ;;  %14603 = vmatprep.subr.bf16.mxu1 %v15875_v34  ;;  %v15879_v47 = vld [vmem:[%s19944_s1 + $0x218] sm:$0xff]   ;;  %v12611_v62 = vld [vmem:[%s16157_s24 + $0x44] sm:$0x1]  ;;  %v3977_v29 = vor.u32 %v3976_v21, %v3973_v60 }
 0x191   : > { %v2250_v56 = vsel %vm2234_vm7, %v2226_v40, %v2242_v10  ;;  %vm2235_vm9 = vcmp.ge.f32.partialorder %v2227_v46, 0.0  ;;  %v2243_v58 = vmul.f32 0.2, %v2227_v46  ;;  %14795 = vmatprep.subr.bf16.mxu0 %v15876_v7  ;;  %v3968_v57 = vrot.slane %v3966_v9, 5  ;;  %v15883_v38 = vld [vmem:[%s19944_s1 + $0x228] sm:$0xff]   ;;  %v15885_v54 = vld [vmem:[%s19944_s1 + $0x230] sm:$0xff]  }
 0x192   : > { %v2258_v63 = vmul.f32 1.4142135, %v2250_v56  ;;  %v2248_v0 = vsel %vm2232_vm8, %v2224_v42, %v2240_v50  ;;  %vm2233_vm10 = vcmp.ge.f32.partialorder %v2225_v51, 0.0  ;;  %v2241_v2 = vmul.f32 0.2, %v2225_v51  ;;  %v15884_v41 = vld [vmem:[%s19944_s1 + $0x1e8] sm:$0xff]  }
 0x193   : > { %v2256_v3 = vmul.f32 1.4142135, %v2248_v0  ;;  %v2251_v4 = vsel %vm2235_vm9, %v2227_v46, %v2243_v58  ;;  %14604 = vmatpush3.bf16.msra.mxu1 %v15875_v34  ;;  %v3985_v22 = vshrl.u32 %v12608_v11, 16  ;;  %v3988_v23 = vshll.u32 %v12608_v11, 16  ;;  %v15886_v5 = vld [vmem:[%s16157_s24 + $0xb8] ss:$8 sps:$4 sm:$0xff]  }
 0x194   : > { %2267 = vst [vmem:[#allocation2 + $0x71] sm:$0xff] %v2258_v63  ;;  %v2259_v12 = vmul.f32 1.4142135, %v2251_v4  ;;  %v2249_v13 = vsel %vm2233_vm10, %v2225_v51, %v2241_v2  ;;  %14796 = vmatpush3.bf16.msra.mxu0 %v15876_v7  ;;  %14605 = vmatprep.subr.bf16.mxu1 %v15877_v44  ;;  %v3964_v24 = vrot.slane %v3963_v18, 4  ;;  %v3982_v25 = vrot.slane %v3980_v1, 5  ;;  %v15887_v63 = vld [vmem:[%s19944_s1 + $0x1f0] sm:$0xff]  }
 0x195   : > { %2265 = vst [vmem:[#allocation2 + $0x51] sm:$0xff] %v2256_v3  ;;  %v2257_v17 = vmul.f32 1.4142135, %v2249_v13  ;;  %14797 = vmatprep.subr.bf16.mxu0 %v15878_v48  ;;  %v3994_v26 = vshll.u32 %v12609_v16, 16  ;;  %v3999_v27 = vshrl.u32 %v12610_v19, 16  ;;  %v3987_v30 = vrot.slane %v3985_v22, 4  ;;  %14789 = vmatprep.mubr.bf16.mxu0 %v15886_v5 }
 0x196   : > { %2268 = vst [vmem:[#allocation2 + $0x81] sm:$0xff] %v2259_v12  ;;  %v3990_v31 = vrot.slane %v3988_v23, 5  ;;  %v4002_v32 = vshll.u32 %v12610_v19, 16  ;;  %v4008_v37 = vshll.u32 %v12611_v62, 16  ;;  %v3969_v20 = vsel %vm16228_vm2, %v3964_v24, %v3968_v57  ;;  %v15888_v10 = vld [vmem:[%s16157_s24 + $0xc8] ss:$8 sps:$4 sm:$0xff]  }
 0x197   : > { %2266 = vst [vmem:[#allocation2 + $0x61] sm:$0xff] %v2257_v17  ;;  %14606 = vmatpush3.bf16.msra.mxu1 %v15877_v44  ;;  %v3996_v35 = vrot.slane %v3994_v26, 5  ;;  %v4001_v36 = vrot.slane %v3999_v27, 4  ;;  %v3978_v34 = vrot.slane %v3977_v29, 4  ;;  %v12640_v15 = vld [vmem:[%s16157_s24 + $0x50] sm:$0xf]  ;;  %14790 = vmatmul.mubr.bf16.gmra.mrb[12].mxu0 %v15888_v10 }
 0x198   : > { %14798 = vmatpush3.bf16.msra.mxu0 %v15878_v48  ;;  %14607 = vmatprep.subr.bf16.mxu1 %v15879_v47  ;;  %v3991_v39 = vor.u32 %v3990_v31, %v3987_v30  ;;  %v4004_v40 = vrot.slane %v4002_v32, 5  ;;  %v4010_v44 = vrot.slane %v4008_v37, 5  ;;  %v12642_v50 = vld [vmem:[%s16157_s24 + $0x58] sm:$0xf]  ;;  %v4182_v56 = vshrl.u32 %v12640_v15, 16  ;;  %v15892_v32 = vld [vmem:[%s19944_s1 + $0x200] sm:$0xff]  }
 0x199   : > { %14799 = vmatprep.subr.bf16.mxu0 %v15880_v6  ;;  %v3983_v7 = vsel %vm16228_vm2, %v3978_v34, %v3982_v25  ;;  %v4185_v58 = vshll.u32 %v12640_v15, 16  ;;  %v4191_v59 = vshll.u32 %v12641_v49, 16  ;;  %v4196_v0 = vshrl.u32 %v12642_v50, 16  ;;  %v12644_v3 = vld [vmem:[%s16157_s24 + $0x60] sm:$0xf]  ;;  %v15889_v17 = vld [vmem:[%s19944_s1 + $0x238] sm:$0xff]  }
 0x19a   : > { %v3992_v42 = vrot.slane %v3991_v39, 4  ;;  %v4005_v43 = vor.u32 %v4004_v40, %v4001_v36  ;;  %v12630_v45 = vcombine.low %v3969_v20, %v3983_v7  ;;  %v4199_v2 = vshll.u32 %v12642_v50, 16  ;;  %v12645_v9 = vld [vmem:[%s16157_s24 + $0x64] sm:$0x1]  ;;  %v12646_v14 = vld [vmem:[%s16157_s24 + $0x68] sm:$0xf] }
 0x19b   : > { %14608 = vmatpush3.bf16.msra.mxu1 %v15879_v47  ;;  %v4205_v47 = vshll.u32 %v12643_v55, 16  ;;  %v4184_v4 = vrot.slane %v4182_v56, 4  ;;  %v4193_v8 = vrot.slane %v4191_v59, 5  ;;  %v4210_v11 = vshrl.u32 %v12644_v3, 16  ;;  %v12647_v57 = vld [vmem:[%s16157_s24 + $0x6c] sm:$0x1] }
 0x19c   : > { %14800 = vmatpush3.bf16.msra.mxu0 %v15880_v6  ;;  %14609 = vmatprep.subr.bf16.mxu1 %v15881_v28  ;;  %v3997_v46 = vsel %vm16228_vm2, %v3992_v42, %v3996_v35  ;;  %v4006_v48 = vrot.slane %v4005_v43, 4  ;;  %v4187_v6 = vrot.slane %v4185_v58, 5  ;;  %v4198_v12 = vrot.slane %v4196_v0, 4  ;;  %v15890_v21 = vld [vmem:[%s19944_s1 + $0x1f8] sm:$0xff]   ;;  %v15891_v31 = vld [vmem:[%s16157_s24 + $0xe0] ss:$8 sps:$4 sm:$0xff]  }
 0x19d   : > { %14801 = vmatprep.subr.bf16.mxu0 %v15882_v33  ;;  %14597 = vmatprep.mubr.bf16.mxu1 %v12630_v45  ;;  %v4201_v13 = vrot.slane %v4199_v2, 5  ;;  %v4207_v52 = vrot.slane %v4205_v47, 5  ;;  %v4213_v16 = vshll.u32 %v12644_v3, 16  ;;  %v4212_v1 = vrot.slane %v4210_v11, 4  ;;  %v15894_v39 = vld [vmem:[%s16157_s24 + $0xf0] ss:$8 sps:$4 sm:$0xff]  }
 0x19e   : > { %v4011_v51 = vsel %vm16228_vm2, %v4006_v48, %v4010_v44  ;;  %v4188_v18 = vor.u32 %v4187_v6, %v4184_v4  ;;  %v4219_v19 = vshll.u32 %v12645_v9, 16  ;;  %v4224_v60 = vshrl.u32 %v12646_v14, 16  ;;  %14809 = vmatprep.mubr.bf16.mxu0 %v15891_v31  ;;  %v12648_v7 = vld [vmem:[%s16157_s24 + $0x70] sm:$0xf]  ;;  %v12649_v42 = vld [vmem:[%s16157_s24 + $0x74] sm:$0x1] }
 0x19f   : > { %14610 = vmatpush3.bf16.msra.mxu1 %v15881_v28  ;;  %v12631_v61 = vcombine.low %v3997_v46, %v4011_v51  ;;  %v4202_v62 = vor.u32 %v4201_v13, %v4198_v12  ;;  %v4215_v22 = vrot.slane %v4213_v16, 5  ;;  %v4227_v23 = vshll.u32 %v12646_v14, 16  ;;  %v12650_v44 = vld [vmem:[%s16157_s24 + $0x78] sm:$0xf]  ;;  %v12651_v45 = vld [vmem:[%s16157_s24 + $0x7c] sm:$0x1] }
 0x1a0   : > { %14802 = vmatpush3.bf16.msra.mxu0 %v15882_v33  ;;  %14611 = vmatprep.subr.bf16.mxu1 %v15883_v38  ;;  %v4233_v24 = vshll.u32 %v12647_v57, 16  ;;  %v4189_v25 = vrot.slane %v4188_v18, 4  ;;  %v4226_v26 = vrot.slane %v4224_v60, 4  ;;  %v4221_v29 = vrot.slane %v4219_v19, 5  ;;  %v15893_v33 = vld [vmem:[%s19944_s1 + $0x40] sm:$0xff]   ;;  %v15896_v15 = vld [vmem:[%s19944_s1 + $0x48] sm:$0xff]  }
 0x1a1   : > { %14803 = vmatprep.subr.bf16.mxu0 %v15884_v41  ;;  %14598 = vmatmul.mubr.bf16.gmra.mrb[12].mxu1 %v12631_v61  ;;  %v4203_v27 = vrot.slane %v4202_v62, 4  ;;  %v4216_v28 = vor.u32 %v4215_v22, %v4212_v1  ;;  %v4229_v30 = vrot.slane %v4227_v23, 5  ;;  %v4238_v10 = vshrl.u32 %v12648_v7, 16  ;;  %v12653_v59 = vld [vmem:[%s16157_s24 + $0x84] sm:$0x1]  ;;  %v15897_v12 = vld [vmem:[%s19944_s1 + $0x210] sm:$0xff]  }
 0x1a2   : > { %v4194_v35 = vsel %vm16228_vm2, %v4189_v25, %v4193_v8  ;;  %v4235_v20 = vrot.slane %v4233_v24, 5  ;;  %v4241_v46 = vshll.u32 %v12648_v7, 16  ;;  %v4247_v49 = vshll.u32 %v12649_v42, 16  ;;  %v12654_v47 = vld [vmem:[%s16157_s24 + $0x88] sm:$0xf]  ;;  %v15899_v22 = vld [vmem:[%s19944_s1 + $0x218] sm:$0xff]  }
 0x1a3   : > { %14612 = vmatpush3.bf16.msra.mxu1 %v15883_v38  ;;  %v4208_v36 = vsel %vm16228_vm2, %v4203_v27, %v4207_v52  ;;  %v4217_v37 = vrot.slane %v4216_v28, 4  ;;  %v4230_v38 = vor.u32 %v4229_v30, %v4226_v26  ;;  %v4252_v50 = vshrl.u32 %v12650_v44, 16  ;;  %v12655_v8 = vld [vmem:[%s16157_s24 + $0x8c] sm:$0x1]  ;;  %v15900_v24 = vld [vmem:[%s19944_s1 + $0x58] sm:$0xff]  }
 0x1a4   : > { %14804 = vmatpush3.bf16.msra.mxu0 %v15884_v41  ;;  %14613 = vmatprep.subr.bf16.mxu1 %v15885_v54  ;;  %v12672_v34 = vcombine.low %v4194_v35, %v4208_v36  ;;  %v15895_v41 = vld [vmem:[%s19944_s1 + $0x208] sm:$0xff]   ;;  %v4255_v51 = vshll.u32 %v12650_v44, 16  ;;  %v4240_v55 = vrot.slane %v4238_v10, 4  ;;  %v4243_v56 = vrot.slane %v4241_v46, 5  ;;  %v12976_v7 = vld [vmem:[%s16157_s24 + $0xa4] sm:$0x1] }
 0x1a5   : > { %14805 = vmatprep.subr.bf16.mxu0 %v15887_v63  ;;  %v4222_v40 = vsel %vm16228_vm2, %v4217_v37, %v4221_v29  ;;  %v4231_v5 = vrot.slane %v4230_v38, 4  ;;  %v4261_v58 = vshll.u32 %v12651_v45, 16  ;;  %v4254_v0 = vrot.slane %v4252_v50, 4  ;;  %v15903_v37 = vld [vmem:[%s19944_s1 + $0x228] sm:$0xff]   ;;  %v15908_v10 = vld [vmem:[%s19944_s1 + $0x70] sm:$0xff]  }
 0x1a6   : > { %14617 = vmatprep.mubr.bf16.mxu1 %v12672_v34  ;;  %v4257_v2 = vrot.slane %v4255_v51, 5  ;;  %v4244_v4 = vor.u32 %v4243_v56, %v4240_v55  ;;  %v4275_v11 = vshll.u32 %v12653_v59, 16  ;;  %v4280_v14 = vshrl.u32 %v12654_v47, 16  ;;  %v15905_v38 = vld [vmem:[%s16157_s24 + $0x100] ss:$8 sps:$4 sm:$0xff]  }
 0x1a7   : > { %14614 = vmatpush3.bf16.msra.mxu1 %v15885_v54  ;;  %v4236_v43 = vsel %vm16228_vm2, %v4231_v5, %v4235_v20  ;;  %v12652_v54 = vld [vmem:[%s16157_s24 + $0x80] sm:$0xf]  ;;  %v4263_v6 = vrot.slane %v4261_v58, 5  ;;  %v4283_v16 = vshll.u32 %v12654_v47, 16  ;;  %v4289_v1 = vshll.u32 %v12655_v8, 16  ;;  %v15904_v34 = vld [vmem:[%s19944_s1 + $0x68] sm:$0xff]  }
 0x1a8   : > { %14806 = vmatpush3.bf16.msra.mxu0 %v15887_v63  ;;  %14615 = vmatprep.subr.bf16.mxu1 %v15889_v17  ;;  %v12673_v48 = vcombine.low %v4222_v40, %v4236_v43  ;;  %v4266_v61 = vshrl.u32 %v12652_v54, 16  ;;  %v4249_v63 = vrot.slane %v4247_v49, 5  ;;  %v4269_v3 = vshll.u32 %v12652_v54, 16  ;;  %v15906_v20 = vld [vmem:[%s16157_s24 + $0x110] ss:$8 sps:$4 sm:$0xff]  }
 0x1a9   : > { %14807 = vmatprep.subr.bf16.mxu0 %v15890_v21  ;;  %v4258_v13 = vor.u32 %v4257_v2, %v4254_v0  ;;  %v4245_v18 = vrot.slane %v4244_v4, 4  ;;  %v4277_v57 = vrot.slane %v4275_v11, 5  ;;  %v4285_v62 = vrot.slane %v4283_v16, 5  ;;  %v12973_v40 = vld [vmem:[%s16157_s24 + $0x98] sm:$0xf] }
 0x1aa   : > { %v4268_v9 = vrot.slane %v4266_v61, 4  ;;  %v4271_v52 = vrot.slane %v4269_v3, 5  ;;  %v4291_v28 = vrot.slane %v4289_v1, 5  ;;  %v12974_v5 = vld [vmem:[%s16157_s24 + $0x9c] sm:$0x1]  ;;  %v6081_v42 = vshrl.u32 %v12973_v40, 16 }
 0x1ab   : > { %14616 = vmatpush3.bf16.msra.mxu1 %v15889_v17  ;;  %v15898_v17 = vld [vmem:[%s19944_s1 + $0x50] sm:$0xff]   ;;  %v4259_v19 = vrot.slane %v4258_v13, 4  ;;  %v4250_v23 = vsel %vm16228_vm2, %v4245_v18, %v4249_v63  ;;  %v6084_v43 = vshll.u32 %v12973_v40, 16  ;;  %v6090_v44 = vshll.u32 %v12974_v5, 16  ;;  %v12978_v49 = vld [vmem:[%s16157_s24 + $0xac] sm:$0x1] }
 0x1ac   : > { %14808 = vmatpush3.bf16.msra.mxu0 %v15890_v21  ;;  %14841 = vmatprep.subr.bf16.mxu1 %v15893_v33  ;;  %v4272_v60 = vor.u32 %v4271_v52, %v4268_v9  ;;  %v4282_v21 = vrot.slane %v4280_v14, 4  ;;  %v6083_v50 = vrot.slane %v6081_v42, 4  ;;  %v12979_v56 = vld [vmem:[%s16157_s24 + $0xb0] sm:$0xf]  ;;  %v12980_v61 = vld [vmem:[%s16157_s24 + $0xb4] sm:$0x1] }
 0x1ad   : > { %14817 = vmatprep.subr.bf16.mxu0 %v15892_v32  ;;  %v4264_v25 = vsel %vm16228_vm2, %v4259_v19, %v4263_v6  ;;  %v6086_v51 = vrot.slane %v6084_v43, 5  ;;  %v6092_v54 = vrot.slane %v6090_v44, 5  ;;  %v6118_v47 = vshll.u32 %v12978_v49, 16  ;;  %v13026_v6 = vld [vmem:[%s16157_s24 + $0x90] sm:$0xf]  ;;  %v15909_v8 = vld [vmem:[%s19944_s1 + $0x238] sm:$0xff]  }
 0x1ae   : > { %14618 = vmatmul.mubr.bf16.vlgmr.msra.gmra.mrb[8].mxu1 %v12673_v48  ;;  %v4273_v26 = vrot.slane %v4272_v60, 4  ;;  %v4286_v27 = vor.u32 %v4285_v62, %v4282_v21  ;;  %v12674_v29 = vcombine.low %v4250_v23, %v4264_v25  ;;  %v6104_v48 = vshll.u32 %v12976_v7, 16  ;;  %v13027_v52 = vld [vmem:[%s16157_s24 + $0x94] sm:$0x1]  ;;  %v15910_v1 = vld [vmem:[%s19944_s1 + $0x78] sm:$0xff]  }
 0x1af   : > { %14810 = vmatmul.mubr.bf16.vlgmr.msra.gmra.mrb[8].mxu0 %v15894_v39  ;;  %14842 = vmatpush3.bf16.msra.mxu1 %v15893_v33  ;;  %v15902_v33 = vld [vmem:[%s19944_s1 + $0x60] sm:$0xff]   ;;  %v15907_v39 = vld [vmem:[%s19944_s1 + $0x230] sm:$0xff]   ;;  %v6087_v2 = vor.u32 %v6086_v51, %v6083_v50  ;;  %v6123_v3 = vshrl.u32 %v12979_v56, 16  ;;  %v6126_v4 = vshll.u32 %v12979_v56, 16  ;;  %v6132_v13 = vshll.u32 %v12980_v61, 16 }
 0x1b0   : > { %14818 = vmatpush3.bf16.msra.mxu0 %v15892_v32  ;;  %14843 = vmatprep.subr.bf16.mxu1 %v15896_v15  ;;  %v4278_v30 = vsel %vm16228_vm2, %v4273_v26, %v4277_v57  ;;  %v4287_v31 = vrot.slane %v4286_v27, 4  ;;  %v15901_v32 = vld [vmem:[%s19944_s1 + $0x220] sm:$0xff]   ;;  %v6106_v59 = vrot.slane %v6104_v48, 5  ;;  %v6120_v16 = vrot.slane %v6118_v47, 5  ;;  %v13028_v57 = vld [vmem:[%s16157_s24 + $0x98] sm:$0xf] }
 0x1b1   : > { %14819 = vmatprep.subr.bf16.mxu0 %v15895_v41  ;;  %14621 = vmatprep.mubr.bf16.mxu1 %v12674_v29  ;;  %v6088_v14 = vrot.slane %v6087_v2, 4  ;;  %v6128_v18 = vrot.slane %v6126_v4, 5  ;;  %v6134_v21 = vrot.slane %v6132_v13, 5  ;;  %v13029_v62 = vld [vmem:[%s16157_s24 + $0x9c] sm:$0x1]  ;;  %v6445_v25 = vshll.u32 %v13026_v6, 16 }
 0x1b2   : > { %v4292_v35 = vsel %vm16228_vm2, %v4287_v31, %v4291_v28  ;;  %14813 = vmatprep.mubr.bf16.mxu0 %v15905_v38  ;;  %v6451_v26 = vshll.u32 %v13027_v52, 16  ;;  %v13030_v31 = vld [vmem:[%s16157_s24 + $0xa0] sm:$0xf]  ;;  %v13032_v40 = vld [vmem:[%s16157_s24 + $0xa8] sm:$0xf] }
 0x1b3   : > { %14844 = vmatpush3.bf16.msra.mxu1 %v15896_v15  ;;  %v12675_v36 = vcombine.low %v4278_v30, %v4292_v35  ;;  %v12977_v15 = vld [vmem:[%s16157_s24 + $0xa8] sm:$0xf]  ;;  %v6093_v23 = vsel %vm16228_vm2, %v6088_v14, %v6092_v54  ;;  %v6456_v30 = vshrl.u32 %v13028_v57, 16  ;;  %v6447_v35 = vrot.slane %v6445_v25, 5  ;;  %v13033_v7 = vld [vmem:[%s16157_s24 + $0xac] sm:$0x1] }
 0x1b4   : > { %14820 = vmatpush3.bf16.msra.mxu0 %v15895_v41  ;;  %14845 = vmatprep.subr.bf16.mxu1 %v15898_v17  ;;  %v12975_v41 = vld [vmem:[%s16157_s24 + $0xa0] sm:$0xf]  ;;  %v6109_v63 = vshrl.u32 %v12977_v15, 16  ;;  %v6112_v0 = vshll.u32 %v12977_v15, 16  ;;  %v6470_v42 = vshrl.u32 %v13030_v31, 16  ;;  %v6473_v43 = vshll.u32 %v13030_v31, 16 }
 0x1b5   : > { %14821 = vmatprep.subr.bf16.mxu0 %v15897_v12  ;;  %v6095_v45 = vshrl.u32 %v12975_v41, 16  ;;  %v6098_v46 = vshll.u32 %v12975_v41, 16  ;;  %v6458_v38 = vrot.slane %v6456_v30, 4  ;;  %v6484_v50 = vshrl.u32 %v13032_v40, 16  ;;  %v12981_v4 = vld [vmem:[%s16157_s24 + $0xb8] sm:$0xf] }
 0x1b6   : > { %14622 = vmatmul.mubr.bf16.gmra.mrb[12].mxu1 %v12675_v36  ;;  %v6111_v11 = vrot.slane %v6109_v63, 4  ;;  %v13031_v36 = vld [vmem:[%s16157_s24 + $0xa4] sm:$0x1]  ;;  %v6472_v15 = vrot.slane %v6470_v42, 4  ;;  %v6475_v49 = vrot.slane %v6473_v43, 5  ;;  %v6493_v56 = vshll.u32 %v13033_v7, 16 }
 0x1b7   : > { %14846 = vmatpush3.bf16.msra.mxu1 %v15898_v17  ;;  %14814 = vmatmul.mubr.bf16.gmra.mrb[12].mxu0 %v15906_v20  ;;  %v6097_v55 = vrot.slane %v6095_v45, 4  ;;  %v6100_v58 = vrot.slane %v6098_v46, 5  ;;  %v6125_v17 = vrot.slane %v6123_v3, 4  ;;  %v6459_v20 = vshll.u32 %v13028_v57, 16  ;;  %v13036_v42 = vld [vmem:[%s16157_s24 + $0xb8] sm:$0xf] }
 0x1b8   : > { %14822 = vmatpush3.bf16.msra.mxu0 %v15897_v12  ;;  %14847 = vmatprep.subr.bf16.mxu1 %v15900_v24  ;;  %v6114_v12 = vrot.slane %v6112_v0, 5  ;;  %v6453_v45 = vrot.slane %v6451_v26, 5  ;;  %v6479_v46 = vshll.u32 %v13031_v36, 16  ;;  %v6486_v61 = vrot.slane %v6484_v50, 4  ;;  %v13034_v36 = vld [vmem:[%s16157_s24 + $0xb0] sm:$0xf] }
 0x1b9   : > { %14823 = vmatprep.subr.bf16.mxu0 %v15899_v22  ;;  %v6101_v9 = vor.u32 %v6100_v58, %v6097_v55  ;;  %v6487_v55 = vshll.u32 %v13032_v40, 16  ;;  %v6476_v58 = vor.u32 %v6475_v49, %v6472_v15  ;;  %v6495_v3 = vrot.slane %v6493_v56, 5  ;;  %v13035_v40 = vld [vmem:[%s16157_s24 + $0xb4] sm:$0x1] }
 0x1ba   : > { %v6115_v60 = vor.u32 %v6114_v12, %v6111_v11  ;;  %v12983_v11 = vld [vmem:[%s16157_s24 + $0xc0] sm:$0xf]  ;;  %v12984_v12 = vld [vmem:[%s16157_s24 + $0xc4] sm:$0x1]  ;;  %v6137_v14 = vshrl.u32 %v12981_v4, 16  ;;  %v6498_v43 = vshrl.u32 %v13034_v36, 16 }
 0x1bb   : > { %14848 = vmatpush3.bf16.msra.mxu1 %v15900_v24  ;;  %v6102_v19 = vrot.slane %v6101_v9, 4  ;;  %v6129_v24 = vor.u32 %v6128_v18, %v6125_v17  ;;  %v6489_v2 = vrot.slane %v6487_v55, 5  ;;  %v6477_v47 = vrot.slane %v6476_v58, 4  ;;  %v12982_v9 = vld [vmem:[%s16157_s24 + $0xbc] sm:$0x1]  ;;  %v15913_v15 = vld [vmem:[%s19944_s1 + $0x10] sm:$0xff]  }
 0x1bc   : > { %14824 = vmatpush3.bf16.msra.mxu0 %v15899_v22  ;;  %14849 = vmatprep.subr.bf16.mxu1 %v15902_v33  ;;  %v6442_v22 = vshrl.u32 %v13026_v6, 16  ;;  %v6116_v28 = vrot.slane %v6115_v60, 4  ;;  %v12985_v17 = vld [vmem:[%s16157_s24 + $0xc8] sm:$0xf]  ;;  %v12986_v18 = vld [vmem:[%s16157_s24 + $0xcc] sm:$0x1] }
 0x1bd   : > { %14825 = vmatprep.subr.bf16.mxu0 %v15901_v32  ;;  %v6107_v27 = vsel %vm16228_vm2, %v6102_v19, %v6106_v59  ;;  %v6481_v59 = vrot.slane %v6479_v46, 5  ;;  %v6151_v19 = vshrl.u32 %v12983_v11, 16  ;;  %v6154_v60 = vshll.u32 %v12983_v11, 16 }
 0x1be   : > { %v6444_v29 = vrot.slane %v6442_v22, 4  ;;  %v6165_v25 = vshrl.u32 %v12985_v17, 16  ;;  %v6501_v56 = vshll.u32 %v13034_v36, 16  ;;  %v6507_v58 = vshll.u32 %v13035_v40, 16 }
 0x1bf   : > { %14850 = vmatpush3.bf16.msra.mxu1 %v15902_v33  ;;  %v6130_v33 = vrot.slane %v6129_v24, 4  ;;  %v6482_v52 = vsel %vm16228_vm2, %v6477_v47, %v6481_v59  ;;  %v12988_v24 = vld [vmem:[%s16157_s24 + $0xd4] sm:$0x1]  ;;  %v6156_v30 = vrot.slane %v6154_v60, 5  ;;  %v13038_v59 = vld [vmem:[%s16157_s24 + $0xc0] sm:$0xf] }
 0x1c0   : > { %14826 = vmatpush3.bf16.msra.mxu0 %v15901_v32  ;;  %14851 = vmatprep.subr.bf16.mxu1 %v15904_v34  ;;  %v13005_v32 = vcombine.low %v6093_v23, %v6107_v27  ;;  %v6448_v41 = vor.u32 %v6447_v35, %v6444_v29  ;;  %v6160_v23 = vshll.u32 %v12984_v12, 16  ;;  %v15912_v27 = vld [vmem:[%s19944_s1 + $0x8] sm:$0xff]   ;;  %v6153_v29 = vrot.slane %v6151_v19, 4 }
 0x1c1   : > { %14827 = vmatprep.subr.bf16.mxu0 %v15903_v37  ;;  %v6135_v5 = vsel %vm16228_vm2, %v6130_v33, %v6134_v21  ;;  %v12987_v21 = vld [vmem:[%s16157_s24 + $0xd0] sm:$0xf]  ;;  %v6167_v35 = vrot.slane %v6165_v25, 4  ;;  %v6188_v7 = vshll.u32 %v12988_v24, 16  ;;  %v6515_v47 = vshll.u32 %v13036_v42, 16 }
 0x1c2   : > { %14833 = vmatprep.mubr.bf16.mxu0 %v13005_v32  ;;  %v6449_v48 = vrot.slane %v6448_v41, 4  ;;  %v6162_v33 = vrot.slane %v6160_v23, 5  ;;  %v6182_v41 = vshll.u32 %v12987_v21, 16  ;;  %v13041_v12 = vld [vmem:[%s16157_s24 + $0xcc] sm:$0x1] }
 0x1c3   : > { %14852 = vmatpush3.bf16.msra.mxu1 %v15904_v34  ;;  %v6465_v34 = vshll.u32 %v13029_v62, 16  ;;  %v6139_v62 = vrot.slane %v6137_v14, 4  ;;  %v6517_v14 = vrot.slane %v6515_v47, 5  ;;  %v15921_v47 = vld [vmem:[%s16157_s24 + $0xe8] ss:$8 sps:$4 sm:$0xff]  }
 0x1c4   : > { %14828 = vmatpush3.bf16.msra.mxu0 %v15903_v37  ;;  %14853 = vmatprep.subr.bf16.mxu1 %v15908_v10  ;;  %v6121_v37 = vsel %vm16228_vm2, %v6116_v28, %v6120_v16  ;;  %v6454_v63 = vsel %vm16228_vm2, %v6449_v48, %v6453_v45  ;;  %v6140_v16 = vshll.u32 %v12981_v4, 16  ;;  %v13037_v48 = vld [vmem:[%s16157_s24 + $0xbc] sm:$0x1]  ;;  %v6184_v50 = vrot.slane %v6182_v41, 5  ;;  %v13040_v4 = vld [vmem:[%s16157_s24 + $0xc8] sm:$0xf] }
 0x1c5   : > { %14829 = vmatprep.subr.bf16.mxu0 %v15907_v39  ;;  %v13006_v44 = vcombine.low %v6121_v37, %v6135_v5  ;;  %v6467_v54 = vrot.slane %v6465_v34, 5  ;;  %v6157_v37 = vor.u32 %v6156_v30, %v6153_v29  ;;  %v6179_v34 = vshrl.u32 %v12987_v21, 16 }
 0x1c6   : > { %v6142_v22 = vrot.slane %v6140_v16, 5  ;;  %v6521_v11 = vshll.u32 %v13037_v48, 16  ;;  %v6526_v16 = vshrl.u32 %v13038_v59, 16  ;;  %v6540_v25 = vshrl.u32 %v13040_v4, 16  ;;  %v13085_v48 = vld [vmem:[%s16157_s24 + $0xe4] sm:$0x1] }
 0x1c7   : > { %14854 = vmatpush3.bf16.msra.mxu1 %v15908_v10  ;;  %v6461_v10 = vrot.slane %v6459_v20, 5  ;;  %v6174_v20 = vshll.u32 %v12986_v18, 16  ;;  %v6181_v46 = vrot.slane %v6179_v34, 4  ;;  %v6549_v29 = vshll.u32 %v13041_v12, 16  ;;  %v15923_v12 = vld [vmem:[%s19944_s1 + $0x90] sm:$0xff]  }
 0x1c8   : > { %14830 = vmatpush3.bf16.msra.mxu0 %v15907_v39  ;;  %14855 = vmatprep.subr.bf16.mxu1 %v15910_v1  ;;  %v17414_v39 = vld [vmem:[%s19944_s1] sm:$0xff]   ;;  %v6143_v32 = vor.u32 %v6142_v22, %v6139_v62  ;;  %v6528_v21 = vrot.slane %v6526_v16, 4 }
 0x1c9   : > { %14831 = vmatprep.subr.bf16.mxu0 %v15909_v8  ;;  %v6462_v51 = vor.u32 %v6461_v10, %v6458_v38  ;;  %v6168_v38 = vshll.u32 %v12985_v17, 16  ;;  %v6176_v10 = vrot.slane %v6174_v20, 5  ;;  %v6551_v34 = vrot.slane %v6549_v29, 5 }
 0x1ca   : > { %v6144_v5 = vrot.slane %v6143_v32, 4  ;;  %v6542_v32 = vrot.slane %v6540_v25, 4 }
 0x1cb   : > { %14856 = vmatpush3.bf16.msra.mxu1 %v15910_v1  ;;  %v6463_v0 = vrot.slane %v6462_v51, 4  ;;  %v6146_v1 = vshll.u32 %v12982_v9, 16  ;;  %v6170_v45 = vrot.slane %v6168_v38, 5  ;;  %v6190_v51 = vrot.slane %v6188_v7, 5  ;;  %v15917_v7 = vld [vmem:[%s19944_s1 + $0x30] sm:$0xff]  }
 0x1cc   : > { %14832 = vmatpush3.bf16.msra.mxu0 %v15909_v8  ;;  %14865 = vmatprep.subr.bf16.mxu1 %v17414_v39  ;;  %v6490_v8 = vor.u32 %v6489_v2, %v6486_v61  ;;  %v15914_v61 = vld [vmem:[%s19944_s1 + $0x18] sm:$0xff]   ;;  %v6512_v2 = vshrl.u32 %v13036_v42, 16  ;;  %v6509_v9 = vrot.slane %v6507_v58, 5 }
 0x1cd   : > { %v6468_v6 = vsel %vm16228_vm2, %v6463_v0, %v6467_v54  ;;  %v6148_v28 = vrot.slane %v6146_v1, 5  ;;  %v6500_v54 = vrot.slane %v6498_v43, 4  ;;  %v6171_v55 = vor.u32 %v6170_v45, %v6167_v35  ;;  %v13082_v45 = vld [vmem:[%s16157_s24 + $0xd8] sm:$0xf] }
 0x1ce   : > { %v13058_v13 = vcombine.low %v6454_v63, %v6468_v6  ;;  %v6491_v57 = vrot.slane %v6490_v8, 4  ;;  %v6185_v0 = vor.u32 %v6184_v50, %v6181_v46  ;;  %v6503_v8 = vrot.slane %v6501_v56, 5  ;;  %v13084_v46 = vld [vmem:[%s16157_s24 + $0xe0] sm:$0xf] }
 0x1cf   : > { %14834 = vmatmul.mubr.bf16.vlgmr.msra.gmra.mrb[8].mxu0 %v13006_v44  ;;  %v6158_v44 = vrot.slane %v6157_v37, 4  ;;  %v6149_v49 = vsel %vm16228_vm2, %v6144_v5, %v6148_v28  ;;  %v6172_v6 = vrot.slane %v6171_v55, 4  ;;  %v6529_v1 = vshll.u32 %v13038_v59, 16 }
 0x1d0   : > { %14857 = vmatprep.mubr.bf16.mxu1 %v13058_v13  ;;  %v6496_v26 = vsel %vm16228_vm2, %v6491_v57, %v6495_v3  ;;  %v13039_v3 = vld [vmem:[%s16157_s24 + $0xc4] sm:$0x1]  ;;  %v6186_v13 = vrot.slane %v6185_v0, 4  ;;  %v6504_v18 = vor.u32 %v6503_v8, %v6500_v54  ;;  %v6523_v57 = vrot.slane %v6521_v11, 5 }
 0x1d1   : > { %v13059_v31 = vcombine.low %v6482_v52, %v6496_v26  ;;  %v6514_v52 = vrot.slane %v6512_v2, 4  ;;  %v6177_v17 = vsel %vm16228_vm2, %v6172_v6, %v6176_v10  ;;  %v6535_v62 = vshll.u32 %v13039_v3, 16  ;;  %v15915_v26 = vld [vmem:[%s19944_s1 + $0x20] sm:$0xff]   ;;  %v13083_v10 = vld [vmem:[%s16157_s24 + $0xdc] sm:$0x1] }
 0x1d2   : > { %v6191_v19 = vsel %vm16228_vm2, %v6186_v13, %v6190_v51  ;;  %v6505_v23 = vrot.slane %v6504_v18, 4  ;;  %v6531_v24 = vrot.slane %v6529_v1, 5  ;;  %v6543_v28 = vshll.u32 %v13040_v4, 16  ;;  %v15918_v51 = vld [vmem:[%s19944_s1 + $0x38] sm:$0xff]   ;;  %v15920_v0 = vld [vmem:[%s19944_s1 + $0x80] sm:$0xff]   ;;  %v15922_v4 = vld [vmem:[%s19944_s1 + $0x88] sm:$0xff]  }
 0x1d3   : > { %14858 = vmatmul.mubr.bf16.vlgmr.msra.gmra.mrb[16].mxu1 %v13059_v31  ;;  %v6518_v60 = vor.u32 %v6517_v14, %v6514_v52  ;;  %v13008_v22 = vcombine.low %v6177_v17, %v6191_v19  ;;  %v6537_v36 = vrot.slane %v6535_v62, 5  ;;  %v6866_v50 = vshrl.u32 %v13084_v46, 16  ;;  %v15927_v3 = vld [vmem:[%s16157_s24 + $0xf8] ss:$8 sps:$4 sm:$0xff]   ;;  %v13086_v13 = vld [vmem:[%s16157_s24 + $0xe8] sm:$0xf] }
 0x1d4   : > { %14866 = vmatpush3.bf16.msra.mxu1 %v17414_v39  ;;  %v6163_v39 = vsel %vm16228_vm2, %v6158_v44, %v6162_v33  ;;  %v6510_v30 = vsel %vm16228_vm2, %v6505_v23, %v6509_v9  ;;  %v6532_v31 = vor.u32 %v6531_v24, %v6528_v21  ;;  %v15916_v33 = vld [vmem:[%s19944_s1 + $0x28] sm:$0xff]   ;;  %v6545_v37 = vrot.slane %v6543_v28, 5  ;;  %v15919_v44 = vld [vmem:[%s16157_s24 + $0xd8] ss:$8 sps:$4 sm:$0xff]   ;;  %v13088_v52 = vld [vmem:[%s16157_s24 + $0xf0] sm:$0xf] }
 0x1d5   : > { %14867 = vmatprep.subr.bf16.mxu1 %v15912_v27  ;;  %v13007_v63 = vcombine.low %v6149_v49, %v6163_v39  ;;  %v6855_v49 = vshll.u32 %v13082_v45, 16  ;;  %v6869_v54 = vshll.u32 %v13084_v46, 16  ;;  %v6868_v56 = vrot.slane %v6866_v50, 4  ;;  %v15929_v14 = vld [vmem:[%s16157_s24 + $0x108] ss:$8 sps:$4 sm:$0xff]  }
 0x1d6   : > { %v6533_v20 = vrot.slane %v6532_v31, 4  ;;  %v6546_v40 = vor.u32 %v6545_v37, %v6542_v32  ;;  %v6861_v58 = vshll.u32 %v13083_v10, 16  ;;  %v13090_v18 = vld [vmem:[%s16157_s24 + $0xf8] sm:$0xf]  ;;  %v13089_v1 = vld [vmem:[%s16157_s24 + $0xf4] sm:$0x1] }
 0x1d7   : > { %14837 = vmatprep.mubr.bf16.mxu0 %v13007_v63  ;;  %v6857_v55 = vrot.slane %v6855_v49, 5  ;;  %v6871_v59 = vrot.slane %v6869_v54, 5  ;;  %v6880_v19 = vshrl.u32 %v13086_v13, 16  ;;  %v6894_v21 = vshrl.u32 %v13088_v52, 16  ;;  %v15925_v31 = vld [vmem:[%s19944_s1 + $0xa0] sm:$0xff]   ;;  %v15928_v46 = vld [vmem:[%s19944_s1 + $0xb0] sm:$0xff]  }
 0x1d8   : > { %14868 = vmatpush3.bf16.msra.mxu1 %v15912_v27  ;;  %v6519_v27 = vrot.slane %v6518_v60, 4  ;;  %14838 = vmatmul.mubr.bf16.gmra.mrb[12].mxu0 %v13008_v22  ;;  %v6538_v5 = vsel %vm16228_vm2, %v6533_v20, %v6537_v36  ;;  %v6547_v41 = vrot.slane %v6546_v40, 4  ;;  %v6863_v8 = vrot.slane %v6861_v58, 5  ;;  %v13092_v22 = vld [vmem:[%s16157_s24 + $0x100] sm:$0xf] }
 0x1d9   : > { %14869 = vmatprep.subr.bf16.mxu1 %v15913_v15  ;;  %v6872_v2 = vor.u32 %v6871_v59, %v6868_v56  ;;  %v6883_v60 = vshll.u32 %v13086_v13, 16  ;;  %v6897_v62 = vshll.u32 %v13088_v52, 16  ;;  %v6908_v24 = vshrl.u32 %v13090_v18, 16  ;;  %v13094_v20 = vld [vmem:[%s16157_s24 + $0x108] sm:$0xf]  ;;  %v15930_v59 = vld [vmem:[%s19944_s1 + $0xb8] sm:$0xff]  }
 0x1da   : > { %v6524_v35 = vsel %vm16228_vm2, %v6519_v27, %v6523_v57  ;;  %v6552_v42 = vsel %vm16228_vm2, %v6547_v41, %v6551_v34  ;;  %v13087_v57 = vld [vmem:[%s16157_s24 + $0xec] sm:$0x1]  ;;  %v6911_v25 = vshll.u32 %v13090_v18, 16  ;;  %v6903_v28 = vshll.u32 %v13089_v1, 16 }
 0x1db   : > { %v13060_v38 = vcombine.low %v6510_v30, %v6524_v35  ;;  %v13061_v43 = vcombine.low %v6538_v5, %v6552_v42  ;;  %v6873_v9 = vrot.slane %v6872_v2, 4  ;;  %v6889_v27 = vshll.u32 %v13087_v57, 16  ;;  %v13096_v5 = vld [vmem:[%s16157_s24 + $0x110] sm:$0xf]  ;;  %v15926_v41 = vld [vmem:[%s19944_s1 + $0xa8] sm:$0xff]  }
 0x1dc   : > { %14870 = vmatpush3.bf16.msra.mxu1 %v15913_v15  ;;  %v6852_v15 = vshrl.u32 %v13082_v45, 16  ;;  %v6922_v29 = vshrl.u32 %v13092_v22, 16  ;;  %v6925_v30 = vshll.u32 %v13092_v22, 16  ;;  %v6882_v32 = vrot.slane %v6880_v19, 4 }
 0x1dd   : > { %14871 = vmatprep.subr.bf16.mxu1 %v15914_v61  ;;  %14861 = vmatprep.mubr.bf16.mxu1 %v13060_v38  ;;  %v6896_v35 = vrot.slane %v6894_v21, 4  ;;  %v6899_v36 = vrot.slane %v6897_v62, 5  ;;  %v6910_v37 = vrot.slane %v6908_v24, 4  ;;  %v6913_v38 = vrot.slane %v6911_v25, 5 }
 0x1de   : > { %14862 = vmatmul.mubr.bf16.gmra.mrb[20].mxu1 %v13061_v43  ;;  %v6854_v39 = vrot.slane %v6852_v15, 4  ;;  %v6924_v34 = vrot.slane %v6922_v29, 4  ;;  %v6927_v40 = vrot.slane %v6925_v30, 5  ;;  %v6939_v42 = vshll.u32 %v13094_v20, 16  ;;  %v13091_v43 = vld [vmem:[%s16157_s24 + $0xfc] sm:$0x1] }
 0x1df   : > { %14881 = vmatprep.mubr.bf16.mxu1 %v15919_v44  ;;  %v13093_v44 = vld [vmem:[%s16157_s24 + $0x104] sm:$0x1]  ;;  %v6900_v10 = vor.u32 %v6899_v36, %v6896_v35  ;;  %v6953_v15 = vshll.u32 %v13096_v5, 16  ;;  %v6914_v49 = vor.u32 %v6913_v38, %v6910_v37  ;;  %v6917_v50 = vshll.u32 %v13091_v43, 16  ;;  %v15934_v29 = vld [vmem:[%s19944_s1 + $0xd8] sm:$0xff]   ;;  %v15937_v35 = vld [vmem:[%s19944_s1 + $0xf0] sm:$0xff]  }
 0x1e0   : > { %14872 = vmatpush3.bf16.msra.mxu1 %v15914_v61  ;;  %v6875_v61 = vshll.u32 %v13085_v48, 16  ;;  %v6858_v63 = vor.u32 %v6857_v55, %v6854_v39  ;;  %v6950_v48 = vshrl.u32 %v13096_v5, 16  ;;  %v6931_v54 = vshll.u32 %v13093_v44, 16  ;;  %v15935_v30 = vld [vmem:[%s19944_s1 + $0xe0] sm:$0xff]   ;;  %v13165_v5 = vld [vmem:[%s16157_s24 + $0x14] sm:$0x1] }
 0x1e1   : > { %14873 = vmatprep.subr.bf16.mxu1 %v15915_v26  ;;  %v6891_v55 = vrot.slane %v6889_v27, 5  ;;  %v6901_v56 = vrot.slane %v6900_v10, 4  ;;  %v6905_v58 = vrot.slane %v6903_v28, 5  ;;  %v6955_v2 = vrot.slane %v6953_v15, 5  ;;  %v15939_v28 = vld [vmem:[%s16157_s24 + $0x50] ss:$8 sps:$4 sm:$0xff]  }
 0x1e2   : > { %v6859_v6 = vrot.slane %v6858_v63, 4  ;;  %v6877_v11 = vrot.slane %v6875_v61, 5  ;;  %v6941_v63 = vrot.slane %v6939_v42, 5  ;;  %v15940_v10 = vld [vmem:[%s19944_s1 + $0x100] sm:$0xff]  }
 0x1e3   : > { %v15941_v15 = vld [vmem:[%s16157_s24 + $0x60] ss:$8 sps:$4 sm:$0xff]  }
 0x1e4   : > { %14874 = vmatpush3.bf16.msra.mxu1 %v15915_v26  ;;  %v6864_v16 = vsel %vm16228_vm2, %v6859_v6, %v6863_v8  ;;  %v6878_v17 = vsel %vm16228_vm2, %v6873_v9, %v6877_v11  ;;  %v15924_v26 = vld [vmem:[%s19944_s1 + $0x98] sm:$0xff]   ;;  %v6919_v6 = vrot.slane %v6917_v50, 5  ;;  %v6933_v9 = vrot.slane %v6931_v54, 5 }
 0x1e5   : > { %14875 = vmatprep.subr.bf16.mxu1 %v15916_v33  ;;  %v13114_v23 = vcombine.low %v6864_v16, %v6878_v17  ;;  %v15931_v17 = vld [vmem:[%s19944_s1 + $0xc0] sm:$0xff]   ;;  %v13166_v50 = vld [vmem:[%s16157_s24 + $0x18] sm:$0xf] }
 0x1e8   : > { %14876 = vmatpush3.bf16.msra.mxu1 %v15916_v33  ;;  %v6885_v33 = vrot.slane %v6883_v60, 5 }
 0x1e9   : > { %14877 = vmatprep.subr.bf16.mxu1 %v15917_v7 }
 0x1ea   : > { %v6886_v45 = vor.u32 %v6885_v33, %v6882_v32  ;;  %v13162_v32 = vld [vmem:[%s16157_s24 + $0x8] sm:$0xf]  ;;  %v13164_v33 = vld [vmem:[%s16157_s24 + $0x10] sm:$0xf] }
 0x1eb   : > { %v7302_v36 = vshrl.u32 %v13162_v32, 16  ;;  %v7305_v37 = vshll.u32 %v13162_v32, 16  ;;  %v7316_v38 = vshrl.u32 %v13164_v33, 16 }
 0x1ec   : > { %14878 = vmatpush3.bf16.msra.mxu1 %v15917_v7  ;;  %v6936_v7 = vshrl.u32 %v13094_v20, 16  ;;  %v6887_v39 = vrot.slane %v6886_v45, 4  ;;  %v7319_v20 = vshll.u32 %v13164_v33, 16  ;;  %v7325_v45 = vshll.u32 %v13165_v5, 16  ;;  %v13206_v5 = vld [vmem:[%s16157_s24 + $0x50] sm:$0xf] }
 0x1ed   : > { %14879 = vmatprep.subr.bf16.mxu1 %v15918_v51  ;;  %v7318_v42 = vrot.slane %v7316_v38, 4 }
 0x1ee   : > { %v6938_v61 = vrot.slane %v6936_v7, 4  ;;  %v6892_v11 = vsel %vm16228_vm2, %v6887_v39, %v6891_v55  ;;  %v7307_v7 = vrot.slane %v7305_v37, 5  ;;  %v7321_v43 = vrot.slane %v7319_v20, 5  ;;  %v15946_v37 = vld [vmem:[%s19944_s1 + $0x128] sm:$0xff]  }
 0x1ef   : > { %v7327_v39 = vrot.slane %v7325_v45, 5  ;;  %v15948_v45 = vld [vmem:[%s19944_s1 + $0x130] sm:$0xff]  }
 0x1f0   : > { %14880 = vmatpush3.bf16.msra.mxu1 %v15918_v51  ;;  %v6928_v51 = vor.u32 %v6927_v40, %v6924_v34  ;;  %v6942_v13 = vor.u32 %v6941_v63, %v6938_v61  ;;  %v15938_v34 = vld [vmem:[%s19944_s1 + $0xf8] sm:$0xff]   ;;  %v13163_v40 = vld [vmem:[%s16157_s24 + $0xc] sm:$0x1]  ;;  %v7333_v61 = vshll.u32 %v13166_v50, 16  ;;  %v15943_v63 = vld [vmem:[%s19944_s1 + $0x110] sm:$0xff]  }
 0x1f1   : > { %14889 = vmatprep.subr.bf16.mxu1 %v15920_v0  ;;  %v7311_v44 = vshll.u32 %v13163_v40, 16 }
 0x1f2   : > { %v6929_v8 = vrot.slane %v6928_v51, 4  ;;  %v6943_v19 = vrot.slane %v6942_v13, 4  ;;  %v15947_v51 = vld [vmem:[%s16157_s24 + $0x70] ss:$8 sps:$4 sm:$0xff]   ;;  %v13167_v13 = vld [vmem:[%s16157_s24 + $0x1c] sm:$0x1] }
 0x1f3   : > { %14882 = vmatmul.mubr.bf16.vlgmr.msra.gmra.mrb[16].mxu1 %v15921_v47  ;;  %v13095_v47 = vld [vmem:[%s16157_s24 + $0x10c] sm:$0x1]  ;;  %v7313_v54 = vrot.slane %v7311_v44, 5 }
 0x1f4   : > { %14890 = vmatpush3.bf16.msra.mxu1 %v15920_v0  ;;  %14885 = vmatprep.mubr.bf16.mxu1 %v15927_v3  ;;  %v6952_v0 = vrot.slane %v6950_v48, 4  ;;  %v13097_v3 = vld [vmem:[%s16157_s24 + $0x114] sm:$0x1]  ;;  %v6945_v52 = vshll.u32 %v13095_v47, 16  ;;  %v6934_v57 = vsel %vm16228_vm2, %v6929_v8, %v6933_v9  ;;  %v7322_v48 = vor.u32 %v7321_v43, %v7318_v42  ;;  %v15949_v47 = vld [vmem:[%s16157_s24 + $0x80] ss:$8 sps:$4 sm:$0xff]  }
 0x1f5   : > { %14891 = vmatprep.subr.bf16.mxu1 %v15922_v4  ;;  %v6959_v16 = vshll.u32 %v13097_v3, 16  ;;  %v7335_v8 = vrot.slane %v7333_v61, 5  ;;  %v15944_v9 = vld [vmem:[%s19944_s1 + $0x118] sm:$0xff]  }
 0x1f6   : > { %v6947_v60 = vrot.slane %v6945_v52, 5  ;;  %v13169_v52 = vld [vmem:[%s16157_s24 + $0x24] sm:$0x1] }
 0x1f7   : > { %v6961_v62 = vrot.slane %v6959_v16, 5 }
 0x1f8   : > { %14892 = vmatpush3.bf16.msra.mxu1 %v15922_v4  ;;  %v6915_v4 = vrot.slane %v6914_v49, 4  ;;  %v6948_v24 = vsel %vm16228_vm2, %v6943_v19, %v6947_v60  ;;  %v15942_v49 = vld [vmem:[%s19944_s1 + $0x108] sm:$0xff]   ;;  %v13173_v19 = vld [vmem:[%s16157_s24 + $0x34] sm:$0x1] }
 0x1f9   : > { %14893 = vmatprep.subr.bf16.mxu1 %v15923_v12 }
 0x1fa   : > { %v6920_v18 = vsel %vm16228_vm2, %v6915_v4, %v6919_v6 }
 0x1fb   : > { %14886 = vmatmul.mubr.bf16.gmra.mrb[20].mxu1 %v15929_v14  ;;  %v6956_v14 = vor.u32 %v6955_v2, %v6952_v0  ;;  %v13116_v22 = vcombine.low %v6920_v18, %v6934_v57  ;;  %v13172_v18 = vld [vmem:[%s16157_s24 + $0x30] sm:$0xf] }
 0x1fc   : > { %14894 = vmatpush3.bf16.msra.mxu1 %v15923_v12  ;;  %14905 = vmatprep.mubr.bf16.mxu1 %v13114_v23  ;;  %v6906_v12 = vsel %vm16228_vm2, %v6901_v56, %v6905_v58  ;;  %v15932_v23 = vld [vmem:[%s19944_s1 + $0xc8] sm:$0xff]   ;;  %v7323_v56 = vrot.slane %v7322_v48, 4  ;;  %v13168_v58 = vld [vmem:[%s16157_s24 + $0x20] sm:$0xf]  ;;  %v7372_v60 = vshrl.u32 %v13172_v18, 16 }
 0x1fd   : > { %14895 = vmatprep.subr.bf16.mxu1 %v15924_v26  ;;  %v13115_v1 = vcombine.low %v6892_v11, %v6906_v12  ;;  %v6957_v21 = vrot.slane %v6956_v14, 4  ;;  %v7344_v0 = vshrl.u32 %v13168_v58, 16  ;;  %v7347_v2 = vshll.u32 %v13168_v58, 16  ;;  %v13170_v11 = vld [vmem:[%s16157_s24 + $0x28] sm:$0xf] }
 0x1fe   : > { %v7328_v4 = vsel %vm16228_vm2, %v7323_v56, %v7327_v39  ;;  %v7358_v57 = vshrl.u32 %v13170_v11, 16  ;;  %v7374_v32 = vrot.slane %v7372_v60, 4 }
 0x1ff   : > { %v6962_v25 = vsel %vm16228_vm2, %v6957_v21, %v6961_v62  ;;  %v7346_v14 = vrot.slane %v7344_v0, 4  ;;  %v7349_v16 = vrot.slane %v7347_v2, 5  ;;  %v7375_v21 = vshll.u32 %v13172_v18, 16  ;;  %v15945_v62 = vld [vmem:[%s19944_s1 + $0x120] sm:$0xff]  }
 0x200   : > { %14896 = vmatpush3.bf16.msra.mxu1 %v15924_v26  ;;  %v15933_v26 = vld [vmem:[%s19944_s1 + $0xd0] sm:$0xff]   ;;  %v13117_v27 = vcombine.low %v6948_v24, %v6962_v25  ;;  %v13174_v24 = vld [vmem:[%s16157_s24 + $0x38] sm:$0xf]  ;;  %v7360_v25 = vrot.slane %v7358_v57, 4 }
 0x201   : > { %14897 = vmatprep.subr.bf16.mxu1 %v15925_v31  ;;  %v7377_v33 = vrot.slane %v7375_v21, 5 }
 0x204   : > { %14898 = vmatpush3.bf16.msra.mxu1 %v15925_v31  ;;  %v15936_v31 = vld [vmem:[%s19944_s1 + $0xe8] sm:$0xff]  }
 0x205   : > { %14899 = vmatprep.subr.bf16.mxu1 %v15926_v41 }
 0x208   : > { %14900 = vmatpush3.bf16.msra.mxu1 %v15926_v41  ;;  %v7304_v41 = vrot.slane %v7302_v36, 4  ;;  %v7389_v36 = vshll.u32 %v13174_v24, 16 }
 0x209   : > { %14901 = vmatprep.subr.bf16.mxu1 %v15928_v46 }
 0x20c   : > { %14902 = vmatpush3.bf16.msra.mxu1 %v15928_v46  ;;  %v7308_v46 = vor.u32 %v7307_v7, %v7304_v41  ;;  %v13208_v41 = vld [vmem:[%s16157_s24 + $0x58] sm:$0xf] }
 0x20d   : > { %14903 = vmatprep.subr.bf16.mxu1 %v15930_v59  ;;  %v7597_v39 = vshrl.u32 %v13208_v41, 16 }
 0x20e   : > { %v7309_v55 = vrot.slane %v7308_v46, 4  ;;  %v7378_v46 = vor.u32 %v7377_v33, %v7374_v32 }
 0x210   : > { %14904 = vmatpush3.bf16.msra.mxu1 %v15930_v59  ;;  %v7330_v59 = vshrl.u32 %v13166_v50, 16  ;;  %v7314_v3 = vsel %vm16228_vm2, %v7309_v55, %v7313_v54  ;;  %v13177_v50 = vld [vmem:[%s16157_s24 + $0x44] sm:$0x1]  ;;  %v7586_v54 = vshll.u32 %v13206_v5, 16  ;;  %v7600_v55 = vshll.u32 %v13208_v41, 16 }
 0x211   : > { %14913 = vmatprep.subr.bf16.mxu1 %v15931_v17  ;;  %v13194_v12 = vcombine.low %v7314_v3, %v7328_v4  ;;  %v7379_v61 = vrot.slane %v7378_v46, 4 }
 0x212   : > { %v7332_v6 = vrot.slane %v7330_v59, 4  ;;  %v7588_v2 = vrot.slane %v7586_v54, 5  ;;  %v7602_v3 = vrot.slane %v7600_v55, 5 }
 0x213   : > { %14906 = vmatmul.mubr.bf16.vlgmr.msra.gmra.mrb[16].mxu1 %v13115_v1  ;;  %v7361_v1 = vshll.u32 %v13170_v11, 16  ;;  %v13207_v11 = vld [vmem:[%s16157_s24 + $0x54] sm:$0x1] }
 0x214   : > { %14914 = vmatpush3.bf16.msra.mxu1 %v15931_v17  ;;  %14909 = vmatprep.mubr.bf16.mxu1 %v13116_v22  ;;  %v13171_v17 = vld [vmem:[%s16157_s24 + $0x2c] sm:$0x1]  ;;  %v7339_v22 = vshll.u32 %v13167_v13, 16  ;;  %v7592_v57 = vshll.u32 %v13207_v11, 16 }
 0x215   : > { %14915 = vmatprep.subr.bf16.mxu1 %v15932_v23 }
 0x216   : > { %v7341_v38 = vrot.slane %v7339_v22, 5 }
 0x218   : > { %14916 = vmatpush3.bf16.msra.mxu1 %v15932_v23  ;;  %v7353_v23 = vshll.u32 %v13169_v52, 16 }
 0x219   : > { %14917 = vmatprep.subr.bf16.mxu1 %v15933_v26 }
 0x21a   : > { %v7355_v20 = vrot.slane %v7353_v23, 5 }
 0x21b   : > { %14910 = vmatmul.mubr.bf16.gmra.mrb[20].mxu1 %v13117_v27  ;;  %v7367_v27 = vshll.u32 %v13171_v17, 16  ;;  %v15951_v17 = vld [vmem:[%s19944_s1 + $0x140] sm:$0xff]  }
 0x21c   : > { %14918 = vmatpush3.bf16.msra.mxu1 %v15933_v26  ;;  %14929 = vmatprep.mubr.bf16.mxu1 %v15939_v28  ;;  %v7363_v26 = vrot.slane %v7361_v1, 5  ;;  %v7381_v28 = vshll.u32 %v13173_v19, 16 }
 0x21d   : > { %14919 = vmatprep.subr.bf16.mxu1 %v15934_v29  ;;  %v7369_v43 = vrot.slane %v7367_v27, 5  ;;  %v13212_v27 = vld [vmem:[%s16157_s24 + $0x68] sm:$0xf] }
 0x21e   : > { %v7383_v44 = vrot.slane %v7381_v28, 5 }
 0x220   : > { %14920 = vmatpush3.bf16.msra.mxu1 %v15934_v29  ;;  %v7336_v29 = vor.u32 %v7335_v8, %v7332_v6 }
 0x221   : > { %14921 = vmatprep.subr.bf16.mxu1 %v15935_v30 }
 0x222   : > { %v7337_v7 = vrot.slane %v7336_v29, 4  ;;  %v7594_v29 = vrot.slane %v7592_v57, 5  ;;  %v15956_v57 = vld [vmem:[%s19944_s1 + $0x168] sm:$0xff]  }
 0x224   : > { %14922 = vmatpush3.bf16.msra.mxu1 %v15935_v30  ;;  %v7350_v30 = vor.u32 %v7349_v16, %v7346_v14  ;;  %v7342_v13 = vsel %vm16228_vm2, %v7337_v7, %v7341_v38  ;;  %v7384_v16 = vsel %vm16228_vm2, %v7379_v61, %v7383_v44  ;;  %v7628_v38 = vshll.u32 %v13212_v27, 16  ;;  %v13217_v61 = vld [vmem:[%s16157_s24 + $0x7c] sm:$0x1] }
 0x225   : > { %14923 = vmatprep.subr.bf16.mxu1 %v15936_v31 }
 0x226   : > { %v7351_v42 = vrot.slane %v7350_v30, 4 }
 0x228   : > { %14924 = vmatpush3.bf16.msra.mxu1 %v15936_v31  ;;  %v13176_v31 = vld [vmem:[%s16157_s24 + $0x40] sm:$0xf]  ;;  %v7356_v52 = vsel %vm16228_vm2, %v7351_v42, %v7355_v20  ;;  %v13214_v20 = vld [vmem:[%s16157_s24 + $0x70] sm:$0xf]  ;;  %v13211_v42 = vld [vmem:[%s16157_s24 + $0x64] sm:$0x1] }
 0x229   : > { %14925 = vmatprep.subr.bf16.mxu1 %v15937_v35  ;;  %v7403_v40 = vshll.u32 %v13176_v31, 16  ;;  %v13195_v23 = vcombine.low %v7342_v13, %v7356_v52  ;;  %v7642_v46 = vshll.u32 %v13214_v20, 16 }
 0x22b   : > { %v7405_v58 = vrot.slane %v7403_v40, 5  ;;  %v15953_v40 = vld [vmem:[%s19944_s1 + $0x150] sm:$0xff]  }
 0x22c   : > { %14926 = vmatpush3.bf16.msra.mxu1 %v15937_v35  ;;  %v7386_v35 = vshrl.u32 %v13174_v24, 16  ;;  %v13210_v24 = vld [vmem:[%s16157_s24 + $0x60] sm:$0xf] }
 0x22d   : > { %14927 = vmatprep.subr.bf16.mxu1 %v15938_v34 }
 0x22e   : > { %v7388_v48 = vrot.slane %v7386_v35, 4  ;;  %v7611_v35 = vshrl.u32 %v13210_v24, 16 }
 0x230   : > { %14928 = vmatpush3.bf16.msra.mxu1 %v15938_v34  ;;  %v7400_v34 = vshrl.u32 %v13176_v31, 16  ;;  %v7613_v44 = vrot.slane %v7611_v35, 4 }
 0x231   : > { %14937 = vmatprep.subr.bf16.mxu1 %v15940_v10 }
 0x232   : > { %v7402_v56 = vrot.slane %v7400_v34, 4  ;;  %v13216_v34 = vld [vmem:[%s16157_s24 + $0x78] sm:$0xf] }
 0x233   : > { %14930 = vmatmul.mubr.bf16.vlgmr.msra.gmra.mrb[16].mxu1 %v15941_v15  ;;  %v7391_v15 = vrot.slane %v7389_v36, 5  ;;  %v7614_v36 = vshll.u32 %v13210_v24, 16 }
 0x234   : > { %14938 = vmatpush3.bf16.msra.mxu1 %v15940_v10  ;;  %14933 = vmatprep.mubr.bf16.mxu1 %v15947_v51  ;;  %v7364_v10 = vor.u32 %v7363_v26, %v7360_v25  ;;  %v7583_v51 = vshrl.u32 %v13206_v5, 16  ;;  %v7406_v8 = vor.u32 %v7405_v58, %v7402_v56  ;;  %v15952_v25 = vld [vmem:[%s19944_s1 + $0x148] sm:$0xff]   ;;  %v13218_v56 = vld [vmem:[%s16157_s24 + $0x80] sm:$0xf] }
 0x235   : > { %14939 = vmatprep.subr.bf16.mxu1 %v15942_v49  ;;  %v7392_v4 = vor.u32 %v7391_v15, %v7388_v48  ;;  %v7630_v15 = vrot.slane %v7628_v38, 5  ;;  %v13220_v58 = vld [vmem:[%s16157_s24 + $0x88] sm:$0xf] }
 0x236   : > { %v7365_v59 = vrot.slane %v7364_v10, 4  ;;  %v7585_v0 = vrot.slane %v7583_v51, 4  ;;  %v7639_v10 = vshrl.u32 %v13214_v20, 16  ;;  %v15954_v51 = vld [vmem:[%s19944_s1 + $0x158] sm:$0xff]   ;;  %v7684_v11 = vshll.u32 %v13220_v58, 16 }
 0x237   : > { %v7393_v60 = vrot.slane %v7392_v4, 4 }
 0x238   : > { %14940 = vmatpush3.bf16.msra.mxu1 %v15942_v49  ;;  %v13175_v49 = vld [vmem:[%s16157_s24 + $0x3c] sm:$0x1]  ;;  %v7370_v14 = vsel %vm16228_vm2, %v7365_v59, %v7369_v43  ;;  %v7589_v18 = vor.u32 %v7588_v2, %v7585_v0  ;;  %v13213_v43 = vld [vmem:[%s16157_s24 + $0x6c] sm:$0x1]  ;;  %v13215_v59 = vld [vmem:[%s16157_s24 + $0x74] sm:$0x1] }
 0x239   : > { %14941 = vmatprep.subr.bf16.mxu1 %v15943_v63  ;;  %v7395_v6 = vshll.u32 %v13175_v49, 16  ;;  %v13196_v26 = vcombine.low %v7370_v14, %v7384_v16  ;;  %v7653_v49 = vshrl.u32 %v13216_v34, 16  ;;  %v7634_v55 = vshll.u32 %v13213_v43, 16  ;;  %v13290_v43 = vld [vmem:[%s16157_s24 + $0xa8] sm:$0xf] }
 0x23a   : > { %v7590_v28 = vrot.slane %v7589_v18, 4  ;;  %v7644_v0 = vrot.slane %v7642_v46, 5  ;;  %v7648_v14 = vshll.u32 %v13215_v59, 16  ;;  %v7662_v16 = vshll.u32 %v13217_v61, 16  ;;  %v13219_v18 = vld [vmem:[%s16157_s24 + $0x84] sm:$0x1] }
 0x23b   : > { %14934 = vmatmul.mubr.bf16.gmra.mrb[20].mxu1 %v15949_v47  ;;  %v7599_v47 = vrot.slane %v7597_v39, 4  ;;  %v7397_v21 = vrot.slane %v7395_v6, 5  ;;  %v7620_v39 = vshll.u32 %v13211_v42, 16  ;;  %v7667_v6 = vshrl.u32 %v13218_v56, 16 }
 0x23c   : > { %14942 = vmatpush3.bf16.msra.mxu1 %v15943_v63  ;;  %14953 = vmatprep.mubr.bf16.mxu1 %v13194_v12  ;;  %v15950_v63 = vld [vmem:[%s19944_s1 + $0x138] sm:$0xff]   ;;  %v7595_v41 = vsel %vm16228_vm2, %v7590_v28, %v7594_v29  ;;  %v7636_v52 = vrot.slane %v7634_v55, 5  ;;  %v7686_v24 = vrot.slane %v7684_v11, 5  ;;  %v7664_v28 = vrot.slane %v7662_v16, 5  ;;  %v13291_v55 = vld [vmem:[%s16157_s24 + $0xac] sm:$0x1] }
 0x23d   : > { %14943 = vmatprep.subr.bf16.mxu1 %v15944_v9  ;;  %v13209_v12 = vld [vmem:[%s16157_s24 + $0x5c] sm:$0x1]  ;;  %v7603_v1 = vor.u32 %v7602_v3, %v7599_v47  ;;  %v7398_v32 = vsel %vm16228_vm2, %v7393_v60, %v7397_v21  ;;  %v7655_v3 = vrot.slane %v7653_v49, 4  ;;  %v7622_v13 = vrot.slane %v7620_v39, 5  ;;  %v13221_v21 = vld [vmem:[%s16157_s24 + $0x8c] sm:$0x1] }
 0x23e   : > { %v7606_v19 = vshll.u32 %v13209_v12, 16  ;;  %v15955_v12 = vld [vmem:[%s19944_s1 + $0x160] sm:$0xff]   ;;  %v13286_v29 = vld [vmem:[%s16157_s24 + $0x98] sm:$0xf]  ;;  %v8064_v61 = vshll.u32 %v13290_v43, 16 }
 0x23f   : > { %v7604_v30 = vrot.slane %v7603_v1, 4  ;;  %v8033_v20 = vshrl.u32 %v13286_v29, 16 }
 0x240   : > { %14944 = vmatpush3.bf16.msra.mxu1 %v15944_v9  ;;  %v7409_v9 = vshll.u32 %v13177_v50, 16  ;;  %v7608_v31 = vrot.slane %v7606_v19, 5  ;;  %v7656_v50 = vshll.u32 %v13216_v34, 16  ;;  %v17674_v34 = vld [vmem:[%s16157_s24 + $0xa4] sm:$0x1] }
 0x241   : > { %14945 = vmatprep.subr.bf16.mxu1 %v15945_v62 }
 0x242   : > { %v7411_v22 = vrot.slane %v7409_v9, 5  ;;  %v7609_v7 = vsel %vm16228_vm2, %v7604_v30, %v7608_v31  ;;  %v7658_v4 = vrot.slane %v7656_v50, 5  ;;  %v7681_v9 = vshrl.u32 %v13220_v58, 16  ;;  %v15957_v30 = vld [vmem:[%s19944_s1 + $0x170] sm:$0xff]   ;;  %v13287_v31 = vld [vmem:[%s16157_s24 + $0x9c] sm:$0x1] }
 0x243   : > { %v13238_v54 = vcombine.low %v7595_v41, %v7609_v7  ;;  %v15959_v58 = vld [vmem:[%s19944_s1 + $0x180] sm:$0xff]  }
 0x244   : > { %14946 = vmatpush3.bf16.msra.mxu1 %v15945_v62  ;;  %v7407_v62 = vrot.slane %v7406_v8, 4  ;;  %v7670_v8 = vshll.u32 %v13218_v56, 16  ;;  %v7659_v60 = vor.u32 %v7658_v4, %v7655_v3  ;;  %v8061_v56 = vshrl.u32 %v13290_v43, 16 }
 0x245   : > { %14947 = vmatprep.subr.bf16.mxu1 %v15946_v37 }
 0x246   : > { %v7412_v33 = vsel %vm16228_vm2, %v7407_v62, %v7411_v22  ;;  %v7669_v62 = vrot.slane %v7667_v6, 4  ;;  %v7672_v22 = vrot.slane %v7670_v8, 5  ;;  %v13296_v6 = vld [vmem:[%s16157_s24 + $0xc0] sm:$0xf] }
 0x247   : > { %v13197_v5 = vcombine.low %v7398_v32, %v7412_v33  ;;  %v7660_v32 = vrot.slane %v7659_v60, 4  ;;  %v8106_v60 = vshll.u32 %v13296_v6, 16 }
 0x248   : > { %14948 = vmatpush3.bf16.msra.mxu1 %v15946_v37  ;;  %v7625_v37 = vshrl.u32 %v13212_v27, 16  ;;  %v7673_v33 = vor.u32 %v7672_v22, %v7669_v62 }
 0x249   : > { %14949 = vmatprep.subr.bf16.mxu1 %v15948_v45 }
 0x24a   : > { %v7627_v48 = vrot.slane %v7625_v37, 4  ;;  %v13288_v37 = vld [vmem:[%s16157_s24 + $0xa0] sm:$0xf] }
 0x24b   : > { %v8047_v49 = vshrl.u32 %v13288_v37, 16  ;;  %v8050_v50 = vshll.u32 %v13288_v37, 16 }
 0x24c   : > { %14950 = vmatpush3.bf16.msra.mxu1 %v15948_v45  ;;  %v7616_v45 = vrot.slane %v7614_v36, 5  ;;  %v7631_v47 = vor.u32 %v7630_v15, %v7627_v48  ;;  %v7690_v36 = vshll.u32 %v13221_v21, 16  ;;  %v8035_v15 = vrot.slane %v8033_v20, 4 }
 0x24d   : > { %14951 = vmatprep.subr.bf16.mxu1 %v15950_v63  ;;  %v8049_v11 = vrot.slane %v8047_v49, 4 }
 0x24e   : > { %v7617_v2 = vor.u32 %v7616_v45, %v7613_v44  ;;  %v7632_v19 = vrot.slane %v7631_v47, 4  ;;  %v15958_v44 = vld [vmem:[%s19944_s1 + $0x178] sm:$0xff]   ;;  %v7665_v45 = vsel %vm16228_vm2, %v7660_v32, %v7664_v28  ;;  %v7692_v48 = vrot.slane %v7690_v36, 5  ;;  %v13293_v47 = vld [vmem:[%s16157_s24 + $0xb4] sm:$0x1] }
 0x24f   : > { %v13297_v28 = vld [vmem:[%s16157_s24 + $0xc4] sm:$0x1]  ;;  %v13301_v36 = vld [vmem:[%s16157_s24 + $0xd4] sm:$0x1] }
 0x250   : > { %14952 = vmatpush3.bf16.msra.mxu1 %v15950_v63  ;;  %v7641_v63 = vrot.slane %v7639_v10, 4  ;;  %v7618_v1 = vrot.slane %v7617_v2, 4  ;;  %v7637_v7 = vsel %vm16228_vm2, %v7632_v19, %v7636_v52  ;;  %v7674_v10 = vrot.slane %v7673_v33, 4 }
 0x251   : > { %14961 = vmatprep.subr.bf16.mxu1 %v15951_v17  ;;  %v8063_v52 = vrot.slane %v8061_v56, 4  ;;  %v8103_v19 = vshrl.u32 %v13296_v6, 16 }
 0x252   : > { %v7623_v41 = vsel %vm16228_vm2, %v7618_v1, %v7622_v13  ;;  %v13298_v13 = vld [vmem:[%s16157_s24 + $0xc8] sm:$0xf]  ;;  %v8084_v1 = vshll.u32 %v13293_v47, 16  ;;  %v17744_v47 = vld [vmem:[%s16157_s24 + $0xe0] sm:$0xf] }
 0x253   : > { %14954 = vmatmul.mubr.bf16.vlgmr.msra.gmra.mrb[16].mxu1 %v13195_v23  ;;  %v7683_v23 = vrot.slane %v7681_v9, 4  ;;  %v8117_v22 = vshrl.u32 %v13298_v13, 16  ;;  %v8105_v33 = vrot.slane %v8103_v19, 4 }
 0x254   : > { %14962 = vmatpush3.bf16.msra.mxu1 %v15951_v17  ;;  %14957 = vmatprep.mubr.bf16.mxu1 %v13196_v26  ;;  %v7645_v17 = vor.u32 %v7644_v0, %v7641_v63  ;;  %v7676_v26 = vshll.u32 %v13219_v18, 16  ;;  %v13294_v63 = vld [vmem:[%s16157_s24 + $0xb8] sm:$0xf]  ;;  %v13239_v0 = vcombine.low %v7623_v41, %v7637_v7  ;;  %v15960_v18 = vld [vmem:[%s19944_s1 + $0x188] sm:$0xff]  }
 0x255   : > { %14963 = vmatprep.subr.bf16.mxu1 %v15952_v25  ;;  %v7687_v35 = vor.u32 %v7686_v24, %v7683_v23  ;;  %v8089_v16 = vshrl.u32 %v13294_v63, 16  ;;  %v8120_v23 = vshll.u32 %v13298_v13, 16  ;;  %v8119_v37 = vrot.slane %v8117_v22, 4 }
 0x256   : > { %v7646_v27 = vrot.slane %v7645_v17, 4  ;;  %v17671_v38 = vrot.slane %v7676_v26, 5  ;;  %v8092_v17 = vshll.u32 %v13294_v63, 16  ;;  %v13300_v26 = vld [vmem:[%s16157_s24 + $0xd0] sm:$0xf] }
 0x257   : > { %v7688_v46 = vrot.slane %v7687_v35, 4  ;;  %v8108_v35 = vrot.slane %v8106_v60, 5  ;;  %v8131_v20 = vshrl.u32 %v13300_v26, 16  ;;  %v15964_v60 = vld [vmem:[%s19944_s1 + $0x1a8] sm:$0xff]  }
 0x258   : > { %14964 = vmatpush3.bf16.msra.mxu1 %v15952_v25  ;;  %v7650_v25 = vrot.slane %v7648_v14, 5  ;;  %v7679_v8 = vsel %vm16228_vm2, %v7674_v10, %v17671_v38  ;;  %v8070_v14 = vshll.u32 %v13291_v55, 16  ;;  %v8122_v38 = vrot.slane %v8120_v23, 5 }
 0x259   : > { %14965 = vmatprep.subr.bf16.mxu1 %v15953_v40  ;;  %v7693_v9 = vsel %vm16228_vm2, %v7688_v46, %v7692_v48  ;;  %v8112_v10 = vshll.u32 %v13297_v28, 16  ;;  %v15967_v46 = vld [vmem:[%s16157_s24 + $0xe0] ss:$8 sps:$4 sm:$0xff]   ;;  %v8133_v56 = vrot.slane %v8131_v20, 4  ;;  %v15966_v20 = vld [vmem:[%s19944_s1 + $0x1b8] sm:$0xff]  }
 0x25a   : > { %v7651_v42 = vsel %vm16228_vm2, %v7646_v27, %v7650_v25  ;;  %v13295_v25 = vld [vmem:[%s16157_s24 + $0xbc] sm:$0x1]  ;;  %v13241_v32 = vcombine.low %v7679_v8, %v7693_v9  ;;  %v8123_v55 = vor.u32 %v8122_v38, %v8119_v37  ;;  %v17778_v37 = vld [vmem:[%s16157_s24 + $0xe8] sm:$0xf] }
 0x25b   : > { %14958 = vmatmul.mubr.bf16.gmra.mrb[20].mxu1 %v13197_v5  ;;  %v8042_v5 = vshll.u32 %v13287_v31, 16  ;;  %v13240_v2 = vcombine.low %v7651_v42, %v7665_v45  ;;  %v13299_v31 = vld [vmem:[%s16157_s24 + $0xcc] sm:$0x1]  ;;  %v8098_v45 = vshll.u32 %v13295_v25, 16 }
 0x25c   : > { %14966 = vmatpush3.bf16.msra.mxu1 %v15953_v40  ;;  %14977 = vmatprep.mubr.bf16.mxu1 %v13238_v54  ;;  %v8036_v40 = vshll.u32 %v13286_v29, 16  ;;  %v13292_v54 = vld [vmem:[%s16157_s24 + $0xb0] sm:$0xf]  ;;  %v8091_v29 = vrot.slane %v8089_v16, 4  ;;  %v8126_v49 = vshll.u32 %v13299_v31, 16 }
 0x25d   : > { %14967 = vmatprep.subr.bf16.mxu1 %v15954_v51  ;;  %v17694_v59 = vrot.slane %v8042_v5, 5  ;;  %v8075_v3 = vshrl.u32 %v13292_v54, 16  ;;  %v8078_v4 = vshll.u32 %v13292_v54, 16  ;;  %v17731_v54 = vld [vmem:[%s19945_s2] ss:$0 sm:$0xff] }
 0x25e   : > { %v8038_v39 = vrot.slane %v8036_v40, 5  ;;  %v15961_v40 = vld [vmem:[%s19944_s1 + $0x190] sm:$0xff]   ;;  %v17753_v8 = vrot.slane %v8126_v49, 5 }
 0x25f   : > { %v8077_v21 = vrot.slane %v8075_v3, 4  ;;  %v8080_v62 = vrot.slane %v8078_v4, 5  ;;  %v15963_v3 = vld [vmem:[%s19944_s1 + $0x1a0] sm:$0xff]  }
 0x260   : > { %14968 = vmatpush3.bf16.msra.mxu1 %v15954_v51  ;;  %v8056_v51 = vshll.u32 %v17674_v34, 16  ;;  %v8039_v24 = vor.u32 %v8038_v39, %v8035_v15  ;;  %v8134_v34 = vshll.u32 %v13300_v26, 16  ;;  %v8109_v15 = vor.u32 %v8108_v35, %v8105_v33  ;;  %v15965_v33 = vld [vmem:[%s19944_s1 + $0x1b0] sm:$0xff]  }
 0x261   : > { %14969 = vmatprep.subr.bf16.mxu1 %v15955_v12  ;;  %v8081_v42 = vor.u32 %v8080_v62, %v8077_v21  ;;  %v17733_v39 = vrot.slane %v8084_v1, 5  ;;  %v8317_v1 = vshll.u32 %v17744_v47, 16 }
 0x262   : > { %v17716_v5 = vrot.slane %v8039_v24, 4  ;;  %v17718_v41 = vrot.slane %v8056_v51, 5  ;;  %v15962_v51 = vld [vmem:[%s19944_s1 + $0x198] sm:$0xff]   ;;  %v17751_v6 = vrot.slane %v8109_v15, 4  ;;  %v15968_v15 = vld [vmem:[%s19944_s1 + $0x1c0] sm:$0xff]  }
 0x263   : > { %v17737_v63 = vrot.slane %v8081_v42, 4 }
 0x264   : > { %14970 = vmatpush3.bf16.msra.mxu1 %v15955_v12  ;;  %v8052_v12 = vrot.slane %v8050_v50, 5  ;;  %v8140_v50 = vshll.u32 %v13301_v36, 16 }
 0x265   : > { %14971 = vmatprep.subr.bf16.mxu1 %v15956_v57 }
 0x266   : > { %v8053_v27 = vor.u32 %v8052_v12, %v8049_v11  ;;  %v17755_v9 = vrot.slane %v8140_v50, 5  ;;  %v17757_v12 = vrot.slane %v8123_v55, 4 }
 0x268   : > { %14972 = vmatpush3.bf16.msra.mxu1 %v15956_v57  ;;  %v8066_v57 = vrot.slane %v8064_v61, 5  ;;  %v17720_v43 = vrot.slane %v8053_v27, 4 }
 0x269   : > { %14973 = vmatprep.subr.bf16.mxu1 %v15957_v30 }
 0x26a   : > { %v8067_v7 = vor.u32 %v8066_v57, %v8063_v52  ;;  %v17760_v52 = vld [vmem:[%s16157_s24 + $0xe4] sm:$0x1] }
 0x26b   : > { %v8323_v27 = vshll.u32 %v17760_v52, 16 }
 0x26c   : > { %14974 = vmatpush3.bf16.msra.mxu1 %v15957_v30  ;;  %v8094_v30 = vrot.slane %v8092_v17, 5  ;;  %v17735_v61 = vrot.slane %v8067_v7, 4  ;;  %v8314_v17 = vshrl.u32 %v17744_v47, 16  ;;  %v8328_v7 = vshrl.u32 %v17778_v37, 16  ;;  %v15969_v47 = vld [vmem:[%s16157_s24 + $0xf0] ss:$8 sps:$4 sm:$0xff]  }
 0x26d   : > { %14975 = vmatprep.subr.bf16.mxu1 %v15958_v44 }
 0x26e   : > { %v8095_v48 = vor.u32 %v8094_v30, %v8091_v29  ;;  %v17793_v49 = vrot.slane %v8314_v17, 4 }
 0x270   : > { %14976 = vmatpush3.bf16.msra.mxu1 %v15958_v44  ;;  %v17722_v44 = vrot.slane %v8070_v14, 5  ;;  %v17749_v4 = vrot.slane %v8095_v48, 4 }
 0x271   : > { %14985 = vmatprep.subr.bf16.mxu1 %v15959_v58 }
 0x273   : > { %14978 = vmatmul.mubr.bf16.vlgmr.msra.gmra.mrb[16].mxu1 %v13239_v0  ;;  %v17739_v0 = vrot.slane %v8098_v45, 5 }
 0x274   : > { %14986 = vmatpush3.bf16.msra.mxu1 %v15959_v58  ;;  %14981 = vmatprep.mubr.bf16.mxu1 %v13240_v2  ;;  %v8136_v58 = vrot.slane %v8134_v34, 5  ;;  %v17741_v2 = vrot.slane %v8112_v10, 5  ;;  %v8331_v10 = vshll.u32 %v17778_v37, 16 }
 0x275   : > { %14987 = vmatprep.subr.bf16.mxu1 %v15960_v18 }
 0x276   : > { %v8137_v13 = vor.u32 %v8136_v58, %v8133_v56  ;;  %v8333_v37 = vrot.slane %v8331_v10, 5 }
 0x278   : > { %14988 = vmatpush3.bf16.msra.mxu1 %v15960_v18  ;;  %v17771_v24 = vrot.slane %v8137_v13, 4 }
 0x279   : > { %14989 = vmatprep.subr.bf16.mxu1 %v15961_v40 }
 0x27b   : > { %14982 = vmatmul.mubr.bf16.gmra.mrb[20].mxu1 %v13241_v32 }
 0x27c   : > { %14990 = vmatpush3.bf16.msra.mxu1 %v15961_v40  ;;  %15001 = vmatprep.mubr.bf16.mxu1 %v15967_v46  ;;  %v17784_v40 = vld [vmem:[%s16157_s24 + $0xec] sm:$0x1] }
 0x27d   : > { %14991 = vmatprep.subr.bf16.mxu1 %v15962_v51 }
 0x280   : > { %14992 = vmatpush3.bf16.msra.mxu1 %v15962_v51 }
 0x281   : > { %v14619_v11 = vpop.f32.mrb[8].mxu1  ;;  %14993 = vmatprep.subr.bf16.mxu1 %v15963_v3 }
 0x282   : > { %v4455_v14 = vadd.f32 %v14619_v11, %v17731_v54  ;;  %v4407_v16 = vpop.f32.mrb[9].mxu1 }
 0x283   : > { %v4453_v18 = vadd.f32 %v17731_v54, %v4407_v16  ;;  %v14620_v57 = vpop.f32.mrb[10].mxu1  ;;  %v8337_v16 = vshll.u32 %v17784_v40, 16 }
 0x284   : > { %vm4463_vm11 = vcmp.ge.f32.partialorder %v4455_v14, 0.0  ;;  %v4471_v19 = vmul.f32 0.2, %v4455_v14  ;;  %v4456_v21 = vadd.f32 %v14620_v57, %v17731_v54  ;;  %v4410_v62 = vpop.f32.mrb[11].mxu1  ;;  %14994 = vmatpush3.bf16.msra.mxu1 %v15963_v3  ;;  %v8319_v3 = vrot.slane %v8317_v1, 5 }
 0x285   : > { %vm4461_vm12 = vcmp.ge.f32.partialorder %v4453_v18, 0.0  ;;  %v4469_v22 = vmul.f32 0.2, %v4453_v18  ;;  %v4454_v23 = vadd.f32 %v17731_v54, %v4410_v62  ;;  %14995 = vmatprep.subr.bf16.mxu1 %v15964_v60  ;;  %v17830_v40 = vrot.slane %v8337_v16, 5 }
 0x286   : > { %v4479_v25 = vsel %vm4463_vm11, %v4455_v14, %v4471_v19  ;;  %vm4464_vm13 = vcmp.ge.f32.partialorder %v4456_v21, 0.0  ;;  %v4472_v26 = vmul.f32 0.2, %v4456_v21  ;;  %v15975_v14 = vld [vmem:[%s16157_s24 + $0x100] ss:$8 sps:$4 sm:$0xff]   ;;  %v8115_v16 = vsel %vm16228_vm2, %v17751_v6, %v17741_v2 }
 0x287   : > { %v4487_v28 = vmul.f32 1.4142135, %v4479_v25  ;;  %v4477_v29 = vsel %vm4461_vm12, %v4453_v18, %v4469_v22  ;;  %vm4462_vm14 = vcmp.ge.f32.partialorder %v4454_v23, 0.0  ;;  %v4470_v30 = vmul.f32 0.2, %v4454_v23  ;;  %v15970_v19 = vld [vmem:[%s19944_s1 + $0x1c8] sm:$0xff]  }
 0x288   : > { %v4485_v31 = vmul.f32 1.4142135, %v4477_v29  ;;  %v4480_v32 = vsel %vm4464_vm13, %v4456_v21, %v4472_v26  ;;  %14996 = vmatpush3.bf16.msra.mxu1 %v15964_v60  ;;  %v15977_v25 = vld [vmem:[%s16157_s24 + $0x110] ss:$8 sps:$4 sm:$0xff]   ;;  %v8045_v26 = vsel %vm16228_vm2, %v17716_v5, %v17694_v59  ;;  %v17823_v59 = vrot.slane %v8323_v27, 5 }
 0x289   : > { %4496 = vst [vmem:[#allocation2 + $0xd1] sm:$0xff] %v4487_v28  ;;  %v4488_v35 = vmul.f32 1.4142135, %v4480_v32  ;;  %v4478_v36 = vsel %vm4462_vm14, %v4454_v23, %v4470_v30  ;;  %14997 = vmatprep.subr.bf16.mxu1 %v15965_v33  ;;  %v14623_v34 = vpop.f32.mrb[12].mxu1  ;;  %v15971_v23 = vld [vmem:[%s19944_s1 + $0x1d0] sm:$0xff]   ;;  %v8059_v28 = vsel %vm16228_vm2, %v17720_v43, %v17718_v41  ;;  %v15972_v29 = vld [vmem:[%s19944_s1 + $0x1d8] sm:$0xff]   ;;  %v8320_v43 = vor.u32 %v8319_v3, %v17793_v49 }
 0x28a   : > { %4494 = vst [vmem:[#allocation2 + $0xb1] sm:$0xff] %v4485_v31  ;;  %v4486_v38 = vmul.f32 1.4142135, %v4478_v36  ;;  %v4459_v42 = vadd.f32 %v14623_v34, %v17731_v54  ;;  %v4423_v45 = vpop.f32.mrb[13].mxu1  ;;  %v13318_v30 = vcombine.low %v8045_v26, %v8059_v28  ;;  %v15973_v31 = vld [vmem:[%s19944_s1 + $0x1e0] sm:$0xff]   ;;  %v8129_v2 = vsel %vm16228_vm2, %v17757_v12, %v17753_v8 }
 0x28b   : > { %4497 = vst [vmem:[#allocation2 + $0xe1] sm:$0xff] %v4488_v35  ;;  %v4457_v46 = vadd.f32 %v17731_v54, %v4423_v45  ;;  %v14624_v48 = vpop.f32.mrb[14].mxu1  ;;  %v17832_v45 = vrot.slane %v8320_v43, 4  ;;  %v15979_v3 = vld [vmem:[%s19944_s1 + $0x200] sm:$0xff]   ;;  %v8143_v6 = vsel %vm16228_vm2, %v17771_v24, %v17755_v9  ;;  %v15981_v9 = vld [vmem:[%s19944_s1 + $0x210] sm:$0xff]   ;;  %vm9055_vm12 = vcmask 1045504  }
 0x28c   : > { %4495 = vst [vmem:[#allocation2 + $0xc1] sm:$0xff] %v4486_v38  ;;  %14998 = vmatpush3.bf16.msra.mxu1 %v15965_v33  ;;  %vm4467_vm15 = vcmp.ge.f32.partialorder %v4459_v42, 0.0  ;;  %v4475_v50 = vmul.f32 0.2, %v4459_v42  ;;  %v4460_v51 = vadd.f32 %v14624_v48, %v17731_v54  ;;  %v4426_v55 = vpop.f32.mrb[15].mxu1  ;;  %v8330_v33 = vrot.slane %v8328_v7, 4 }
 0x28d   : > { %vm4465_vm0 = vcmp.ge.f32.partialorder %v4457_v46, 0.0  ;;  %v4473_v56 = vmul.f32 0.2, %v4457_v46  ;;  %14999 = vmatprep.subr.bf16.mxu1 %v15966_v20  ;;  %v4458_v58 = vadd.f32 %v17731_v54, %v4426_v55  ;;  %v15974_v48 = vld [vmem:[%s19944_s1 + $0x1e8] sm:$0xff]   ;;  %v13334_v26 = vld [vmem:[%s16157_s24 + $0xf0] sm:$0xf] }
 0x28e   : > { %v4483_v11 = vsel %vm4467_vm15, %v4459_v42, %v4475_v50  ;;  %vm4468_vm1 = vcmp.ge.f32.partialorder %v4460_v51, 0.0  ;;  %v4476_v13 = vmul.f32 0.2, %v4460_v51  ;;  %v13336_v28 = vld [vmem:[%s16157_s24 + $0xf8] sm:$0xf] }
 0x28f   : > { %v4491_v17 = vmul.f32 1.4142135, %v4483_v11  ;;  %v4481_v18 = vsel %vm4465_vm0, %v4457_v46, %v4473_v56  ;;  %vm4466_vm3 = vcmp.ge.f32.partialorder %v4458_v58, 0.0  ;;  %v4474_v57 = vmul.f32 0.2, %v4458_v58  ;;  %v15976_v56 = vld [vmem:[%s19944_s1 + $0x1f0] sm:$0xff]  }
 0x290   : > { %v4489_v60 = vmul.f32 1.4142135, %v4481_v18  ;;  %v4484_v21 = vsel %vm4468_vm1, %v4460_v51, %v4476_v13  ;;  %15000 = vmatpush3.bf16.msra.mxu1 %v15966_v20  ;;  %v8073_v11 = vsel %vm16228_vm2, %v17735_v61, %v17722_v44  ;;  %v8087_v13 = vsel %vm16228_vm2, %v17737_v63, %v17733_v39  ;;  %v15980_v44 = vld [vmem:[%s19944_s1 + $0x208] sm:$0xff]  }
 0x291   : > { %4500 = vst [vmem:[#allocation2 + $0x111] sm:$0xff] %v4491_v17  ;;  %v4492_v1 = vmul.f32 1.4142135, %v4484_v21  ;;  %v4482_v62 = vsel %vm4466_vm3, %v4458_v58, %v4474_v57  ;;  %15009 = vmatprep.subr.bf16.mxu1 %v15968_v15  ;;  %v8334_v17 = vor.u32 %v8333_v37, %v8330_v33  ;;  %v13319_v18 = vcombine.low %v8073_v11, %v8087_v13  ;;  %v13340_v43 = vld [vmem:[%s16157_s24 + $0x108] sm:$0xf] }
 0x292   : > { %4498 = vst [vmem:[#allocation2 + $0xf1] sm:$0xff] %v4489_v60  ;;  %v4490_v22 = vmul.f32 1.4142135, %v4482_v62  ;;  %v8326_v62 = vsel %vm16228_vm2, %v17832_v45, %v17823_v59  ;;  %v8342_v37 = vshrl.u32 %v13334_v26, 16  ;;  %v15984_v45 = vld [vmem:[%s19944_s1 + $0x228] sm:$0xff]  }
 0x293   : > { %4501 = vst [vmem:[#allocation2 + $0x121] sm:$0xff] %v4492_v1  ;;  %15002 = vmatmul.mubr.bf16.vlgmr.msra.gmra.mrb[16].mxu1 %v15969_v47  ;;  %v15978_v47 = vld [vmem:[%s19944_s1 + $0x1f8] sm:$0xff]   ;;  %v8335_v63 = vrot.slane %v8334_v17, 4  ;;  %v13339_v11 = vld [vmem:[%s16157_s24 + $0x104] sm:$0x1] }
 0x294   : > { %4499 = vst [vmem:[#allocation2 + $0x101] sm:$0xff] %v4490_v22  ;;  %15010 = vmatpush3.bf16.msra.mxu1 %v15968_v15  ;;  %15005 = vmatprep.mubr.bf16.mxu1 %v15975_v14  ;;  %v8101_v14 = vsel %vm16228_vm2, %v17749_v4, %v17739_v0  ;;  %v13341_v13 = vld [vmem:[%s16157_s24 + $0x10c] sm:$0x1] }
 0x295   : > { %15011 = vmatprep.subr.bf16.mxu1 %v15970_v19  ;;  %v13320_v61 = vcombine.low %v8101_v14, %v8115_v16  ;;  %v8340_v24 = vsel %vm16228_vm2, %v8335_v63, %v17830_v40 }
 0x298   : > { %15012 = vmatpush3.bf16.msra.mxu1 %v15970_v19 }
 0x299   : > { %15013 = vmatprep.subr.bf16.mxu1 %v15971_v23 }
 0x29b   : > { %15006 = vmatmul.mubr.bf16.gmra.mrb[20].mxu1 %v15977_v25  ;;  %v13321_v25 = vcombine.low %v8129_v2, %v8143_v6  ;;  %v8393_v2 = vshll.u32 %v13341_v13, 16  ;;  %v15986_v6 = vld [vmem:[%s19944_s1 + $0x238] sm:$0xff]  }
 0x29c   : > { %15014 = vmatpush3.bf16.msra.mxu1 %v15971_v23  ;;  %15025 = vmatprep.mubr.bf16.mxu1 %v13318_v30 }
 0x29d   : > { %15015 = vmatprep.subr.bf16.mxu1 %v15972_v29 }
 0x2a0   : > { %15016 = vmatpush3.bf16.msra.mxu1 %v15972_v29 }
 0x2a1   : > { %15017 = vmatprep.subr.bf16.mxu1 %v15973_v31 }
 0x2a2   : > { %v14835_v32 = vpop.f32.mrb[8].mxu0 }
 0x2a3   : > { %v6354_v5 = vadd.f32 %v14835_v32, %v17731_v54  ;;  %v6306_v41 = vpop.f32.mrb[9].mxu0 }
 0x2a4   : > { %v6352_v35 = vadd.f32 %v17731_v54, %v6306_v41  ;;  %v14836_v36 = vpop.f32.mrb[10].mxu0  ;;  %15018 = vmatpush3.bf16.msra.mxu1 %v15973_v31  ;;  %v15982_v31 = vld [vmem:[%s19944_s1 + $0x218] sm:$0xff]   ;;  %v13338_v41 = vld [vmem:[%s16157_s24 + $0x100] sm:$0xf] }
 0x2a5   : > { %vm6362_vm4 = vcmp.ge.f32.partialorder %v6354_v5, 0.0  ;;  %v6370_v38 = vmul.f32 0.2, %v6354_v5  ;;  %v6355_v20 = vadd.f32 %v14836_v36, %v17731_v54  ;;  %v6309_v52 = vpop.f32.mrb[11].mxu0  ;;  %15019 = vmatprep.subr.bf16.mxu1 %v15974_v48  ;;  %v8373_v40 = vshll.u32 %v13338_v41, 16 }
 0x2a6   : > { %vm6360_vm5 = vcmp.ge.f32.partialorder %v6352_v35, 0.0  ;;  %v6368_v27 = vmul.f32 0.2, %v6352_v35  ;;  %v6353_v34 = vadd.f32 %v17731_v54, %v6309_v52  ;;  %v8359_v52 = vshll.u32 %v13336_v28, 16 }
 0x2a7   : > { %v6378_v42 = vsel %vm6362_vm4, %v6354_v5, %v6370_v38  ;;  %vm6363_vm6 = vcmp.ge.f32.partialorder %v6355_v20, 0.0  ;;  %v6371_v7 = vmul.f32 0.2, %v6355_v20  ;;  %v13362_v5 = vcombine.low %v8326_v62, %v8340_v24 }
 0x2a8   : > { %v6386_v46 = vmul.f32 1.4142135, %v6378_v42  ;;  %v6376_v10 = vsel %vm6360_vm5, %v6352_v35, %v6368_v27  ;;  %vm6361_vm7 = vcmp.ge.f32.partialorder %v6353_v34, 0.0  ;;  %v6369_v15 = vmul.f32 0.2, %v6353_v34  ;;  %15020 = vmatpush3.bf16.msra.mxu1 %v15974_v48  ;;  %v15983_v27 = vld [vmem:[%s19944_s1 + $0x220] sm:$0xff]  }
 0x2a9   : > { %v6384_v49 = vmul.f32 1.4142135, %v6376_v10  ;;  %v6379_v50 = vsel %vm6363_vm6, %v6355_v20, %v6371_v7  ;;  %15021 = vmatprep.subr.bf16.mxu1 %v15976_v56  ;;  %v8345_v38 = vshll.u32 %v13334_v26, 16  ;;  %v8356_v20 = vshrl.u32 %v13336_v28, 16 }
 0x2aa   : > { %6395 = vst [vmem:[#allocation2 + $0x171] sm:$0xff] %v6386_v46  ;;  %v6387_v51 = vmul.f32 1.4142135, %v6379_v50  ;;  %v6377_v55 = vsel %vm6361_vm7, %v6353_v34, %v6369_v15  ;;  %v8370_v34 = vshrl.u32 %v13338_v41, 16  ;;  %v8384_v42 = vshrl.u32 %v13340_v43, 16 }
 0x2ab   : > { %6393 = vst [vmem:[#allocation2 + $0x151] sm:$0xff] %v6384_v49  ;;  %v6385_v58 = vmul.f32 1.4142135, %v6377_v55  ;;  %v14839_v39 = vpop.f32.mrb[12].mxu0  ;;  %v8387_v7 = vshll.u32 %v13340_v43, 16  ;;  %v8344_v46 = vrot.slane %v8342_v37, 4 }
 0x2ac   : > { %6396 = vst [vmem:[#allocation2 + $0x181] sm:$0xff] %v6387_v51  ;;  %15022 = vmatpush3.bf16.msra.mxu1 %v15976_v56  ;;  %v6358_v57 = vadd.f32 %v14839_v39, %v17731_v54  ;;  %v6322_v19 = vpop.f32.mrb[13].mxu0  ;;  %v8347_v10 = vrot.slane %v8345_v38, 5  ;;  %v8358_v48 = vrot.slane %v8356_v20, 4  ;;  %v8361_v15 = vrot.slane %v8359_v52, 5 }
 0x2ad   : > { %6394 = vst [vmem:[#allocation2 + $0x161] sm:$0xff] %v6385_v58  ;;  %15023 = vmatprep.subr.bf16.mxu1 %v15978_v47  ;;  %v6356_v0 = vadd.f32 %v17731_v54, %v6322_v19  ;;  %v14840_v4 = vpop.f32.mrb[14].mxu0  ;;  %v13335_v49 = vld [vmem:[%s16157_s24 + $0xf4] sm:$0x1]  ;;  %v13337_v50 = vld [vmem:[%s16157_s24 + $0xfc] sm:$0x1] }
 0x2ae   : > { %vm6366_vm8 = vcmp.ge.f32.partialorder %v6358_v57, 0.0  ;;  %v6374_v60 = vmul.f32 0.2, %v6358_v57  ;;  %v6359_v21 = vadd.f32 %v14840_v4, %v17731_v54  ;;  %v6325_v1 = vpop.f32.mrb[15].mxu0  ;;  %v13342_v51 = vld [vmem:[%s16157_s24 + $0x110] sm:$0xf]  ;;  %v8348_v14 = vor.u32 %v8347_v10, %v8344_v46 }
 0x2af   : > { %vm6364_vm9 = vcmp.ge.f32.partialorder %v6356_v0, 0.0  ;;  %v6372_v8 = vmul.f32 0.2, %v6356_v0  ;;  %v6357_v12 = vadd.f32 %v17731_v54, %v6325_v1  ;;  %v8372_v55 = vrot.slane %v8370_v34, 4  ;;  %v9106_v46 = vld [vmem:[#allocation2 + $0x140] sm:$0xff] }
 0x2b0   : > { %15024 = vmatpush3.bf16.msra.mxu1 %v15978_v47  ;;  %v6382_v22 = vsel %vm6366_vm8, %v6358_v57, %v6374_v60  ;;  %vm6367_vm10 = vcmp.ge.f32.partialorder %v6359_v21, 0.0  ;;  %v6375_v23 = vmul.f32 0.2, %v6359_v21  ;;  %v8375_v56 = vrot.slane %v8373_v40, 5  ;;  %v15985_v57 = vld [vmem:[%s19944_s1 + $0x230] sm:$0xff]  }
 0x2b1   : > { %15033 = vmatprep.subr.bf16.mxu1 %v15979_v3  ;;  %v6390_v29 = vmul.f32 1.4142135, %v6382_v22  ;;  %v6380_v30 = vsel %vm6364_vm9, %v6356_v0, %v6372_v8  ;;  %vm6365_vm11 = vcmp.ge.f32.partialorder %v6357_v12, 0.0  ;;  %v6373_v54 = vmul.f32 0.2, %v6357_v12  ;;  %v8636_v40 = vld [vmem:[#allocation2 + $0x10] sm:$0xff] }
 0x2b2   : > { %v6388_v32 = vmul.f32 1.4142135, %v6380_v30  ;;  %v6383_v59 = vsel %vm6367_vm10, %v6359_v21, %v6375_v23  ;;  %v8386_v58 = vrot.slane %v8384_v42, 4  ;;  %v8389_v47 = vrot.slane %v8387_v7, 5  ;;  %v13343_v8 = vld [vmem:[%s16157_s24 + $0x114] sm:$0x1] }
 0x2b3   : > { %15026 = vmatmul.mubr.bf16.vlgmr.msra.gmra.mrb[16].mxu1 %v13319_v18  ;;  %6399 = vst [vmem:[#allocation2 + $0x1b1] sm:$0xff] %v6390_v29  ;;  %v6391_v33 = vmul.f32 1.4142135, %v6383_v59  ;;  %v6381_v35 = vsel %vm6365_vm11, %v6357_v12, %v6373_v54  ;;  %v8351_v16 = vshll.u32 %v13335_v49, 16  ;;  %v8362_v17 = vor.u32 %v8361_v15, %v8358_v48  ;;  %v13345_v29 = vld [vmem:[%s16157_s24 + $0x11c] sm:$0x1] }
 0x2b4   : > { %15034 = vmatpush3.bf16.msra.mxu1 %v15979_v3  ;;  %15029 = vmatprep.mubr.bf16.mxu1 %v13320_v61  ;;  %6397 = vst [vmem:[#allocation2 + $0x191] sm:$0xff] %v6388_v32  ;;  %v6389_v36 = vmul.f32 1.4142135, %v6381_v35  ;;  %v13344_v3 = vld [vmem:[%s16157_s24 + $0x118] sm:$0xf]  ;;  %v8365_v18 = vshll.u32 %v13337_v50, 16  ;;  %v8376_v19 = vor.u32 %v8375_v56, %v8372_v55  ;;  %v8390_v4 = vor.u32 %v8389_v47, %v8386_v58 }
 0x2b5   : > { %15035 = vmatprep.subr.bf16.mxu1 %v15980_v44  ;;  %6400 = vst [vmem:[#allocation2 + $0x1c1] sm:$0xff] %v6391_v33  ;;  %v8401_v61 = vshll.u32 %v13342_v51, 16  ;;  %v8412_v39 = vshrl.u32 %v13344_v3, 16  ;;  %v8415_v63 = vshll.u32 %v13344_v3, 16  ;;  %v8379_v0 = vshll.u32 %v13339_v11, 16  ;;  %v8656_v7 = vld [vmem:[#allocation2 + $0xb0] sm:$0xff] }
 0x2b6   : > { %6398 = vst [vmem:[#allocation2 + $0x1a1] sm:$0xff] %v6389_v36  ;;  %v8349_v60 = vrot.slane %v8348_v14, 4  ;;  %v8353_v21 = vrot.slane %v8351_v16, 5  ;;  %v8363_v1 = vrot.slane %v8362_v17, 4  ;;  %v8367_v62 = vrot.slane %v8365_v18, 5  ;;  %v9126_v56 = vld [vmem:[#allocation2 + $0x1e0] sm:$0xff] }
 0x2b7   : > { %v8414_v24 = vrot.slane %v8412_v39, 4  ;;  %v8417_v22 = vrot.slane %v8415_v63, 5  ;;  %v8377_v23 = vrot.slane %v8376_v19, 4  ;;  %v8391_v26 = vrot.slane %v8390_v4, 4  ;;  %v8637_v42 = vld [vmem:[#allocation2 + $0x18] sm:$0x3] }
 0x2b8   : > { %15036 = vmatpush3.bf16.msra.mxu1 %v15980_v44  ;;  %v8398_v44 = vshrl.u32 %v13342_v51, 16  ;;  %v8395_v28 = vrot.slane %v8393_v2, 5  ;;  %v8354_v30 = vsel %vm16228_vm2, %v8349_v60, %v8353_v21  ;;  %v8407_v54 = vshll.u32 %v13343_v8, 16  ;;  %v9107_v10 = vld [vmem:[#allocation2 + $0x148] sm:$0x3]  ;;  %v15987_v3 = vld [vmem:[%s19946_s3 + $0x40] sm:$0xff]  }
 0x2b9   : > { %15037 = vmatprep.subr.bf16.mxu1 %v15981_v9  ;;  %v8418_v59 = vor.u32 %v8417_v22, %v8414_v24  ;;  %v8736_v48 = vmul.f32 0.375, %v8636_v40  ;;  %v8737_v15 = vmul.f32 0.375, %v8637_v42  ;;  %v17926_v49 = vmul.f32 0.375, %v8656_v7  ;;  %v9127_v58 = vld [vmem:[#allocation2 + $0x1e8] sm:$0x3]  ;;  %15057 = vmatprep.subr.bf16.mxu0 %v15987_v3 }
 0x2ba   : > { %v8400_v12 = vrot.slane %v8398_v44, 4  ;;  %v8396_v43 = vsel %vm16228_vm2, %v8391_v26, %v8395_v28  ;;  %v8409_v35 = vrot.slane %v8407_v54, 5  ;;  %v9206_v51 = vmul.f32 0.375, %v9106_v46  ;;  %15058 = vmatpush3.bf16.msra.mxu0 %v15987_v3 }
 0x2bb   : > { %15030 = vmatmul.mubr.bf16.gmra.mrb[20].mxu1 %v13321_v25  ;;  %v8381_v25 = vrot.slane %v8379_v0, 5  ;;  %v8419_v38 = vrot.slane %v8418_v59, 4  ;;  %v9207_v55 = vmul.f32 0.375, %v9107_v10  ;;  %v8778_v47 = vrot.slane %v8736_v48, 1  ;;  %v8638_v48 = vld [vmem:[#allocation2 + $0x20] sm:$0xff] }
 0x2bc   : > { %15038 = vmatpush3.bf16.msra.mxu1 %v15981_v9  ;;  %15049 = vmatprep.mubr.bf16.mxu1 %v13362_v5  ;;  %v8403_v9 = vrot.slane %v8401_v61, 5  ;;  %v8421_v5 = vshll.u32 %v13345_v29, 16  ;;  %v8779_v53 = vrot.slane %v8737_v15, 1  ;;  %v17931_v11 = vmul.f32 0.125, %v8656_v7  ;;  %v15995_v15 = vld [vmem:[%s19946_s3] sm:$0xff]  }
 0x2bd   : > { %15039 = vmatprep.subr.bf16.mxu1 %v15982_v31  ;;  %v8382_v41 = vsel %vm16228_vm2, %v8377_v23, %v8381_v25  ;;  %v8988_v13 = vrot.slane %v17926_v49, 1  ;;  %v17934_v16 = vmul.f32 0.375, %v9126_v56  ;;  %v9167_v17 = vmul.f32 0.375, %v9127_v58 }
 0x2be   : > { %v8404_v32 = vor.u32 %v8403_v9, %v8400_v12  ;;  %v13364_v36 = vcombine.low %v8382_v41, %v8396_v43  ;;  %v8423_v20 = vrot.slane %v8421_v5, 5  ;;  %20122 = vst [vmem:[#allocation3_spill] sm:$0xff] %v17931_v11  ;;  %v9246_v18 = vrot.slane %v9206_v51, 1  ;;  %v15989_v9 = vld [vmem:[%s19946_s3 + $0x50] sm:$0xff]  }
 0x2bf   : > { %20123 = vst [vmem:[#allocation4_spill] sm:$0xff] %v17934_v16  ;;  %v9247_v44 = vrot.slane %v9207_v55, 1  ;;  %v17936_v61 = vmul.f32 0.125, %v8636_v40  ;;  %v8677_v39 = vmul.f32 0.125, %v8637_v42  ;;  %v17946_v0 = vmul.f32 0.125, %v9126_v56  ;;  %v15993_v42 = vld [vmem:[%s19946_s3 + $0x70] sm:$0xff]  }
 0x2c0   : > { %15040 = vmatpush3.bf16.msra.mxu1 %v15982_v31  ;;  %v8368_v31 = vsel %vm16228_vm2, %v8363_v1, %v8367_v62  ;;  %v8405_v37 = vrot.slane %v8404_v32, 4  ;;  %v9457_v60 = vrot.slane %v9167_v17, 1  ;;  %v17954_v62 = vmul.f32 0.125, %v9106_v46  ;;  %v15990_v32 = vld [vmem:[%s19946_s3 + $0x58] sm:$0xff]   ;;  %v8640_v51 = vld [vmem:[#allocation2 + $0x30] sm:$0xff]  ;;  %v8642_v56 = vld [vmem:[#allocation2 + $0x40] sm:$0xff] }
 0x2c1   : > { %15041 = vmatprep.subr.bf16.mxu1 %v15983_v27  ;;  %v13363_v33 = vcombine.low %v8354_v30, %v8368_v31  ;;  %20124 = vst [vmem:[#allocation5_spill] sm:$0xff] %v17946_v0  ;;  %v9059_v21 = vrot.slane %v17936_v61, 2  ;;  %v9060_v1 = vrot.slane %v8677_v39, 2  ;;  %v9147_v8 = vmul.f32 0.125, %v9107_v10  ;;  %v15994_v10 = vld [vmem:[%s19946_s3 + $0x78] sm:$0xff]  }
 0x2c2   : > { %v8410_v52 = vsel %vm16228_vm2, %v8405_v37, %v8409_v35  ;;  %20126 = vst [vmem:[#allocation7_spill] sm:$0xff] %v17954_v62  ;;  %v9526_v25 = vrot.slane %v17954_v62, 2  ;;  %v17966_v30 = vmul.f32 0.125, %v9127_v58  ;;  %v15991_v37 = vld [vmem:[%s19946_s3 + $0x60] sm:$0xff]   ;;  %v8641_v55 = vld [vmem:[#allocation2 + $0x38] sm:$0x3] }
 0x2c3   : > { %v9527_v26 = vrot.slane %v9147_v8, 2  ;;  %v9061_v29 = vsel %vm9055_vm12, %v9059_v21, %v9060_v1  ;;  %v9187_v31 = vadd.f32 %v9167_v17, %v9147_v8  ;;  %v8643_v58 = vld [vmem:[#allocation2 + $0x48] sm:$0x3]  ;;  %v8740_v3 = vmul.f32 0.375, %v8640_v51  ;;  %v18033_v21 = vld [vmem:[#allocation2] sm:$0xff]  ;;  %v8668_v62 = vld [vmem:[#allocation2 + $0x110] sm:$0xff] }
 0x2c4   : > { %15042 = vmatpush3.bf16.msra.mxu1 %v15983_v27  ;;  %v8424_v27 = vsel %vm16228_vm2, %v8419_v38, %v8423_v20  ;;  %vm8774_vm2 = vcmask 1046528   ;;  %20128 = vst [vmem:[#allocation9_spill] sm:$0xff] %v17966_v30  ;;  %v15992_v38 = vld [vmem:[%s19946_s3 + $0x68] sm:$0xff]  }
 0x2c5   : > { %15043 = vmatprep.subr.bf16.mxu1 %v15984_v45  ;;  %v13365_v34 = vcombine.low %v8410_v52, %v8424_v27  ;;  %v17939_v63 = vsel %vm8774_vm2, %v8778_v47, %v8779_v53  ;;  %v17950_v2 = vsel %vm8774_vm2, %v9246_v18, %v9247_v44  ;;  %v9528_v41 = vsel %vm9055_vm12, %v9526_v25, %v9527_v26 }
 0x2c6   : > { %v8956_v19 = vadd.f32 %v17931_v11, %v17939_v63  ;;  %20125 = vst [vmem:[#allocation6_spill] sm:$0xff] %v17950_v2  ;;  %v9426_v22 = vadd.f32 %v17946_v0, %v17950_v2  ;;  %v8738_v47 = vmul.f32 0.375, %v8638_v48  ;;  %v18023_v18 = vmul.f32 0.125, %v8640_v51 }
 0x2c8   : > { %15044 = vmatpush3.bf16.msra.mxu1 %v15984_v45  ;;  %v8657_v45 = vld [vmem:[#allocation2 + $0xb8] sm:$0x3]  ;;  %v8781_v1 = vrot.slane %v8738_v47, 1  ;;  %v9065_v25 = vrot.slane %v18023_v18, 2  ;;  %v18070_v47 = vld [vmem:[#allocation2 + $0xa8] sm:$0x3] }
 0x2c9   : > { %15045 = vmatprep.subr.bf16.mxu1 %v15985_v57  ;;  %v8697_v50 = vmul.f32 0.375, %v8657_v45  ;;  %v17963_v28 = vmul.f32 0.125, %v8657_v45 }
 0x2cb   : > { %v8989_v14 = vrot.slane %v8697_v50, 1  ;;  %v8717_v12 = vadd.f32 %v8697_v50, %v8677_v39  ;;  %20127 = vst [vmem:[#allocation8_spill] sm:$0xff] %v17963_v28  ;;  %v19953_v43 = vrot.slane %v17963_v28, 1  ;;  %v8639_v50 = vld [vmem:[#allocation2 + $0x28] sm:$0x3]  ;;  %v18027_v39 = vmul.f32 0.125, %v8642_v56 }
 0x2cc   : > { %15046 = vmatpush3.bf16.msra.mxu1 %v15985_v57  ;;  %v15988_v57 = vld [vmem:[%s19946_s3 + $0x48] sm:$0xff]   ;;  %v18021_v17 = vmul.f32 0.125, %v8639_v50 }
 0x2cd   : > { %15047 = vmatprep.subr.bf16.mxu1 %v15986_v6  ;;  %v8990_v4 = vsel %vm8774_vm2, %v8988_v13, %v8989_v14  ;;  %15059 = vmatprep.subr.bf16.mxu0 %v15988_v57  ;;  %v8828_v54 = vadd.f32 %v8779_v53, %v8717_v12  ;;  %v18015_v53 = vmul.f32 0.375, %v8639_v50  ;;  %v18017_v13 = vmul.f32 0.375, %v8641_v55  ;;  %20138 = vst [vmem:[#allocation19_spill] sm:$0xff] %v18027_v39 }
 0x2ce   : > { %15060 = vmatpush3.bf16.msra.mxu0 %v15988_v57  ;;  %v9026_v24 = vadd.f32 %v8990_v4, %v8956_v19  ;;  %v18019_v14 = vmul.f32 0.125, %v8638_v48  ;;  %20136 = vst [vmem:[#allocation17_spill] sm:$0xff] %v18021_v17  ;;  %v18029_v57 = vmul.f32 0.125, %v8643_v58  ;;  %v8742_v19 = vmul.f32 0.375, %v8642_v56  ;;  %v8648_v56 = vld [vmem:[#allocation2 + $0x70] sm:$0xff] }
 0x2cf   : > { %15061 = vmatprep.subr.bf16.mxu0 %v15989_v9  ;;  %v17978_v35 = vadd.f32 %v19953_v43, %v8828_v54  ;;  %20134 = vst [vmem:[#allocation15_spill] sm:$0xff] %v18015_v53  ;;  %20135 = vst [vmem:[#allocation16_spill] sm:$0xff] %v18017_v13  ;;  %v18031_v4 = vmul.f32 0.375, %v8643_v58  ;;  %v19951_v8 = vrot.slane %v18015_v53, 1  ;;  %v8784_v12 = vrot.slane %v8740_v3, 1  ;;  %v8654_v58 = vld [vmem:[#allocation2 + $0xa0] sm:$0xff] }
 0x2d0   : > { %15048 = vmatpush3.bf16.msra.mxu1 %v15986_v6  ;;  %v9456_v6 = vrot.slane %v17934_v16, 1  ;;  %v17971_v59 = vadd.f32 %v9061_v29, %v9026_v24  ;;  %20139 = vst [vmem:[#allocation20_spill] sm:$0xff] %v18029_v57  ;;  %v8646_v24 = vld [vmem:[#allocation2 + $0x60] sm:$0xff]  ;;  %v8647_v29 = vld [vmem:[#allocation2 + $0x68] sm:$0x3]  ;;  %v18092_v43 = vmul.f32 0.375, %v8654_v58 }
 0x2d1   : > { %20129 = vst [vmem:[#allocation10_spill] sm:$0xff] %v17978_v35  ;;  %v17997_v40 = vmul.f32 0.375, %v17978_v35  ;;  %20140 = vst [vmem:[#allocation21_spill] sm:$0xff] %v18031_v4  ;;  %v8635_v54 = vld [vmem:[#allocation2 + $0x8] sm:$0x3]  ;;  %v18057_v48 = vmul.f32 0.375, %v8647_v29 }
 0x2d2   : > { %v9458_v23 = vsel %vm8774_vm2, %v9456_v6, %v9457_v60  ;;  %15062 = vmatpush3.bf16.msra.mxu0 %v15989_v9  ;;  %v17989_v52 = vmul.f32 0.375, %v17971_v59  ;;  %v8644_v6 = vld [vmem:[#allocation2 + $0x50] sm:$0xff]  ;;  %v8645_v60 = vld [vmem:[#allocation2 + $0x58] sm:$0x3]  ;;  %v19950_v9 = vrot.slane %v18017_v13, 1  ;;  %v18060_v50 = vmul.f32 0.375, %v8635_v54 }
 0x2d3   : > { %15050 = vmatmul.mubr.bf16.vlgmr.msra.gmra.mrb[16].mxu1 %v13363_v33  ;;  %v9496_v5 = vadd.f32 %v9458_v23, %v9426_v22  ;;  %15063 = vmatprep.subr.bf16.mxu0 %v15990_v32  ;;  %v19952_v33 = vrot.slane %v17966_v30, 1  ;;  %20131 = vst [vmem:[#allocation12_spill] sm:$0xff] %v17997_v40  ;;  %v9062_v22 = vrot.slane %v18019_v14, 2  ;;  %v9063_v23 = vrot.slane %v18021_v17, 2  ;;  %20145 = vst [vmem:[#allocation26_spill] sm:$0xff] %v18057_v48 }
 0x2d4   : > { %15053 = vmatprep.mubr.bf16.mxu1 %v13364_v36  ;;  %v9297_v36 = vadd.f32 %v9247_v44, %v9187_v31  ;;  %v18025_v44 = vmul.f32 0.125, %v8641_v55  ;;  %v9068_v31 = vrot.slane %v18027_v39, 2  ;;  %20146 = vst [vmem:[#allocation27_spill] sm:$0xff] %v18060_v50  ;;  %v18065_v51 = vsel %vm8774_vm2, %v8784_v12, %v19950_v9  ;;  %v18156_v13 = vld [vmem:[#allocation2 + $0xe8] sm:$0x3] }
 0x2d5   : > { %v17986_v20 = vadd.f32 %v9528_v41, %v9496_v5  ;;  %v18043_v5 = vmul.f32 0.125, %v8644_v6  ;;  %v18045_v41 = vmul.f32 0.125, %v8645_v60  ;;  %v18068_v55 = vsel %vm9055_vm12, %v9062_v22, %v9063_v23  ;;  %v8649_v23 = vld [vmem:[#allocation2 + $0x78] sm:$0x3]  ;;  %v8660_v22 = vld [vmem:[#allocation2 + $0xd0] sm:$0xff]  ;;  %20158 = vst [vmem:[#allocation36_spill] sm:$0xff] %v18156_v13 }
 0x2d6   : > { %15064 = vmatpush3.bf16.msra.mxu0 %v15990_v32  ;;  %20137 = vst [vmem:[#allocation18_spill] sm:$0xff] %v18025_v44  ;;  %v9066_v26 = vrot.slane %v18025_v44, 2  ;;  %v9069_v32 = vrot.slane %v18029_v57, 2  ;;  %v20153_v35 = vrot.slane %v18057_v48, 1  ;;  %v18141_v48 = vmul.f32 0.125, %v18033_v21  ;;  %v8662_v57 = vld [vmem:[#allocation2 + $0xe0] sm:$0xff] }
 0x2d7   : > { %15065 = vmatprep.subr.bf16.mxu0 %v15991_v37  ;;  %v9817_v27 = vmul.f32 0.125, %v17986_v20  ;;  %20141 = vst [vmem:[#allocation22_spill] sm:$0xff] %v18043_v5  ;;  %20142 = vst [vmem:[#allocation23_spill] sm:$0xff] %v18045_v41  ;;  %v18178_v2 = vmul.f32 0.375, %v8662_v57  ;;  %v18201_v16 = vmul.f32 0.125, %v8662_v57 }
 0x2d8   : > { %v18073_v3 = vsel %vm9055_vm12, %v9065_v25, %v9066_v26  ;;  %v18085_v12 = vsel %vm9055_vm12, %v9068_v31, %v9069_v32  ;;  %v8650_v25 = vld [vmem:[#allocation2 + $0x80] sm:$0xff]  ;;  %v18115_v32 = vmul.f32 0.375, %v8648_v56 }
 0x2d9   : > { %v18003_v7 = vadd.f32 %v9817_v27, %v17989_v52  ;;  %v18048_v27 = vmul.f32 0.375, %v8645_v60  ;;  %v9072_v60 = vrot.slane %v18045_v41, 2  ;;  %20163 = vst [vmem:[#allocation41_spill] sm:$0xff] %v18178_v2  ;;  %20168 = vst [vmem:[#allocation46_spill] sm:$0xff] %v18201_v16 }
 0x2da   : > { %15066 = vmatpush3.bf16.msra.mxu0 %v15991_v37  ;;  %v19954_v37 = vrot.slane %v18031_v4, 1  ;;  %v18121_v4 = vmul.f32 0.125, %v8654_v58  ;;  %v18161_v58 = vmul.f32 0.125, %v8660_v22 }
 0x2db   : > { %15054 = vmatmul.mubr.bf16.gmra.mrb[20].mxu1 %v13365_v34  ;;  %v17994_v34 = vadd.f32 %v19952_v33, %v9297_v36  ;;  %15067 = vmatprep.subr.bf16.mxu0 %v15992_v38  ;;  %20132 = vst [vmem:[#allocation13_spill] sm:$0xff] %v18003_v7  ;;  %v8787_v36 = vrot.slane %v8742_v19, 1  ;;  %20143 = vst [vmem:[#allocation24_spill] sm:$0xff] %v18048_v27  ;;  %v18075_v19 = vmul.f32 0.125, %v8647_v29  ;;  %v18090_v33 = vmul.f32 0.125, %v8648_v56 }
 0x2dc   : > { %v18104_v29 = vmul.f32 0.125, %v8650_v25  ;;  %v18106_v7 = vld [vmem:[#allocation2 + $0xd8] sm:$0x3]  ;;  %20159 = vst [vmem:[#allocation37_spill] sm:$0xff] %v18161_v58  ;;  %v8958_v39 = vadd.f32 %v18161_v58, %v18065_v51 }
 0x2dd   : > { %20130 = vst [vmem:[#allocation11_spill] sm:$0xff] %v17994_v34  ;;  %v9703_v45 = vmul.f32 0.125, %v17994_v34  ;;  %20147 = vst [vmem:[#allocation28_spill] sm:$0xff] %v18075_v19 }
 0x2de   : > { %15068 = vmatpush3.bf16.msra.mxu0 %v15992_v38  ;;  %v8744_v38 = vmul.f32 0.375, %v8644_v6  ;;  %v9071_v6 = vrot.slane %v18043_v5, 2  ;;  %20150 = vst [vmem:[#allocation31_spill] sm:$0xff] %v18104_v29 }
 0x2df   : > { %v18007_v46 = vadd.f32 %v9703_v45, %v17997_v40  ;;  %15069 = vmatprep.subr.bf16.mxu0 %v15993_v42  ;;  %v18055_v45 = vmul.f32 0.125, %v8646_v24 }
 0x2e1   : > { %20133 = vst [vmem:[#allocation14_spill] sm:$0xff] %v18007_v46  ;;  %20144 = vst [vmem:[#allocation25_spill] sm:$0xff] %v18055_v45  ;;  %v9074_v9 = vrot.slane %v18055_v45, 2  ;;  %v20151_v46 = vrot.slane %v18048_v27, 1  ;;  %v18128_v27 = vmul.f32 0.375, %v8650_v25  ;;  %v18146_v25 = vmul.f32 0.375, %v18106_v7 }
 0x2e2   : > { %15070 = vmatpush3.bf16.msra.mxu0 %v15993_v42  ;;  %v18053_v42 = vsel %vm8774_vm2, %v8781_v1, %v19951_v8  ;;  %v18082_v1 = vsel %vm8774_vm2, %v8787_v36, %v19954_v37  ;;  %v8651_v8 = vld [vmem:[#allocation2 + $0x88] sm:$0x3]  ;;  %v18095_v36 = vmul.f32 0.375, %v18070_v47  ;;  %v18102_v37 = vmul.f32 0.125, %v8649_v23 }
 0x2e3   : > { %15071 = vmatprep.subr.bf16.mxu0 %v15994_v10  ;;  %20148 = vst [vmem:[#allocation29_spill] sm:$0xff] %v18082_v1  ;;  %20155 = vst [vmem:[#allocation33_spill] sm:$0xff] %v18146_v25  ;;  %v9056_v45 = vrot.slane %v18141_v48, 2  ;;  %v8995_v30 = vrot.slane %v18146_v25, 1  ;;  %v9080_v25 = vrot.slane %v18104_v29, 2 }
 0x2e4   : > { %20149 = vst [vmem:[#allocation30_spill] sm:$0xff] %v18095_v36  ;;  %v8986_v41 = vrot.slane %v18095_v36, 1  ;;  %v18208_v29 = vld [vmem:[#allocation2 + $0x118] sm:$0x3] }
 0x2e5   : > { %20169 = vst [vmem:[#allocation47_spill] sm:$0xff] %v18208_v29 }
 0x2e6   : > { %15072 = vmatpush3.bf16.msra.mxu0 %v15994_v10  ;;  %v8746_v10 = vmul.f32 0.375, %v8646_v24  ;;  %v8790_v24 = vrot.slane %v8744_v38, 1  ;;  %v18099_v38 = vsel %vm9055_vm12, %v9071_v6, %v9072_v60  ;;  %v18117_v6 = vmul.f32 0.375, %v8649_v23  ;;  %v8658_v60 = vld [vmem:[#allocation2 + $0xc0] sm:$0xff] }
 0x2e7   : > { %15081 = vmatprep.subr.bf16.mxu0 %v15995_v15  ;;  %v8734_v15 = vmul.f32 0.375, %v18033_v21  ;;  %v8985_v23 = vrot.slane %v18092_v43, 1  ;;  %v18169_v17 = vmul.f32 0.125, %v8658_v60 }
 0x2e8   : > { %v8793_v26 = vrot.slane %v8746_v10, 1  ;;  %v9075_v10 = vrot.slane %v18075_v19, 2  ;;  %v18111_v40 = vsel %vm8774_vm2, %v8790_v24, %v20151_v46  ;;  %v18119_v19 = vld [vmem:[#allocation2 + $0xc8] sm:$0x3]  ;;  %v18130_v46 = vmul.f32 0.375, %v8651_v8 }
 0x2e9   : > { %v8775_v31 = vrot.slane %v8734_v15, 1  ;;  %v18113_v15 = vmul.f32 0.125, %v8651_v8  ;;  %v20154_v24 = vrot.slane %v18060_v50, 1  ;;  %v8664_v50 = vld [vmem:[#allocation2 + $0xf0] sm:$0xff]  ;;  %v18165_v8 = vld [vmem:[#allocation2 + $0xf8] sm:$0x3]  ;;  %v8987_v36 = vsel %vm8774_vm2, %v8985_v23, %v8986_v41 }
 0x2ea   : > { %v18126_v34 = vsel %vm8774_vm2, %v8793_v26, %v20153_v35  ;;  %v18143_v35 = vmul.f32 0.375, %v8660_v22  ;;  %v18149_v26 = vmul.f32 0.125, %v8635_v54  ;;  %v18159_v21 = vsel %vm9055_vm12, %v9074_v9, %v9075_v10  ;;  %20160 = vst [vmem:[#allocation38_spill] sm:$0xff] %v18165_v8  ;;  %20161 = vst [vmem:[#allocation39_spill] sm:$0xff] %v18169_v17  ;;  %v8666_v22 = vld [vmem:[#allocation2 + $0x100] sm:$0xff] }
 0x2eb   : > { %20152 = vst [vmem:[#allocation32_spill] sm:$0xff] %v18113_v15  ;;  %v18135_v56 = vsel %vm8774_vm2, %v8775_v31, %v20154_v24  ;;  %v18151_v31 = vmul.f32 0.375, %v8658_v60  ;;  %v18154_v24 = vmul.f32 0.375, %v18119_v19  ;;  %v18174_v10 = vld [vmem:[#allocation2 + $0x108] sm:$0x3]  ;;  %v18181_v54 = vmul.f32 0.375, %v18156_v13 }
 0x2ec   : > { %20156 = vst [vmem:[#allocation34_spill] sm:$0xff] %v18149_v26  ;;  %v8955_v53 = vadd.f32 %v18121_v4, %v18135_v56  ;;  %v9057_v9 = vrot.slane %v18149_v26, 2  ;;  %20162 = vst [vmem:[#allocation40_spill] sm:$0xff] %v18174_v10  ;;  %v8994_v5 = vrot.slane %v18143_v35, 1  ;;  %v18185_v23 = vmul.f32 0.375, %v8664_v50 }
 0x2ed   : > { %20157 = vst [vmem:[#allocation35_spill] sm:$0xff] %v18154_v24  ;;  %20164 = vst [vmem:[#allocation42_spill] sm:$0xff] %v18181_v54  ;;  %v8991_v60 = vrot.slane %v18151_v31, 1  ;;  %v8992_v41 = vrot.slane %v18154_v24, 1  ;;  %v18188_v44 = vmul.f32 0.375, %v18165_v8  ;;  %v18190_v28 = vmul.f32 0.375, %v8666_v22 }
 0x2ee   : > { %v9025_v26 = vadd.f32 %v8987_v36, %v8955_v53  ;;  %v18193_v0 = vmul.f32 0.375, %v18174_v10  ;;  %v8957_v13 = vadd.f32 %v18169_v17, %v18053_v42  ;;  %v9058_v24 = vsel %vm9055_vm12, %v9056_v45, %v9057_v9  ;;  %v8670_v9 = vld [vmem:[#allocation2 + $0x120] sm:$0xff] }
 0x2ef   : > { %20165 = vst [vmem:[#allocation43_spill] sm:$0xff] %v18188_v44  ;;  %20166 = vst [vmem:[#allocation44_spill] sm:$0xff] %v18190_v28  ;;  %v8996_v8 = vsel %vm8774_vm2, %v8994_v5, %v8995_v30  ;;  %v8997_v53 = vrot.slane %v18178_v2, 1  ;;  %v8998_v36 = vrot.slane %v18181_v54, 1  ;;  %v18206_v10 = vmul.f32 0.125, %v8664_v50 }
 0x2f0   : > { %20167 = vst [vmem:[#allocation45_spill] sm:$0xff] %v18193_v0  ;;  %v8993_v17 = vsel %vm8774_vm2, %v8991_v60, %v8992_v41  ;;  %v18211_v11 = vmul.f32 0.125, %v8666_v22  ;;  %v9000_v58 = vrot.slane %v18185_v23, 1  ;;  %v9001_v57 = vrot.slane %v18188_v44, 1  ;;  %v18217_v54 = vld [vmem:[#allocation2 + $0x128] sm:$0x3] }
 0x2f1   : > { %v9096_v45 = vadd.f32 %v9058_v24, %v9025_v26  ;;  %v9003_v30 = vrot.slane %v18190_v28, 1  ;;  %v9004_v5 = vrot.slane %v18193_v0, 1  ;;  %20171 = vst [vmem:[#allocation49_spill] sm:$0xff] %v18217_v54  ;;  %v9081_v50 = vrot.slane %v18113_v15, 2 }
 0x2f2   : > { %20170 = vst [vmem:[#allocation48_spill] sm:$0xff] %v18211_v11  ;;  %v8959_v2 = vadd.f32 %v18201_v16, %v18082_v1  ;;  %v18222_v60 = vmul.f32 0.375, %v8668_v62  ;;  %v18225_v22 = vmul.f32 0.375, %v18208_v29  ;;  %v8799_v41 = vrot.slane %v18128_v27, 1 }
 0x2f3   : > { %v9027_v26 = vadd.f32 %v8993_v17, %v8957_v13  ;;  %v9028_v24 = vadd.f32 %v8996_v8, %v8958_v39  ;;  %v8999_v44 = vsel %vm8774_vm2, %v8997_v53, %v8998_v36  ;;  %v8960_v0 = vadd.f32 %v18206_v10, %v18111_v40 }
 0x2f4   : > { %v8961_v15 = vadd.f32 %v18211_v11, %v18126_v34  ;;  %v9002_v28 = vsel %vm8774_vm2, %v9000_v58, %v9001_v57  ;;  %v18234_v1 = vmul.f32 0.375, %v8670_v9  ;;  %v18237_v16 = vmul.f32 0.375, %v18217_v54 }
 0x2f5   : > { %v9754_v29 = vmul.f32 0.125, %v9096_v45  ;;  %v9005_v27 = vsel %vm8774_vm2, %v9003_v30, %v9004_v5  ;;  %v20000_v13 = vrot.slane %v18130_v46, 1  ;;  %v18241_v17 = vmul.f32 0.125, %v8668_v62 }
 0x2f6   : > { %v9763_v39 = vmul.f32 0.375, %v17986_v20  ;;  %v9029_v8 = vadd.f32 %v8999_v44, %v8959_v2  ;;  %v9006_v53 = vrot.slane %v18222_v60, 1  ;;  %v9007_v36 = vrot.slane %v18225_v22, 1 }
 0x2f7   : > { %v9098_v58 = vadd.f32 %v18068_v55, %v9027_v26  ;;  %v9099_v57 = vadd.f32 %v18073_v3, %v9028_v24  ;;  %v9030_v54 = vadd.f32 %v9002_v28, %v8960_v0  ;;  %v18248_v11 = vmul.f32 0.125, %v8670_v9 }
 0x2f8   : > { %v9031_v45 = vadd.f32 %v9005_v27, %v8961_v15  ;;  %v20172_v30 = vrot.slane %v18117_v6, 1  ;;  %v20173_v62 = vrot.slane %v18115_v32, 1  ;;  %v9009_v2 = vrot.slane %v18234_v1, 1 }
 0x2f9   : > { %v9010_v20 = vrot.slane %v18237_v16, 1  ;;  %v18262_v44 = vsel %vm8774_vm2, %v8799_v41, %v20000_v13  ;;  %v20174_v28 = vrot.slane %v18102_v37, 2  ;;  %v20175_v55 = vrot.slane %v18090_v33, 2  ;;  %v9114_v13 = vld [vmem:[#allocation2 + $0x180] sm:$0xff] }
 0x2fa   : > { %v18255_v5 = vsel %vm8774_vm2, %v20173_v62, %v20172_v30  ;;  %v9082_v32 = vsel %vm9055_vm12, %v9080_v25, %v9081_v50  ;;  %v18273_v15 = vmul.f32 0.125, %v17971_v59  ;;  %v9772_v9 = vadd.f32 %v9763_v39, %v9754_v29 }
 0x2fb   : > { %v8962_v0 = vadd.f32 %v18241_v17, %v18255_v5  ;;  %v9079_v3 = vsel %vm9055_vm12, %v20175_v55, %v20174_v28  ;;  %v9100_v26 = vadd.f32 %v18085_v12, %v9029_v8  ;;  %v9008_v41 = vsel %vm8774_vm2, %v9006_v53, %v9007_v36 }
 0x2fc   : > { %20176 = vst [vmem:[#allocation50_spill] sm:$0xff] %v18273_v15  ;;  %v18277_v24 = vmul.f32 0.125, %v9098_v58  ;;  %v18279_v27 = vmul.f32 0.125, %v9099_v57  ;;  %v9101_v30 = vadd.f32 %v18099_v38, %v9030_v54  ;;  %v8963_v62 = vadd.f32 %v18248_v11, %v18262_v44  ;;  %v20261_v15 = vld [vmem:[#allocation17_spill] sm:$0xff] }
 0x2fd   : > { %v9102_v28 = vadd.f32 %v18159_v21, %v9031_v45  ;;  %v9011_v25 = vsel %vm8774_vm2, %v9009_v2, %v9010_v20  ;;  %v8714_v59 = vadd.f32 %v18092_v43, %v18141_v48  ;;  %v8716_v12 = vadd.f32 %v17926_v49, %v17936_v61  ;;  %v9112_v49 = vld [vmem:[#allocation2 + $0x170] sm:$0xff]  ;;  %v9113_v45 = vld [vmem:[#allocation2 + $0x178] sm:$0x3] }
 0x2fe   : > { %20177 = vst [vmem:[#allocation51_spill] sm:$0xff] %v18277_v24  ;;  %20178 = vst [vmem:[#allocation52_spill] sm:$0xff] %v18279_v27  ;;  %v18290_v29 = vmul.f32 0.375, %v9098_v58  ;;  %v9032_v50 = vadd.f32 %v9008_v41, %v8962_v0  ;;  %v8718_v39 = vadd.f32 %v18151_v31, %v18019_v14  ;;  %v8720_v38 = vadd.f32 %v18143_v35, %v18023_v18  ;;  %v9108_v31 = vld [vmem:[#allocation2 + $0x150] sm:$0xff]  ;;  %v9109_v18 = vld [vmem:[#allocation2 + $0x158] sm:$0x3] }
 0x2ff   : > { %v18296_v54 = vmul.f32 0.375, %v9099_v57  ;;  %v18299_v21 = vadd.f32 %v17989_v52, %v9772_v9  ;;  %v18301_v8 = vmul.f32 0.375, %v9100_v26  ;;  %v18304_v43 = vmul.f32 0.125, %v18070_v47  ;;  %v9110_v58 = vld [vmem:[#allocation2 + $0x160] sm:$0xff]  ;;  %v9111_v57 = vld [vmem:[#allocation2 + $0x168] sm:$0x3] }
 0x300   : > { %20179 = vst [vmem:[#allocation53_spill] sm:$0xff] %v18290_v29  ;;  %v18306_v61 = vmul.f32 0.125, %v9100_v26  ;;  %v18308_v48 = vmul.f32 0.125, %v9101_v30  ;;  %v18310_v53 = vmul.f32 0.375, %v9101_v30  ;;  %v9033_v14 = vadd.f32 %v9011_v25, %v8963_v62  ;;  %v9115_v26 = vld [vmem:[#allocation2 + $0x188] sm:$0x3] }
 0x301   : > { %20180 = vst [vmem:[#allocation54_spill] sm:$0xff] %v18296_v54  ;;  %20181 = vst [vmem:[#allocation55_spill] sm:$0xff] %v18299_v21  ;;  %v18312_v35 = vmul.f32 0.375, %v9102_v28  ;;  %v18314_v36 = vmul.f32 0.125, %v9102_v28  ;;  %v18317_v52 = vadd.f32 %v18135_v56, %v8714_v59  ;;  %v18320_v47 = vadd.f32 %v17939_v63, %v8716_v12  ;;  %v20195_v12 = vld [vmem:[#allocation7_spill] sm:$0xff]  ;;  %v20260_v24 = vld [vmem:[#allocation30_spill] sm:$0xff] }
 0x302   : > { %20182 = vst [vmem:[#allocation56_spill] sm:$0xff] %v18301_v8  ;;  %20183 = vst [vmem:[#allocation57_spill] sm:$0xff] %v18306_v61  ;;  %v18322_v2 = vadd.f32 %v9079_v3, %v9032_v50  ;;  %v18325_v20 = vadd.f32 %v18053_v42, %v8718_v39  ;;  %v18328_v0 = vadd.f32 %v18065_v51, %v8720_v38  ;;  %v18331_v55 = vmul.f32 0.125, %v18119_v19  ;;  %v20196_v50 = vld [vmem:[#allocation4_spill] sm:$0xff]  ;;  %v20197_v38 = vld [vmem:[#allocation19_spill] sm:$0xff] }
 0x303   : > { %20184 = vst [vmem:[#allocation58_spill] sm:$0xff] %v18308_v48  ;;  %20185 = vst [vmem:[#allocation59_spill] sm:$0xff] %v18310_v53  ;;  %v18333_v9 = vmul.f32 0.125, %v9112_v49  ;;  %v9212_v56 = vmul.f32 0.375, %v9112_v49  ;;  %v8885_v63 = vrot.slane %v18121_v4, 1  ;;  %v9208_v41 = vmul.f32 0.375, %v9108_v31 }
 0x304   : > { %20186 = vst [vmem:[#allocation60_spill] sm:$0xff] %v18312_v35  ;;  %20187 = vst [vmem:[#allocation61_spill] sm:$0xff] %v18314_v36  ;;  %v18337_v30 = vmul.f32 0.375, %v9109_v18  ;;  %v18339_v3 = vadd.f32 %v9082_v32, %v9033_v14  ;;  %v18342_v42 = vmul.f32 0.125, %v18106_v7  ;;  %v18344_v51 = vmul.f32 0.125, %v9108_v31  ;;  %v20194_v4 = vld [vmem:[#allocation3_spill] sm:$0xff] }
 0x305   : > { %v9210_v62 = vmul.f32 0.375, %v9110_v58  ;;  %v18346_v19 = vmul.f32 0.375, %v9111_v57  ;;  %v18348_v28 = vmul.f32 0.375, %v9113_v45  ;;  %v18350_v25 = vmul.f32 0.125, %v9113_v45  ;;  %v20198_v32 = vld [vmem:[#allocation41_spill] sm:$0xff] }
 0x306   : > { %20188 = vst [vmem:[#allocation62_spill] sm:$0xff] %v18337_v30  ;;  %20189 = vst [vmem:[#allocation63_spill] sm:$0xff] %v18339_v3  ;;  %v8888_v59 = vrot.slane %v20194_v4, 1  ;;  %v9186_v39 = vadd.f32 %v20196_v50, %v20195_v12  ;;  %v18357_v49 = vadd.f32 %v20198_v32, %v20197_v38  ;;  %v18359_v7 = vmul.f32 0.125, %v9109_v18 }
 0x307   : > { %20190 = vst [vmem:[#allocation64_spill] sm:$0xff] %v18344_v51  ;;  %20191 = vst [vmem:[#allocation65_spill] sm:$0xff] %v18346_v19  ;;  %v9255_v14 = vrot.slane %v9212_v56, 1  ;;  %v9535_v31 = vrot.slane %v18333_v9, 2  ;;  %v20200_v35 = vrot.slane %v18304_v43, 1  ;;  %v18365_v36 = vmul.f32 0.125, %v9110_v58 }
 0x308   : > { %20192 = vst [vmem:[#allocation66_spill] sm:$0xff] %v18348_v28  ;;  %20193 = vst [vmem:[#allocation67_spill] sm:$0xff] %v18350_v25  ;;  %v18367_v4 = vmul.f32 0.125, %v9111_v57  ;;  %v9249_v12 = vrot.slane %v9208_v41, 1  ;;  %v9252_v38 = vrot.slane %v9210_v62, 1  ;;  %v9529_v32 = vrot.slane %v18344_v51, 2 }
 0x309   : > { %20199 = vst [vmem:[#allocation3_spill] sm:$0xff] %v18359_v7  ;;  %v8887_v45 = vsel %vm8774_vm2, %v8885_v63, %v20200_v35  ;;  %20201 = vst [vmem:[#allocation7_spill] sm:$0xff] %v18365_v36  ;;  %v18373_v48 = vmul.f32 0.125, %v9114_v13  ;;  %v18375_v53 = vmul.f32 0.125, %v9115_v26  ;;  %v9214_v61 = vmul.f32 0.375, %v9114_v13  ;;  %v20206_v58 = vld [vmem:[#allocation39_spill] sm:$0xff] }
 0x30a   : > { %20202 = vst [vmem:[#allocation4_spill] sm:$0xff] %v18367_v4  ;;  %v18377_v35 = vmul.f32 0.375, %v9115_v26  ;;  %v8891_v57 = vrot.slane %v20206_v58, 1  ;;  %v20207_v41 = vld [vmem:[#allocation37_spill] sm:$0xff]  ;;  %v20208_v18 = vrot.slane %v18337_v30, 1  ;;  %v9530_v51 = vrot.slane %v18359_v7, 2 }
 0x30b   : > { %20203 = vst [vmem:[#allocation19_spill] sm:$0xff] %v18373_v48  ;;  %20204 = vst [vmem:[#allocation41_spill] sm:$0xff] %v18375_v53  ;;  %v8894_v50 = vrot.slane %v20207_v41, 1  ;;  %v9532_v8 = vrot.slane %v18365_v36, 2  ;;  %v20209_v13 = vld [vmem:[#allocation5_spill] sm:$0xff]  ;;  %v20210_v29 = vrot.slane %v18346_v19, 1 }
 0x30c   : > { %20205 = vst [vmem:[#allocation68_spill] sm:$0xff] %v18377_v35  ;;  %v18386_v56 = vsel %vm8774_vm2, %v9249_v12, %v20208_v18  ;;  %v9356_v26 = vrot.slane %v20209_v13, 1  ;;  %v20211_v41 = vrot.slane %v18348_v28, 1  ;;  %v9533_v63 = vrot.slane %v18367_v4, 2  ;;  %v20212_v13 = vld [vmem:[#allocation8_spill] sm:$0xff] }
 0x30d   : > { %v18394_v58 = vsel %vm8774_vm2, %v9252_v38, %v20210_v29  ;;  %v9536_v12 = vrot.slane %v18350_v25, 2  ;;  %v9258_v18 = vrot.slane %v9214_v61, 1  ;;  %v9538_v30 = vrot.slane %v18373_v48, 2  ;;  %v20216_v25 = vld [vmem:[#allocation6_spill] sm:$0xff] }
 0x30e   : > { %v18399_v62 = vsel %vm8774_vm2, %v9255_v14, %v20211_v41  ;;  %v9539_v7 = vrot.slane %v18375_v53, 2  ;;  %v20213_v36 = vrot.slane %v20212_v13, 1  ;;  %v20214_v38 = vrot.slane %v18331_v55, 1  ;;  %v20217_v13 = vld [vmem:[#allocation9_spill] sm:$0xff] }
 0x30f   : > { %v20215_v41 = vrot.slane %v18342_v42, 1  ;;  %v9296_v61 = vadd.f32 %v20216_v25, %v9186_v39  ;;  %v18417_v4 = vsel %vm9055_vm12, %v9529_v32, %v9530_v51  ;;  %v8935_v53 = vadd.f32 %v8887_v45, %v18317_v52 }
 0x310   : > { %v8890_v19 = vsel %vm8774_vm2, %v8888_v59, %v20213_v36  ;;  %v8893_v14 = vsel %vm8774_vm2, %v8891_v57, %v20214_v38  ;;  %v20218_v48 = vrot.slane %v20217_v13, 1  ;;  %v20219_v59 = vld [vmem:[#allocation36_spill] sm:$0xff]  ;;  %v18427_v57 = vsel %vm9055_vm12, %v9532_v8, %v9533_v63  ;;  %v20228_v63 = vld [vmem:[#allocation46_spill] sm:$0xff] }
 0x311   : > { %v8896_v28 = vsel %vm8774_vm2, %v8894_v50, %v20215_v41  ;;  %v18424_v29 = vmul.f32 0.125, %v20219_v59  ;;  %20220 = vst [vmem:[#allocation39_spill] sm:$0xff] %v18427_v57  ;;  %v18430_v38 = vsel %vm9055_vm12, %v9535_v31, %v9536_v12  ;;  %v18433_v25 = vmul.f32 0.125, %v18322_v2  ;;  %v20229_v12 = vld [vmem:[#allocation38_spill] sm:$0xff]  ;;  %v20233_v13 = vld [vmem:[#allocation44_spill] sm:$0xff] }
 0x312   : > { %v9358_v36 = vsel %vm8774_vm2, %v9356_v26, %v20218_v48  ;;  %20221 = vst [vmem:[#allocation37_spill] sm:$0xff] %v18430_v38  ;;  %v8937_v51 = vadd.f32 %v8890_v19, %v18320_v47  ;;  %v18437_v52 = vmul.f32 0.375, %v18322_v2  ;;  %v18440_v39 = vmul.f32 0.375, %v18339_v3  ;;  %v20227_v47 = vld [vmem:[#allocation22_spill] sm:$0xff]  ;;  %v20272_v38 = vld [vmem:[#allocation16_spill] sm:$0xff] }
 0x313   : > { %20222 = vst [vmem:[#allocation5_spill] sm:$0xff] %v18433_v25  ;;  %v8939_v48 = vadd.f32 %v8893_v14, %v18325_v20  ;;  %v8941_v45 = vadd.f32 %v8896_v28, %v18328_v0  ;;  %v20225_v8 = vrot.slane %v18377_v35, 1  ;;  %v18450_v50 = vsel %vm9055_vm12, %v9538_v30, %v9539_v7  ;;  %v9116_v28 = vld [vmem:[#allocation2 + $0x190] sm:$0xff]  ;;  %v9117_v14 = vld [vmem:[#allocation2 + $0x198] sm:$0x3]  ;;  %v20238_v20 = vld [vmem:[#allocation40_spill] sm:$0xff] }
 0x314   : > { %20223 = vst [vmem:[#allocation8_spill] sm:$0xff] %v18437_v52  ;;  %20224 = vst [vmem:[#allocation6_spill] sm:$0xff] %v18440_v39  ;;  %v18452_v32 = vadd.f32 %v9358_v36, %v9296_v61  ;;  %v8724_v2 = vadd.f32 %v18185_v23, %v20227_v47  ;;  %v9576_v19 = vmul.f32 0.125, %v8935_v53  ;;  %v8897_v26 = vrot.slane %v20228_v63, 1  ;;  %v20231_v30 = vld [vmem:[#allocation29_spill] sm:$0xff]  ;;  %v9118_v53 = vld [vmem:[#allocation2 + $0x1a0] sm:$0xff] }
 0x315   : > { %v18447_v31 = vsel %vm8774_vm2, %v9258_v18, %v20225_v8  ;;  %20226 = vst [vmem:[#allocation9_spill] sm:$0xff] %v18450_v50  ;;  %v18459_v0 = vmul.f32 0.125, %v20229_v12  ;;  %v18461_v18 = vmul.f32 0.125, %v8937_v51  ;;  %v18463_v41 = vmul.f32 0.375, %v8937_v51  ;;  %v20232_v61 = vld [vmem:[#allocation25_spill] sm:$0xff]  ;;  %v9122_v39 = vld [vmem:[#allocation2 + $0x1c0] sm:$0xff] }
 0x316   : > { %v8833_v7 = vadd.f32 %v20231_v30, %v18357_v49  ;;  %v8726_v23 = vadd.f32 %v20233_v13, %v20232_v61  ;;  %v18469_v36 = vmul.f32 0.125, %v8939_v48  ;;  %v18471_v59 = vmul.f32 0.125, %v8941_v45  ;;  %v9119_v63 = vld [vmem:[#allocation2 + $0x1a8] sm:$0x3]  ;;  %v9121_v3 = vld [vmem:[#allocation2 + $0x1b8] sm:$0x3] }
 0x317   : > { %20230 = vst [vmem:[#allocation36_spill] sm:$0xff] %v18461_v18  ;;  %v18473_v8 = vmul.f32 0.375, %v8939_v48  ;;  %v18475_v47 = vmul.f32 0.375, %v8941_v45  ;;  %v9594_v12 = vmul.f32 0.375, %v18452_v32  ;;  %v18479_v51 = vadd.f32 %v18111_v40, %v8724_v2  ;;  %v20243_v2 = vld [vmem:[#allocation48_spill] sm:$0xff]  ;;  %v9120_v18 = vld [vmem:[#allocation2 + $0x1b0] sm:$0xff] }
 0x318   : > { %20234 = vst [vmem:[#allocation22_spill] sm:$0xff] %v18469_v36  ;;  %20235 = vst [vmem:[#allocation46_spill] sm:$0xff] %v18471_v59  ;;  %v18482_v49 = vmul.f32 0.125, %v20238_v20  ;;  %v8900_v30 = vrot.slane %v18206_v10, 1  ;;  %v18485_v61 = vmul.f32 0.125, %v9116_v28  ;;  %v18487_v13 = vmul.f32 0.125, %v9117_v14 }
 0x319   : > { %20236 = vst [vmem:[#allocation38_spill] sm:$0xff] %v18473_v8  ;;  %20237 = vst [vmem:[#allocation29_spill] sm:$0xff] %v18475_v47  ;;  %v20241_v48 = vrot.slane %v18424_v29, 1  ;;  %v18493_v35 = vmul.f32 0.125, %v9118_v53  ;;  %v9216_v8 = vmul.f32 0.375, %v9116_v28  ;;  %v18496_v40 = vadd.f32 %v18126_v34, %v8726_v23  ;;  %v20247_v34 = vld [vmem:[#allocation31_spill] sm:$0xff] }
 0x31a   : > { %20239 = vst [vmem:[#allocation25_spill] sm:$0xff] %v18485_v61  ;;  %20240 = vst [vmem:[#allocation44_spill] sm:$0xff] %v18487_v13  ;;  %v8903_v20 = vrot.slane %v20243_v2, 1  ;;  %v18499_v47 = vmul.f32 0.125, %v9119_v63  ;;  %v18501_v10 = vmul.f32 0.375, %v9117_v14  ;;  %v9218_v59 = vmul.f32 0.375, %v9118_v53 }
 0x31b   : > { %v8899_v45 = vsel %vm8774_vm2, %v8897_v26, %v20241_v48  ;;  %20242 = vst [vmem:[#allocation40_spill] sm:$0xff] %v18493_v35  ;;  %v18503_v36 = vmul.f32 0.375, %v9119_v63  ;;  %v8728_v28 = vadd.f32 %v18222_v60, %v18090_v33  ;;  %v8730_v23 = vadd.f32 %v18234_v1, %v20247_v34  ;;  %v9123_v53 = vld [vmem:[#allocation2 + $0x1c8] sm:$0x3]  ;;  %v20249_v52 = vld [vmem:[#allocation47_spill] sm:$0xff]  ;;  %v20250_v33 = vld [vmem:[#allocation49_spill] sm:$0xff] }
 0x31c   : > { %20244 = vst [vmem:[#allocation48_spill] sm:$0xff] %v18499_v47  ;;  %20245 = vst [vmem:[#allocation69_spill] sm:$0xff] %v18501_v10  ;;  %v18505_v26 = vadd.f32 %v8899_v45, %v8833_v7  ;;  %v9541_v2 = vrot.slane %v18485_v61, 2  ;;  %v9542_v14 = vrot.slane %v18487_v13, 2  ;;  %v9612_v63 = vadd.f32 %v9594_v12, %v9576_v19 }
 0x31d   : > { %20246 = vst [vmem:[#allocation70_spill] sm:$0xff] %v18503_v36  ;;  %v20248_v25 = vrot.slane %v18459_v0, 1  ;;  %v9261_v45 = vrot.slane %v9216_v8, 1  ;;  %v9544_v48 = vrot.slane %v18493_v35, 2  ;;  %v18519_v54 = vmul.f32 0.125, %v20249_v52  ;;  %v20259_v35 = vld [vmem:[#allocation34_spill] sm:$0xff] }
 0x31e   : > { %v18522_v60 = vmul.f32 0.125, %v20250_v33  ;;  %v9264_v34 = vrot.slane %v9218_v59, 1  ;;  %v9545_v19 = vrot.slane %v18499_v47, 2  ;;  %v18527_v12 = vmul.f32 0.125, %v9120_v18 }
 0x31f   : > { %v8902_v7 = vsel %vm8774_vm2, %v8900_v30, %v20248_v25  ;;  %v18529_v61 = vmul.f32 0.125, %v9121_v3  ;;  %v18531_v25 = vmul.f32 0.125, %v9122_v39  ;;  %v18533_v8 = vmul.f32 0.125, %v9123_v53 }
 0x320   : > { %20251 = vst [vmem:[#allocation31_spill] sm:$0xff] %v18522_v60  ;;  %20252 = vst [vmem:[#allocation47_spill] sm:$0xff] %v18527_v12  ;;  %v18536_v52 = vsel %vm9055_vm12, %v9541_v2, %v9542_v14  ;;  %v9220_v30 = vmul.f32 0.375, %v9120_v18  ;;  %v18538_v33 = vmul.f32 0.375, %v9121_v3  ;;  %v9222_v1 = vmul.f32 0.375, %v9122_v39  ;;  %v20262_v2 = vld [vmem:[#allocation35_spill] sm:$0xff] }
 0x321   : > { %20253 = vst [vmem:[#allocation49_spill] sm:$0xff] %v18529_v61  ;;  %20254 = vst [vmem:[#allocation71_spill] sm:$0xff] %v18531_v25  ;;  %v18540_v59 = vmul.f32 0.375, %v9123_v53  ;;  %v8906_v13 = vrot.slane %v18241_v17, 1  ;;  %v8715_v50 = vadd.f32 %v20260_v24, %v20259_v35  ;;  %v8909_v21 = vrot.slane %v18248_v11, 1  ;;  %v20263_v18 = vld [vmem:[#allocation18_spill] sm:$0xff] }
 0x322   : > { %20255 = vst [vmem:[#allocation72_spill] sm:$0xff] %v18533_v8  ;;  %20256 = vst [vmem:[#allocation73_spill] sm:$0xff] %v18536_v52  ;;  %v8719_v14 = vadd.f32 %v20262_v2, %v20261_v15  ;;  %v20264_v3 = vld [vmem:[#allocation33_spill] sm:$0xff]  ;;  %v9547_v39 = vrot.slane %v18527_v12, 2  ;;  %v9548_v53 = vrot.slane %v18529_v61, 2  ;;  %v9550_v17 = vrot.slane %v18531_v25, 2 }
 0x323   : > { %20257 = vst [vmem:[#allocation74_spill] sm:$0xff] %v18538_v33  ;;  %20258 = vst [vmem:[#allocation75_spill] sm:$0xff] %v18540_v59  ;;  %v8721_v52 = vadd.f32 %v20264_v3, %v20263_v18  ;;  %v9551_v47 = vrot.slane %v18533_v8, 2  ;;  %v9267_v57 = vrot.slane %v9220_v30, 1  ;;  %v9270_v11 = vrot.slane %v9222_v1, 1  ;;  %v20267_v61 = vld [vmem:[#allocation27_spill] sm:$0xff] }
 0x324   : > { %v8839_v35 = vadd.f32 %v18255_v5, %v8728_v28  ;;  %v20265_v27 = vrot.slane %v18482_v49, 1  ;;  %v8841_v2 = vadd.f32 %v18262_v44, %v8730_v23  ;;  %v20266_v18 = vrot.slane %v18519_v54, 1  ;;  %v20270_v5 = vld [vmem:[#allocation15_spill] sm:$0xff] }
 0x325   : > { %v20268_v25 = vrot.slane %v20267_v61, 1  ;;  %v20038_v30 = vrot.slane %v18540_v59, 1  ;;  %v20269_v24 = vrot.slane %v18522_v60, 1  ;;  %v20271_v28 = vrot.slane %v20270_v5, 1 }
 0x326   : > { %v8905_v15 = vsel %vm8774_vm2, %v8903_v20, %v20265_v27  ;;  %v8908_v3 = vsel %vm8774_vm2, %v8906_v13, %v20266_v18  ;;  %v20273_v27 = vrot.slane %v20272_v38, 1  ;;  %v20274_v44 = vrot.slane %v18501_v10, 1 }
 0x327   : > { %v8826_v12 = vadd.f32 %v20268_v25, %v8715_v50  ;;  %v8911_v1 = vsel %vm8774_vm2, %v8909_v21, %v20269_v24  ;;  %v8830_v8 = vadd.f32 %v20271_v28, %v8719_v14  ;;  %v20275_v61 = vrot.slane %v18503_v36, 1  ;;  %v20292_v28 = vld [vmem:[#allocation11_spill] sm:$0xff] }
 0x328   : > { %v8832_v20 = vadd.f32 %v20273_v27, %v8721_v52  ;;  %v18578_v23 = vsel %vm8774_vm2, %v9261_v45, %v20274_v44  ;;  %v18586_v13 = vsel %vm9055_vm12, %v9544_v48, %v9545_v19  ;;  %v8945_v21 = vadd.f32 %v8902_v7, %v18479_v51 }
 0x329   : > { %v18583_v50 = vsel %vm8774_vm2, %v9264_v34, %v20275_v61  ;;  %v18590_v25 = vsel %vm9055_vm12, %v9547_v39, %v9548_v53  ;;  %v18593_v38 = vsel %vm9055_vm12, %v9550_v17, %v9551_v47  ;;  %v8947_v52 = vadd.f32 %v8905_v15, %v18496_v40  ;;  %v20284_v15 = vld [vmem:[#allocation23_spill] sm:$0xff] }
 0x32a   : > { %v8949_v45 = vadd.f32 %v8908_v3, %v8839_v35  ;;  %v18597_v14 = vadd.f32 %v18463_v41, %v9612_v63  ;;  %v18600_v34 = vmul.f32 0.375, %v18505_v26  ;;  %v18602_v24 = vadd.f32 %v8911_v1, %v8841_v2  ;;  %v20283_v35 = vld [vmem:[#allocation42_spill] sm:$0xff]  ;;  %v20285_v2 = vld [vmem:[#allocation43_spill] sm:$0xff] }
 0x32b   : > { %v20277_v48 = vrot.slane %v18304_v43, 1  ;;  %v20278_v7 = vrot.slane %v18538_v33, 1  ;;  %v18614_v47 = vsel %vm8774_vm2, %v9270_v11, %v20038_v30  ;;  %v20279_v40 = vrot.slane %v18331_v55, 1 }
 0x32c   : > { %20276 = vst [vmem:[#allocation34_spill] sm:$0xff] %v18602_v24  ;;  %v20280_v39 = vrot.slane %v18342_v42, 1  ;;  %v18621_v17 = vmul.f32 0.125, %v18505_v26  ;;  %v18623_v43 = vmul.f32 0.125, %v8945_v21  ;;  %v8725_v18 = vadd.f32 %v20285_v2, %v20284_v15  ;;  %v20300_v15 = vld [vmem:[#allocation45_spill] sm:$0xff] }
 0x32d   : > { %v8936_v51 = vadd.f32 %v20277_v48, %v8826_v12  ;;  %v18609_v19 = vsel %vm8774_vm2, %v9267_v57, %v20278_v7  ;;  %v8940_v63 = vadd.f32 %v20279_v40, %v8830_v8  ;;  %v20282_v12 = vld [vmem:[#allocation20_spill] sm:$0xff]  ;;  %v18629_v3 = vmul.f32 0.375, %v8945_v21  ;;  %v20293_v21 = vld [vmem:[#allocation10_spill] sm:$0xff] }
 0x32e   : > { %v8942_v53 = vadd.f32 %v20280_v39, %v8832_v20  ;;  %20281 = vst [vmem:[#allocation30_spill] sm:$0xff] %v18623_v43  ;;  %v8723_v57 = vadd.f32 %v20283_v35, %v20282_v12  ;;  %v18631_v11 = vmul.f32 0.375, %v8947_v52  ;;  %v18633_v55 = vmul.f32 0.125, %v8947_v52  ;;  %v16067_v20 = vld [vmem:[%s19945_s2] ss:$0 sm:$0xff]  ;;  %v20297_v39 = vld [vmem:[#allocation21_spill] sm:$0xff] }
 0x32f   : > { %20286 = vst [vmem:[#allocation17_spill] sm:$0xff] %v18629_v3  ;;  %v18635_v8 = vmul.f32 0.125, %v8949_v45  ;;  %v18637_v1 = vmul.f32 0.375, %v8949_v45  ;;  %v18640_v26 = vmul.f32 0.375, %v18602_v24  ;;  %v9577_v5 = vmul.f32 0.125, %v8936_v51  ;;  %v20299_v35 = vld [vmem:[#allocation28_spill] sm:$0xff] }
 0x330   : > { %20287 = vst [vmem:[#allocation35_spill] sm:$0xff] %v18631_v11  ;;  %20288 = vst [vmem:[#allocation18_spill] sm:$0xff] %v18633_v55  ;;  %v9595_v27 = vmul.f32 0.375, %v20292_v28  ;;  %v18647_v52 = vmul.f32 0.125, %v20293_v21  ;;  %v18649_v48 = vmul.f32 0.125, %v8940_v63  ;;  %v18651_v7 = vmul.f32 0.125, %v8942_v53 }
 0x331   : > { %20289 = vst [vmem:[#allocation33_spill] sm:$0xff] %v18635_v8  ;;  %20290 = vst [vmem:[#allocation27_spill] sm:$0xff] %v18637_v1  ;;  %v20298_v12 = vrot.slane %v20297_v39, 1  ;;  %v8727_v2 = vadd.f32 %v20300_v15, %v20299_v35  ;;  %v20301_v28 = vld [vmem:[#allocation24_spill] sm:$0xff]  ;;  %v8729_v33 = vadd.f32 %v18225_v22, %v18102_v37  ;;  %v20305_v37 = vrot.slane %v18424_v29, 1  ;;  %v20335_v11 = vld [vmem:[#allocation55_spill] sm:$0xff] }
 0x332   : > { %20291 = vst [vmem:[#allocation15_spill] sm:$0xff] %v18640_v26  ;;  %20294 = vst [vmem:[#allocation16_spill] sm:$0xff] %v18647_v52  ;;  %v20302_v30 = vrot.slane %v20301_v28, 1  ;;  %v9613_v10 = vadd.f32 %v9595_v27, %v9577_v5  ;;  %v20303_v39 = vld [vmem:[#allocation32_spill] sm:$0xff]  ;;  %v18663_v28 = vmul.f32 0.375, %v8940_v63  ;;  %v20309_v63 = vrot.slane %v18459_v0, 1 }
 0x333   : > { %20295 = vst [vmem:[#allocation20_spill] sm:$0xff] %v18649_v48  ;;  %20296 = vst [vmem:[#allocation42_spill] sm:$0xff] %v18651_v7  ;;  %v8834_v51 = vadd.f32 %v20298_v12, %v8723_v57  ;;  %v8731_v12 = vadd.f32 %v18237_v16, %v20303_v39  ;;  %v20336_v55 = vld [vmem:[#allocation9_spill] sm:$0xff] }
 0x334   : > { %v8836_v24 = vadd.f32 %v20302_v30, %v8725_v18  ;;  %20304 = vst [vmem:[#allocation23_spill] sm:$0xff] %v18663_v28 }
 0x335   : > { %v8944_v22 = vadd.f32 %v20305_v37, %v8834_v51 }
 0x3a6   : > { %v15051_v42 = vpop.f32.mrb[16].mxu1 }
 0x3a7   : > { %v8587_v44 = vadd.f32 %v16067_v20, %v15051_v42  ;;  %v8539_v61 = vpop.f32.mrb[17].mxu1 }
 0x3a8   : > { %v8585_v45 = vadd.f32 %v16067_v20, %v8539_v61  ;;  %v15052_v40 = vpop.f32.mrb[18].mxu1 }
 0x3a9   : > { %vm8595_vm13 = vcmp.ge.f32.partialorder %v8587_v44, 0.0  ;;  %v8603_v42 = vmul.f32 0.2, %v8587_v44  ;;  %v8588_v59 = vadd.f32 %v16067_v20, %v15052_v40  ;;  %v8542_v21 = vpop.f32.mrb[19].mxu1 }
 0x3aa   : > { %vm8593_vm14 = vcmp.ge.f32.partialorder %v8585_v45, 0.0  ;;  %v8601_v36 = vmul.f32 0.2, %v8585_v45  ;;  %v8586_v61 = vadd.f32 %v16067_v20, %v8542_v21 }
 0x3ab   : > { %v8611_v7 = vsel %vm8595_vm13, %v8587_v44, %v8603_v42  ;;  %vm8596_vm15 = vcmp.ge.f32.partialorder %v8588_v59, 0.0  ;;  %v8604_v57 = vmul.f32 0.2, %v8588_v59  ;;  %v18667_v44 = vmul.f32 0.375, %v8942_v53 }
 0x3ac   : > { %v8619_v35 = vmul.f32 1.4142135, %v8611_v7  ;;  %v8609_v15 = vsel %vm8593_vm14, %v8585_v45, %v8601_v36  ;;  %vm8594_vm0 = vcmp.ge.f32.partialorder %v8586_v61, 0.0  ;;  %v8602_v30 = vmul.f32 0.2, %v8586_v61  ;;  %v20307_v45 = vld [vmem:[#allocation26_spill] sm:$0xff] }
 0x3ad   : > { %v8617_v18 = vmul.f32 1.4142135, %v8609_v15  ;;  %v8612_v40 = vsel %vm8596_vm15, %v8588_v59, %v8604_v57  ;;  %20306 = vst [vmem:[#allocation43_spill] sm:$0xff] %v18667_v44  ;;  %v9702_v42 = vmul.f32 0.125, %v18452_v32  ;;  %v20308_v39 = vrot.slane %v20307_v45, 1 }
 0x3ae   : > { %8628 = vst [vmem:[#allocation2 + $0x211] sm:$0xff] %v8619_v35  ;;  %v8620_v21 = vmul.f32 1.4142135, %v8612_v40  ;;  %v8610_v5 = vsel %vm8594_vm0, %v8586_v61, %v8602_v30  ;;  %v15055_v27 = vpop.f32.mrb[20].mxu1  ;;  %v8946_v57 = vadd.f32 %v20309_v63, %v8836_v24  ;;  %v20310_v35 = vld [vmem:[#allocation12_spill] sm:$0xff]  ;;  %v20312_v53 = vrot.slane %v18117_v6, 1 }
 0x3af   : > { %8626 = vst [vmem:[#allocation2 + $0x1f1] sm:$0xff] %v8617_v18  ;;  %v8618_v16 = vmul.f32 1.4142135, %v8610_v5  ;;  %v8591_v36 = vadd.f32 %v16067_v20, %v15055_v27  ;;  %v8555_v7 = vpop.f32.mrb[21].mxu1  ;;  %v8838_v59 = vadd.f32 %v20308_v39, %v8727_v2  ;;  %v18675_v61 = vadd.f32 %v20310_v35, %v9613_v10 }
 0x3b0   : > { %8629 = vst [vmem:[#allocation2 + $0x221] sm:$0xff] %v8620_v21  ;;  %v8589_v29 = vadd.f32 %v16067_v20, %v8555_v7  ;;  %v15056_v51 = vpop.f32.mrb[22].mxu1  ;;  %v18679_v15 = vadd.f32 %v20312_v53, %v8729_v33  ;;  %v20313_v32 = vrot.slane %v18130_v46, 1  ;;  %v18685_v24 = vmul.f32 0.375, %v8944_v22 }
 0x3b1   : > { %20311 = vst [vmem:[#allocation11_spill] sm:$0xff] %v18675_v61  ;;  %8627 = vst [vmem:[#allocation2 + $0x201] sm:$0xff] %v8618_v16  ;;  %vm8599_vm1 = vcmp.ge.f32.partialorder %v8591_v36, 0.0  ;;  %v8607_v2 = vmul.f32 0.2, %v8591_v36  ;;  %v8592_v18 = vadd.f32 %v16067_v20, %v15056_v51  ;;  %v8558_v0 = vpop.f32.mrb[23].mxu1 }
 0x3b2   : > { %v18683_v30 = vadd.f32 %v20313_v32, %v8731_v12  ;;  %20315 = vst [vmem:[#allocation21_spill] sm:$0xff] %v18685_v24  ;;  %vm8597_vm3 = vcmp.ge.f32.partialorder %v8589_v29, 0.0  ;;  %v8605_v40 = vmul.f32 0.2, %v8589_v29  ;;  %v8590_v37 = vadd.f32 %v16067_v20, %v8558_v0 }
 0x3b3   : > { %v18687_v10 = vmul.f32 0.125, %v8944_v22  ;;  %v8615_v21 = vsel %vm8599_vm1, %v8591_v36, %v8607_v2  ;;  %vm8600_vm4 = vcmp.ge.f32.partialorder %v8592_v18, 0.0  ;;  %v8608_v6 = vmul.f32 0.2, %v8592_v18 }
 0x3b4   : > { %20314 = vst [vmem:[#allocation10_spill] sm:$0xff] %v18683_v30  ;;  %v18689_v33 = vmul.f32 0.125, %v8946_v57  ;;  %v8623_v46 = vmul.f32 1.4142135, %v8615_v21  ;;  %v8613_v12 = vsel %vm8597_vm3, %v8589_v29, %v8605_v40  ;;  %vm8598_vm5 = vcmp.ge.f32.partialorder %v8590_v37, 0.0 }
 0x3b5   : > { %20316 = vst [vmem:[#allocation28_spill] sm:$0xff] %v18687_v10  ;;  %v8606_v5 = vmul.f32 0.2, %v8590_v37  ;;  %v8621_v27 = vmul.f32 1.4142135, %v8613_v12  ;;  %v8616_v16 = vsel %vm8600_vm4, %v8592_v18, %v8608_v6  ;;  %v9132_v7 = vld [vmem:[#allocation2 + $0x210] sm:$0xff]  ;;  %v18696_v20 = vadd.f32 %v9702_v42, %v18463_v41 }
 0x3b6   : > { %20317 = vst [vmem:[#allocation45_spill] sm:$0xff] %v18689_v33  ;;  %v18691_v45 = vld [vmem:[#allocation2 + $0x218] sm:$0x3]  ;;  %v18693_v39 = vmul.f32 0.375, %v8946_v57  ;;  %8632 = vst [vmem:[#allocation2 + $0x251] sm:$0xff] %v8623_v46  ;;  %v9128_v63 = vld [vmem:[#allocation2 + $0x1f0] sm:$0xff] }
 0x3b7   : > { %20319 = vst [vmem:[#allocation32_spill] sm:$0xff] %v18696_v20  ;;  %v8624_v22 = vmul.f32 1.4142135, %v8616_v16  ;;  %v8614_v36 = vsel %vm8598_vm5, %v8590_v37, %v8606_v5  ;;  %v18698_v51 = vld [vmem:[#allocation2 + $0x1f8] sm:$0x3]  ;;  %v9172_v35 = vmul.f32 0.375, %v9132_v7 }
 0x3b8   : > { %20318 = vst [vmem:[#allocation24_spill] sm:$0xff] %v18693_v39  ;;  %v20320_v29 = vrot.slane %v18482_v49, 1  ;;  %8630 = vst [vmem:[#allocation2 + $0x231] sm:$0xff] %v8621_v27  ;;  %v8622_v32 = vmul.f32 1.4142135, %v8614_v36  ;;  %v18704_v2 = vmul.f32 0.375, %v9128_v63 }
 0x3b9   : > { %v18707_v57 = vmul.f32 0.375, %v18698_v51  ;;  %v18710_v41 = vmul.f32 0.375, %v18691_v45  ;;  %v9134_v42 = vld [vmem:[#allocation2 + $0x220] sm:$0xff]  ;;  %8633 = vst [vmem:[#allocation2 + $0x261] sm:$0xff] %v8624_v22  ;;  %v18712_v0 = vld [vmem:[#allocation2 + $0x208] sm:$0x3]  ;;  %v18719_v37 = vadd.f32 %v9172_v35, %v18333_v9 }
 0x3ba   : > { %v18702_v53 = vadd.f32 %v20320_v29, %v8838_v59  ;;  %v9130_v18 = vld [vmem:[#allocation2 + $0x200] sm:$0xff]  ;;  %v18714_v40 = vmul.f32 0.125, %v9128_v63  ;;  %v18716_v49 = vmul.f32 0.125, %v9132_v7  ;;  %v9465_v59 = vrot.slane %v9172_v35, 1  ;;  %8631 = vst [vmem:[#allocation2 + $0x241] sm:$0xff] %v8622_v32 }
 0x3bb   : > { %20322 = vst [vmem:[#allocation12_spill] sm:$0xff] %v18707_v57  ;;  %20323 = vst [vmem:[#allocation76_spill] sm:$0xff] %v18710_v41  ;;  %v18721_v21 = vmul.f32 0.375, %v9130_v18  ;;  %v18724_v6 = vmul.f32 0.375, %v18712_v0  ;;  %v18726_v46 = vmul.f32 0.125, %v9130_v18  ;;  %v9459_v12 = vrot.slane %v18704_v2, 1 }
 0x3bc   : > { %20321 = vst [vmem:[#allocation26_spill] sm:$0xff] %v18702_v53  ;;  %v18729_v5 = vld [vmem:[#allocation2 + $0x228] sm:$0x3]  ;;  %v9427_v27 = vadd.f32 %v18714_v40, %v18386_v56  ;;  %v9429_v16 = vadd.f32 %v18716_v49, %v18399_v62  ;;  %v9460_v9 = vrot.slane %v18707_v57, 1  ;;  %v9466_v7 = vrot.slane %v18710_v41, 1  ;;  %v20340_v57 = vld [vmem:[#allocation53_spill] sm:$0xff] }
 0x3bd   : > { %20324 = vst [vmem:[#allocation77_spill] sm:$0xff] %v18724_v6  ;;  %v9428_v22 = vadd.f32 %v18726_v46, %v18394_v58  ;;  %v9462_v36 = vrot.slane %v18721_v21, 1  ;;  %v9463_v63 = vrot.slane %v18724_v6, 1  ;;  %v18741_v35 = vmul.f32 0.375, %v9134_v42  ;;  %v18752_v24 = vld [vmem:[#allocation2 + $0x250] sm:$0xff]  ;;  %v20337_v6 = vld [vmem:[#allocation51_spill] sm:$0xff] }
 0x3be   : > { %v9461_v29 = vsel %vm8774_vm2, %v9459_v12, %v9460_v9  ;;  %v9467_v32 = vsel %vm8774_vm2, %v9465_v59, %v9466_v7  ;;  %v18746_v18 = vmul.f32 0.375, %v18729_v5  ;;  %v18748_v20 = vmul.f32 0.125, %v9134_v42  ;;  %v18754_v28 = vld [vmem:[#allocation2 + $0x258] sm:$0x3] }
 0x3bf   : > { %v9464_v33 = vsel %vm8774_vm2, %v9462_v36, %v9463_v63  ;;  %v9497_v39 = vadd.f32 %v9461_v29, %v9427_v27  ;;  %v9499_v53 = vadd.f32 %v9467_v32, %v9429_v16  ;;  %v9468_v10 = vrot.slane %v18741_v35, 1  ;;  %20326 = vst [vmem:[#allocation79_spill] sm:$0xff] %v18754_v28  ;;  %v9136_v9 = vld [vmem:[#allocation2 + $0x230] sm:$0xff]  ;;  %v18759_v7 = vld [vmem:[#allocation2 + $0x238] sm:$0x3] }
 0x3c0   : > { %20325 = vst [vmem:[#allocation78_spill] sm:$0xff] %v18746_v18  ;;  %v9498_v44 = vadd.f32 %v9464_v33, %v9428_v22  ;;  %v9430_v12 = vadd.f32 %v18748_v20, %v18447_v31  ;;  %v9469_v59 = vrot.slane %v18746_v18, 1  ;;  %v18762_v42 = vmul.f32 0.375, %v18752_v24  ;;  %v20327_v16 = vld [vmem:[#allocation37_spill] sm:$0xff]  ;;  %v20329_v33 = vld [vmem:[#allocation39_spill] sm:$0xff] }
 0x3c1   : > { %v9567_v27 = vadd.f32 %v18417_v4, %v9497_v39  ;;  %v9569_v36 = vadd.f32 %v20327_v16, %v9499_v53  ;;  %v18766_v63 = vmul.f32 0.375, %v9136_v9  ;;  %v18769_v29 = vmul.f32 0.375, %v18759_v7  ;;  %v9138_v61 = vld [vmem:[#allocation2 + $0x240] sm:$0xff]  ;;  %v18782_v16 = vld [vmem:[#allocation2 + $0x248] sm:$0x3] }
 0x3c2   : > { %v9568_v22 = vadd.f32 %v20329_v33, %v9498_v44  ;;  %v9470_v32 = vsel %vm8774_vm2, %v9468_v10, %v9469_v59  ;;  %v18773_v48 = vmul.f32 0.125, %v9136_v9  ;;  %v18776_v52 = vmul.f32 0.375, %v18754_v28  ;;  %v20333_v10 = vld [vmem:[#allocation50_spill] sm:$0xff]  ;;  %v20334_v9 = vld [vmem:[#allocation52_spill] sm:$0xff] }
 0x3c3   : > { %20328 = vst [vmem:[#allocation37_spill] sm:$0xff] %v18769_v29  ;;  %v18778_v18 = vmul.f32 0.375, %v9567_v27  ;;  %v9766_v4 = vmul.f32 0.375, %v9569_v36  ;;  %v18780_v39 = vmul.f32 0.125, %v9567_v27  ;;  %v9500_v53 = vadd.f32 %v9470_v32, %v9430_v12  ;;  %v20338_v32 = vld [vmem:[#allocation54_spill] sm:$0xff] }
 0x3c4   : > { %v18784_v26 = vmul.f32 0.375, %v9568_v22  ;;  %v9800_v8 = vmul.f32 0.125, %v9568_v22  ;;  %v9801_v44 = vmul.f32 0.125, %v9569_v36  ;;  %v18786_v33 = vmul.f32 0.375, %v9138_v61 }
 0x3c5   : > { %20330 = vst [vmem:[#allocation39_spill] sm:$0xff] %v18778_v18  ;;  %20331 = vst [vmem:[#allocation80_spill] sm:$0xff] %v18780_v39  ;;  %v9773_v59 = vadd.f32 %v18778_v18, %v20333_v10  ;;  %v9775_v1 = vadd.f32 %v9766_v4, %v20334_v9  ;;  %v9808_v41 = vadd.f32 %v18780_v39, %v20335_v11  ;;  %v18798_v22 = vmul.f32 0.375, %v18782_v16  ;;  %v20341_v10 = vld [vmem:[#allocation56_spill] sm:$0xff] }
 0x3c6   : > { %20332 = vst [vmem:[#allocation81_spill] sm:$0xff] %v18784_v26  ;;  %v9570_v27 = vadd.f32 %v20336_v55, %v9500_v53  ;;  %v9774_v12 = vadd.f32 %v18784_v26, %v20337_v6  ;;  %v9820_v43 = vadd.f32 %v9800_v8, %v20338_v32  ;;  %v18800_v36 = vmul.f32 0.125, %v9138_v61  ;;  %v9142_v61 = vld [vmem:[#allocation2 + $0x260] sm:$0xff]  ;;  %v18814_v39 = vld [vmem:[#allocation2 + $0x268] sm:$0x3] }
 0x3c7   : > { %20339 = vst [vmem:[#allocation50_spill] sm:$0xff] %v18798_v22  ;;  %v9791_v3 = vadd.f32 %v20340_v57, %v9773_v59  ;;  %v9793_v18 = vadd.f32 %v20341_v10, %v9775_v1  ;;  %v9431_v11 = vadd.f32 %v18773_v48, %v18578_v23  ;;  %v9471_v26 = vrot.slane %v18766_v63, 1  ;;  %20344 = vst [vmem:[#allocation54_spill] sm:$0xff] %v18814_v39 }
 0x3c8   : > { %v18804_v9 = vmul.f32 0.125, %v9570_v27  ;;  %v9792_v55 = vadd.f32 %v20338_v32, %v9774_v12  ;;  %v18809_v53 = vadd.f32 %v9820_v43, %v9766_v4  ;;  %v9432_v6 = vadd.f32 %v18800_v36, %v18583_v50 }
 0x3c9   : > { %v18816_v59 = vadd.f32 %v9800_v8, %v9791_v3  ;;  %v9472_v57 = vrot.slane %v18769_v29, 1  ;;  %v9474_v60 = vrot.slane %v18786_v33, 1  ;;  %v9475_v43 = vrot.slane %v18798_v22, 1  ;;  %v20351_v29 = vld [vmem:[#allocation59_spill] sm:$0xff] }
 0x3ca   : > { %20342 = vst [vmem:[#allocation55_spill] sm:$0xff] %v18804_v9  ;;  %20343 = vst [vmem:[#allocation9_spill] sm:$0xff] %v18809_v53  ;;  %v18819_v1 = vadd.f32 %v18804_v9, %v9793_v18  ;;  %v18823_v12 = vadd.f32 %v9801_v44, %v9792_v55  ;;  %v9767_v4 = vmul.f32 0.375, %v9570_v27  ;;  %v9821_v32 = vadd.f32 %v9801_v44, %v20341_v10  ;;  %v15996_v55 = vld [vmem:[%s19946_s3 + $0x8] sm:$0xff]   ;;  %v20348_v44 = vld [vmem:[#allocation57_spill] sm:$0xff] }
 0x3cb   : > { %20345 = vst [vmem:[#allocation56_spill] sm:$0xff] %v18816_v59  ;;  %v9863_v53 = vpack.c.bf16 %v18816_v59, %v9808_v41  ;;  %v9473_v30 = vsel %vm8774_vm2, %v9471_v26, %v9472_v57  ;;  %v18829_v3 = vmul.f32 0.375, %v9142_v61  ;;  %v18832_v8 = vmul.f32 0.375, %v18814_v39 }
 0x3cc   : > { %20346 = vst [vmem:[#allocation82_spill] sm:$0xff] %v18819_v1  ;;  %20347 = vst [vmem:[#allocation83_spill] sm:$0xff] %v18823_v12  ;;  %v9864_v18 = vpack.c.bf16 %v18819_v1, %v18823_v12  ;;  %v9476_v27 = vsel %vm8774_vm2, %v9474_v60, %v9475_v43  ;;  %v9501_v9 = vadd.f32 %v9473_v30, %v9431_v11  ;;  %v18844_v57 = vmul.f32 0.125, %v18752_v24  ;;  %v20350_v12 = vld [vmem:[#allocation73_spill] sm:$0xff]  ;;  %v16068_v30 = vld [vmem:[%s19946_s3] sm:$0xff]  }
 0x3cd   : > { %v9776_v10 = vadd.f32 %v9767_v4, %v20348_v44  ;;  %15073 = vmatprep.mubr.bf16.mxu0 %v9863_v53  ;;  %v9502_v41 = vadd.f32 %v9476_v27, %v9432_v6  ;;  %v18841_v26 = vadd.f32 %v9821_v32, %v9767_v4  ;;  %v18846_v59 = vmul.f32 0.125, %v9142_v61  ;;  %v20356_v27 = vld [vmem:[#allocation64_spill] sm:$0xff] }
 0x3ce   : > { %15074 = vmatmul.mubr.bf16.vlgmr.msra.gmra.mrb[16].mxu0 %v9864_v18  ;;  %v9571_v22 = vadd.f32 %v20350_v12, %v9501_v9  ;;  %v9477_v28 = vrot.slane %v18762_v42, 1  ;;  %v9478_v60 = vrot.slane %v18776_v52, 1  ;;  %v9433_v24 = vadd.f32 %v18844_v57, %v18609_v19  ;;  %v15997_v12 = vld [vmem:[%s19946_s3 + $0x10] sm:$0xff]  }
 0x3cf   : > { %20349 = vst [vmem:[#allocation84_spill] sm:$0xff] %v18841_v26  ;;  %v9794_v39 = vadd.f32 %v20351_v29, %v9776_v10  ;;  %15082 = vmatpush3.bf16.msra.mxu0 %v16068_v30  ;;  %v9572_v6 = vadd.f32 %v18586_v13, %v9502_v41  ;;  %v9434_v11 = vadd.f32 %v18846_v59, %v18614_v47  ;;  %v9480_v9 = vrot.slane %v18829_v3, 1  ;;  %v20357_v41 = vld [vmem:[#allocation58_spill] sm:$0xff]  ;;  %v20359_v26 = vld [vmem:[#allocation7_spill] sm:$0xff] }
 0x3d0   : > { %15083 = vmatprep.subr.bf16.mxu0 %v15996_v55  ;;  %v18861_v53 = vmul.f32 0.375, %v9571_v22  ;;  %v18863_v61 = vmul.f32 0.125, %v9571_v22  ;;  %v9479_v43 = vsel %vm8774_vm2, %v9477_v28, %v9478_v60  ;;  %v9481_v13 = vrot.slane %v18832_v8, 1 }
 0x3d1   : > { %v18870_v4 = vmul.f32 0.125, %v9572_v6  ;;  %v9503_v32 = vadd.f32 %v9479_v43, %v9433_v24  ;;  %v18872_v18 = vmul.f32 0.375, %v9572_v6  ;;  %v9188_v10 = vadd.f32 %v18704_v2, %v20356_v27  ;;  %v20360_v6 = vld [vmem:[#allocation61_spill] sm:$0xff]  ;;  %v20361_v27 = vld [vmem:[#allocation60_spill] sm:$0xff] }
 0x3d2   : > { %20352 = vst [vmem:[#allocation73_spill] sm:$0xff] %v18861_v53  ;;  %20353 = vst [vmem:[#allocation85_spill] sm:$0xff] %v18863_v61  ;;  %v9777_v22 = vadd.f32 %v18861_v53, %v20357_v41  ;;  %v18879_v30 = vadd.f32 %v18863_v61, %v9794_v39  ;;  %v9482_v29 = vsel %vm8774_vm2, %v9480_v9, %v9481_v13  ;;  %v20420_v41 = vld [vmem:[#allocation11_spill] sm:$0xff] }
 0x3d3   : > { %20354 = vst [vmem:[#allocation86_spill] sm:$0xff] %v18870_v4  ;;  %20355 = vst [vmem:[#allocation87_spill] sm:$0xff] %v18872_v18  ;;  %v9190_v28 = vadd.f32 %v18721_v21, %v20359_v26  ;;  %15084 = vmatpush3.bf16.msra.mxu0 %v15996_v55  ;;  %v9504_v60 = vadd.f32 %v9482_v29, %v9434_v11  ;;  %v9573_v24 = vadd.f32 %v18590_v25, %v9503_v32  ;;  %v15998_v25 = vld [vmem:[%s19946_s3 + $0x18] sm:$0xff]  }
 0x3d4   : > { %20358 = vst [vmem:[#allocation64_spill] sm:$0xff] %v18879_v30  ;;  %v9778_v43 = vadd.f32 %v18872_v18, %v20360_v6  ;;  %v9298_v2 = vadd.f32 %v18386_v56, %v9188_v10  ;;  %v9795_v44 = vadd.f32 %v20361_v27, %v9777_v22  ;;  %15085 = vmatprep.subr.bf16.mxu0 %v15997_v12  ;;  %v20364_v56 = vld [vmem:[#allocation8_spill] sm:$0xff]  ;;  %v20388_v6 = vld [vmem:[#allocation54_spill] sm:$0xff] }
 0x3d5   : > { %v9300_v9 = vadd.f32 %v18394_v58, %v9190_v28  ;;  %v9302_v21 = vadd.f32 %v18399_v62, %v18719_v37  ;;  %v18898_v29 = vadd.f32 %v18593_v38, %v9504_v60  ;;  %v18900_v55 = vmul.f32 0.375, %v9573_v24  ;;  %v20367_v38 = vld [vmem:[#allocation5_spill] sm:$0xff]  ;;  %v15999_v60 = vld [vmem:[%s19946_s3 + $0x20] sm:$0xff]  }
 0x3d6   : > { %v9796_v26 = vadd.f32 %v20364_v56, %v9778_v43  ;;  %v18903_v11 = vmul.f32 0.125, %v9573_v24  ;;  %v18906_v13 = vadd.f32 %v18870_v4, %v9795_v44  ;;  %v18909_v58 = vmul.f32 0.125, %v18698_v51  ;;  %v20369_v24 = vld [vmem:[#allocation6_spill] sm:$0xff]  ;;  %v20397_v4 = vld [vmem:[#allocation76_spill] sm:$0xff]  ;;  %v20398_v56 = vld [vmem:[#allocation35_spill] sm:$0xff] }
 0x3d7   : > { %20362 = vst [vmem:[#allocation7_spill] sm:$0xff] %v18898_v29  ;;  %20363 = vst [vmem:[#allocation88_spill] sm:$0xff] %v18900_v55  ;;  %v18912_v62 = vmul.f32 0.125, %v18712_v0  ;;  %v18915_v37 = vmul.f32 0.125, %v18691_v45  ;;  %v9779_v32 = vadd.f32 %v18900_v55, %v20367_v38  ;;  %v9806_v10 = vmul.f32 0.125, %v18898_v29  ;;  %15086 = vmatpush3.bf16.msra.mxu0 %v15997_v12  ;;  %v20404_v38 = vld [vmem:[#allocation27_spill] sm:$0xff] }
 0x3d8   : > { %20365 = vst [vmem:[#allocation89_spill] sm:$0xff] %v18903_v11  ;;  %20366 = vst [vmem:[#allocation90_spill] sm:$0xff] %v18906_v13  ;;  %v18921_v22 = vadd.f32 %v18903_v11, %v9796_v26  ;;  %v9359_v44 = vrot.slane %v18714_v40, 1  ;;  %v9865_v51 = vpack.c.bf16 %v18906_v13, %v18879_v30  ;;  %v20084_v0 = vrot.slane %v18909_v58, 1  ;;  %15087 = vmatprep.subr.bf16.mxu0 %v15998_v25  ;;  %v20370_v26 = vld [vmem:[#allocation19_spill] sm:$0xff] }
 0x3d9   : > { %v9362_v28 = vrot.slane %v18726_v46, 1  ;;  %v20081_v45 = vrot.slane %v18912_v62, 1  ;;  %v9797_v43 = vadd.f32 %v20369_v24, %v9779_v32  ;;  %v9365_v12 = vrot.slane %v18716_v49, 1  ;;  %v20395_v24 = vld [vmem:[#allocation18_spill] sm:$0xff] }
 0x3da   : > { %20368 = vst [vmem:[#allocation91_spill] sm:$0xff] %v18921_v22  ;;  %v20082_v40 = vrot.slane %v18915_v37, 1  ;;  %v9194_v39 = vadd.f32 %v18741_v35, %v20370_v26  ;;  %15077 = vmatprep.mubr.bf16.mxu0 %v9865_v51  ;;  %v9361_v46 = vsel %vm8774_vm2, %v9359_v44, %v20084_v0  ;;  %v18944_v30 = vmul.f32 0.125, %v18729_v5 }
 0x3db   : > { %v9364_v1 = vsel %vm8774_vm2, %v9362_v28, %v20081_v45  ;;  %v9368_v32 = vrot.slane %v18748_v20, 1  ;;  %v18947_v49 = vadd.f32 %v9806_v10, %v9797_v43  ;;  %v9408_v51 = vadd.f32 %v9361_v46, %v9298_v2  ;;  %15088 = vmatpush3.bf16.msra.mxu0 %v15998_v25  ;;  %v20372_v45 = vld [vmem:[#allocation25_spill] sm:$0xff] }
 0x3dc   : > { %v9367_v35 = vsel %vm8774_vm2, %v9365_v12, %v20082_v40  ;;  %v9410_v26 = vadd.f32 %v9364_v1, %v9300_v9  ;;  %15089 = vmatprep.subr.bf16.mxu0 %v15999_v60  ;;  %v9304_v44 = vadd.f32 %v18447_v31, %v9194_v39  ;;  %v20083_v28 = vrot.slane %v18944_v30, 1  ;;  %v16000_v1 = vld [vmem:[%s19946_s3 + $0x28] sm:$0xff]  }
 0x3dd   : > { %20371 = vst [vmem:[#allocation19_spill] sm:$0xff] %v18947_v49  ;;  %v9412_v13 = vadd.f32 %v9367_v35, %v9302_v21  ;;  %v9196_v5 = vadd.f32 %v18766_v63, %v20372_v45  ;;  %v9866_v20 = vpack.c.bf16 %v18947_v49, %v18921_v22  ;;  %v18958_v10 = vmul.f32 0.375, %v9408_v51  ;;  %v20374_v21 = vld [vmem:[#allocation36_spill] sm:$0xff]  ;;  %v20375_v45 = vld [vmem:[#allocation22_spill] sm:$0xff] }
 0x3de   : > { %v18960_v43 = vmul.f32 0.375, %v9410_v26  ;;  %v18962_v12 = vmul.f32 0.125, %v9408_v51  ;;  %v9668_v31 = vmul.f32 0.125, %v9410_v26  ;;  %v9370_v39 = vsel %vm8774_vm2, %v9368_v32, %v20083_v28  ;;  %v20376_v26 = vld [vmem:[#allocation46_spill] sm:$0xff]  ;;  %v20377_v28 = vld [vmem:[#allocation29_spill] sm:$0xff] }
 0x3df   : > { %v9600_v2 = vmul.f32 0.375, %v9412_v13  ;;  %v20373_v63 = vrot.slane %v18519_v54, 1  ;;  %15078 = vmatmul.mubr.bf16.gmra.mrb[20].mxu0 %v9866_v20  ;;  %v9614_v25 = vadd.f32 %v18958_v10, %v20374_v21  ;;  %v9414_v35 = vadd.f32 %v9370_v39, %v9304_v44 }
 0x3e0   : > { %v9616_v46 = vadd.f32 %v18960_v43, %v20375_v45  ;;  %v18979_v51 = vmul.f32 0.125, %v9412_v13  ;;  %v18984_v32 = vadd.f32 %v18962_v12, %v18597_v14  ;;  %v9708_v54 = vadd.f32 %v9668_v31, %v20377_v28  ;;  %15090 = vmatpush3.bf16.msra.mxu0 %v15999_v60  ;;  %v16001_v13 = vld [vmem:[%s19946_s3 + $0x30] sm:$0xff]  }
 0x3e1   : > { %v18973_v9 = vadd.f32 %v20373_v63, %v18679_v15  ;;  %v9618_v40 = vadd.f32 %v9600_v2, %v20376_v26  ;;  %v20378_v15 = vld [vmem:[#allocation40_spill] sm:$0xff]  ;;  %v20379_v63 = vld [vmem:[#allocation38_spill] sm:$0xff]  ;;  %15091 = vmatprep.subr.bf16.mxu0 %v16000_v1  ;;  %v18994_v44 = vmul.f32 0.125, %v9414_v35  ;;  %v9306_v14 = vadd.f32 %v18578_v23, %v9196_v5 }
 0x3e2   : > { %v9198_v20 = vadd.f32 %v18786_v33, %v20378_v15  ;;  %v9650_v21 = vadd.f32 %v20379_v63, %v9614_v25  ;;  %v9652_v0 = vadd.f32 %v20377_v28, %v9616_v46  ;;  %v18997_v39 = vadd.f32 %v9708_v54, %v9600_v2  ;;  %v20382_v2 = vld [vmem:[#allocation71_spill] sm:$0xff] }
 0x3e3   : > { %v9654_v60 = vadd.f32 %v18600_v34, %v9618_v40  ;;  %v19002_v33 = vmul.f32 0.125, %v18759_v7  ;;  %v19010_v46 = vmul.f32 0.125, %v18782_v16  ;;  %v9371_v15 = vrot.slane %v18773_v48, 1  ;;  %v16002_v16 = vld [vmem:[%s19946_s3 + $0x38] sm:$0xff]   ;;  %v20383_v54 = vld [vmem:[#allocation79_spill] sm:$0xff] }
 0x3e4   : > { %v9308_v49 = vadd.f32 %v18583_v50, %v9198_v20  ;;  %v19004_v25 = vadd.f32 %v9668_v31, %v9650_v21  ;;  %v19007_v28 = vadd.f32 %v18979_v51, %v9652_v0  ;;  %15092 = vmatpush3.bf16.msra.mxu0 %v16000_v1  ;;  %v9374_v50 = vrot.slane %v18800_v36, 1  ;;  %v20381_v0 = vld [vmem:[#allocation47_spill] sm:$0xff]  ;;  %v20384_v21 = vld [vmem:[#allocation10_spill] sm:$0xff] }
 0x3e5   : > { %v19014_v23 = vadd.f32 %v18994_v44, %v9654_v60  ;;  %v20088_v40 = vrot.slane %v19002_v33, 1  ;;  %v19018_v7 = vmul.f32 0.375, %v9414_v35  ;;  %15093 = vmatprep.subr.bf16.mxu0 %v16001_v13  ;;  %v9200_v1 = vadd.f32 %v18762_v42, %v20381_v0  ;;  %v20385_v60 = vld [vmem:[#allocation31_spill] sm:$0xff] }
 0x3e6   : > { %20380 = vst [vmem:[#allocation25_spill] sm:$0xff] %v19004_v25  ;;  %v9843_v5 = vpack.c.bf16 %v19004_v25, %v18984_v32  ;;  %v9202_v31 = vadd.f32 %v18829_v3, %v20382_v2  ;;  %v19036_v20 = vmul.f32 0.125, %v20383_v54  ;;  %v20386_v22 = vrot.slane %v20385_v60, 1 }
 0x3e7   : > { %v9373_v36 = vsel %vm8774_vm2, %v9371_v15, %v20088_v40  ;;  %v9620_v35 = vadd.f32 %v19018_v7, %v18621_v17  ;;  %v9844_v42 = vpack.c.bf16 %v19014_v23, %v19007_v28  ;;  %v20387_v3 = vrot.slane %v19010_v46, 1 }
 0x3e8   : > { %v19041_v48 = vadd.f32 %v20386_v22, %v20384_v21  ;;  %15097 = vmatprep.mubr.bf16.mxu0 %v9843_v5  ;;  %v9416_v15 = vadd.f32 %v9373_v36, %v9306_v14  ;;  %v9310_v2 = vadd.f32 %v18609_v19, %v9200_v1  ;;  %15094 = vmatpush3.bf16.msra.mxu0 %v16001_v13  ;;  %v19051_v53 = vmul.f32 0.125, %v20388_v6  ;;  %v16003_v5 = vld [vmem:[%s19946_s3 + $0x80] sm:$0xff]   ;;  %v20391_v1 = vld [vmem:[#allocation12_spill] sm:$0xff]  ;;  %v20392_v36 = vld [vmem:[#allocation30_spill] sm:$0xff] }
 0x3e9   : > { %v9376_v0 = vsel %vm8774_vm2, %v9374_v50, %v20387_v3  ;;  %v9312_v54 = vadd.f32 %v18614_v47, %v9202_v31  ;;  %v9377_v22 = vrot.slane %v18844_v57, 1  ;;  %15095 = vmatprep.subr.bf16.mxu0 %v16002_v16  ;;  %v20389_v50 = vld [vmem:[#allocation17_spill] sm:$0xff]  ;;  %v20094_v19 = vrot.slane %v19036_v20, 1  ;;  %v20390_v57 = vld [vmem:[#allocation3_spill] sm:$0xff] }
 0x3ea   : > { %v9418_v40 = vadd.f32 %v9376_v0, %v9308_v49  ;;  %v19057_v21 = vmul.f32 0.375, %v9416_v15  ;;  %v9656_v14 = vadd.f32 %v20389_v50, %v9620_v35  ;;  %v9380_v49 = vrot.slane %v18846_v59, 1  ;;  %v20393_v0 = vld [vmem:[#allocation4_spill] sm:$0xff]  ;;  %v20394_v59 = vld [vmem:[#allocation77_spill] sm:$0xff] }
 0x3eb   : > { %v19062_v13 = vmul.f32 0.125, %v9416_v15  ;;  %v20095_v47 = vrot.slane %v19051_v53, 1  ;;  %v9189_v31 = vadd.f32 %v20391_v1, %v20390_v57  ;;  %v9379_v35 = vsel %vm8774_vm2, %v9377_v22, %v20094_v19  ;;  %v20396_v1 = vld [vmem:[#allocation67_spill] sm:$0xff]  ;;  %v16004_v22 = vld [vmem:[%s19946_s3 + $0x88] sm:$0xff]  }
 0x3ec   : > { %v19065_v6 = vmul.f32 0.375, %v9418_v40  ;;  %v9622_v60 = vadd.f32 %v19057_v21, %v20392_v36  ;;  %v19071_v3 = vmul.f32 0.125, %v9418_v40  ;;  %v9191_v15 = vadd.f32 %v20394_v59, %v20393_v0  ;;  %15096 = vmatpush3.bf16.msra.mxu0 %v16002_v16  ;;  %v20400_v16 = vld [vmem:[#allocation62_spill] sm:$0xff] }
 0x3ed   : > { %v9382_v55 = vsel %vm8774_vm2, %v9380_v49, %v20095_v47  ;;  %v9420_v11 = vadd.f32 %v9379_v35, %v9310_v2  ;;  %v9193_v40 = vadd.f32 %v20397_v4, %v20396_v1  ;;  %15105 = vmatprep.subr.bf16.mxu0 %v16003_v5  ;;  %v20401_v59 = vrot.slane %v20400_v16, 1  ;;  %v20402_v49 = vld [vmem:[#allocation65_spill] sm:$0xff]  ;;  %v20406_v1 = vld [vmem:[#allocation66_spill] sm:$0xff] }
 0x3ee   : > { %v9624_v57 = vadd.f32 %v19065_v6, %v20395_v24  ;;  %v9658_v29 = vadd.f32 %v20398_v56, %v9622_v60  ;;  %v19089_v0 = vadd.f32 %v9382_v55, %v9312_v54  ;;  %v20403_v2 = vrot.slane %v20402_v49, 1  ;;  %v20415_v49 = vld [vmem:[#allocation15_spill] sm:$0xff] }
 0x3ef   : > { %v9299_v19 = vadd.f32 %v20401_v59, %v9189_v31  ;;  %v19095_v47 = vmul.f32 0.375, %v9420_v11  ;;  %v19098_v4 = vmul.f32 0.125, %v9420_v11  ;;  %v20407_v60 = vrot.slane %v20406_v1, 1  ;;  %15098 = vmatmul.mubr.bf16.vlgmr.msra.gmra.mrb[16].mxu0 %v9844_v42 }
 0x3f0   : > { %20399 = vst [vmem:[#allocation36_spill] sm:$0xff] %v19089_v0  ;;  %v9301_v35 = vadd.f32 %v20403_v2, %v9191_v15  ;;  %v9660_v18 = vadd.f32 %v20404_v38, %v9624_v57  ;;  %v19103_v27 = vadd.f32 %v19062_v13, %v9656_v14  ;;  %v19106_v55 = vadd.f32 %v19071_v3, %v9658_v29  ;;  %v20410_v57 = vld [vmem:[#allocation33_spill] sm:$0xff] }
 0x3f1   : > { %20405 = vst [vmem:[#allocation22_spill] sm:$0xff] %v19098_v4  ;;  %v9303_v61 = vadd.f32 %v20407_v60, %v9193_v40  ;;  %v20408_v54 = vrot.slane %v18909_v58, 1  ;;  %v20409_v15 = vrot.slane %v18912_v62, 1  ;;  %15106 = vmatpush3.bf16.msra.mxu0 %v16003_v5  ;;  %v9626_v11 = vadd.f32 %v19095_v47, %v20410_v57  ;;  %v16005_v58 = vld [vmem:[%s19946_s3 + $0x90] sm:$0xff]  }
 0x3f2   : > { %v9680_v59 = vmul.f32 0.125, %v19089_v0  ;;  %v19116_v42 = vadd.f32 %v19098_v4, %v9660_v18  ;;  %v20411_v14 = vrot.slane %v18915_v37, 1  ;;  %v9845_v29 = vpack.c.bf16 %v19106_v55, %v19103_v27  ;;  %15107 = vmatprep.subr.bf16.mxu0 %v16004_v22  ;;  %v20416_v37 = vld [vmem:[#allocation41_spill] sm:$0xff] }
 0x3f3   : > { %v9409_v31 = vadd.f32 %v20408_v54, %v9299_v19  ;;  %v9411_v16 = vadd.f32 %v20409_v15, %v9301_v35  ;;  %v9662_v18 = vadd.f32 %v20415_v49, %v9626_v11  ;;  %v10126_v60 = vrot.slane %v18984_v32, 1  ;;  %v20418_v54 = vld [vmem:[#allocation16_spill] sm:$0xff]  ;;  %v20422_v11 = vld [vmem:[#allocation42_spill] sm:$0xff]  ;;  %v20423_v49 = vld [vmem:[#allocation43_spill] sm:$0xff] }
 0x3f4   : > { %v9413_v40 = vadd.f32 %v20411_v14, %v9303_v61  ;;  %v20417_v61 = vld [vmem:[#allocation78_spill] sm:$0xff]  ;;  %15101 = vmatprep.mubr.bf16.mxu0 %v9845_v29  ;;  %v20419_v14 = vld [vmem:[#allocation20_spill] sm:$0xff]  ;;  %v20426_v29 = vld [vmem:[#allocation23_spill] sm:$0xff] }
 0x3f5   : > { %v19125_v62 = vmul.f32 0.375, %v9409_v31  ;;  %v19127_v5 = vmul.f32 0.375, %v9411_v16  ;;  %v19129_v19 = vmul.f32 0.125, %v9409_v31  ;;  %v9669_v35 = vmul.f32 0.125, %v9411_v16  ;;  %15108 = vmatpush3.bf16.msra.mxu0 %v16004_v22 }
 0x3f6   : > { %v9601_v2 = vmul.f32 0.375, %v9413_v40  ;;  %v9195_v1 = vadd.f32 %v20417_v61, %v20416_v37  ;;  %v19141_v4 = vadd.f32 %v9680_v59, %v9662_v18  ;;  %v20424_v37 = vld [vmem:[#allocation68_spill] sm:$0xff]  ;;  %15109 = vmatprep.subr.bf16.mxu0 %v16005_v58  ;;  %v16006_v59 = vld [vmem:[%s19946_s3 + $0x98] sm:$0xff]   ;;  %v20428_v18 = vrot.slane %v18944_v30, 1 }
 0x3f7   : > { %20412 = vst [vmem:[#allocation46_spill] sm:$0xff] %v19125_v62  ;;  %20413 = vst [vmem:[#allocation29_spill] sm:$0xff] %v19127_v5  ;;  %v9615_v15 = vadd.f32 %v19125_v62, %v20418_v54  ;;  %v9617_v57 = vadd.f32 %v19127_v5, %v20419_v14  ;;  %v9685_v31 = vadd.f32 %v19129_v19, %v20420_v41  ;;  %v20425_v61 = vrot.slane %v20424_v37, 1  ;;  %v20429_v37 = vld [vmem:[#allocation21_spill] sm:$0xff]  ;;  %v20433_v62 = vld [vmem:[#allocation50_spill] sm:$0xff] }
 0x3f8   : > { %20414 = vst [vmem:[#allocation40_spill] sm:$0xff] %v19129_v19  ;;  %20421 = vst [vmem:[#allocation38_spill] sm:$0xff] %v19141_v4  ;;  %v9619_v16 = vadd.f32 %v9601_v2, %v20422_v11  ;;  %v9709_v0 = vadd.f32 %v9669_v35, %v20423_v49  ;;  %v10129_v14 = vrot.slane %v19004_v25, 1  ;;  %v9671_v5 = vmul.f32 0.125, %v9413_v40  ;;  %v20430_v25 = vld [vmem:[#allocation44_spill] sm:$0xff] }
 0x3f9   : > { %v9305_v32 = vadd.f32 %v20425_v61, %v9195_v1  ;;  %v9651_v24 = vadd.f32 %v20426_v29, %v9615_v15  ;;  %v9653_v54 = vadd.f32 %v20423_v49, %v9617_v57  ;;  %v9846_v41 = vpack.c.bf16 %v19141_v4, %v19116_v42  ;;  %15110 = vmatpush3.bf16.msra.mxu0 %v16005_v58  ;;  %v20438_v58 = vld [vmem:[#allocation28_spill] sm:$0xff] }
 0x3fa   : > { %v19152_v22 = vadd.f32 %v9709_v0, %v9601_v2  ;;  %v9655_v61 = vadd.f32 %v20429_v37, %v9619_v16  ;;  %v10127_v11 = vrot.slane %v9685_v31, 1  ;;  %v10132_v49 = vrot.slane %v19007_v28, 1  ;;  %v20431_v0 = vld [vmem:[#allocation37_spill] sm:$0xff]  ;;  %15111 = vmatprep.subr.bf16.mxu0 %v16006_v59 }
 0x3fb   : > { %v9415_v1 = vadd.f32 %v20428_v18, %v9305_v32  ;;  %v9687_v15 = vadd.f32 %v9669_v35, %v9651_v24  ;;  %v9689_v57 = vadd.f32 %v9671_v5, %v9653_v54  ;;  %15102 = vmatmul.mubr.bf16.gmra.mrb[20].mxu0 %v9846_v41  ;;  %v9197_v2 = vadd.f32 %v20431_v0, %v20430_v25  ;;  %v16007_v35 = vld [vmem:[%s19946_s3 + $0xa0] sm:$0xff]   ;;  %v20434_v54 = vld [vmem:[#allocation69_spill] sm:$0xff]  ;;  %v20436_v18 = vld [vmem:[#allocation70_spill] sm:$0xff] }
 0x3fc   : > { %20427 = vst [vmem:[#allocation47_spill] sm:$0xff] %v19152_v22  ;;  %v20432_v22 = vld [vmem:[#allocation48_spill] sm:$0xff]  ;;  %v10135_v16 = vrot.slane %v19014_v23, 1  ;;  %v9711_v24 = vadd.f32 %v9671_v5, %v20429_v37  ;;  %v20435_v25 = vrot.slane %v20434_v54, 1 }
 0x3fd   : > { %v19161_v40 = vmul.f32 0.125, %v9415_v1  ;;  %v9199_v19 = vadd.f32 %v20433_v62, %v20432_v22  ;;  %v9603_v29 = vmul.f32 0.375, %v9415_v1  ;;  %v10130_v30 = vrot.slane %v9687_v15, 1  ;;  %15112 = vmatpush3.bf16.msra.mxu0 %v16006_v59 }
 0x3fe   : > { %v10133_v32 = vrot.slane %v9689_v57, 1  ;;  %v9307_v41 = vadd.f32 %v20435_v25, %v9197_v2  ;;  %v20437_v62 = vrot.slane %v20436_v18, 1  ;;  %v10128_v15 = vsel %vm8774_vm2, %v10126_v60, %v10127_v11  ;;  %v20442_v18 = vld [vmem:[#allocation26_spill] sm:$0xff]  ;;  %15113 = vmatprep.subr.bf16.mxu0 %v16007_v35 }
 0x3ff   : > { %v9691_v31 = vadd.f32 %v19161_v40, %v9655_v61  ;;  %v9621_v1 = vadd.f32 %v9603_v29, %v20438_v58  ;;  %v19180_v57 = vsel %vm8774_vm2, %v10129_v14, %v10130_v30  ;;  %v19185_v37 = vadd.f32 %v9711_v24, %v9603_v29  ;;  %v20443_v14 = vld [vmem:[#allocation49_spill] sm:$0xff] }
 0x400   : > { %v9309_v22 = vadd.f32 %v20437_v62, %v9199_v19  ;;  %20439 = vst [vmem:[#allocation71_spill] sm:$0xff] %v19180_v57  ;;  %v19183_v5 = vsel %vm8774_vm2, %v10132_v49, %v10133_v32  ;;  %v10158_v61 = vpack.c.bf16 %v19180_v57, %v10128_v15  ;;  %v20440_v2 = vrot.slane %v19002_v33, 1  ;;  %v20444_v49 = vld [vmem:[#allocation72_spill] sm:$0xff] }
 0x401   : > { %v10136_v0 = vrot.slane %v9691_v31, 1  ;;  %v20441_v19 = vrot.slane %v19010_v46, 1  ;;  %v19193_v60 = vmul.f32 0.375, %v20442_v18  ;;  %v9201_v11 = vadd.f32 %v18776_v52, %v20443_v14  ;;  %v16008_v33 = vld [vmem:[%s19946_s3 + $0xa8] sm:$0xff]   ;;  %15114 = vmatpush3.bf16.msra.mxu0 %v16007_v35 }
 0x402   : > { %v9417_v54 = vadd.f32 %v20440_v2, %v9307_v41  ;;  %v9203_v29 = vadd.f32 %v18832_v8, %v20444_v49  ;;  %v19200_v30 = vmul.f32 0.125, %v20442_v18  ;;  %15121 = vmatprep.mubr.bf16.mxu0 %v10158_v61  ;;  %v20446_v32 = vld [vmem:[#allocation24_spill] sm:$0xff]  ;;  %v10138_v31 = vrot.slane %v19103_v27, 1  ;;  %v20447_v41 = vld [vmem:[#allocation74_spill] sm:$0xff]  ;;  %v20449_v61 = vld [vmem:[#allocation45_spill] sm:$0xff]  ;;  %15115 = vmatprep.subr.bf16.mxu0 %v16008_v33 }
 0x403   : > { %v9419_v25 = vadd.f32 %v20441_v19, %v9309_v22  ;;  %v19206_v46 = vsel %vm8774_vm2, %v10135_v16, %v10136_v0  ;;  %v9657_v24 = vadd.f32 %v20446_v32, %v9621_v1  ;;  %v20448_v62 = vrot.slane %v20447_v41, 1  ;;  %v20450_v2 = vld [vmem:[#allocation75_spill] sm:$0xff] }
 0x404   : > { %20445 = vst [vmem:[#allocation79_spill] sm:$0xff] %v19206_v46  ;;  %v19208_v59 = vmul.f32 0.375, %v9417_v54  ;;  %v19211_v52 = vmul.f32 0.125, %v9417_v54  ;;  %v20451_v19 = vrot.slane %v20450_v2, 1  ;;  %v9706_v54 = vadd.f32 %v18962_v12, %v20379_v63 }
 0x405   : > { %v9311_v22 = vadd.f32 %v20448_v62, %v9201_v11  ;;  %v19218_v15 = vmul.f32 0.375, %v9419_v25  ;;  %v19227_v18 = vmul.f32 0.125, %v9419_v25  ;;  %v20452_v14 = vrot.slane %v19036_v20, 1  ;;  %15116 = vmatpush3.bf16.msra.mxu0 %v16008_v33 }
 0x406   : > { %v9623_v16 = vadd.f32 %v19208_v59, %v20449_v61  ;;  %v9693_v0 = vadd.f32 %v19211_v52, %v9657_v24  ;;  %v9313_v1 = vadd.f32 %v20451_v19, %v9203_v29  ;;  %v19234_v41 = vmul.f32 0.375, %v18973_v9  ;;  %v16009_v29 = vld [vmem:[%s19946_s3 + $0xb0] sm:$0xff]   ;;  %v20455_v19 = vld [vmem:[#allocation32_spill] sm:$0xff] }
 0x407   : > { %v9421_v49 = vadd.f32 %v20452_v14, %v9311_v22  ;;  %v9625_v11 = vadd.f32 %v19218_v15, %v19200_v30  ;;  %v9722_v63 = vadd.f32 %v9706_v54, %v18960_v43  ;;  %v9710_v20 = vadd.f32 %v18979_v51, %v18600_v34  ;;  %15117 = vmatprep.subr.bf16.mxu0 %v16009_v29 }
 0x408   : > { %v9659_v24 = vadd.f32 %v19193_v60, %v9623_v16  ;;  %v10139_v12 = vrot.slane %v9693_v0, 1  ;;  %v19244_v35 = vmul.f32 0.125, %v18973_v9  ;;  %v19249_v62 = vmul.f32 0.375, %v19041_v48 }
 0x409   : > { %v19246_v25 = vmul.f32 0.375, %v9421_v49  ;;  %v9661_v22 = vadd.f32 %v19234_v41, %v9625_v11  ;;  %v20454_v43 = vrot.slane %v19051_v53, 1  ;;  %v19260_v34 = vmul.f32 0.125, %v9421_v49  ;;  %v16010_v53 = vld [vmem:[%s19946_s3 + $0xb8] sm:$0xff]   ;;  %15118 = vmatpush3.bf16.msra.mxu0 %v16009_v29 }
 0x40a   : > { %v9695_v2 = vadd.f32 %v19227_v18, %v9659_v24  ;;  %v19254_v16 = vsel %vm8774_vm2, %v10138_v31, %v10139_v12  ;;  %v9720_v54 = vadd.f32 %v20455_v19, %v18958_v10  ;;  %v9726_v14 = vadd.f32 %v9710_v20, %v19018_v7  ;;  %v8672_v24 = vld [vmem:[#allocation2 + $0x130] sm:$0xff]  ;;  %15119 = vmatprep.subr.bf16.mxu0 %v16010_v53 }
 0x40b   : > { %20453 = vst [vmem:[#allocation10_spill] sm:$0xff] %v19254_v16  ;;  %v19258_v0 = vadd.f32 %v20454_v43, %v9313_v1  ;;  %v9627_v51 = vadd.f32 %v19246_v25, %v19244_v35  ;;  %v10141_v31 = vrot.slane %v19106_v55, 1  ;;  %v9697_v33 = vadd.f32 %v19260_v34, %v9661_v22  ;;  %v8652_v20 = vld [vmem:[#allocation2 + $0x90] sm:$0xff]  ;;  %v20457_v43 = vld [vmem:[#allocation34_spill] sm:$0xff]  ;;  %v20458_v22 = vld [vmem:[#allocation63_spill] sm:$0xff] }
 0x40c   : > { %v19275_v1 = vadd.f32 %v9722_v63, %v20376_v26  ;;  %v10142_v49 = vrot.slane %v9695_v2, 1  ;;  %v19280_v10 = vadd.f32 %v18997_v39, %v18621_v17  ;;  %v19283_v7 = vadd.f32 %v9726_v14, %v20392_v36  ;;  %v8653_v39 = vld [vmem:[#allocation2 + $0x98] sm:$0x3] }
 0x40d   : > { %v9663_v11 = vadd.f32 %v19249_v62, %v9627_v51  ;;  %v9681_v12 = vmul.f32 0.125, %v19258_v0  ;;  %v19287_v19 = vmul.f32 0.125, %v20457_v43  ;;  %v19290_v26 = vmul.f32 0.125, %v20458_v22  ;;  %v16011_v51 = vld [vmem:[%s19946_s3 + $0xc0] sm:$0xff]   ;;  %15120 = vmatpush3.bf16.msra.mxu0 %v16010_v53 }
 0x40e   : > { %20456 = vst [vmem:[#allocation31_spill] sm:$0xff] %v19283_v7  ;;  %v19293_v63 = vadd.f32 %v9720_v54, %v20375_v45  ;;  %v19297_v36 = vmul.f32 0.125, %v8652_v20  ;;  %v19300_v2 = vmul.f32 0.125, %v19041_v48  ;;  %v10144_v29 = vrot.slane %v19116_v42, 1  ;;  %v8673_v54 = vld [vmem:[#allocation2 + $0x138] sm:$0x3]  ;;  %15129 = vmatprep.subr.bf16.mxu0 %v16011_v51 }
 0x40f   : > { %v9699_v14 = vadd.f32 %v9681_v12, %v9663_v11  ;;  %v10147_v45 = vrot.slane %v19141_v4, 1  ;;  %v19307_v43 = vmul.f32 0.375, %v8672_v24  ;;  %v19310_v22 = vsel %vm8774_vm2, %v10141_v31, %v10142_v49 }
 0x410   : > { %20459 = vst [vmem:[#allocation54_spill] sm:$0xff] %v19310_v22  ;;  %v10145_v9 = vrot.slane %v9697_v33, 1  ;;  %v8752_v17 = vmul.f32 0.375, %v8652_v20  ;;  %v9712_v8 = vadd.f32 %v18994_v44, %v20389_v50  ;;  %v9714_v11 = vadd.f32 %v19062_v13, %v20398_v56  ;;  %v16012_v44 = vld [vmem:[%s19946_s3 + $0xc8] sm:$0xff]  }
 0x411   : > { %v19318_v12 = vmul.f32 0.375, %v8653_v39  ;;  %v8863_v4 = vmul.f32 0.125, %v8672_v24  ;;  %v19322_v33 = vmul.f32 0.125, %v8673_v54  ;;  %v10160_v20 = vpack.c.bf16 %v19310_v22, %v19254_v16  ;;  %v20463_v16 = vld [vmem:[#allocation9_spill] sm:$0xff] }
 0x412   : > { %v8802_v49 = vrot.slane %v8752_v17, 1  ;;  %v10148_v56 = vrot.slane %v9699_v14, 1  ;;  %v9728_v50 = vadd.f32 %v9712_v8, %v19057_v21  ;;  %v8732_v13 = vadd.f32 %v19307_v43, %v19297_v36  ;;  %v20462_v14 = vld [vmem:[#allocation57_spill] sm:$0xff] }
 0x413   : > { %v8912_v24 = vrot.slane %v8863_v4, 1  ;;  %v9716_v31 = vadd.f32 %v19071_v3, %v20404_v38  ;;  %v20460_v57 = vpack.c.bf16 %v19206_v46, %v19183_v5  ;;  %v19340_v48 = vsel %vm8774_vm2, %v10144_v29, %v10145_v9  ;;  %v20475_v46 = vld [vmem:[#allocation60_spill] sm:$0xff] }
 0x414   : > { %20461 = vst [vmem:[#allocation17_spill] sm:$0xff] %v19340_v48  ;;  %v9730_v8 = vadd.f32 %v9714_v11, %v19065_v6  ;;  %v19346_v53 = vadd.f32 %v20463_v16, %v20462_v14  ;;  %v19348_v17 = vmul.f32 0.375, %v8673_v54  ;;  %v20465_v38 = vrot.slane %v19318_v12, 1  ;;  %v16013_v6 = vld [vmem:[%s19946_s3 + $0xd0] sm:$0xff]   ;;  %v20467_v16 = vld [vmem:[#allocation18_spill] sm:$0xff]  ;;  %v20468_v54 = vld [vmem:[#allocation36_spill] sm:$0xff] }
 0x415   : > { %15122 = vmatmul.mubr.bf16.vlgmr.msra.gmra.mrb[16].mxu0 %v20460_v57  ;;  %v20466_v57 = vrot.slane %v19322_v33, 1  ;;  %v9732_v29 = vadd.f32 %v9716_v31, %v19095_v47  ;;  %v19361_v11 = vadd.f32 %v9728_v50, %v20467_v16  ;;  %v20469_v14 = vld [vmem:[#allocation15_spill] sm:$0xff]  ;;  %v19369_v21 = vsel %vm8774_vm2, %v10147_v45, %v10148_v56  ;;  %v20472_v31 = vld [vmem:[#allocation58_spill] sm:$0xff]  ;;  %v20476_v50 = vld [vmem:[#allocation85_spill] sm:$0xff] }
 0x416   : > { %20464 = vst [vmem:[#allocation3_spill] sm:$0xff] %v19346_v53  ;;  %15125 = vmatprep.mubr.bf16.mxu0 %v10160_v20  ;;  %15130 = vmatpush3.bf16.msra.mxu0 %v16011_v51  ;;  %v8804_v3 = vsel %vm8774_vm2, %v8802_v49, %v20465_v38  ;;  %v19364_v20 = vmul.f32 0.375, %v20468_v54  ;;  %v20470_v49 = vld [vmem:[#allocation22_spill] sm:$0xff]  ;;  %20471 = vst [vmem:[#allocation12_spill] sm:$0xff] %v19369_v21  ;;  %v9823_v16 = vadd.f32 %v20476_v50, %v20475_v46  ;;  %v20477_v54 = vld [vmem:[#allocation33_spill] sm:$0xff] }
 0x417   : > { %v8914_v9 = vsel %vm8774_vm2, %v8912_v24, %v20466_v57  ;;  %15131 = vmatprep.subr.bf16.mxu0 %v16012_v44  ;;  %v8843_v51 = vadd.f32 %v8804_v3, %v8732_v13  ;;  %v9718_v38 = vadd.f32 %v20470_v49, %v20469_v14  ;;  %v19372_v47 = vadd.f32 %v9732_v29, %v19287_v19  ;;  %v20473_v24 = vld [vmem:[#allocation84_spill] sm:$0xff]  ;;  %v20478_v29 = vld [vmem:[#allocation87_spill] sm:$0xff]  ;;  %v16014_v46 = vld [vmem:[%s19946_s3 + $0xd8] sm:$0xff]  }
 0x418   : > { %v19376_v57 = vadd.f32 %v20473_v24, %v20472_v31  ;;  %v10161_v13 = vpack.c.bf16 %v19369_v21, %v19340_v48  ;;  %v19383_v22 = vadd.f32 %v9730_v8, %v20477_v54  ;;  %v9012_v45 = vrot.slane %v19307_v43, 1  ;;  %v20479_v50 = vld [vmem:[#allocation5_spill] sm:$0xff]  ;;  %v20483_v56 = vld [vmem:[#allocation86_spill] sm:$0xff] }
 0x419   : > { %v19385_v14 = vadd.f32 %v8914_v9, %v8843_v51  ;;  %v9831_v49 = vadd.f32 %v9823_v16, %v20478_v29  ;;  %v8693_v31 = vmul.f32 0.125, %v8653_v39  ;;  %v8964_v24 = vadd.f32 %v8863_v4, %v8804_v3  ;;  %v20481_v4 = vld [vmem:[#allocation7_spill] sm:$0xff]  ;;  %v20482_v29 = vld [vmem:[#allocation8_spill] sm:$0xff]  ;;  %v20485_v21 = vld [vmem:[#allocation89_spill] sm:$0xff] }
 0x41a   : > { %20474 = vst [vmem:[#allocation30_spill] sm:$0xff] %v19376_v57  ;;  %15132 = vmatpush3.bf16.msra.mxu0 %v16012_v44  ;;  %v9734_v8 = vadd.f32 %v9718_v38, %v19364_v20  ;;  %v9013_v51 = vrot.slane %v19348_v17, 1  ;;  %v9083_v43 = vrot.slane %v19297_v36, 2  ;;  %v10609_v44 = vrot.slane %v19283_v7, 1  ;;  %v20484_v57 = vld [vmem:[#allocation6_spill] sm:$0xff]  ;;  %v20492_v7 = vld [vmem:[#allocation47_spill] sm:$0xff] }
 0x41b   : > { %15133 = vmatprep.subr.bf16.mxu0 %v16013_v6  ;;  %v9736_v9 = vmul.f32 0.125, %v19385_v14  ;;  %v19400_v54 = vadd.f32 %v9831_v49, %v20479_v50  ;;  %v9084_v39 = vrot.slane %v8693_v31, 2  ;;  %v19403_v3 = vmul.f32 0.375, %v20481_v4 }
 0x41c   : > { %v10612_v16 = vrot.slane %v19361_v11, 1  ;;  %v9014_v38 = vsel %vm8774_vm2, %v9012_v45, %v9013_v51  ;;  %v9824_v53 = vadd.f32 %v20483_v56, %v20482_v29  ;;  %v9825_v36 = vadd.f32 %v20485_v21, %v20484_v57  ;;  %v16015_v45 = vld [vmem:[%s19946_s3 + $0xe0] sm:$0xff]   ;;  %v20487_v21 = vld [vmem:[#allocation88_spill] sm:$0xff] }
 0x41d   : > { %20480 = vst [vmem:[#allocation4_spill] sm:$0xff] %v19400_v54  ;;  %15126 = vmatmul.mubr.bf16.gmra.mrb[20].mxu0 %v10161_v13  ;;  %v20486_v49 = vpack.c.bf16 %v19275_v1, %v19293_v63  ;;  %v10615_v50 = vrot.slane %v19383_v22, 1  ;;  %v9034_v13 = vadd.f32 %v9014_v38, %v8964_v24  ;;  %v9085_v54 = vsel %vm9055_vm12, %v9083_v43, %v9084_v39  ;;  %v20489_v24 = vld [vmem:[#allocation40_spill] sm:$0xff]  ;;  %v20490_v43 = vld [vmem:[#allocation46_spill] sm:$0xff] }
 0x41e   : > { %15134 = vmatpush3.bf16.msra.mxu0 %v16013_v6  ;;  %v19420_v56 = vadd.f32 %v9736_v9, %v9734_v8  ;;  %v9832_v6 = vadd.f32 %v9824_v53, %v20487_v21  ;;  %v9833_v57 = vadd.f32 %v9825_v36, %v19403_v3  ;;  %v19425_v51 = vmul.f32 0.375, %v19258_v0  ;;  %v20491_v39 = vld [vmem:[#allocation14_spill] sm:$0xff]  ;;  %v20493_v36 = vld [vmem:[#allocation29_spill] sm:$0xff]  ;;  %v20494_v21 = vld [vmem:[#allocation20_spill] sm:$0xff] }
 0x41f   : > { %15145 = vmatprep.mubr.bf16.mxu0 %v20486_v49  ;;  %15135 = vmatprep.subr.bf16.mxu0 %v16014_v46  ;;  %v19427_v29 = vadd.f32 %v9085_v54, %v9034_v13  ;;  %v20488_v49 = vld [vmem:[#allocation23_spill] sm:$0xff]  ;;  %v9721_v4 = vadd.f32 %v20491_v39, %v20490_v43  ;;  %v9743_v48 = vadd.f32 %v20492_v7, %v20438_v58  ;;  %v16016_v7 = vld [vmem:[%s19946_s3 + $0xe8] sm:$0xff]  }
 0x420   : > { %v9707_v38 = vadd.f32 %v20489_v24, %v20488_v49  ;;  %v19436_v8 = vadd.f32 %v9832_v6, %v19290_v26  ;;  %v9745_v53 = vadd.f32 %v19185_v37, %v20449_v61  ;;  %v9713_v0 = vadd.f32 %v19161_v40, %v20446_v32 }
 0x421   : > { %v9715_v9 = vadd.f32 %v19211_v52, %v19193_v60  ;;  %v9834_v54 = vmul.f32 0.125, %v19427_v29  ;;  %v9739_v49 = vadd.f32 %v9721_v4, %v20494_v21  ;;  %v10607_v58 = vrot.slane %v9743_v48, 1  ;;  %v20495_v52 = vld [vmem:[#allocation42_spill] sm:$0xff] }
 0x422   : > { %15136 = vmatpush3.bf16.msra.mxu0 %v16014_v46  ;;  %v9723_v13 = vadd.f32 %v9707_v38, %v20493_v36  ;;  %v10610_v37 = vrot.slane %v9745_v53, 1  ;;  %v9729_v61 = vadd.f32 %v9713_v0, %v19208_v59  ;;  %v8733_v60 = vadd.f32 %v19348_v17, %v8693_v31  ;;  %v20501_v36 = vld [vmem:[#allocation25_spill] sm:$0xff] }
 0x423   : > { %15137 = vmatprep.subr.bf16.mxu0 %v16015_v45  ;;  %v9731_v40 = vadd.f32 %v9715_v9, %v19218_v15  ;;  %v19453_v32 = vadd.f32 %v9834_v54, %v9833_v57  ;;  %v10601_v6 = vrot.slane %v9739_v49, 1  ;;  %v20496_v4 = vrot.slane %v19280_v10, 1 }
 0x424   : > { %v9741_v46 = vadd.f32 %v9723_v13, %v20495_v52  ;;  %v19462_v24 = vsel %vm8774_vm2, %v10609_v44, %v10610_v37  ;;  %v9747_v38 = vadd.f32 %v9729_v61, %v19200_v30  ;;  %v20497_v15 = vrot.slane %v19318_v12, 1  ;;  %v16017_v30 = vld [vmem:[%s19946_s3 + $0xf0] sm:$0xff]  }
 0x425   : > { %v19459_v48 = vsel %vm8774_vm2, %v20496_v4, %v10607_v58  ;;  %v9749_v59 = vadd.f32 %v9731_v40, %v19244_v35  ;;  %v10445_v31 = vpack.c.bf16 %v19453_v32, %v19436_v8  ;;  %v20498_v57 = vrot.slane %v19293_v63, 1  ;;  %v9124_v58 = vld [vmem:[#allocation2 + $0x1d0] sm:$0xff]  ;;  %v16031_v8 = vld [vmem:[%s19946_s3 + $0x160] sm:$0xff]  }
 0x426   : > { %v8844_v17 = vadd.f32 %v20497_v15, %v8733_v60  ;;  %15138 = vmatpush3.bf16.msra.mxu0 %v16015_v45  ;;  %v10604_v39 = vrot.slane %v9741_v46, 1  ;;  %v10613_v35 = vrot.slane %v9747_v38, 1  ;;  %v20499_v45 = vrot.slane %v19322_v33, 1  ;;  %v9144_v33 = vld [vmem:[#allocation2 + $0x270] sm:$0xff] }
 0x427   : > { %v19473_v43 = vsel %vm8774_vm2, %v20498_v57, %v10601_v6  ;;  %15139 = vmatprep.subr.bf16.mxu0 %v16016_v7  ;;  %v10616_v12 = vrot.slane %v9749_v59, 1  ;;  %v9717_v63 = vadd.f32 %v19227_v18, %v19234_v41  ;;  %v20500_v0 = vrot.slane %v19275_v1, 1 }
 0x428   : > { %v19482_v53 = vadd.f32 %v20499_v45, %v8844_v17  ;;  %v9719_v54 = vadd.f32 %v19260_v34, %v19249_v62  ;;  %v19500_v18 = vsel %vm8774_vm2, %v10612_v16, %v10613_v35  ;;  %v9125_v62 = vld [vmem:[#allocation2 + $0x1d8] sm:$0x3]  ;;  %v19517_v60 = vmul.f32 0.125, %v9124_v58 }
 0x429   : > { %v19489_v9 = vsel %vm8774_vm2, %v20500_v0, %v10604_v39  ;;  %v19503_v41 = vsel %vm8774_vm2, %v10615_v50, %v10616_v12  ;;  %v9733_v1 = vadd.f32 %v9717_v63, %v19246_v25  ;;  %v9145_v16 = vld [vmem:[#allocation2 + $0x278] sm:$0x3]  ;;  %v10621_v25 = vrot.slane %v19420_v56, 1  ;;  %v16019_v63 = vld [vmem:[%s19946_s3 + $0x100] sm:$0xff]   ;;  %v20502_v0 = vld [vmem:[#allocation53_spill] sm:$0xff] }
 0x42a   : > { %v10632_v49 = vpack.c.bf16 %v19489_v9, %v19473_v43  ;;  %15140 = vmatpush3.bf16.msra.mxu0 %v16016_v7  ;;  %v9735_v37 = vadd.f32 %v9719_v54, %v19425_v51  ;;  %v9737_v61 = vmul.f32 0.125, %v19482_v53  ;;  %v16018_v50 = vld [vmem:[%s19946_s3 + $0xf8] sm:$0xff]   ;;  %v19519_v52 = vmul.f32 0.375, %v9144_v33  ;;  %v20503_v54 = vld [vmem:[#allocation80_spill] sm:$0xff] }
 0x42b   : > { %15141 = vmatprep.subr.bf16.mxu0 %v16017_v30  ;;  %v9751_v7 = vadd.f32 %v9733_v1, %v19300_v2  ;;  %v9224_v6 = vmul.f32 0.375, %v9124_v58  ;;  %v9225_v4 = vmul.f32 0.375, %v9125_v62  ;;  %v19521_v38 = vmul.f32 0.125, %v9144_v33 }
 0x42c   : > { %v9753_v46 = vadd.f32 %v9737_v61, %v9735_v37  ;;  %v9204_v15 = vadd.f32 %v19519_v52, %v19517_v60  ;;  %v9335_v17 = vmul.f32 0.125, %v9145_v16  ;;  %v9628_v57 = vadd.f32 %v19364_v20, %v19287_v19 }
 0x42d   : > { %v10619_v59 = vrot.slane %v9751_v7, 1  ;;  %v9273_v35 = vrot.slane %v9224_v6, 1  ;;  %v9274_v12 = vrot.slane %v9225_v4, 1  ;;  %v9383_v45 = vrot.slane %v19521_v38, 1 }
 0x42e   : > { %15142 = vmatpush3.bf16.msra.mxu0 %v16017_v30  ;;  %v10622_v39 = vrot.slane %v9753_v46, 1  ;;  %v9819_v33 = vadd.f32 %v20503_v54, %v20502_v0  ;;  %v20504_v1 = vrot.slane %v19372_v47, 1  ;;  %v9384_v19 = vrot.slane %v9335_v17, 1 }
 0x42f   : > { %15143 = vmatprep.subr.bf16.mxu0 %v16018_v50  ;;  %v9646_v20 = vmul.f32 0.375, %v19385_v14  ;;  %v19542_v37 = vmul.f32 0.375, %v9145_v16  ;;  %v19545_v61 = vsel %vm8774_vm2, %v9273_v35, %v9274_v12  ;;  %v19547_v7 = vmul.f32 0.125, %v9125_v62  ;;  %v16020_v16 = vld [vmem:[%s19946_s3 + $0x108] sm:$0xff]   ;;  %v20506_v35 = vld [vmem:[#allocation71_spill] sm:$0xff] }
 0x430   : > { %v19536_v58 = vsel %vm8774_vm2, %v20504_v1, %v10619_v59  ;;  %v19540_v30 = vsel %vm8774_vm2, %v10621_v25, %v10622_v39  ;;  %v9314_v6 = vadd.f32 %v19545_v61, %v9204_v15  ;;  %v9385_v4 = vsel %vm8774_vm2, %v9383_v45, %v9384_v19  ;;  %v20505_v39 = vld [vmem:[#allocation81_spill] sm:$0xff] }
 0x431   : > { %v9664_v59 = vadd.f32 %v9646_v20, %v9628_v57  ;;  %v10302_v14 = vpack.c.bf16 %v19383_v22, %v19361_v11  ;;  %v9780_v62 = vadd.f32 %v19403_v3, %v19290_v26  ;;  %v9789_v17 = vmul.f32 0.375, %v19427_v29  ;;  %v20508_v45 = vld [vmem:[#allocation17_spill] sm:$0xff]  ;;  %v20509_v11 = vld [vmem:[#allocation31_spill] sm:$0xff] }
 0x432   : > { %15144 = vmatpush3.bf16.msra.mxu0 %v16018_v50  ;;  %v9424_v25 = vadd.f32 %v9385_v4, %v9314_v6  ;;  %v9827_v15 = vadd.f32 %v9819_v33, %v20505_v39  ;;  %v20507_v50 = vld [vmem:[#allocation54_spill] sm:$0xff]  ;;  %v9205_v22 = vadd.f32 %v19542_v37, %v19547_v7  ;;  %v20510_v54 = vpack.c.bf16 %v20509_v11, %v19280_v10  ;;  %v20511_v26 = vld [vmem:[#allocation39_spill] sm:$0xff]  ;;  %v20512_v3 = vld [vmem:[#allocation13_spill] sm:$0xff] }
 0x433   : > { %15153 = vmatprep.subr.bf16.mxu0 %v16019_v63  ;;  %v19571_v20 = vadd.f32 %v9789_v17, %v9780_v62  ;;  %v9826_v29 = vadd.f32 %v20512_v3, %v20511_v26  ;;  %v16052_v33 = vld [vmem:[%s19948_s5] sm:$0xff]   ;;  %v9629_v4 = vadd.f32 %v19425_v51, %v19300_v2  ;;  %v9647_v39 = vmul.f32 0.375, %v19482_v53  ;;  %v16021_v10 = vld [vmem:[%s19946_s3 + $0x110] sm:$0xff]   ;;  %v20514_v11 = vld [vmem:[#allocation38_spill] sm:$0xff] }
 0x434   : > { %v9682_v1 = vmul.f32 0.125, %v9424_v25  ;;  %v9315_v6 = vadd.f32 %v9274_v12, %v9205_v22  ;;  %15273 = vmatprep.subr.bf16.mxu1 %v16052_v33  ;;  %v20515_v2 = vld [vmem:[#allocation51_spill] sm:$0xff]  ;;  %v16054_v53 = vld [vmem:[%s19948_s5 + $0x8] sm:$0xff]  }
 0x435   : > { %15146 = vmatmul.mubr.bf16.vlgmr.msra.gmra.mrb[16].mxu0 %v20510_v54  ;;  %v9665_v17 = vadd.f32 %v9647_v39, %v9629_v4  ;;  %15274 = vmatpush3.bf16.msra.mxu1 %v16052_v33  ;;  %v9835_v51 = vadd.f32 %v9826_v29, %v20515_v2  ;;  %v16058_v33 = vld [vmem:[%s19948_s5 + $0x18] sm:$0xff]   ;;  %v9483_v4 = vrot.slane %v19519_v52, 1  ;;  %v9484_v39 = vrot.slane %v19542_v37, 1 }
 0x436   : > { %15149 = vmatprep.mubr.bf16.mxu0 %v10302_v14  ;;  %15154 = vmatpush3.bf16.msra.mxu0 %v16019_v63  ;;  %v19584_v14 = vadd.f32 %v9682_v1, %v9664_v59  ;;  %v20513_v63 = vld [vmem:[#allocation52_spill] sm:$0xff]  ;;  %v9425_v62 = vadd.f32 %v9384_v19, %v9315_v6  ;;  %v10303_v59 = vpack.c.bf16 %v19420_v56, %v19372_v47  ;;  %v16022_v19 = vld [vmem:[%s19946_s3 + $0x118] sm:$0xff]   ;;  %v16056_v1 = vld [vmem:[%s19948_s5 + $0x10] sm:$0xff]   ;;  %v9553_v52 = vrot.slane %v19517_v60, 2 }
 0x437   : > { %15155 = vmatprep.subr.bf16.mxu0 %v16020_v16  ;;  %v9836_v25 = vadd.f32 %v9827_v15, %v20513_v63  ;;  %15275 = vmatprep.subr.bf16.mxu1 %v16054_v53  ;;  %v16023_v47 = vld [vmem:[%s19946_s3 + $0x120] sm:$0xff]   ;;  %v16024_v6 = vld [vmem:[%s19946_s3 + $0x128] sm:$0xff]   ;;  %v16025_v63 = vld [vmem:[%s19946_s3 + $0x130] sm:$0xff]   ;;  %v9554_v37 = vrot.slane %v19547_v7, 2 }
 0x438   : > { %v9683_v22 = vmul.f32 0.125, %v9425_v62  ;;  %v11060_v54 = vrot.slane %v19584_v14, 1  ;;  %v9485_v62 = vsel %vm8774_vm2, %v9483_v4, %v9484_v39  ;;  %v16026_v2 = vld [vmem:[%s19946_s3 + $0x138] sm:$0xff]   ;;  %v20523_v4 = vld [vmem:[#allocation3_spill] sm:$0xff] }
 0x439   : > { %v10442_v15 = vpack.c.bf16 %v9836_v25, %v9835_v51  ;;  %15276 = vmatpush3.bf16.msra.mxu1 %v16054_v53  ;;  %v9435_v25 = vadd.f32 %v19521_v38, %v19545_v61  ;;  %v20517_v51 = vld [vmem:[#allocation59_spill] sm:$0xff]  ;;  %v9555_v7 = vsel %vm9055_vm12, %v9553_v52, %v9554_v37  ;;  %v20527_v37 = vld [vmem:[#allocation90_spill] sm:$0xff] }
 0x43a   : > { %15156 = vmatpush3.bf16.msra.mxu0 %v16020_v16  ;;  %v9701_v16 = vadd.f32 %v9683_v22, %v9665_v17  ;;  %15277 = vmatprep.subr.bf16.mxu1 %v16056_v1  ;;  %v16062_v17 = vld [vmem:[%s19948_s5 + $0x28] sm:$0xff]   ;;  %v20518_v53 = vld [vmem:[#allocation55_spill] sm:$0xff]  ;;  %v20519_v22 = vld [vmem:[#allocation73_spill] sm:$0xff] }
 0x43b   : > { %15157 = vmatprep.subr.bf16.mxu0 %v16021_v10  ;;  %v9822_v38 = vadd.f32 %v20518_v53, %v20517_v51  ;;  %v9505_v61 = vadd.f32 %v9485_v62, %v9435_v25  ;;  %v20525_v25 = vld [vmem:[#allocation56_spill] sm:$0xff]  ;;  %v20526_v62 = vld [vmem:[#allocation83_spill] sm:$0xff] }
 0x43c   : > { %v11061_v26 = vrot.slane %v9701_v16, 1  ;;  %v11245_v51 = vld [vmem:[%s16157_s24] ss:$8 sps:$4 sm:$0xff]   ;;  %v11246_v53 = vld [vmem:[%s16157_s24 + $0x4] sm:$0x1] }
 0x43d   : > { %15150 = vmatmul.mubr.bf16.gmra.mrb[20].mxu0 %v10303_v59  ;;  %15278 = vmatpush3.bf16.msra.mxu1 %v16056_v1  ;;  %v9830_v60 = vadd.f32 %v9822_v38, %v20519_v22  ;;  %v16064_v59 = vld [vmem:[%s19948_s5 + $0x30] sm:$0xff]   ;;  %v16066_v1 = vld [vmem:[%s19948_s5 + $0x38] sm:$0xff]   ;;  %v11248_v38 = vld [vmem:[%s16157_s24 + $0xc] sm:$0x1] }
 0x43e   : > { %15158 = vmatpush3.bf16.msra.mxu0 %v16021_v10  ;;  %15169 = vmatprep.mubr.bf16.mxu0 %v10442_v15  ;;  %v19606_v56 = vsel %vm8774_vm2, %v11060_v54, %v11061_v26  ;;  %v16060_v10 = vld [vmem:[%s19948_s5 + $0x20] sm:$0xff]   ;;  %v9575_v15 = vadd.f32 %v9555_v7, %v9505_v61  ;;  %v20520_v54 = vld [vmem:[#allocation61_spill] sm:$0xff]  ;;  %v16028_v26 = vld [vmem:[%s19946_s3 + $0x148] sm:$0xff]   ;;  %v11264_v7 = vunpack.c.l.bf16 %v11246_v53 }
 0x43f   : > { %15159 = vmatprep.subr.bf16.mxu0 %v16022_v19  ;;  %15279 = vmatprep.subr.bf16.mxu1 %v16058_v33  ;;  %v9839_v16 = vadd.f32 %v9830_v60, %v20520_v54  ;;  %v11249_v61 = vld [vmem:[%s16157_s24 + $0x10] ss:$56 sps:$4 sm:$0xff]   ;;  %v11250_v22 = vld [vmem:[%s16157_s24 + $0x14] sm:$0x1]  ;;  %v11263_v60 = vunpack.c.l.bf16 %v11245_v51 }
 0x440   : > { %v11267_v54 = vunpack.c.l.bf16 %v11249_v61  ;;  %v11345_v21 = vmul.f32 0.375, %v11264_v7 }
 0x441   : > { %15280 = vmatpush3.bf16.msra.mxu1 %v16058_v33 }
 0x442   : > { %15160 = vmatpush3.bf16.msra.mxu0 %v16022_v19  ;;  %15281 = vmatprep.subr.bf16.mxu1 %v16060_v10  ;;  %v16027_v19 = vld [vmem:[%s19946_s3 + $0x140] sm:$0xff]   ;;  %v11319_v12 = vmul.f32 0.125, %v11267_v54 }
 0x443   : > { %15161 = vmatprep.subr.bf16.mxu0 %v16023_v47 }
 0x445   : > { %15282 = vmatpush3.bf16.msra.mxu1 %v16060_v10  ;;  %v16029_v10 = vld [vmem:[%s19946_s3 + $0x150] sm:$0xff]  }
 0x446   : > { %15162 = vmatpush3.bf16.msra.mxu0 %v16023_v47  ;;  %15283 = vmatprep.subr.bf16.mxu1 %v16062_v17  ;;  %v20521_v47 = vld [vmem:[#allocation4_spill] sm:$0xff] }
 0x447   : > { %15163 = vmatprep.subr.bf16.mxu0 %v16024_v6  ;;  %v10444_v33 = vpack.c.bf16 %v20521_v47, %v9839_v16  ;;  %v11268_v16 = vunpack.c.l.bf16 %v11250_v22  ;;  %v13579_v47 = vld [vmem:[%s16157_s24 + $0x54] sm:$0x1]  ;;  %v11344_v22 = vmul.f32 0.375, %v11263_v60 }
 0x448   : > { %v11302_v29 = vunpack.c.l.bf16 %v13579_v47  ;;  %v11348_v47 = vmul.f32 0.375, %v11267_v54 }
 0x449   : > { %15284 = vmatpush3.bf16.msra.mxu1 %v16062_v17  ;;  %v20528_v17 = vld [vmem:[#allocation91_spill] sm:$0xff]  ;;  %v11380_v46 = vrot.slane %v11344_v22, 1 }
 0x44a   : > { %15164 = vmatpush3.bf16.msra.mxu0 %v16024_v6  ;;  %15285 = vmatprep.subr.bf16.mxu1 %v16064_v59  ;;  %v20522_v6 = vld [vmem:[#allocation30_spill] sm:$0xff]  ;;  %v11428_v9 = vmul.f32 0.125, %v11302_v29 }
 0x44b   : > { %15165 = vmatprep.subr.bf16.mxu0 %v16025_v63  ;;  %v20524_v39 = vpack.c.bf16 %v20522_v6, %v20523_v4  ;;  %v11299_v6 = vunpack.c.h.bf16 %v11249_v61 }
 0x44c   : > { %v11465_v29 = vrot.slane %v11428_v9, 1 }
 0x44d   : > { %15286 = vmatpush3.bf16.msra.mxu1 %v16064_v59  ;;  %v11265_v59 = vunpack.c.h.bf16 %v11245_v51  ;;  %v11326_v40 = vmul.f32 0.375, %v11299_v6  ;;  %v16030_v51 = vld [vmem:[%s19946_s3 + $0x158] sm:$0xff]  }
 0x44e   : > { %15166 = vmatpush3.bf16.msra.mxu0 %v16025_v63  ;;  %15287 = vmatprep.subr.bf16.mxu1 %v16066_v1  ;;  %v19659_v63 = vmul.f32 0.125, %v9575_v15  ;;  %v11266_v15 = vunpack.c.l.bf16 %v11248_v38 }
 0x44f   : > { %15167 = vmatprep.subr.bf16.mxu0 %v16026_v2  ;;  %v11318_v52 = vmul.f32 0.125, %v11265_v59 }
 0x450   : > { %v11347_v13 = vmul.f32 0.375, %v11266_v15 }
 0x451   : > { %15288 = vmatpush3.bf16.msra.mxu1 %v16066_v1  ;;  %v13578_v1 = vld [vmem:[%s16157_s24 + $0x50] ss:$8 sps:$4 sm:$0xff]  }
 0x452   : > { %15168 = vmatpush3.bf16.msra.mxu0 %v16026_v2  ;;  %v11303_v0 = vunpack.c.h.bf16 %v13578_v1  ;;  %v11317_v2 = vmul.f32 0.125, %v11263_v60  ;;  %v11381_v60 = vrot.slane %v11345_v21, 1 }
 0x453   : > { %15177 = vmatprep.subr.bf16.mxu0 %v16027_v19 }
 0x454   : > { %v11328_v38 = vmul.f32 0.375, %v11303_v0  ;;  %v11335_v61 = vadd.f32 %v11326_v40, %v11317_v2  ;;  %v11384_v40 = vrot.slane %v11347_v13, 1  ;;  %v11386_v2 = vrot.slane %v11348_v47, 1  ;;  %v13594_v13 = vld [vmem:[%s16157_s24 + $0x90] ss:$8 sps:$4 sm:$0xff]  }
 0x455   : > { %15170 = vmatmul.mubr.bf16.vlgmr.msra.gmra.mrb[16].mxu0 %v20524_v39  ;;  %v11301_v39 = vunpack.c.l.bf16 %v13578_v1  ;;  %v11429_v21 = vmul.f32 0.125, %v11303_v0  ;;  %v16032_v0 = vld [vmem:[%s19946_s3 + $0x168] sm:$0xff]  }
 0x456   : > { %15173 = vmatprep.mubr.bf16.mxu0 %v10444_v33  ;;  %15178 = vmatpush3.bf16.msra.mxu0 %v16027_v19  ;;  %v13577_v19 = vld [vmem:[%s16157_s24 + $0x4c] sm:$0x1]  ;;  %v13581_v33 = vld [vmem:[%s16157_s24 + $0x5c] sm:$0x1]  ;;  %v11337_v1 = vadd.f32 %v11328_v38, %v11319_v12  ;;  %v13598_v38 = vld [vmem:[%s16157_s24 + $0xa0] ss:$56 sps:$4 sm:$0xff]  }
 0x457   : > { %15179 = vmatprep.subr.bf16.mxu0 %v16028_v26  ;;  %v11300_v4 = vunpack.c.l.bf16 %v13577_v19  ;;  %v11304_v57 = vunpack.c.l.bf16 %v13581_v33  ;;  %v11327_v53 = vmul.f32 0.375, %v11301_v39  ;;  %v11346_v19 = vmul.f32 0.375, %v11265_v59 }
 0x458   : > { %v11349_v33 = vmul.f32 0.375, %v11268_v16  ;;  %v13595_v16 = vld [vmem:[%s16157_s24 + $0x94] sm:$0x1]  ;;  %v11467_v22 = vrot.slane %v11429_v21, 1  ;;  %v11560_v9 = vunpack.c.h.bf16 %v13598_v38 }
 0x459   : > { %v11383_v7 = vrot.slane %v11346_v19, 1  ;;  %v11426_v12 = vmul.f32 0.125, %v11300_v4  ;;  %v11430_v54 = vmul.f32 0.125, %v11304_v57  ;;  %v11524_v19 = vunpack.c.l.bf16 %v13594_v13  ;;  %v16033_v21 = vld [vmem:[%s19946_s3 + $0x170] sm:$0xff]  }
 0x45a   : > { %15180 = vmatpush3.bf16.msra.mxu0 %v16028_v26  ;;  %v11336_v26 = vadd.f32 %v11327_v53, %v11318_v52  ;;  %v11387_v32 = vrot.slane %v11349_v33, 1  ;;  %v11382_v52 = vsel %vm8774_vm2, %v11380_v46, %v11381_v60  ;;  %v13597_v53 = vld [vmem:[%s16157_s24 + $0x9c] sm:$0x1]  ;;  %v11525_v47 = vunpack.c.l.bf16 %v13595_v16  ;;  %v13614_v60 = vld [vmem:[%s16157_s24 + $0xe0] ss:$8 sps:$4 sm:$0xff]  }
 0x45b   : > { %15181 = vmatprep.subr.bf16.mxu0 %v16029_v10  ;;  %v11385_v43 = vsel %vm8774_vm2, %v11383_v7, %v11384_v40  ;;  %v11416_v59 = vadd.f32 %v11382_v52, %v11335_v61  ;;  %v11462_v46 = vrot.slane %v11426_v12, 1  ;;  %v11468_v57 = vrot.slane %v11430_v54, 1  ;;  %v13599_v61 = vld [vmem:[%s16157_s24 + $0xa4] sm:$0x1]  ;;  %v13613_v33 = vld [vmem:[%s16157_s24 + $0xdc] sm:$0x1] }
 0x45c   : > { %v11417_v15 = vadd.f32 %v11385_v43, %v11336_v26  ;;  %v11526_v26 = vunpack.c.h.bf16 %v13594_v13  ;;  %v13615_v7 = vld [vmem:[%s16157_s24 + $0xe4] sm:$0x1]  ;;  %v13617_v12 = vld [vmem:[%s16157_s24 + $0xec] sm:$0x1]  ;;  %v11529_v43 = vunpack.c.l.bf16 %v13599_v61  ;;  %v11561_v13 = vunpack.c.l.bf16 %v13613_v33  ;;  %v16034_v61 = vld [vmem:[%s19946_s3 + $0x178] sm:$0xff]  }
 0x45d   : > { %15174 = vmatmul.mubr.bf16.gmra.mrb[20].mxu0 %v10445_v31  ;;  %v11425_v31 = vmul.f32 0.125, %v11299_v6  ;;  %v11563_v54 = vunpack.c.l.bf16 %v13615_v7  ;;  %v11564_v16 = vunpack.c.h.bf16 %v13614_v60 }
 0x45e   : > { %15182 = vmatpush3.bf16.msra.mxu0 %v16029_v10  ;;  %15193 = vmatprep.mubr.bf16.mxu0 %v10632_v49  ;;  %v11427_v10 = vmul.f32 0.125, %v11301_v39  ;;  %v11388_v49 = vsel %vm8774_vm2, %v11386_v2, %v11387_v32  ;;  %v11469_v2 = vsel %vm8774_vm2, %v11467_v22, %v11468_v57  ;;  %v11610_v7 = vmul.f32 0.375, %v11529_v43  ;;  %v16035_v43 = vld [vmem:[%s19946_s3 + $0x180] sm:$0xff]  }
 0x45f   : > { %15183 = vmatprep.subr.bf16.mxu0 %v16030_v51  ;;  %v11418_v6 = vadd.f32 %v11388_v49, %v11337_v1  ;;  %v11461_v4 = vrot.slane %v11425_v31, 1  ;;  %v11527_v1 = vunpack.c.l.bf16 %v13597_v53  ;;  %v11528_v31 = vunpack.c.l.bf16 %v13598_v38 }
 0x460   : > { %v11464_v39 = vrot.slane %v11427_v10, 1  ;;  %v11562_v49 = vunpack.c.l.bf16 %v13614_v60  ;;  %v11565_v53 = vunpack.c.l.bf16 %v13617_v12  ;;  %v11607_v38 = vmul.f32 0.375, %v11526_v26 }
 0x461   : > { %v19706_v52 = vadd.f32 %v11469_v2, %v11418_v6  ;;  %v11605_v6 = vmul.f32 0.375, %v11524_v19  ;;  %v11608_v22 = vmul.f32 0.375, %v11527_v1  ;;  %v11609_v57 = vmul.f32 0.375, %v11528_v31 }
 0x462   : > { %15184 = vmatpush3.bf16.msra.mxu0 %v16030_v51  ;;  %v11463_v51 = vsel %vm8774_vm2, %v11461_v4, %v11462_v46  ;;  %v11466_v40 = vsel %vm8774_vm2, %v11464_v39, %v11465_v29  ;;  %v11579_v4 = vmul.f32 0.125, %v11526_v26  ;;  %v11580_v46 = vmul.f32 0.125, %v11528_v31 }
 0x463   : > { %15185 = vmatprep.subr.bf16.mxu0 %v16031_v8  ;;  %v11497_v32 = vadd.f32 %v11463_v51, %v11416_v59  ;;  %v19704_v10 = vadd.f32 %v11466_v40, %v11417_v15  ;;  %v11578_v59 = vmul.f32 0.125, %v11524_v19  ;;  %v11588_v15 = vmul.f32 0.375, %v11562_v49 }
 0x464   : > { %v11589_v39 = vmul.f32 0.375, %v11564_v16  ;;  %v11606_v29 = vmul.f32 0.375, %v11525_v47  ;;  %v11641_v40 = vrot.slane %v11605_v6, 1  ;;  %v11644_v12 = vrot.slane %v11607_v38, 1 }
 0x465   : > { %v11597_v33 = vadd.f32 %v11588_v15, %v11579_v4  ;;  %v11645_v34 = vrot.slane %v11608_v22, 1  ;;  %v11647_v44 = vrot.slane %v11609_v57, 1  ;;  %v11648_v19 = vrot.slane %v11610_v7, 1  ;;  %v11254_v57 = vld [vmem:[%s16157_s24 + $0x24] sm:$0x1] }
 0x466   : > { %15186 = vmatpush3.bf16.msra.mxu0 %v16031_v8  ;;  %v11587_v8 = vmul.f32 0.375, %v11560_v9  ;;  %v11598_v60 = vadd.f32 %v11589_v39, %v11580_v46  ;;  %v11642_v2 = vrot.slane %v11606_v29, 1  ;;  %v11687_v47 = vmul.f32 0.125, %v11561_v13  ;;  %v11251_v39 = vld [vmem:[%s16157_s24 + $0x18] ss:$8 sps:$4 sm:$0xff]  }
 0x467   : > { %15187 = vmatprep.subr.bf16.mxu0 %v16032_v0  ;;  %v11646_v1 = vsel %vm8774_vm2, %v11644_v12, %v11645_v34  ;;  %v11688_v31 = vmul.f32 0.125, %v11562_v49  ;;  %v11689_v3 = vmul.f32 0.125, %v11563_v54  ;;  %v11767_v6 = vmul.f32 0.125, %v11497_v32  ;;  %v11252_v29 = vld [vmem:[%s16157_s24 + $0x1c] sm:$0x1] }
 0x468   : > { %v11596_v51 = vadd.f32 %v11587_v8, %v11578_v59  ;;  %v11643_v26 = vsel %vm8774_vm2, %v11641_v40, %v11642_v2  ;;  %v11649_v59 = vsel %vm8774_vm2, %v11647_v44, %v11648_v19  ;;  %v11678_v46 = vadd.f32 %v11646_v1, %v11597_v33  ;;  %v16036_v44 = vld [vmem:[%s19946_s3 + $0x188] sm:$0xff]  }
 0x469   : > { %v11679_v13 = vadd.f32 %v11649_v59, %v11598_v60  ;;  %v11723_v15 = vrot.slane %v11687_v47, 1  ;;  %v11725_v34 = vrot.slane %v11688_v31, 1  ;;  %v11726_v49 = vrot.slane %v11689_v3, 1  ;;  %v13582_v33 = vld [vmem:[%s16157_s24 + $0x60] ss:$8 sps:$4 sm:$0xff]  }
 0x46a   : > { %15188 = vmatpush3.bf16.msra.mxu0 %v16032_v0  ;;  %v11686_v0 = vmul.f32 0.125, %v11560_v9  ;;  %v11677_v4 = vadd.f32 %v11643_v26, %v11596_v51  ;;  %v11690_v9 = vmul.f32 0.125, %v11564_v16  ;;  %v11769_v22 = vmul.f32 0.125, %v19706_v52  ;;  %v13583_v60 = vld [vmem:[%s16157_s24 + $0x64] sm:$0x1] }
 0x46b   : > { %15189 = vmatprep.subr.bf16.mxu0 %v16033_v21  ;;  %v11727_v3 = vsel %vm8774_vm2, %v11725_v34, %v11726_v49  ;;  %v11791_v32 = vmul.f32 0.375, %v19704_v10  ;;  %v11269_v2 = vunpack.c.l.bf16 %v11251_v39  ;;  %v11270_v12 = vunpack.c.l.bf16 %v11252_v29  ;;  %v13585_v31 = vld [vmem:[%s16157_s24 + $0x6c] sm:$0x1] }
 0x46c   : > { %v11722_v8 = vrot.slane %v11686_v0, 1  ;;  %v11728_v54 = vrot.slane %v11690_v9, 1  ;;  %v11759_v40 = vadd.f32 %v11727_v3, %v11678_v46  ;;  %v20529_v19 = vpack.c.bf16 %v19462_v24, %v19459_v48  ;;  %v16037_v48 = vld [vmem:[%s19946_s3 + $0x190] sm:$0xff]  }
 0x46d   : > { %v11271_v26 = vunpack.c.h.bf16 %v11251_v39  ;;  %v11272_v1 = vunpack.c.l.bf16 %v11254_v57  ;;  %v11306_v46 = vunpack.c.l.bf16 %v13583_v60  ;;  %v11320_v39 = vmul.f32 0.125, %v11269_v2 }
 0x46e   : > { %15190 = vmatpush3.bf16.msra.mxu0 %v16033_v21  ;;  %v11691_v21 = vmul.f32 0.125, %v11565_v53  ;;  %v11724_v16 = vsel %vm8774_vm2, %v11722_v8, %v11723_v15  ;;  %v11768_v53 = vmul.f32 0.125, %v19704_v10  ;;  %v20530_v10 = vpack.c.bf16 %v19503_v41, %v19500_v18 }
 0x46f   : > { %15191 = vmatprep.subr.bf16.mxu0 %v16034_v61  ;;  %v11758_v51 = vadd.f32 %v11724_v16, %v11677_v4  ;;  %v11807_v59 = vmul.f32 0.125, %v11759_v40  ;;  %v11305_v4 = vunpack.c.l.bf16 %v13582_v33  ;;  %v11308_v15 = vunpack.c.l.bf16 %v13585_v31  ;;  %v13603_v31 = vld [vmem:[%s16157_s24 + $0xb4] sm:$0x1] }
 0x470   : > { %v11729_v38 = vrot.slane %v11691_v21, 1  ;;  %v11307_v21 = vunpack.c.h.bf16 %v13582_v33  ;;  %v11321_v34 = vmul.f32 0.125, %v11271_v26  ;;  %v11350_v29 = vmul.f32 0.375, %v11269_v2 }
 0x471   : > { %v11775_v47 = vmul.f32 0.375, %v11758_v51  ;;  %v11351_v16 = vmul.f32 0.375, %v11270_v12  ;;  %v11353_v51 = vmul.f32 0.375, %v11272_v1  ;;  %v20531_v60 = vpack.c.bf16 %v19540_v30, %v19536_v58  ;;  %v13618_v58 = vld [vmem:[%s16157_s24 + $0xf0] ss:$8 sps:$4 sm:$0xff]   ;;  %v16039_v30 = vld [vmem:[%s19946_s3 + $0x1a0] sm:$0xff]  }
 0x472   : > { %15192 = vmatpush3.bf16.msra.mxu0 %v16034_v61  ;;  %v11792_v61 = vmul.f32 0.375, %v19706_v52  ;;  %v11730_v7 = vsel %vm8774_vm2, %v11728_v54, %v11729_v38  ;;  %v11776_v52 = vmul.f32 0.375, %v11759_v40  ;;  %v11330_v49 = vmul.f32 0.375, %v11307_v21 }
 0x473   : > { %15201 = vmatprep.subr.bf16.mxu0 %v16035_v43  ;;  %v11760_v0 = vadd.f32 %v11730_v7, %v11679_v13  ;;  %v11783_v9 = vadd.f32 %v11775_v47, %v11767_v6  ;;  %v11352_v38 = vmul.f32 0.375, %v11271_v26  ;;  %v16038_v6 = vld [vmem:[%s19946_s3 + $0x198] sm:$0xff]   ;;  %v11389_v33 = vrot.slane %v11350_v29, 1 }
 0x474   : > { %v11784_v8 = vadd.f32 %v11776_v52, %v11768_v53  ;;  %v11339_v3 = vadd.f32 %v11330_v49, %v11321_v34  ;;  %v11393_v7 = vrot.slane %v11353_v51, 1  ;;  %v11431_v40 = vmul.f32 0.125, %v11305_v4 }
 0x475   : > { %15194 = vmatmul.mubr.bf16.vlgmr.msra.gmra.mrb[16].mxu0 %v20529_v19  ;;  %v11777_v24 = vmul.f32 0.375, %v11760_v0  ;;  %v11808_v13 = vmul.f32 0.125, %v11760_v0  ;;  %v11799_v41 = vadd.f32 %v11791_v32, %v11783_v9  ;;  %v11432_v2 = vmul.f32 0.125, %v11306_v46  ;;  %v13601_v19 = vld [vmem:[%s16157_s24 + $0xac] sm:$0x1] }
 0x476   : > { %15197 = vmatprep.mubr.bf16.mxu0 %v20530_v10  ;;  %15202 = vmatpush3.bf16.msra.mxu0 %v16035_v43  ;;  %v11329_v43 = vmul.f32 0.375, %v11305_v4  ;;  %v11800_v54 = vadd.f32 %v11792_v61, %v11784_v8  ;;  %v11392_v61 = vrot.slane %v11352_v38, 1  ;;  %v11433_v12 = vmul.f32 0.125, %v11307_v21 }
 0x477   : > { %15203 = vmatprep.subr.bf16.mxu0 %v16036_v44  ;;  %v19745_v18 = vadd.f32 %v11777_v24, %v11769_v22  ;;  %v11815_v53 = vadd.f32 %v11807_v59, %v11799_v41  ;;  %v13600_v22 = vld [vmem:[%s16157_s24 + $0xa8] ss:$8 sps:$4 sm:$0xff]   ;;  %v20532_v0 = vpack.c.bf16 %v19007_v28, %v20501_v36  ;;  %v11434_v1 = vmul.f32 0.125, %v11308_v15  ;;  %v13619_v28 = vld [vmem:[%s16157_s24 + $0xf4] sm:$0x1] }
 0x478   : > { %v11338_v57 = vadd.f32 %v11329_v43, %v11320_v39  ;;  %v11816_v32 = vadd.f32 %v11808_v13, %v11800_v54  ;;  %v11530_v10 = vunpack.c.l.bf16 %v13600_v22  ;;  %v11394_v52 = vsel %vm8774_vm2, %v11392_v61, %v11393_v7  ;;  %v13621_v13 = vld [vmem:[%s16157_s24 + $0xfc] sm:$0x1]  ;;  %v16040_v54 = vld [vmem:[%s19946_s3 + $0x1a8] sm:$0xff]   ;;  %v16041_v61 = vld [vmem:[%s19946_s3 + $0x1b0] sm:$0xff]  }
 0x479   : > { %v11470_v4 = vrot.slane %v11431_v40, 1  ;;  %v11471_v46 = vrot.slane %v11432_v2, 1  ;;  %v11420_v36 = vadd.f32 %v11394_v52, %v11339_v3  ;;  %v11474_v24 = vrot.slane %v11434_v1, 1 }
 0x47a   : > { %15204 = vmatpush3.bf16.msra.mxu0 %v16036_v44  ;;  %v11390_v44 = vrot.slane %v11351_v16, 1  ;;  %v11823_v47 = vpack.c.bf16 %v11816_v32, %v11815_v53  ;;  %v11531_v9 = vunpack.c.l.bf16 %v13601_v19  ;;  %v11532_v8 = vunpack.c.h.bf16 %v13600_v22 }
 0x47b   : > { %15205 = vmatprep.subr.bf16.mxu0 %v16037_v48  ;;  %v11472_v21 = vsel %vm8774_vm2, %v11470_v4, %v11471_v46  ;;  %v11533_v15 = vunpack.c.l.bf16 %v13603_v31  ;;  %v11566_v39 = vunpack.c.l.bf16 %v13618_v58  ;;  %v11567_v43 = vunpack.c.l.bf16 %v13619_v28  ;;  %v11258_v28 = vld [vmem:[%s16157_s24 + $0x34] sm:$0x1] }
 0x47c   : > { %v11391_v26 = vsel %vm8774_vm2, %v11389_v33, %v11390_v44  ;;  %15289 = vmatprep.mubr.bf16.mxu1 %v11823_v47  ;;  %v11568_v49 = vunpack.c.h.bf16 %v13618_v58  ;;  %v11569_v16 = vunpack.c.l.bf16 %v13621_v13  ;;  %v11581_v38 = vmul.f32 0.125, %v11530_v10  ;;  %v13586_v13 = vld [vmem:[%s16157_s24 + $0x70] ss:$8 sps:$4 sm:$0xff]  }
 0x47d   : > { %15198 = vmatmul.mubr.bf16.gmra.mrb[20].mxu0 %v20531_v60  ;;  %v11419_v59 = vadd.f32 %v11391_v26, %v11338_v57  ;;  %v11582_v53 = vmul.f32 0.125, %v11532_v8  ;;  %v11590_v57 = vmul.f32 0.375, %v11566_v39  ;;  %v11611_v51 = vmul.f32 0.375, %v11530_v10  ;;  %v11255_v26 = vld [vmem:[%s16157_s24 + $0x28] ss:$8 sps:$4 sm:$0xff]  }
 0x47e   : > { %15206 = vmatpush3.bf16.msra.mxu0 %v16037_v48  ;;  %15217 = vmatprep.mubr.bf16.mxu0 %v20532_v0  ;;  %v11473_v48 = vrot.slane %v11433_v12, 1  ;;  %v11591_v3 = vmul.f32 0.375, %v11568_v49  ;;  %v11612_v22 = vmul.f32 0.375, %v11531_v9  ;;  %v11614_v32 = vmul.f32 0.375, %v11533_v15 }
 0x47f   : > { %15207 = vmatprep.subr.bf16.mxu0 %v16038_v6  ;;  %v11500_v41 = vadd.f32 %v11472_v21, %v11419_v59  ;;  %v11692_v33 = vmul.f32 0.125, %v11566_v39  ;;  %v11693_v44 = vmul.f32 0.125, %v11567_v43  ;;  %v11599_v60 = vadd.f32 %v11590_v57, %v11581_v38  ;;  %v13587_v21 = vld [vmem:[%s16157_s24 + $0x74] sm:$0x1] }
 0x480   : > { %v11475_v34 = vsel %vm8774_vm2, %v11473_v48, %v11474_v24  ;;  %v11600_v7 = vadd.f32 %v11591_v3, %v11582_v53  ;;  %v11650_v40 = vrot.slane %v11611_v51, 1  ;;  %v11651_v2 = vrot.slane %v11612_v22, 1 }
 0x481   : > { %v19772_v29 = vadd.f32 %v11475_v34, %v11420_v36  ;;  %v11654_v19 = vrot.slane %v11614_v32, 1  ;;  %v11694_v0 = vmul.f32 0.125, %v11568_v49  ;;  %v11695_v47 = vmul.f32 0.125, %v11569_v16  ;;  %v13589_v49 = vld [vmem:[%s16157_s24 + $0x7c] sm:$0x1] }
 0x482   : > { %15208 = vmatpush3.bf16.msra.mxu0 %v16038_v6  ;;  %v11613_v6 = vmul.f32 0.375, %v11532_v8  ;;  %v11652_v1 = vsel %vm8774_vm2, %v11650_v40, %v11651_v2  ;;  %v11731_v31 = vrot.slane %v11692_v33, 1  ;;  %v11732_v10 = vrot.slane %v11693_v44, 1  ;;  %v16042_v8 = vld [vmem:[%s19946_s3 + $0x1b8] sm:$0xff]   ;;  %v16043_v44 = vld [vmem:[%s19946_s3 + $0x1c0] sm:$0xff]  }
 0x483   : > { %15209 = vmatprep.subr.bf16.mxu0 %v16039_v30  ;;  %v11770_v58 = vmul.f32 0.125, %v11500_v41  ;;  %v11680_v59 = vadd.f32 %v11652_v1, %v11599_v60  ;;  %v11734_v4 = vrot.slane %v11694_v0, 1  ;;  %v11735_v46 = vrot.slane %v11695_v47, 1 }
 0x484   : > { %v11653_v12 = vrot.slane %v11613_v6, 1  ;;  %v11733_v48 = vsel %vm8774_vm2, %v11731_v31, %v11732_v10  ;;  %v11793_v24 = vmul.f32 0.375, %v11500_v41  ;;  %v11794_v9 = vmul.f32 0.375, %v19772_v29  ;;  %v13604_v31 = vld [vmem:[%s16157_s24 + $0xb8] ss:$8 sps:$4 sm:$0xff]  }
 0x485   : > { %v11736_v15 = vsel %vm8774_vm2, %v11734_v4, %v11735_v46  ;;  %v11761_v39 = vadd.f32 %v11733_v48, %v11680_v59  ;;  %v11273_v34 = vunpack.c.l.bf16 %v11255_v26  ;;  %v11275_v41 = vunpack.c.h.bf16 %v11255_v26  ;;  %v16044_v59 = vld [vmem:[%s19946_s3 + $0x1c8] sm:$0xff]   ;;  %v13605_v48 = vld [vmem:[%s16157_s24 + $0xbc] sm:$0x1] }
 0x486   : > { %15210 = vmatpush3.bf16.msra.mxu0 %v16039_v30  ;;  %v11256_v30 = vld [vmem:[%s16157_s24 + $0x2c] sm:$0x1]  ;;  %v11655_v52 = vsel %vm8774_vm2, %v11653_v12, %v11654_v19  ;;  %v11801_v16 = vadd.f32 %v11793_v24, %v19745_v18  ;;  %v11276_v38 = vunpack.c.l.bf16 %v11258_v28  ;;  %v11309_v3 = vunpack.c.l.bf16 %v13586_v13 }
 0x487   : > { %15211 = vmatprep.subr.bf16.mxu0 %v16040_v54  ;;  %v11681_v36 = vadd.f32 %v11655_v52, %v11600_v7  ;;  %v11274_v43 = vunpack.c.l.bf16 %v11256_v30  ;;  %v11778_v53 = vmul.f32 0.375, %v11761_v39  ;;  %v11809_v57 = vmul.f32 0.125, %v11761_v39 }
 0x488   : > { %v11310_v51 = vunpack.c.l.bf16 %v13587_v21  ;;  %v11311_v6 = vunpack.c.h.bf16 %v13586_v13  ;;  %v11312_v32 = vunpack.c.l.bf16 %v13589_v49  ;;  %v11322_v33 = vmul.f32 0.125, %v11273_v34  ;;  %v13607_v21 = vld [vmem:[%s16157_s24 + $0xc4] sm:$0x1] }
 0x489   : > { %v11786_v60 = vadd.f32 %v11778_v53, %v11770_v58  ;;  %v11817_v18 = vadd.f32 %v11809_v57, %v11801_v16  ;;  %v11323_v7 = vmul.f32 0.125, %v11275_v41  ;;  %v11331_v40 = vmul.f32 0.375, %v11309_v3 }
 0x48a   : > { %15212 = vmatpush3.bf16.msra.mxu0 %v16040_v54  ;;  %v19791_v54 = vadd.f32 %v11736_v15, %v11681_v36  ;;  %v11332_v2 = vmul.f32 0.375, %v11311_v6  ;;  %v11354_v12 = vmul.f32 0.375, %v11273_v34  ;;  %v11355_v19 = vmul.f32 0.375, %v11274_v43  ;;  %v13622_v15 = vld [vmem:[%s16157_s24 + $0x100] ss:$8 sps:$4 sm:$0xff]  }
 0x48b   : > { %15213 = vmatprep.subr.bf16.mxu0 %v16041_v61  ;;  %v11356_v0 = vmul.f32 0.375, %v11275_v41  ;;  %v11340_v47 = vadd.f32 %v11331_v40, %v11322_v33  ;;  %v11357_v26 = vmul.f32 0.375, %v11276_v38  ;;  %v11435_v1 = vmul.f32 0.125, %v11309_v3  ;;  %v13623_v41 = vld [vmem:[%s16157_s24 + $0x104] sm:$0x1] }
 0x48c   : > { %v11810_v22 = vmul.f32 0.125, %v19791_v54  ;;  %v11341_v10 = vadd.f32 %v11332_v2, %v11323_v7  ;;  %v11395_v30 = vrot.slane %v11354_v12, 1  ;;  %v11396_v52 = vrot.slane %v11355_v19, 1 }
 0x48d   : > { %v11398_v58 = vrot.slane %v11356_v0, 1  ;;  %v11399_v46 = vrot.slane %v11357_v26, 1  ;;  %v11436_v28 = vmul.f32 0.125, %v11310_v51  ;;  %v11437_v36 = vmul.f32 0.125, %v11311_v6 }
 0x48e   : > { %15214 = vmatpush3.bf16.msra.mxu0 %v16041_v61  ;;  %v11802_v61 = vadd.f32 %v11794_v9, %v11786_v60  ;;  %v11397_v24 = vsel %vm8774_vm2, %v11395_v30, %v11396_v52  ;;  %v11438_v9 = vmul.f32 0.125, %v11312_v32  ;;  %v11476_v13 = vrot.slane %v11435_v1, 1 }
 0x48f   : > { %15215 = vmatprep.subr.bf16.mxu0 %v16042_v8  ;;  %v20533_v39 = vpack.c.bf16 %v19103_v27, %v19014_v23  ;;  %v11400_v43 = vsel %vm8774_vm2, %v11398_v58, %v11399_v46  ;;  %v11421_v49 = vadd.f32 %v11397_v24, %v11340_v47  ;;  %v11477_v16 = vrot.slane %v11436_v28, 1  ;;  %v16045_v27 = vld [vmem:[%s19946_s3 + $0x1d0] sm:$0xff]   ;;  %v16046_v47 = vld [vmem:[%s19946_s3 + $0x1d8] sm:$0xff]  }
 0x490   : > { %v11818_v4 = vadd.f32 %v11810_v22, %v11802_v61  ;;  %v20534_v38 = vpack.c.bf16 %v19116_v42, %v19106_v55  ;;  %v11422_v53 = vadd.f32 %v11400_v43, %v11341_v10  ;;  %v11479_v57 = vrot.slane %v11437_v36, 1  ;;  %v13625_v22 = vld [vmem:[%s16157_s24 + $0x10c] sm:$0x1] }
 0x491   : > { %v11480_v3 = vrot.slane %v11438_v9, 1  ;;  %v11535_v51 = vunpack.c.l.bf16 %v13605_v48  ;;  %v11478_v23 = vsel %vm8774_vm2, %v11476_v13, %v11477_v16  ;;  %v11536_v6 = vunpack.c.h.bf16 %v13604_v31  ;;  %v16047_v9 = vld [vmem:[%s19946_s3 + $0x1e0] sm:$0xff]  }
 0x492   : > { %15216 = vmatpush3.bf16.msra.mxu0 %v16042_v8  ;;  %v11534_v8 = vunpack.c.l.bf16 %v13604_v31  ;;  %v11824_v34 = vpack.c.bf16 %v11818_v4, %v11817_v18  ;;  %v11537_v32 = vunpack.c.l.bf16 %v13607_v21  ;;  %v11570_v33 = vunpack.c.l.bf16 %v13622_v15 }
 0x493   : > { %15225 = vmatprep.subr.bf16.mxu0 %v16043_v44  ;;  %v11481_v55 = vsel %vm8774_vm2, %v11479_v57, %v11480_v3  ;;  %v11502_v42 = vadd.f32 %v11478_v23, %v11421_v49  ;;  %v11572_v60 = vunpack.c.h.bf16 %v13622_v15  ;;  %v11573_v7 = vunpack.c.l.bf16 %v13625_v22  ;;  %v13591_v22 = vld [vmem:[%s16157_s24 + $0x84] sm:$0x1] }
 0x494   : > { %15290 = vmatmul.mubr.bf16.vlgmr.msra.gmra.mrb[24].mxu1 %v11824_v34  ;;  %v19820_v18 = vadd.f32 %v11481_v55, %v11422_v53  ;;  %v11583_v40 = vmul.f32 0.125, %v11534_v8  ;;  %v11584_v2 = vmul.f32 0.125, %v11536_v6  ;;  %v11592_v12 = vmul.f32 0.375, %v11570_v33  ;;  %v11260_v34 = vld [vmem:[%s16157_s24 + $0x3c] sm:$0x1] }
 0x495   : > { %15218 = vmatmul.mubr.bf16.vlgmr.msra.gmra.mrb[16].mxu0 %v20533_v39  ;;  %v11593_v19 = vmul.f32 0.375, %v11572_v60  ;;  %v11615_v0 = vmul.f32 0.375, %v11534_v8  ;;  %v11616_v61 = vmul.f32 0.375, %v11535_v51  ;;  %v11617_v26 = vmul.f32 0.375, %v11536_v6  ;;  %v13590_v51 = vld [vmem:[%s16157_s24 + $0x80] ss:$8 sps:$4 sm:$0xff]  }
 0x496   : > { %15221 = vmatprep.mubr.bf16.mxu0 %v20534_v38  ;;  %15226 = vmatpush3.bf16.msra.mxu0 %v16043_v44  ;;  %v11571_v44 = vunpack.c.l.bf16 %v13623_v41  ;;  %v11618_v1 = vmul.f32 0.375, %v11537_v32  ;;  %v11696_v31 = vmul.f32 0.125, %v11570_v33  ;;  %v11601_v30 = vadd.f32 %v11592_v12, %v11583_v40  ;;  %v11262_v38 = vld [vmem:[%s16157_s24 + $0x44] sm:$0x1]  ;;  %v13593_v33 = vld [vmem:[%s16157_s24 + $0x8c] sm:$0x1] }
 0x497   : > { %15227 = vmatprep.subr.bf16.mxu0 %v16044_v59  ;;  %v11602_v52 = vadd.f32 %v11593_v19, %v11584_v2  ;;  %v11656_v58 = vrot.slane %v11615_v0, 1  ;;  %v11657_v4 = vrot.slane %v11616_v61, 1  ;;  %v11659_v46 = vrot.slane %v11617_v26, 1 }
 0x498   : > { %v11697_v10 = vmul.f32 0.125, %v11571_v44  ;;  %v11660_v28 = vrot.slane %v11618_v1, 1  ;;  %v11698_v36 = vmul.f32 0.125, %v11572_v60  ;;  %v11699_v48 = vmul.f32 0.125, %v11573_v7 }
 0x499   : > { %v20536_v24 = vpack.c.bf16 %v20526_v62, %v20525_v25  ;;  %v11658_v13 = vsel %vm8774_vm2, %v11656_v58, %v11657_v4  ;;  %v11771_v21 = vmul.f32 0.125, %v19772_v29  ;;  %v11259_v62 = vld [vmem:[%s16157_s24 + $0x38] ss:$8 sps:$4 sm:$0xff]   ;;  %v11772_v16 = vmul.f32 0.125, %v11502_v42 }
 0x49a   : > { %15228 = vmatpush3.bf16.msra.mxu0 %v16044_v59  ;;  %v20535_v59 = vpack.c.bf16 %v19584_v14, %v20514_v11  ;;  %v11737_v14 = vrot.slane %v11696_v31, 1  ;;  %v11738_v11 = vrot.slane %v11697_v10, 1  ;;  %v11661_v8 = vsel %vm8774_vm2, %v11659_v46, %v11660_v28 }
 0x49b   : > { %15229 = vmatprep.subr.bf16.mxu0 %v16045_v27  ;;  %v11682_v15 = vadd.f32 %v11658_v13, %v11601_v30  ;;  %v11740_v39 = vrot.slane %v11698_v36, 1  ;;  %v11741_v25 = vrot.slane %v11699_v48, 1  ;;  %v11683_v43 = vadd.f32 %v11661_v8, %v11602_v52  ;;  %v16049_v30 = vld [vmem:[%s19946_s3 + $0x1f0] sm:$0xff]  }
 0x49c   : > { %v11739_v49 = vsel %vm8774_vm2, %v11737_v14, %v11738_v11  ;;  %v11779_v41 = vmul.f32 0.375, %v19791_v54  ;;  %v11795_v57 = vmul.f32 0.375, %v11502_v42  ;;  %v11796_v3 = vmul.f32 0.375, %v19820_v18  ;;  %v16048_v54 = vld [vmem:[%s19946_s3 + $0x1e8] sm:$0xff]  }
 0x49d   : > { %15222 = vmatmul.mubr.bf16.gmra.mrb[20].mxu0 %v20535_v59  ;;  %v11742_v29 = vsel %vm8774_vm2, %v11740_v39, %v11741_v25  ;;  %v11763_v53 = vadd.f32 %v11739_v49, %v11682_v15  ;;  %v11277_v6 = vunpack.c.l.bf16 %v11259_v62  ;;  %v11278_v32 = vunpack.c.l.bf16 %v11260_v34  ;;  %v16050_v34 = vld [vmem:[%s19946_s3 + $0x1f8] sm:$0xff]  }
 0x49e   : > { %15230 = vmatpush3.bf16.msra.mxu0 %v16045_v27  ;;  %15241 = vmatprep.mubr.bf16.mxu0 %v20536_v24  ;;  %v19846_v27 = vadd.f32 %v11742_v29, %v11683_v43  ;;  %v11787_v23 = vadd.f32 %v11779_v41, %v11771_v21  ;;  %v11279_v60 = vunpack.c.h.bf16 %v11259_v62  ;;  %v11280_v42 = vunpack.c.l.bf16 %v11262_v38  ;;  %v13608_v24 = vld [vmem:[%s16157_s24 + $0xc8] ss:$8 sps:$4 sm:$0xff]   ;;  %v13609_v21 = vld [vmem:[%s16157_s24 + $0xcc] sm:$0x1]  ;;  %v13611_v62 = vld [vmem:[%s16157_s24 + $0xd4] sm:$0x1] }
 0x49f   : > { %15231 = vmatprep.subr.bf16.mxu0 %v16046_v47  ;;  %v11780_v55 = vmul.f32 0.375, %v11763_v53  ;;  %v11811_v44 = vmul.f32 0.125, %v11763_v53  ;;  %v11313_v2 = vunpack.c.l.bf16 %v13590_v51  ;;  %v11314_v12 = vunpack.c.l.bf16 %v13591_v22  ;;  %v13626_v38 = vld [vmem:[%s16157_s24 + $0x110] ss:$8 sps:$4 sm:$0xff]   ;;  %v13627_v29 = vld [vmem:[%s16157_s24 + $0x114] sm:$0x1] }
 0x4a0   : > { %v11803_v7 = vadd.f32 %v11795_v57, %v11787_v23  ;;  %v11812_v40 = vmul.f32 0.125, %v19846_v27  ;;  %v11315_v0 = vunpack.c.h.bf16 %v13590_v51  ;;  %v11316_v61 = vunpack.c.l.bf16 %v13593_v33  ;;  %v13629_v33 = vld [vmem:[%s16157_s24 + $0x11c] sm:$0x1] }
 0x4a1   : > { %v11788_v19 = vadd.f32 %v11780_v55, %v11772_v16  ;;  %v11325_v1 = vmul.f32 0.125, %v11279_v60  ;;  %v11333_v31 = vmul.f32 0.375, %v11313_v2  ;;  %v11358_v10 = vmul.f32 0.375, %v11277_v6 }
 0x4a2   : > { %15232 = vmatpush3.bf16.msra.mxu0 %v16046_v47  ;;  %v11324_v47 = vmul.f32 0.125, %v11277_v6  ;;  %v11819_v26 = vadd.f32 %v11811_v44, %v11803_v7  ;;  %v11334_v58 = vmul.f32 0.375, %v11315_v0  ;;  %v11359_v4 = vmul.f32 0.375, %v11278_v32 }
 0x4a3   : > { %15233 = vmatprep.subr.bf16.mxu0 %v16047_v9  ;;  %v11804_v52 = vadd.f32 %v11796_v3, %v11788_v19  ;;  %v11360_v59 = vmul.f32 0.375, %v11279_v60  ;;  %v11361_v28 = vmul.f32 0.375, %v11280_v42  ;;  %v11401_v36 = vrot.slane %v11358_v10, 1  ;;  %v16051_v42 = vld [vmem:[%s19946_s3 + $0x200] sm:$0xff]  }
 0x4a4   : > { %v11342_v46 = vadd.f32 %v11333_v31, %v11324_v47  ;;  %v11439_v48 = vmul.f32 0.125, %v11313_v2  ;;  %v11343_v13 = vadd.f32 %v11334_v58, %v11325_v1  ;;  %v11402_v14 = vrot.slane %v11359_v4, 1  ;;  %v16053_v58 = vld [vmem:[%s19946_s3 + $0x208] sm:$0xff]  }
 0x4a5   : > { %v11404_v11 = vrot.slane %v11360_v59, 1  ;;  %v11405_v8 = vrot.slane %v11361_v28, 1  ;;  %v11440_v15 = vmul.f32 0.125, %v11314_v12  ;;  %v11441_v39 = vmul.f32 0.125, %v11315_v0 }
 0x4a6   : > { %15234 = vmatpush3.bf16.msra.mxu0 %v16047_v9  ;;  %v11820_v9 = vadd.f32 %v11812_v40, %v11804_v52  ;;  %v11442_v25 = vmul.f32 0.125, %v11316_v61  ;;  %v11403_v49 = vsel %vm8774_vm2, %v11401_v36, %v11402_v14  ;;  %v11482_v16 = vrot.slane %v11439_v48, 1  ;;  %v20538_v14 = vld [vmem:[#allocation82_spill] sm:$0xff] }
 0x4a7   : > { %15235 = vmatprep.subr.bf16.mxu0 %v16048_v54  ;;  %v11538_v41 = vunpack.c.l.bf16 %v13608_v24  ;;  %v11406_v53 = vsel %vm8774_vm2, %v11404_v11, %v11405_v8  ;;  %v11423_v57 = vadd.f32 %v11403_v49, %v11342_v46  ;;  %v11483_v3 = vrot.slane %v11440_v15, 1 }
 0x4a8   : > { %v11825_v43 = vpack.c.bf16 %v11820_v9, %v11819_v26  ;;  %v11485_v51 = vrot.slane %v11441_v39, 1  ;;  %v19868_v22 = vadd.f32 %v19659_v63, %v19571_v20  ;;  %v11486_v23 = vrot.slane %v11442_v25, 1 }
 0x4a9   : > { %v11539_v6 = vunpack.c.l.bf16 %v13609_v21  ;;  %v11540_v32 = vunpack.c.h.bf16 %v13608_v24  ;;  %v11541_v55 = vunpack.c.l.bf16 %v13611_v62  ;;  %v11574_v44 = vunpack.c.l.bf16 %v13626_v38 }
 0x4aa   : > { %15236 = vmatpush3.bf16.msra.mxu0 %v16048_v54  ;;  %15293 = vmatprep.mubr.bf16.mxu1 %v11825_v43  ;;  %v11484_v54 = vsel %vm8774_vm2, %v11482_v16, %v11483_v3  ;;  %v11575_v60 = vunpack.c.l.bf16 %v13627_v29  ;;  %v11424_v7 = vadd.f32 %v11406_v53, %v11343_v13  ;;  %v11487_v20 = vsel %vm8774_vm2, %v11485_v51, %v11486_v23  ;;  %v20537_v13 = vld [vmem:[#allocation64_spill] sm:$0xff]  ;;  %v16055_v16 = vld [vmem:[%s19946_s3 + $0x210] sm:$0xff]  }
 0x4ab   : > { %15237 = vmatprep.subr.bf16.mxu0 %v16049_v30  ;;  %v11504_v63 = vadd.f32 %v11484_v54, %v11423_v57  ;;  %v11576_v40 = vunpack.c.h.bf16 %v13626_v38  ;;  %v11577_v2 = vunpack.c.l.bf16 %v13629_v33  ;;  %v11585_v12 = vmul.f32 0.125, %v11538_v41  ;;  %v16057_v54 = vld [vmem:[%s19946_s3 + $0x218] sm:$0xff]  }
 0x4ac   : > { %v11586_v19 = vmul.f32 0.125, %v11540_v32  ;;  %v11594_v0 = vmul.f32 0.375, %v11574_v44  ;;  %v11619_v47 = vmul.f32 0.375, %v11538_v41  ;;  %v11620_v26 = vmul.f32 0.375, %v11539_v6 }
 0x4ad   : > { %v11595_v61 = vmul.f32 0.375, %v11576_v40  ;;  %v11621_v1 = vmul.f32 0.375, %v11540_v32  ;;  %v11622_v10 = vmul.f32 0.375, %v11541_v55  ;;  %v11701_v52 = vmul.f32 0.125, %v11575_v60  ;;  %v20541_v32 = vld [vmem:[#allocation19_spill] sm:$0xff] }
 0x4ae   : > { %15238 = vmatpush3.bf16.msra.mxu0 %v16049_v30  ;;  %v11603_v31 = vadd.f32 %v11594_v0, %v11585_v12  ;;  %v11700_v30 = vmul.f32 0.125, %v11574_v44  ;;  %v11662_v59 = vrot.slane %v11619_v47, 1  ;;  %v11663_v46 = vrot.slane %v11620_v26, 1  ;;  %v20544_v12 = vld [vmem:[#allocation79_spill] sm:$0xff] }
 0x4af   : > { %15239 = vmatprep.subr.bf16.mxu0 %v16050_v34  ;;  %v11604_v4 = vadd.f32 %v11595_v61, %v11586_v19  ;;  %v11665_v28 = vrot.slane %v11621_v1, 1  ;;  %v11666_v36 = vrot.slane %v11622_v10, 1  ;;  %v11702_v48 = vmul.f32 0.125, %v11576_v40  ;;  %v16061_v40 = vld [vmem:[%s19946_s3 + $0x228] sm:$0xff]  }
 0x4b0   : > { %v11703_v24 = vmul.f32 0.125, %v11577_v2  ;;  %v11743_v9 = vrot.slane %v11700_v30, 1  ;;  %v20539_v11 = vpack.c.bf16 %v20537_v13, %v20538_v14  ;;  %v11505_v21 = vadd.f32 %v11487_v20, %v11424_v7  ;;  %v20543_v2 = vld [vmem:[#allocation10_spill] sm:$0xff]  ;;  %v20547_v61 = vld [vmem:[#allocation12_spill] sm:$0xff] }
 0x4b1   : > { %v11664_v8 = vsel %vm8774_vm2, %v11662_v59, %v11663_v46  ;;  %v11744_v15 = vrot.slane %v11701_v52, 1  ;;  %v11773_v39 = vmul.f32 0.125, %v19820_v18  ;;  %v20540_v25 = vpack.c.bf16 %v20528_v17, %v20527_v37  ;;  %v13575_v59 = vld [vmem:[%s19947_s4] ss:$0 sm:$0xff] }
 0x4b2   : > { %15240 = vmatpush3.bf16.msra.mxu0 %v16050_v34  ;;  %v11667_v62 = vsel %vm8774_vm2, %v11665_v28, %v11666_v36  ;;  %v11684_v34 = vadd.f32 %v11664_v8, %v11603_v31  ;;  %v11746_v43 = vrot.slane %v11702_v48, 1  ;;  %v11747_v49 = vrot.slane %v11703_v24, 1 }
 0x4b3   : > { %15249 = vmatprep.subr.bf16.mxu0 %v16051_v42  ;;  %v11685_v41 = vadd.f32 %v11667_v62, %v11604_v4  ;;  %v11745_v38 = vsel %vm8774_vm2, %v11743_v9, %v11744_v15  ;;  %v11781_v18 = vmul.f32 0.375, %v19846_v27  ;;  %v11797_v29 = vmul.f32 0.375, %v11504_v63 }
 0x4b4   : > { %v11748_v37 = vsel %vm8774_vm2, %v11746_v43, %v11747_v49  ;;  %v11765_v17 = vadd.f32 %v11745_v38, %v11684_v34  ;;  %v11774_v53 = vmul.f32 0.125, %v11504_v63  ;;  %v11798_v23 = vmul.f32 0.375, %v11505_v21 }
 0x4b5   : > { %15242 = vmatmul.mubr.bf16.vlgmr.msra.gmra.mrb[16].mxu0 %v20539_v11  ;;  %v11766_v57 = vadd.f32 %v11748_v37, %v11685_v41  ;;  %v11789_v3 = vadd.f32 %v11781_v18, %v11773_v39  ;;  %v10919_v33 = vpack.c.bf16 %v19868_v22, %v20541_v32  ;;  %v20542_v60 = vpack.c.bf16 %v19183_v5, %v20506_v35  ;;  %v16059_v22 = vld [vmem:[%s19946_s3 + $0x220] sm:$0xff]   ;;  %v16063_v5 = vld [vmem:[%s19946_s3 + $0x230] sm:$0xff]   ;;  %v16065_v35 = vld [vmem:[%s19946_s3 + $0x238] sm:$0xff]  }
 0x4b6   : > { %15245 = vmatprep.mubr.bf16.mxu0 %v20540_v25  ;;  %15250 = vmatpush3.bf16.msra.mxu0 %v16051_v42  ;;  %v11782_v51 = vmul.f32 0.375, %v11765_v17  ;;  %v11813_v6 = vmul.f32 0.125, %v11765_v17  ;;  %v20545_v19 = vpack.c.bf16 %v20543_v2, %v20544_v12  ;;  %v20546_v0 = vpack.c.bf16 %v20508_v45, %v20507_v50 }
 0x4b7   : > { %15251 = vmatprep.subr.bf16.mxu0 %v16053_v58  ;;  %v11805_v27 = vadd.f32 %v11797_v29, %v11789_v3  ;;  %v11814_v44 = vmul.f32 0.125, %v11766_v57  ;;  %v20548_v47 = vpack.c.bf16 %v19606_v56, %v20547_v61 }
 0x4b8   : > { %v11790_v55 = vadd.f32 %v11782_v51, %v11774_v53 }
 0x4b9   : > { %v11821_v7 = vadd.f32 %v11813_v6, %v11805_v27 }
 0x4ba   : > { %15252 = vmatpush3.bf16.msra.mxu0 %v16053_v58  ;;  %v11806_v42 = vadd.f32 %v11798_v23, %v11790_v55 }
 0x4bb   : > { %15253 = vmatprep.subr.bf16.mxu0 %v16055_v16 }
 0x4bc   : > { %v11822_v20 = vadd.f32 %v11814_v44, %v11806_v42 }
 0x4bd   : > { %15246 = vmatmul.mubr.bf16.gmra.mrb[20].mxu0 %v10919_v33 }
 0x4be   : > { %15254 = vmatpush3.bf16.msra.mxu0 %v16055_v16  ;;  %15265 = vmatprep.mubr.bf16.mxu0 %v20542_v60  ;;  %v11826_v63 = vpack.c.bf16 %v11822_v20, %v11821_v7 }
 0x4bf   : > { %15255 = vmatprep.subr.bf16.mxu0 %v16057_v54 }
 0x4c0   : > { %15294 = vmatmul.mubr.bf16.gmra.mrb[28].mxu1 %v11826_v63 }
 0x4c2   : > { %15256 = vmatpush3.bf16.msra.mxu0 %v16057_v54 }
 0x4c3   : > { %15257 = vmatprep.subr.bf16.mxu0 %v16059_v22 }
 0x4c6   : > { %15258 = vmatpush3.bf16.msra.mxu0 %v16059_v22 }
 0x4c7   : > { %15259 = vmatprep.subr.bf16.mxu0 %v16061_v40 }
 0x4ca   : > { %15260 = vmatpush3.bf16.msra.mxu0 %v16061_v40 }
 0x4cb   : > { %15261 = vmatprep.subr.bf16.mxu0 %v16063_v5 }
 0x4ce   : > { %15262 = vmatpush3.bf16.msra.mxu0 %v16063_v5 }
 0x4cf   : > { %15263 = vmatprep.subr.bf16.mxu0 %v16065_v35 }
 0x4d2   : > { %15264 = vmatpush3.bf16.msra.mxu0 %v16065_v35 }
 0x4d5   : > { %15266 = vmatmul.mubr.bf16.vlgmr.msra.gmra.mrb[16].mxu0 %v20545_v19 }
 0x4d6   : > { %15269 = vmatprep.mubr.bf16.mxu0 %v20546_v0 }
 0x4dd   : > { %15270 = vmatmul.mubr.bf16.gmra.mrb[20].mxu0 %v20548_v47 }
 0x567   : > { %v15291_v26 = vpop.f32.mrb[24].mxu1 }
 0x568   : > { %v11925_v1 = vpop.f32.mrb[25].mxu1 }
 0x569   : > { %v15292_v31 = vpop.f32.mrb[26].mxu1 }
 0x56a   : > { %v11928_v10 = vpop.f32.mrb[27].mxu1 }
 0x593   : > { %v15295_v30 = vpop.f32.mrb[28].mxu1 }
 0x594   : > { %v11941_v52 = vpop.f32.mrb[29].mxu1 }
 0x595   : > { %v15296_v58 = vpop.f32.mrb[30].mxu1 }
 0x596   : > { %v11944_v4 = vpop.f32.mrb[31].mxu1 }
 0x5a8   : > { %v15267_v46 = vpop.f32.mrb[16].mxu0 }
 0x5a9   : > { %v11215_v50 = vadd.f32 %v15267_v46, %v13575_v59  ;;  %v11167_v45 = vpop.f32.mrb[17].mxu0 }
 0x5aa   : > { %v11213_v28 = vadd.f32 %v13575_v59, %v11167_v45  ;;  %v15268_v36 = vpop.f32.mrb[18].mxu0 }
 0x5ab   : > { %v11231_v56 = vmul.f32 0.2, %v11215_v50  ;;  %v11216_v48 = vadd.f32 %v15268_v36, %v13575_v59  ;;  %vm11223_vm6 = vcmp.ge.f32.partialorder %v11215_v50, 0.0  ;;  %v11170_v24 = vpop.f32.mrb[19].mxu0 }
 0x5ac   : > { %v11229_v9 = vmul.f32 0.2, %v11213_v28  ;;  %v11214_v13 = vadd.f32 %v13575_v59, %v11170_v24  ;;  %vm11221_vm7 = vcmp.ge.f32.partialorder %v11213_v28, 0.0 }
 0x5ad   : > { %v11232_v14 = vmul.f32 0.2, %v11216_v48  ;;  %v11239_v11 = vsel %vm11223_vm6, %v11215_v50, %v11231_v56  ;;  %vm11224_vm8 = vcmp.ge.f32.partialorder %v11216_v48, 0.0 }
 0x5ae   : > { %v11958_v21 = vadd.f32 %v15291_v26, %v11239_v11  ;;  %v11230_v8 = vmul.f32 0.2, %v11214_v13  ;;  %v11237_v15 = vsel %vm11221_vm7, %v11213_v28, %v11229_v9  ;;  %vm11222_vm9 = vcmp.ge.f32.partialorder %v11214_v13, 0.0 }
 0x5af   : > { %v11956_v39 = vadd.f32 %v11925_v1, %v11237_v15  ;;  %v11240_v25 = vsel %vm11224_vm8, %v11216_v48, %v11232_v14 }
 0x5b0   : > { %11966 = vst [vmem:[%s19930_s15 + $0x10] sm:$0xff] %v11958_v21  ;;  %v11959_v62 = vadd.f32 %v15292_v31, %v11240_v25  ;;  %v11238_v34 = vsel %vm11222_vm9, %v11214_v13, %v11230_v8  ;;  %v15271_v43 = vpop.f32.mrb[20].mxu0 }
 0x5b1   : > { %11964 = vst [vmem:[%s19930_s15] sm:$0xff] %v11956_v39  ;;  %v11957_v49 = vadd.f32 %v11928_v10, %v11238_v34  ;;  %v11219_v16 = vadd.f32 %v15271_v43, %v13575_v59  ;;  %v11183_v41 = vpop.f32.mrb[21].mxu0 }
 0x5b2   : > { %11967 = vst [vmem:[%s19930_s15 + $0x18] sm:$0xff] %v11959_v62  ;;  %v11217_v38 = vadd.f32 %v13575_v59, %v11183_v41  ;;  %v15272_v18 = vpop.f32.mrb[22].mxu0 }
 0x5b3   : > { %11965 = vst [vmem:[%s19930_s15 + $0x8] sm:$0xff] %v11957_v49  ;;  %v11235_v29 = vmul.f32 0.2, %v11219_v16  ;;  %v11220_v37 = vadd.f32 %v15272_v18, %v13575_v59  ;;  %vm11227_vm10 = vcmp.ge.f32.partialorder %v11219_v16, 0.0  ;;  %v11186_v17 = vpop.f32.mrb[23].mxu0 }
 0x5b4   : > { %v11233_v53 = vmul.f32 0.2, %v11217_v38  ;;  %v11218_v57 = vadd.f32 %v13575_v59, %v11186_v17  ;;  %vm11225_vm11 = vcmp.ge.f32.partialorder %v11217_v38, 0.0 }
 0x5b5   : > { %v11236_v3 = vmul.f32 0.2, %v11220_v37  ;;  %v11243_v51 = vsel %vm11227_vm10, %v11219_v16, %v11235_v29  ;;  %vm11228_vm2 = vcmp.ge.f32.partialorder %v11220_v37, 0.0 }
 0x5b6   : > { %v11962_v23 = vadd.f32 %v15295_v30, %v11243_v51  ;;  %v11234_v6 = vmul.f32 0.2, %v11218_v57  ;;  %v11241_v32 = vsel %vm11225_vm11, %v11217_v38, %v11233_v53  ;;  %vm11226_vm12 = vcmp.ge.f32.partialorder %v11218_v57, 0.0 }
 0x5b7   : > { %v11960_v33 = vadd.f32 %v11941_v52, %v11241_v32  ;;  %v11244_v54 = vsel %vm11228_vm2, %v11220_v37, %v11236_v3 }
 0x5b8   : > { %11970 = vst [vmem:[%s19930_s15 + $0x30] sm:$0xff] %v11962_v23  ;;  %v11963_v27 = vadd.f32 %v15296_v58, %v11244_v54  ;;  %v11242_v55 = vsel %vm11226_vm12, %v11218_v57, %v11234_v6 }
 0x5b9   : > { %11968 = vst [vmem:[%s19930_s15 + $0x20] sm:$0xff] %v11960_v33  ;;  %v11961_v44 = vadd.f32 %v11944_v4, %v11242_v55 }
 0x5ba   : > { %11971 = vst [vmem:[%s19930_s15 + $0x38] sm:$0xff] %v11963_v27 }
 0x5bb   : > { %11969 = vst [vmem:[%s19930_s15 + $0x28] sm:$0xff] %v11961_v44 }
 0x5bc PF: > { %s16_s21 = sadd.s32 1, %s16075_s21  }
 0x5bd   : > { %p13_p4 = scmp.ge.s32.totalorder %s16_s21, 4  }
 0x5bf   :  { %15 = sbr.rel (!%p13_p4) target bundleno = 1 (0x1), region = 108 }

</bundles_post_ra>
